<compile_context>
chip_gen: v7x
topology: tpu7x:2x2x1
jax: 0.10.0
libtpu: 0.0.40
codegen_flags: <defaults>
</compile_context>

<pallas_src>
import numpy as np
import jax
import jax.numpy as jnp
from jax.experimental import pallas as pl
from jax.experimental.pallas import tpu as pltpu

IN_CH = 2
NUM_JOINTS = 21
IN_FEAT = IN_CH * NUM_JOINTS          # 42
T = 5                                 # frames (reshape(B, 5, -1) in the reference)
SP1 = 256                             # first spatial-MLP width
H = 128                               # hidden_size
NUM_CLASSES = 4
CLH = 128                             # classifier hidden width, lane-padded from 64
CL_PAD = 128                          # classifier output width, lane-padded from 4
BF16 = jnp.bfloat16
F32 = jnp.float32


# ---------------------------------------------------------------------------
# LSTM cell
# ---------------------------------------------------------------------------

def _lstm_cell(gx, h, c, whh_ref):
    """One LSTM step. gx = x@W_ih + (b_ih + b_hh), f32 (B, 4H), gate order (i,f,o,g).

    h/c may be None (zero initial state): the recurrent matmul and f*c are
    dropped entirely. W_hh is read from its ref at the point of use (never
    hoisted into a long-lived value) so the per-step live set stays tiny.
    """
    if h is None:
        g = gx
    else:
        g = gx + jnp.dot(h.astype(BF16), whh_ref[...], preferred_element_type=F32)
    # sigmoid via EUP exp + approx reciprocal; one contiguous (B, 3H) slab.
    s = pl.reciprocal(1.0 + jnp.exp(-g[:, 0:3 * H]), approx=True)
    i_g = s[:, 0:H]
    f_g = s[:, H:2 * H]
    o_g = s[:, 2 * H:3 * H]
    g_g = jnp.tanh(g[:, 3 * H:4 * H])
    c_new = i_g * g_g if c is None else f_g * c + i_g * g_g
    h_new = o_g * jnp.tanh(c_new)
    return h_new, c_new


# ---------------------------------------------------------------------------
# Fused kernel
# ---------------------------------------------------------------------------

def _skeleton_lstm_kernel(
    x_ref,                                       # (B, IN_FEAT*T)  raw flattened input
    sp_w1_ref, sp_b1_ref,                        # (IN_FEAT*T, T*SP1) f32, (1, T*SP1)
    sp_w2_ref, sp_b2_ref,                        # (SP1, H) bf16, (1, H)
    wih1_ref, b1_ref,                            # (H, 8H) bf16 [fwd|bwd], (1, 8H)
    whh1f_ref, whh1b_ref,                        # (H, 4H) bf16 each
    wih2f_ref, whh2f_ref, b2f_ref,               # (2H, 4H) bf16, (H, 4H) bf16, (1, 4H)
    wih2b_ref, whh2b_ref, b2b_ref,
    cl_w1_ref, cl_b1_ref, cl_w2_ref, cl_b2_ref,  # lane-padded classifier
    o_ref,                                       # (B, CL_PAD)
    gx1_scr,                                     # (T, B, 8H) f32 layer-1 gate pre-acts
    gx2a_scr,                                    # (T, B, 4H) f32 layer-2 fwd, fwd-half + bias
    gx2b_scr,                                    # (T, B, 4H) f32 layer-2 fwd, bwd-half
):
    # ---- spatial MLP layer 1: the (0,3,1,2) permute + per-frame Linear(42,256)
    # are folded into one block-sparse weight, so the kernel eats the raw
    # flattened input: (B, 210) @ (210, 1280). ----
    h1 = jnp.dot(x_ref[...], sp_w1_ref[...],
                 preferred_element_type=F32) + sp_b1_ref[...]
    h1 = jnp.maximum(h1, 0.0)                                        # (B, T*SP1)

    # ---- spatial MLP layer 2 + hoisted layer-1 input matmul, per frame.
    # Gate pre-activations go straight to VMEM scratch; both LSTM directions
    # share one fused W_ih (lanes [0:4H]=fwd, [4H:8H]=bwd). ----
    for t in range(T):
        h1_t = h1[:, t * SP1:(t + 1) * SP1].astype(BF16)
        f_t = jnp.dot(h1_t, sp_w2_ref[...],
                      preferred_element_type=F32) + sp_b2_ref[...]
        f_t = jnp.maximum(f_t, 0.0).astype(BF16)                     # (B, H)
        gx1_scr[t] = jnp.dot(f_t, wih1_ref[...],
                             preferred_element_type=F32) + b1_ref[...]

    # ---- LSTM layer 1 (bidirectional), both directions interleaved.
    # Layer-2's input matmuls are issued inside this loop, per timestep, as
    # soon as the producing hidden state exists (no full-slab y1 sync point). ----
    hf = cf = hb = cb = None
    gx2_last_b = None                 # layer-2 backward needs only position T-1
    for s in range(T):
        tf = s                        # forward position
        tb = T - 1 - s                # backward position (static reverse index)
        hf, cf = _lstm_cell(gx1_scr[tf][:, 0:4 * H], hf, cf, whh1f_ref)
        hb, cb = _lstm_cell(gx1_scr[tb][:, 4 * H:8 * H], hb, cb, whh1b_ref)
        hf16 = hf.astype(BF16)
        hb16 = hb.astype(BF16)
        # layer-2 forward gate pre-activations, split into y1-forward-half and
        # y1-backward-half contributions (overlap with the layer-1 latency chain)
        gx2a_scr[tf] = (jnp.dot(hf16, wih2f_ref[0:H, :],
                                preferred_element_type=F32) + b2f_ref[...])
        gx2b_scr[tb] = jnp.dot(hb16, wih2f_ref[H:2 * H, :],
                               preferred_element_type=F32)
        if s == 0:        # hb here is the backward state at position T-1
            gx2_last_b = (jnp.dot(hb16, wih2b_ref[H:2 * H, :],
                                  preferred_element_type=F32) + b2b_ref[...])
        if s == T - 1:    # hf here is the forward state at position T-1
            gx2_last_b = gx2_last_b + jnp.dot(hf16, wih2b_ref[0:H, :],
                                              preferred_element_type=F32)

    # ---- LSTM layer 2, forward direction: full recurrence, keep final h ----
    h2f = c2f = None
    for t in range(T):
        h2f, c2f = _lstm_cell(gx2a_scr[t] + gx2b_scr[t], h2f, c2f, whh2f_ref)

    # ---- LSTM layer 2, backward direction: its output at the LAST sequence
    # position is produced by its FIRST step (zero state, input y1[T-1]). ----
    h2b, _ = _lstm_cell(gx2_last_b, None, None, whh2b_ref)

    # ---- classifier: concat(h2f, h2b) @ W replaced by a split matmul;
    # hidden/output widths lane-padded to 128 so the final store is dense. ----
    hc = (jnp.dot(h2f.astype(BF16), cl_w1_ref[0:H, :], preferred_element_type=F32)
          + jnp.dot(h2b.astype(BF16), cl_w1_ref[H:2 * H, :], preferred_element_type=F32)
          + cl_b1_ref[...])
    hc = jnp.maximum(hc, 0.0).astype(BF16)
    o_ref[...] = jnp.dot(hc, cl_w2_ref[...],
                         preferred_element_type=F32) + cl_b2_ref[...]


# ---------------------------------------------------------------------------
# pallas_call wrapper (single fused call, everything VMEM-resident, no grid)
# ---------------------------------------------------------------------------

def _fused_forward(x_flat, params):
    b = x_flat.shape[0]
    args = (
        x_flat,
        params['sp_w1'], params['sp_b1'], params['sp_w2'], params['sp_b2'],
        params['l1_wih'], params['l1_b'], params['l1f_whh'], params['l1b_whh'],
        params['l2f_wih'], params['l2f_whh'], params['l2f_b'],
        params['l2b_wih'], params['l2b_whh'], params['l2b_b'],
        params['cl_w1'], params['cl_b1'], params['cl_w2'], params['cl_b2'],
    )
    # Total VMEM footprint ~3 MiB: fits every generation (incl. v7x 64 MiB)
    # without tiling, pipelining or vmem_limit tweaks.
    # TODO(synk): for large deployment batches, grow B (multiples of 8) first;
    # only then consider a batch grid with dimension_semantics=("parallel",)
    # to use the second v7x TensorCore.
    return pl.pallas_call(
        _skeleton_lstm_kernel,
        out_shape=jax.ShapeDtypeStruct((b, CL_PAD), jnp.float32),
        in_specs=[pl.BlockSpec(memory_space=pltpu.MemorySpace.VMEM) for _ in args],
        out_specs=pl.BlockSpec(memory_space=pltpu.MemorySpace.VMEM),
        scratch_shapes=[
            pltpu.VMEM((T, b, 8 * H), jnp.float32),   # layer-1 gates (fwd|bwd)
            pltpu.VMEM((T, b, 4 * H), jnp.float32),   # layer-2 fwd gates, fwd half
            pltpu.VMEM((T, b, 4 * H), jnp.float32),   # layer-2 fwd gates, bwd half
        ],
    )(*args)


@jax.jit
def skeleton_lstm_forward(x, params):
    B, C, J, Tin = x.shape
    assert C == IN_CH and J == NUM_JOINTS and Tin == T
    # Contiguous reshape only (free); the (0,3,1,2) permutation is folded into
    # sp_w1, so there is no separate transpose/pad op before the fused kernel.
    x_flat = x.reshape(B, C * J * Tin).astype(jnp.float32)
    out_pad = _fused_forward(x_flat, params)
    return out_pad[:, :NUM_CLASSES]


# ---------------------------------------------------------------------------
# Parameter initialization (deterministic, PyTorch-style uniform(-k, k))
# ---------------------------------------------------------------------------

def _uinit(key, shape, fan_in):
    k = 1.0 / np.sqrt(fan_in)
    return jax.random.uniform(key, shape, jnp.float32, -k, k)


def _perm_gates(w):
    """PyTorch LSTM gate order (i, f, g, o) -> kernel gate order (i, f, o, g)."""
    return jnp.concatenate([w[..., 0:2 * H], w[..., 3 * H:4 * H], w[..., 2 * H:3 * H]],
                           axis=-1)


def init_params(key):
    keys = iter(jax.random.split(key, 32))
    p = {}

    # spatial_features: Linear(42,256) ReLU Drop Linear(256,128) ReLU Drop.
    # The per-frame Linear(42,256) and x.permute(0,3,1,2) are folded into one
    # block-sparse weight applied to x.reshape(B, C*J*T):
    #   w1big[f*T + t, t*SP1 + k] = w1[f, k].
    w1 = np.asarray(_uinit(next(keys), (IN_FEAT, SP1), IN_FEAT))
    b1 = np.asarray(_uinit(next(keys), (1, SP1), IN_FEAT))
    w1big = np.zeros((IN_FEAT * T, T * SP1), np.float32)
    for t in range(T):
        w1big[t::T, t * SP1:(t + 1) * SP1] = w1
    p['sp_w1'] = jnp.asarray(w1big)                       # f32 (K=210 contraction)
    p['sp_b1'] = jnp.asarray(np.tile(b1, (1, T)))
    p['sp_w2'] = _uinit(next(keys), (SP1, H), SP1).astype(BF16)
    p['sp_b2'] = _uinit(next(keys), (1, H), SP1)

    # LSTM: 2 layers, bidirectional, input 128 / 256, hidden 128.
    # Weights stored transposed vs PyTorch ((in, 4H)); gate columns permuted to
    # (i, f, o, g); combined bias b = b_ih + b_hh; weights bf16, biases f32.
    def lstm_dir(d_in):
        wih = _perm_gates(_uinit(next(keys), (d_in, 4 * H), H))
        whh = _perm_gates(_uinit(next(keys), (H, 4 * H), H))
        b = _perm_gates(_uinit(next(keys), (1, 4 * H), H)
                        + _uinit(next(keys), (1, 4 * H), H))
        return wih, whh, b

    wih1f, whh1f, b1f = lstm_dir(H)
    wih1b, whh1b, b1b = lstm_dir(H)
    p['l1_wih'] = jnp.concatenate([wih1f, wih1b], axis=1).astype(BF16)   # (H, 8H)
    p['l1_b'] = jnp.concatenate([b1f, b1b], axis=1)                      # (1, 8H)
    p['l1f_whh'] = whh1f.astype(BF16)
    p['l1b_whh'] = whh1b.astype(BF16)

    wih2f, whh2f, b2f = lstm_dir(2 * H)
    wih2b, whh2b, b2b = lstm_dir(2 * H)
    p['l2f_wih'] = wih2f.astype(BF16)
    p['l2f_whh'] = whh2f.astype(BF16)
    p['l2f_b'] = b2f
    p['l2b_wih'] = wih2b.astype(BF16)
    p['l2b_whh'] = whh2b.astype(BF16)
    p['l2b_b'] = b2b

    # classifier: Linear(256,64) ReLU Drop Linear(64,4); hidden and output
    # widths lane-padded to 128 with zeros so every matmul / store stays dense.
    w1c = _uinit(next(keys), (2 * H, 64), 2 * H)
    b1c = _uinit(next(keys), (1, 64), 2 * H)
    p['cl_w1'] = jnp.zeros((2 * H, CLH), jnp.float32).at[:, :64].set(w1c).astype(BF16)
    p['cl_b1'] = jnp.zeros((1, CLH), jnp.float32).at[:, :64].set(b1c)
    w2c = _uinit(next(keys), (64, NUM_CLASSES), 64)
    b2c = _uinit(next(keys), (1, NUM_CLASSES), 64)
    p['cl_w2'] = (jnp.zeros((CLH, CL_PAD), jnp.float32)
                  .at[:64, :NUM_CLASSES].set(w2c).astype(BF16))
    p['cl_b2'] = jnp.zeros((1, CL_PAD), jnp.float32).at[:, :NUM_CLASSES].set(b2c)
    return p


# ---------------------------------------------------------------------------

if __name__ == "__main__":
    key = jax.random.PRNGKey(0)
    pkey, xkey = jax.random.split(key)
    params = init_params(pkey)
    # Input: (batch=2, channels=2, joints=21, frames=5)
    x = jax.random.normal(xkey, (2, IN_CH, NUM_JOINTS, T), jnp.float32)
    out = skeleton_lstm_forward(x, params)
    out = jax.block_until_ready(out)
    assert out.shape == (2, NUM_CLASSES), out.shape
    assert bool(jnp.all(jnp.isfinite(out)))
    print("KERNEL_OK")
</pallas_src>

<mosaic_0001>
module attributes {stable_mosaic.version = 11 : i64} {
  func.func @_skeleton_lstm_kernel(%arg0: memref<2x210xf32, #tpu.memory_space<vmem>>, %arg1: memref<210x1280xf32, #tpu.memory_space<vmem>>, %arg2: memref<1x1280xf32, #tpu.memory_space<vmem>>, %arg3: memref<256x128xbf16, #tpu.memory_space<vmem>>, %arg4: memref<1x128xf32, #tpu.memory_space<vmem>>, %arg5: memref<128x1024xbf16, #tpu.memory_space<vmem>>, %arg6: memref<1x1024xf32, #tpu.memory_space<vmem>>, %arg7: memref<128x512xbf16, #tpu.memory_space<vmem>>, %arg8: memref<128x512xbf16, #tpu.memory_space<vmem>>, %arg9: memref<256x512xbf16, #tpu.memory_space<vmem>>, %arg10: memref<128x512xbf16, #tpu.memory_space<vmem>>, %arg11: memref<1x512xf32, #tpu.memory_space<vmem>>, %arg12: memref<256x512xbf16, #tpu.memory_space<vmem>>, %arg13: memref<128x512xbf16, #tpu.memory_space<vmem>>, %arg14: memref<1x512xf32, #tpu.memory_space<vmem>>, %arg15: memref<256x128xbf16, #tpu.memory_space<vmem>>, %arg16: memref<1x128xf32, #tpu.memory_space<vmem>>, %arg17: memref<128x128xbf16, #tpu.memory_space<vmem>>, %arg18: memref<1x128xf32, #tpu.memory_space<vmem>>, %arg19: memref<2x128xf32, #tpu.memory_space<vmem>>, %arg20: memref<5x2x1024xf32, #tpu.memory_space<vmem>>, %arg21: memref<5x2x512xf32, #tpu.memory_space<vmem>>, %arg22: memref<5x2x512xf32, #tpu.memory_space<vmem>>) attributes {dimension_semantics = [], scalar_prefetch = 0 : i64, scratch_operands = 3 : i64, tpu.core_type = #tpu.core_type<tc>} {
    %c0 = arith.constant 0 : index
    %c0_0 = arith.constant 0 : index
    %0 = vector.load %arg0[%c0, %c0_0] : memref<2x210xf32, #tpu.memory_space<vmem>>, vector<2x210xf32>
    %c0_1 = arith.constant 0 : index
    %c0_2 = arith.constant 0 : index
    %1 = vector.load %arg1[%c0_1, %c0_2] : memref<210x1280xf32, #tpu.memory_space<vmem>>, vector<210x1280xf32>
    %cst = arith.constant dense<0.000000e+00> : vector<2x1280xf32>
    %2 = tpu.matmul %0, %1, %cst {dimension_numbers = #tpu.dot_dimension_numbers<[1], [0], [0], [1], [0, 0, 1, 1], [], []>} : vector<2x210xf32>, vector<210x1280xf32>, vector<2x1280xf32> -> vector<2x1280xf32>
    %c0_3 = arith.constant 0 : index
    %c0_4 = arith.constant 0 : index
    %3 = vector.load %arg2[%c0_3, %c0_4] : memref<1x1280xf32, #tpu.memory_space<vmem>>, vector<1x1280xf32>
    %4 = vector.broadcast %3 : vector<1x1280xf32> to vector<2x1280xf32>
    %5 = arith.addf %2, %4 : vector<2x1280xf32>
    %cst_5 = arith.constant 0.000000e+00 : f32
    %6 = vector.broadcast %cst_5 : f32 to vector<2x1280xf32>
    %7 = arith.maximumf %5, %6 : vector<2x1280xf32>
    %8 = vector.extract_strided_slice %7 {offsets = [0, 0], sizes = [2, 256], strides = [1, 1]} : vector<2x1280xf32> to vector<2x256xf32>
    %9 = arith.truncf %8 : vector<2x256xf32> to vector<2x256xbf16>
    %c0_6 = arith.constant 0 : index
    %c0_7 = arith.constant 0 : index
    %10 = vector.load %arg3[%c0_6, %c0_7] : memref<256x128xbf16, #tpu.memory_space<vmem>>, vector<256x128xbf16>
    %cst_8 = arith.constant dense<0.000000e+00> : vector<2x128xf32>
    %11 = tpu.matmul %9, %10, %cst_8 {dimension_numbers = #tpu.dot_dimension_numbers<[1], [0], [0], [1], [0, 0, 1, 1], [], []>} : vector<2x256xbf16>, vector<256x128xbf16>, vector<2x128xf32> -> vector<2x128xf32>
    %c0_9 = arith.constant 0 : index
    %c0_10 = arith.constant 0 : index
    %12 = vector.load %arg4[%c0_9, %c0_10] : memref<1x128xf32, #tpu.memory_space<vmem>>, vector<1x128xf32>
    %13 = vector.broadcast %12 : vector<1x128xf32> to vector<2x128xf32>
    %14 = arith.addf %11, %13 : vector<2x128xf32>
    %cst_11 = arith.constant 0.000000e+00 : f32
    %15 = vector.broadcast %cst_11 : f32 to vector<2x128xf32>
    %16 = arith.maximumf %14, %15 : vector<2x128xf32>
    %17 = arith.truncf %16 : vector<2x128xf32> to vector<2x128xbf16>
    %c0_12 = arith.constant 0 : index
    %c0_13 = arith.constant 0 : index
    %18 = vector.load %arg5[%c0_12, %c0_13] : memref<128x1024xbf16, #tpu.memory_space<vmem>>, vector<128x1024xbf16>
    %cst_14 = arith.constant dense<0.000000e+00> : vector<2x1024xf32>
    %19 = tpu.matmul %17, %18, %cst_14 {dimension_numbers = #tpu.dot_dimension_numbers<[1], [0], [0], [1], [0, 0, 1, 1], [], []>} : vector<2x128xbf16>, vector<128x1024xbf16>, vector<2x1024xf32> -> vector<2x1024xf32>
    %c0_15 = arith.constant 0 : index
    %c0_16 = arith.constant 0 : index
    %20 = vector.load %arg6[%c0_15, %c0_16] : memref<1x1024xf32, #tpu.memory_space<vmem>>, vector<1x1024xf32>
    %21 = vector.broadcast %20 : vector<1x1024xf32> to vector<2x1024xf32>
    %22 = arith.addf %19, %21 : vector<2x1024xf32>
    %c0_17 = arith.constant 0 : index
    %c0_18 = arith.constant 0 : index
    %c0_19 = arith.constant 0 : index
    %23 = vector.load %arg20[%c0_17, %c0_18, %c0_19] : memref<5x2x1024xf32, #tpu.memory_space<vmem>>, vector<1x2x1024xf32>
    %24 = vector.shape_cast %23 : vector<1x2x1024xf32> to vector<2x1024xf32>
    %25 = vector.shape_cast %22 : vector<2x1024xf32> to vector<1x2x1024xf32>
    tpu.vector_store %arg20[%c0_17, %c0_18, %c0_19], %25 {strides = array<i32>} : memref<5x2x1024xf32, #tpu.memory_space<vmem>>, vector<1x2x1024xf32>,
    %26 = vector.extract_strided_slice %7 {offsets = [0, 256], sizes = [2, 256], strides = [1, 1]} : vector<2x1280xf32> to vector<2x256xf32>
    %27 = arith.truncf %26 : vector<2x256xf32> to vector<2x256xbf16>
    %c0_20 = arith.constant 0 : index
    %c0_21 = arith.constant 0 : index
    %28 = vector.load %arg3[%c0_20, %c0_21] : memref<256x128xbf16, #tpu.memory_space<vmem>>, vector<256x128xbf16>
    %cst_22 = arith.constant dense<0.000000e+00> : vector<2x128xf32>
    %29 = tpu.matmul %27, %28, %cst_22 {dimension_numbers = #tpu.dot_dimension_numbers<[1], [0], [0], [1], [0, 0, 1, 1], [], []>} : vector<2x256xbf16>, vector<256x128xbf16>, vector<2x128xf32> -> vector<2x128xf32>
    %c0_23 = arith.constant 0 : index
    %c0_24 = arith.constant 0 : index
    %30 = vector.load %arg4[%c0_23, %c0_24] : memref<1x128xf32, #tpu.memory_space<vmem>>, vector<1x128xf32>
    %31 = vector.broadcast %30 : vector<1x128xf32> to vector<2x128xf32>
    %32 = arith.addf %29, %31 : vector<2x128xf32>
    %cst_25 = arith.constant 0.000000e+00 : f32
    %33 = vector.broadcast %cst_25 : f32 to vector<2x128xf32>
    %34 = arith.maximumf %32, %33 : vector<2x128xf32>
    %35 = arith.truncf %34 : vector<2x128xf32> to vector<2x128xbf16>
    %c0_26 = arith.constant 0 : index
    %c0_27 = arith.constant 0 : index
    %36 = vector.load %arg5[%c0_26, %c0_27] : memref<128x1024xbf16, #tpu.memory_space<vmem>>, vector<128x1024xbf16>
    %cst_28 = arith.constant dense<0.000000e+00> : vector<2x1024xf32>
    %37 = tpu.matmul %35, %36, %cst_28 {dimension_numbers = #tpu.dot_dimension_numbers<[1], [0], [0], [1], [0, 0, 1, 1], [], []>} : vector<2x128xbf16>, vector<128x1024xbf16>, vector<2x1024xf32> -> vector<2x1024xf32>
    %c0_29 = arith.constant 0 : index
    %c0_30 = arith.constant 0 : index
    %38 = vector.load %arg6[%c0_29, %c0_30] : memref<1x1024xf32, #tpu.memory_space<vmem>>, vector<1x1024xf32>
    %39 = vector.broadcast %38 : vector<1x1024xf32> to vector<2x1024xf32>
    %40 = arith.addf %37, %39 : vector<2x1024xf32>
    %c1 = arith.constant 1 : index
    %c0_31 = arith.constant 0 : index
    %c0_32 = arith.constant 0 : index
    %41 = vector.load %arg20[%c1, %c0_31, %c0_32] : memref<5x2x1024xf32, #tpu.memory_space<vmem>>, vector<1x2x1024xf32>
    %42 = vector.shape_cast %41 : vector<1x2x1024xf32> to vector<2x1024xf32>
    %43 = vector.shape_cast %40 : vector<2x1024xf32> to vector<1x2x1024xf32>
    tpu.vector_store %arg20[%c1, %c0_31, %c0_32], %43 {strides = array<i32>} : memref<5x2x1024xf32, #tpu.memory_space<vmem>>, vector<1x2x1024xf32>,
    %44 = vector.extract_strided_slice %7 {offsets = [0, 512], sizes = [2, 256], strides = [1, 1]} : vector<2x1280xf32> to vector<2x256xf32>
    %45 = arith.truncf %44 : vector<2x256xf32> to vector<2x256xbf16>
    %c0_33 = arith.constant 0 : index
    %c0_34 = arith.constant 0 : index
    %46 = vector.load %arg3[%c0_33, %c0_34] : memref<256x128xbf16, #tpu.memory_space<vmem>>, vector<256x128xbf16>
    %cst_35 = arith.constant dense<0.000000e+00> : vector<2x128xf32>
    %47 = tpu.matmul %45, %46, %cst_35 {dimension_numbers = #tpu.dot_dimension_numbers<[1], [0], [0], [1], [0, 0, 1, 1], [], []>} : vector<2x256xbf16>, vector<256x128xbf16>, vector<2x128xf32> -> vector<2x128xf32>
    %c0_36 = arith.constant 0 : index
    %c0_37 = arith.constant 0 : index
    %48 = vector.load %arg4[%c0_36, %c0_37] : memref<1x128xf32, #tpu.memory_space<vmem>>, vector<1x128xf32>
    %49 = vector.broadcast %48 : vector<1x128xf32> to vector<2x128xf32>
    %50 = arith.addf %47, %49 : vector<2x128xf32>
    %cst_38 = arith.constant 0.000000e+00 : f32
    %51 = vector.broadcast %cst_38 : f32 to vector<2x128xf32>
    %52 = arith.maximumf %50, %51 : vector<2x128xf32>
    %53 = arith.truncf %52 : vector<2x128xf32> to vector<2x128xbf16>
    %c0_39 = arith.constant 0 : index
    %c0_40 = arith.constant 0 : index
    %54 = vector.load %arg5[%c0_39, %c0_40] : memref<128x1024xbf16, #tpu.memory_space<vmem>>, vector<128x1024xbf16>
    %cst_41 = arith.constant dense<0.000000e+00> : vector<2x1024xf32>
    %55 = tpu.matmul %53, %54, %cst_41 {dimension_numbers = #tpu.dot_dimension_numbers<[1], [0], [0], [1], [0, 0, 1, 1], [], []>} : vector<2x128xbf16>, vector<128x1024xbf16>, vector<2x1024xf32> -> vector<2x1024xf32>
    %c0_42 = arith.constant 0 : index
    %c0_43 = arith.constant 0 : index
    %56 = vector.load %arg6[%c0_42, %c0_43] : memref<1x1024xf32, #tpu.memory_space<vmem>>, vector<1x1024xf32>
    %57 = vector.broadcast %56 : vector<1x1024xf32> to vector<2x1024xf32>
    %58 = arith.addf %55, %57 : vector<2x1024xf32>
    %c2 = arith.constant 2 : index
    %c0_44 = arith.constant 0 : index
    %c0_45 = arith.constant 0 : index
    %59 = vector.load %arg20[%c2, %c0_44, %c0_45] : memref<5x2x1024xf32, #tpu.memory_space<vmem>>, vector<1x2x1024xf32>
    %60 = vector.shape_cast %59 : vector<1x2x1024xf32> to vector<2x1024xf32>
    %61 = vector.shape_cast %58 : vector<2x1024xf32> to vector<1x2x1024xf32>
    tpu.vector_store %arg20[%c2, %c0_44, %c0_45], %61 {strides = array<i32>} : memref<5x2x1024xf32, #tpu.memory_space<vmem>>, vector<1x2x1024xf32>,
    %62 = vector.extract_strided_slice %7 {offsets = [0, 768], sizes = [2, 256], strides = [1, 1]} : vector<2x1280xf32> to vector<2x256xf32>
    %63 = arith.truncf %62 : vector<2x256xf32> to vector<2x256xbf16>
    %c0_46 = arith.constant 0 : index
    %c0_47 = arith.constant 0 : index
    %64 = vector.load %arg3[%c0_46, %c0_47] : memref<256x128xbf16, #tpu.memory_space<vmem>>, vector<256x128xbf16>
    %cst_48 = arith.constant dense<0.000000e+00> : vector<2x128xf32>
    %65 = tpu.matmul %63, %64, %cst_48 {dimension_numbers = #tpu.dot_dimension_numbers<[1], [0], [0], [1], [0, 0, 1, 1], [], []>} : vector<2x256xbf16>, vector<256x128xbf16>, vector<2x128xf32> -> vector<2x128xf32>
    %c0_49 = arith.constant 0 : index
    %c0_50 = arith.constant 0 : index
    %66 = vector.load %arg4[%c0_49, %c0_50] : memref<1x128xf32, #tpu.memory_space<vmem>>, vector<1x128xf32>
    %67 = vector.broadcast %66 : vector<1x128xf32> to vector<2x128xf32>
    %68 = arith.addf %65, %67 : vector<2x128xf32>
    %cst_51 = arith.constant 0.000000e+00 : f32
    %69 = vector.broadcast %cst_51 : f32 to vector<2x128xf32>
    %70 = arith.maximumf %68, %69 : vector<2x128xf32>
    %71 = arith.truncf %70 : vector<2x128xf32> to vector<2x128xbf16>
    %c0_52 = arith.constant 0 : index
    %c0_53 = arith.constant 0 : index
    %72 = vector.load %arg5[%c0_52, %c0_53] : memref<128x1024xbf16, #tpu.memory_space<vmem>>, vector<128x1024xbf16>
    %cst_54 = arith.constant dense<0.000000e+00> : vector<2x1024xf32>
    %73 = tpu.matmul %71, %72, %cst_54 {dimension_numbers = #tpu.dot_dimension_numbers<[1], [0], [0], [1], [0, 0, 1, 1], [], []>} : vector<2x128xbf16>, vector<128x1024xbf16>, vector<2x1024xf32> -> vector<2x1024xf32>
    %c0_55 = arith.constant 0 : index
    %c0_56 = arith.constant 0 : index
    %74 = vector.load %arg6[%c0_55, %c0_56] : memref<1x1024xf32, #tpu.memory_space<vmem>>, vector<1x1024xf32>
    %75 = vector.broadcast %74 : vector<1x1024xf32> to vector<2x1024xf32>
    %76 = arith.addf %73, %75 : vector<2x1024xf32>
    %c3 = arith.constant 3 : index
    %c0_57 = arith.constant 0 : index
    %c0_58 = arith.constant 0 : index
    %77 = vector.load %arg20[%c3, %c0_57, %c0_58] : memref<5x2x1024xf32, #tpu.memory_space<vmem>>, vector<1x2x1024xf32>
    %78 = vector.shape_cast %77 : vector<1x2x1024xf32> to vector<2x1024xf32>
    %79 = vector.shape_cast %76 : vector<2x1024xf32> to vector<1x2x1024xf32>
    tpu.vector_store %arg20[%c3, %c0_57, %c0_58], %79 {strides = array<i32>} : memref<5x2x1024xf32, #tpu.memory_space<vmem>>, vector<1x2x1024xf32>,
    %80 = vector.extract_strided_slice %7 {offsets = [0, 1024], sizes = [2, 256], strides = [1, 1]} : vector<2x1280xf32> to vector<2x256xf32>
    %81 = arith.truncf %80 : vector<2x256xf32> to vector<2x256xbf16>
    %c0_59 = arith.constant 0 : index
    %c0_60 = arith.constant 0 : index
    %82 = vector.load %arg3[%c0_59, %c0_60] : memref<256x128xbf16, #tpu.memory_space<vmem>>, vector<256x128xbf16>
    %cst_61 = arith.constant dense<0.000000e+00> : vector<2x128xf32>
    %83 = tpu.matmul %81, %82, %cst_61 {dimension_numbers = #tpu.dot_dimension_numbers<[1], [0], [0], [1], [0, 0, 1, 1], [], []>} : vector<2x256xbf16>, vector<256x128xbf16>, vector<2x128xf32> -> vector<2x128xf32>
    %c0_62 = arith.constant 0 : index
    %c0_63 = arith.constant 0 : index
    %84 = vector.load %arg4[%c0_62, %c0_63] : memref<1x128xf32, #tpu.memory_space<vmem>>, vector<1x128xf32>
    %85 = vector.broadcast %84 : vector<1x128xf32> to vector<2x128xf32>
    %86 = arith.addf %83, %85 : vector<2x128xf32>
    %cst_64 = arith.constant 0.000000e+00 : f32
    %87 = vector.broadcast %cst_64 : f32 to vector<2x128xf32>
    %88 = arith.maximumf %86, %87 : vector<2x128xf32>
    %89 = arith.truncf %88 : vector<2x128xf32> to vector<2x128xbf16>
    %c0_65 = arith.constant 0 : index
    %c0_66 = arith.constant 0 : index
    %90 = vector.load %arg5[%c0_65, %c0_66] : memref<128x1024xbf16, #tpu.memory_space<vmem>>, vector<128x1024xbf16>
    %cst_67 = arith.constant dense<0.000000e+00> : vector<2x1024xf32>
    %91 = tpu.matmul %89, %90, %cst_67 {dimension_numbers = #tpu.dot_dimension_numbers<[1], [0], [0], [1], [0, 0, 1, 1], [], []>} : vector<2x128xbf16>, vector<128x1024xbf16>, vector<2x1024xf32> -> vector<2x1024xf32>
    %c0_68 = arith.constant 0 : index
    %c0_69 = arith.constant 0 : index
    %92 = vector.load %arg6[%c0_68, %c0_69] : memref<1x1024xf32, #tpu.memory_space<vmem>>, vector<1x1024xf32>
    %93 = vector.broadcast %92 : vector<1x1024xf32> to vector<2x1024xf32>
    %94 = arith.addf %91, %93 : vector<2x1024xf32>
    %c4 = arith.constant 4 : index
    %c0_70 = arith.constant 0 : index
    %c0_71 = arith.constant 0 : index
    %95 = vector.load %arg20[%c4, %c0_70, %c0_71] : memref<5x2x1024xf32, #tpu.memory_space<vmem>>, vector<1x2x1024xf32>
    %96 = vector.shape_cast %95 : vector<1x2x1024xf32> to vector<2x1024xf32>
    %97 = vector.shape_cast %94 : vector<2x1024xf32> to vector<1x2x1024xf32>
    tpu.vector_store %arg20[%c4, %c0_70, %c0_71], %97 {strides = array<i32>} : memref<5x2x1024xf32, #tpu.memory_space<vmem>>, vector<1x2x1024xf32>,
    %c0_72 = arith.constant 0 : index
    %c0_73 = arith.constant 0 : index
    %c0_74 = arith.constant 0 : index
    %98 = vector.load %arg20[%c0_72, %c0_73, %c0_74] : memref<5x2x1024xf32, #tpu.memory_space<vmem>>, vector<1x2x1024xf32>
    %99 = vector.shape_cast %98 : vector<1x2x1024xf32> to vector<2x1024xf32>
    %100 = vector.extract_strided_slice %99 {offsets = [0, 0], sizes = [2, 512], strides = [1, 1]} : vector<2x1024xf32> to vector<2x512xf32>
    %101 = vector.extract_strided_slice %100 {offsets = [0, 0], sizes = [2, 384], strides = [1, 1]} : vector<2x512xf32> to vector<2x384xf32>
    %cst_75 = arith.constant 0.000000e+00 : f32
    %102 = vector.broadcast %cst_75 : f32 to vector<2x384xf32>
    %103 = arith.subf %102, %101 : vector<2x384xf32>
    %104 = math.exp %103 : vector<2x384xf32>
    %cst_76 = arith.constant 1.000000e+00 : f32
    %105 = vector.broadcast %cst_76 : f32 to vector<2x384xf32>
    %106 = arith.addf %105, %104 : vector<2x384xf32>
    %107 = tpu.reciprocal %106 {approx = true} : vector<2x384xf32> -> vector<2x384xf32>
    %108 = vector.extract_strided_slice %107 {offsets = [0, 0], sizes = [2, 128], strides = [1, 1]} : vector<2x384xf32> to vector<2x128xf32>
    %109 = vector.extract_strided_slice %107 {offsets = [0, 256], sizes = [2, 128], strides = [1, 1]} : vector<2x384xf32> to vector<2x128xf32>
    %110 = vector.extract_strided_slice %100 {offsets = [0, 384], sizes = [2, 128], strides = [1, 1]} : vector<2x512xf32> to vector<2x128xf32>
    %111 = math.tanh %110 : vector<2x128xf32>
    %112 = arith.mulf %108, %111 : vector<2x128xf32>
    %113 = math.tanh %112 : vector<2x128xf32>
    %114 = arith.mulf %109, %113 : vector<2x128xf32>
    %c4_77 = arith.constant 4 : index
    %c0_78 = arith.constant 0 : index
    %c0_79 = arith.constant 0 : index
    %115 = vector.load %arg20[%c4_77, %c0_78, %c0_79] : memref<5x2x1024xf32, #tpu.memory_space<vmem>>, vector<1x2x1024xf32>
    %116 = vector.shape_cast %115 : vector<1x2x1024xf32> to vector<2x1024xf32>
    %117 = vector.extract_strided_slice %116 {offsets = [0, 512], sizes = [2, 512], strides = [1, 1]} : vector<2x1024xf32> to vector<2x512xf32>
    %118 = vector.extract_strided_slice %117 {offsets = [0, 0], sizes = [2, 384], strides = [1, 1]} : vector<2x512xf32> to vector<2x384xf32>
    %cst_80 = arith.constant 0.000000e+00 : f32
    %119 = vector.broadcast %cst_80 : f32 to vector<2x384xf32>
    %120 = arith.subf %119, %118 : vector<2x384xf32>
    %121 = math.exp %120 : vector<2x384xf32>
    %cst_81 = arith.constant 1.000000e+00 : f32
    %122 = vector.broadcast %cst_81 : f32 to vector<2x384xf32>
    %123 = arith.addf %122, %121 : vector<2x384xf32>
    %124 = tpu.reciprocal %123 {approx = true} : vector<2x384xf32> -> vector<2x384xf32>
    %125 = vector.extract_strided_slice %124 {offsets = [0, 0], sizes = [2, 128], strides = [1, 1]} : vector<2x384xf32> to vector<2x128xf32>
    %126 = vector.extract_strided_slice %124 {offsets = [0, 256], sizes = [2, 128], strides = [1, 1]} : vector<2x384xf32> to vector<2x128xf32>
    %127 = vector.extract_strided_slice %117 {offsets = [0, 384], sizes = [2, 128], strides = [1, 1]} : vector<2x512xf32> to vector<2x128xf32>
    %128 = math.tanh %127 : vector<2x128xf32>
    %129 = arith.mulf %125, %128 : vector<2x128xf32>
    %130 = math.tanh %129 : vector<2x128xf32>
    %131 = arith.mulf %126, %130 : vector<2x128xf32>
    %132 = arith.truncf %114 : vector<2x128xf32> to vector<2x128xbf16>
    %133 = arith.truncf %131 : vector<2x128xf32> to vector<2x128xbf16>
    %c0_82 = arith.constant 0 : index
    %c0_83 = arith.constant 0 : index
    %134 = vector.load %arg9[%c0_82, %c0_83] : memref<256x512xbf16, #tpu.memory_space<vmem>>, vector<128x512xbf16>
    %cst_84 = arith.constant dense<0.000000e+00> : vector<2x512xf32>
    %135 = tpu.matmul %132, %134, %cst_84 {dimension_numbers = #tpu.dot_dimension_numbers<[1], [0], [0], [1], [0, 0, 1, 1], [], []>} : vector<2x128xbf16>, vector<128x512xbf16>, vector<2x512xf32> -> vector<2x512xf32>
    %c0_85 = arith.constant 0 : index
    %c0_86 = arith.constant 0 : index
    %136 = vector.load %arg11[%c0_85, %c0_86] : memref<1x512xf32, #tpu.memory_space<vmem>>, vector<1x512xf32>
    %137 = vector.broadcast %136 : vector<1x512xf32> to vector<2x512xf32>
    %138 = arith.addf %135, %137 : vector<2x512xf32>
    %c0_87 = arith.constant 0 : index
    %c0_88 = arith.constant 0 : index
    %c0_89 = arith.constant 0 : index
    %139 = vector.load %arg21[%c0_87, %c0_88, %c0_89] : memref<5x2x512xf32, #tpu.memory_space<vmem>>, vector<1x2x512xf32>
    %140 = vector.shape_cast %139 : vector<1x2x512xf32> to vector<2x512xf32>
    %141 = vector.shape_cast %138 : vector<2x512xf32> to vector<1x2x512xf32>
    tpu.vector_store %arg21[%c0_87, %c0_88, %c0_89], %141 {strides = array<i32>} : memref<5x2x512xf32, #tpu.memory_space<vmem>>, vector<1x2x512xf32>,
    %c128 = arith.constant 128 : index
    %c0_90 = arith.constant 0 : index
    %142 = vector.load %arg9[%c128, %c0_90] : memref<256x512xbf16, #tpu.memory_space<vmem>>, vector<128x512xbf16>
    %cst_91 = arith.constant dense<0.000000e+00> : vector<2x512xf32>
    %143 = tpu.matmul %133, %142, %cst_91 {dimension_numbers = #tpu.dot_dimension_numbers<[1], [0], [0], [1], [0, 0, 1, 1], [], []>} : vector<2x128xbf16>, vector<128x512xbf16>, vector<2x512xf32> -> vector<2x512xf32>
    %c4_92 = arith.constant 4 : index
    %c0_93 = arith.constant 0 : index
    %c0_94 = arith.constant 0 : index
    %144 = vector.load %arg22[%c4_92, %c0_93, %c0_94] : memref<5x2x512xf32, #tpu.memory_space<vmem>>, vector<1x2x512xf32>
    %145 = vector.shape_cast %144 : vector<1x2x512xf32> to vector<2x512xf32>
    %146 = vector.shape_cast %143 : vector<2x512xf32> to vector<1x2x512xf32>
    tpu.vector_store %arg22[%c4_92, %c0_93, %c0_94], %146 {strides = array<i32>} : memref<5x2x512xf32, #tpu.memory_space<vmem>>, vector<1x2x512xf32>,
    %c128_95 = arith.constant 128 : index
    %c0_96 = arith.constant 0 : index
    %147 = vector.load %arg12[%c128_95, %c0_96] : memref<256x512xbf16, #tpu.memory_space<vmem>>, vector<128x512xbf16>
    %cst_97 = arith.constant dense<0.000000e+00> : vector<2x512xf32>
    %148 = tpu.matmul %133, %147, %cst_97 {dimension_numbers = #tpu.dot_dimension_numbers<[1], [0], [0], [1], [0, 0, 1, 1], [], []>} : vector<2x128xbf16>, vector<128x512xbf16>, vector<2x512xf32> -> vector<2x512xf32>
    %c0_98 = arith.constant 0 : index
    %c0_99 = arith.constant 0 : index
    %149 = vector.load %arg14[%c0_98, %c0_99] : memref<1x512xf32, #tpu.memory_space<vmem>>, vector<1x512xf32>
    %150 = vector.broadcast %149 : vector<1x512xf32> to vector<2x512xf32>
    %151 = arith.addf %148, %150 : vector<2x512xf32>
    %c1_100 = arith.constant 1 : index
    %c0_101 = arith.constant 0 : index
    %c0_102 = arith.constant 0 : index
    %152 = vector.load %arg20[%c1_100, %c0_101, %c0_102] : memref<5x2x1024xf32, #tpu.memory_space<vmem>>, vector<1x2x1024xf32>
    %153 = vector.shape_cast %152 : vector<1x2x1024xf32> to vector<2x1024xf32>
    %154 = vector.extract_strided_slice %153 {offsets = [0, 0], sizes = [2, 512], strides = [1, 1]} : vector<2x1024xf32> to vector<2x512xf32>
    %155 = arith.truncf %114 : vector<2x128xf32> to vector<2x128xbf16>
    %c0_103 = arith.constant 0 : index
    %c0_104 = arith.constant 0 : index
    %156 = vector.load %arg7[%c0_103, %c0_104] : memref<128x512xbf16, #tpu.memory_space<vmem>>, vector<128x512xbf16>
    %cst_105 = arith.constant dense<0.000000e+00> : vector<2x512xf32>
    %157 = tpu.matmul %155, %156, %cst_105 {dimension_numbers = #tpu.dot_dimension_numbers<[1], [0], [0], [1], [0, 0, 1, 1], [], []>} : vector<2x128xbf16>, vector<128x512xbf16>, vector<2x512xf32> -> vector<2x512xf32>
    %158 = arith.addf %154, %157 : vector<2x512xf32>
    %159 = vector.extract_strided_slice %158 {offsets = [0, 0], sizes = [2, 384], strides = [1, 1]} : vector<2x512xf32> to vector<2x384xf32>
    %cst_106 = arith.constant 0.000000e+00 : f32
    %160 = vector.broadcast %cst_106 : f32 to vector<2x384xf32>
    %161 = arith.subf %160, %159 : vector<2x384xf32>
    %162 = math.exp %161 : vector<2x384xf32>
    %cst_107 = arith.constant 1.000000e+00 : f32
    %163 = vector.broadcast %cst_107 : f32 to vector<2x384xf32>
    %164 = arith.addf %163, %162 : vector<2x384xf32>
    %165 = tpu.reciprocal %164 {approx = true} : vector<2x384xf32> -> vector<2x384xf32>
    %166 = vector.extract_strided_slice %165 {offsets = [0, 0], sizes = [2, 128], strides = [1, 1]} : vector<2x384xf32> to vector<2x128xf32>
    %167 = vector.extract_strided_slice %165 {offsets = [0, 128], sizes = [2, 128], strides = [1, 1]} : vector<2x384xf32> to vector<2x128xf32>
    %168 = vector.extract_strided_slice %165 {offsets = [0, 256], sizes = [2, 128], strides = [1, 1]} : vector<2x384xf32> to vector<2x128xf32>
    %169 = vector.extract_strided_slice %158 {offsets = [0, 384], sizes = [2, 128], strides = [1, 1]} : vector<2x512xf32> to vector<2x128xf32>
    %170 = math.tanh %169 : vector<2x128xf32>
    %171 = arith.mulf %167, %112 : vector<2x128xf32>
    %172 = arith.mulf %166, %170 : vector<2x128xf32>
    %173 = arith.addf %171, %172 : vector<2x128xf32>
    %174 = math.tanh %173 : vector<2x128xf32>
    %175 = arith.mulf %168, %174 : vector<2x128xf32>
    %c3_108 = arith.constant 3 : index
    %c0_109 = arith.constant 0 : index
    %c0_110 = arith.constant 0 : index
    %176 = vector.load %arg20[%c3_108, %c0_109, %c0_110] : memref<5x2x1024xf32, #tpu.memory_space<vmem>>, vector<1x2x1024xf32>
    %177 = vector.shape_cast %176 : vector<1x2x1024xf32> to vector<2x1024xf32>
    %178 = vector.extract_strided_slice %177 {offsets = [0, 512], sizes = [2, 512], strides = [1, 1]} : vector<2x1024xf32> to vector<2x512xf32>
    %179 = arith.truncf %131 : vector<2x128xf32> to vector<2x128xbf16>
    %c0_111 = arith.constant 0 : index
    %c0_112 = arith.constant 0 : index
    %180 = vector.load %arg8[%c0_111, %c0_112] : memref<128x512xbf16, #tpu.memory_space<vmem>>, vector<128x512xbf16>
    %cst_113 = arith.constant dense<0.000000e+00> : vector<2x512xf32>
    %181 = tpu.matmul %179, %180, %cst_113 {dimension_numbers = #tpu.dot_dimension_numbers<[1], [0], [0], [1], [0, 0, 1, 1], [], []>} : vector<2x128xbf16>, vector<128x512xbf16>, vector<2x512xf32> -> vector<2x512xf32>
    %182 = arith.addf %178, %181 : vector<2x512xf32>
    %183 = vector.extract_strided_slice %182 {offsets = [0, 0], sizes = [2, 384], strides = [1, 1]} : vector<2x512xf32> to vector<2x384xf32>
    %cst_114 = arith.constant 0.000000e+00 : f32
    %184 = vector.broadcast %cst_114 : f32 to vector<2x384xf32>
    %185 = arith.subf %184, %183 : vector<2x384xf32>
    %186 = math.exp %185 : vector<2x384xf32>
    %cst_115 = arith.constant 1.000000e+00 : f32
    %187 = vector.broadcast %cst_115 : f32 to vector<2x384xf32>
    %188 = arith.addf %187, %186 : vector<2x384xf32>
    %189 = tpu.reciprocal %188 {approx = true} : vector<2x384xf32> -> vector<2x384xf32>
    %190 = vector.extract_strided_slice %189 {offsets = [0, 0], sizes = [2, 128], strides = [1, 1]} : vector<2x384xf32> to vector<2x128xf32>
    %191 = vector.extract_strided_slice %189 {offsets = [0, 128], sizes = [2, 128], strides = [1, 1]} : vector<2x384xf32> to vector<2x128xf32>
    %192 = vector.extract_strided_slice %189 {offsets = [0, 256], sizes = [2, 128], strides = [1, 1]} : vector<2x384xf32> to vector<2x128xf32>
    %193 = vector.extract_strided_slice %182 {offsets = [0, 384], sizes = [2, 128], strides = [1, 1]} : vector<2x512xf32> to vector<2x128xf32>
    %194 = math.tanh %193 : vector<2x128xf32>
    %195 = arith.mulf %191, %129 : vector<2x128xf32>
    %196 = arith.mulf %190, %194 : vector<2x128xf32>
    %197 = arith.addf %195, %196 : vector<2x128xf32>
    %198 = math.tanh %197 : vector<2x128xf32>
    %199 = arith.mulf %192, %198 : vector<2x128xf32>
    %200 = arith.truncf %175 : vector<2x128xf32> to vector<2x128xbf16>
    %201 = arith.truncf %199 : vector<2x128xf32> to vector<2x128xbf16>
    %c0_116 = arith.constant 0 : index
    %c0_117 = arith.constant 0 : index
    %202 = vector.load %arg9[%c0_116, %c0_117] : memref<256x512xbf16, #tpu.memory_space<vmem>>, vector<128x512xbf16>
    %cst_118 = arith.constant dense<0.000000e+00> : vector<2x512xf32>
    %203 = tpu.matmul %200, %202, %cst_118 {dimension_numbers = #tpu.dot_dimension_numbers<[1], [0], [0], [1], [0, 0, 1, 1], [], []>} : vector<2x128xbf16>, vector<128x512xbf16>, vector<2x512xf32> -> vector<2x512xf32>
    %c0_119 = arith.constant 0 : index
    %c0_120 = arith.constant 0 : index
    %204 = vector.load %arg11[%c0_119, %c0_120] : memref<1x512xf32, #tpu.memory_space<vmem>>, vector<1x512xf32>
    %205 = vector.broadcast %204 : vector<1x512xf32> to vector<2x512xf32>
    %206 = arith.addf %203, %205 : vector<2x512xf32>
    %c1_121 = arith.constant 1 : index
    %c0_122 = arith.constant 0 : index
    %c0_123 = arith.constant 0 : index
    %207 = vector.load %arg21[%c1_121, %c0_122, %c0_123] : memref<5x2x512xf32, #tpu.memory_space<vmem>>, vector<1x2x512xf32>
    %208 = vector.shape_cast %207 : vector<1x2x512xf32> to vector<2x512xf32>
    %209 = vector.shape_cast %206 : vector<2x512xf32> to vector<1x2x512xf32>
    tpu.vector_store %arg21[%c1_121, %c0_122, %c0_123], %209 {strides = array<i32>} : memref<5x2x512xf32, #tpu.memory_space<vmem>>, vector<1x2x512xf32>,
    %c128_124 = arith.constant 128 : index
    %c0_125 = arith.constant 0 : index
    %210 = vector.load %arg9[%c128_124, %c0_125] : memref<256x512xbf16, #tpu.memory_space<vmem>>, vector<128x512xbf16>
    %cst_126 = arith.constant dense<0.000000e+00> : vector<2x512xf32>
    %211 = tpu.matmul %201, %210, %cst_126 {dimension_numbers = #tpu.dot_dimension_numbers<[1], [0], [0], [1], [0, 0, 1, 1], [], []>} : vector<2x128xbf16>, vector<128x512xbf16>, vector<2x512xf32> -> vector<2x512xf32>
    %c3_127 = arith.constant 3 : index
    %c0_128 = arith.constant 0 : index
    %c0_129 = arith.constant 0 : index
    %212 = vector.load %arg22[%c3_127, %c0_128, %c0_129] : memref<5x2x512xf32, #tpu.memory_space<vmem>>, vector<1x2x512xf32>
    %213 = vector.shape_cast %212 : vector<1x2x512xf32> to vector<2x512xf32>
    %214 = vector.shape_cast %211 : vector<2x512xf32> to vector<1x2x512xf32>
    tpu.vector_store %arg22[%c3_127, %c0_128, %c0_129], %214 {strides = array<i32>} : memref<5x2x512xf32, #tpu.memory_space<vmem>>, vector<1x2x512xf32>,
    %c2_130 = arith.constant 2 : index
    %c0_131 = arith.constant 0 : index
    %c0_132 = arith.constant 0 : index
    %215 = vector.load %arg20[%c2_130, %c0_131, %c0_132] : memref<5x2x1024xf32, #tpu.memory_space<vmem>>, vector<1x2x1024xf32>
    %216 = vector.shape_cast %215 : vector<1x2x1024xf32> to vector<2x1024xf32>
    %217 = vector.extract_strided_slice %216 {offsets = [0, 0], sizes = [2, 512], strides = [1, 1]} : vector<2x1024xf32> to vector<2x512xf32>
    %218 = arith.truncf %175 : vector<2x128xf32> to vector<2x128xbf16>
    %c0_133 = arith.constant 0 : index
    %c0_134 = arith.constant 0 : index
    %219 = vector.load %arg7[%c0_133, %c0_134] : memref<128x512xbf16, #tpu.memory_space<vmem>>, vector<128x512xbf16>
    %cst_135 = arith.constant dense<0.000000e+00> : vector<2x512xf32>
    %220 = tpu.matmul %218, %219, %cst_135 {dimension_numbers = #tpu.dot_dimension_numbers<[1], [0], [0], [1], [0, 0, 1, 1], [], []>} : vector<2x128xbf16>, vector<128x512xbf16>, vector<2x512xf32> -> vector<2x512xf32>
    %221 = arith.addf %217, %220 : vector<2x512xf32>
    %222 = vector.extract_strided_slice %221 {offsets = [0, 0], sizes = [2, 384], strides = [1, 1]} : vector<2x512xf32> to vector<2x384xf32>
    %cst_136 = arith.constant 0.000000e+00 : f32
    %223 = vector.broadcast %cst_136 : f32 to vector<2x384xf32>
    %224 = arith.subf %223, %222 : vector<2x384xf32>
    %225 = math.exp %224 : vector<2x384xf32>
    %cst_137 = arith.constant 1.000000e+00 : f32
    %226 = vector.broadcast %cst_137 : f32 to vector<2x384xf32>
    %227 = arith.addf %226, %225 : vector<2x384xf32>
    %228 = tpu.reciprocal %227 {approx = true} : vector<2x384xf32> -> vector<2x384xf32>
    %229 = vector.extract_strided_slice %228 {offsets = [0, 0], sizes = [2, 128], strides = [1, 1]} : vector<2x384xf32> to vector<2x128xf32>
    %230 = vector.extract_strided_slice %228 {offsets = [0, 128], sizes = [2, 128], strides = [1, 1]} : vector<2x384xf32> to vector<2x128xf32>
    %231 = vector.extract_strided_slice %228 {offsets = [0, 256], sizes = [2, 128], strides = [1, 1]} : vector<2x384xf32> to vector<2x128xf32>
    %232 = vector.extract_strided_slice %221 {offsets = [0, 384], sizes = [2, 128], strides = [1, 1]} : vector<2x512xf32> to vector<2x128xf32>
    %233 = math.tanh %232 : vector<2x128xf32>
    %234 = arith.mulf %230, %173 : vector<2x128xf32>
    %235 = arith.mulf %229, %233 : vector<2x128xf32>
    %236 = arith.addf %234, %235 : vector<2x128xf32>
    %237 = math.tanh %236 : vector<2x128xf32>
    %238 = arith.mulf %231, %237 : vector<2x128xf32>
    %c2_138 = arith.constant 2 : index
    %c0_139 = arith.constant 0 : index
    %c0_140 = arith.constant 0 : index
    %239 = vector.load %arg20[%c2_138, %c0_139, %c0_140] : memref<5x2x1024xf32, #tpu.memory_space<vmem>>, vector<1x2x1024xf32>
    %240 = vector.shape_cast %239 : vector<1x2x1024xf32> to vector<2x1024xf32>
    %241 = vector.extract_strided_slice %240 {offsets = [0, 512], sizes = [2, 512], strides = [1, 1]} : vector<2x1024xf32> to vector<2x512xf32>
    %242 = arith.truncf %199 : vector<2x128xf32> to vector<2x128xbf16>
    %c0_141 = arith.constant 0 : index
    %c0_142 = arith.constant 0 : index
    %243 = vector.load %arg8[%c0_141, %c0_142] : memref<128x512xbf16, #tpu.memory_space<vmem>>, vector<128x512xbf16>
    %cst_143 = arith.constant dense<0.000000e+00> : vector<2x512xf32>
    %244 = tpu.matmul %242, %243, %cst_143 {dimension_numbers = #tpu.dot_dimension_numbers<[1], [0], [0], [1], [0, 0, 1, 1], [], []>} : vector<2x128xbf16>, vector<128x512xbf16>, vector<2x512xf32> -> vector<2x512xf32>
    %245 = arith.addf %241, %244 : vector<2x512xf32>
    %246 = vector.extract_strided_slice %245 {offsets = [0, 0], sizes = [2, 384], strides = [1, 1]} : vector<2x512xf32> to vector<2x384xf32>
    %cst_144 = arith.constant 0.000000e+00 : f32
    %247 = vector.broadcast %cst_144 : f32 to vector<2x384xf32>
    %248 = arith.subf %247, %246 : vector<2x384xf32>
    %249 = math.exp %248 : vector<2x384xf32>
    %cst_145 = arith.constant 1.000000e+00 : f32
    %250 = vector.broadcast %cst_145 : f32 to vector<2x384xf32>
    %251 = arith.addf %250, %249 : vector<2x384xf32>
    %252 = tpu.reciprocal %251 {approx = true} : vector<2x384xf32> -> vector<2x384xf32>
    %253 = vector.extract_strided_slice %252 {offsets = [0, 0], sizes = [2, 128], strides = [1, 1]} : vector<2x384xf32> to vector<2x128xf32>
    %254 = vector.extract_strided_slice %252 {offsets = [0, 128], sizes = [2, 128], strides = [1, 1]} : vector<2x384xf32> to vector<2x128xf32>
    %255 = vector.extract_strided_slice %252 {offsets = [0, 256], sizes = [2, 128], strides = [1, 1]} : vector<2x384xf32> to vector<2x128xf32>
    %256 = vector.extract_strided_slice %245 {offsets = [0, 384], sizes = [2, 128], strides = [1, 1]} : vector<2x512xf32> to vector<2x128xf32>
    %257 = math.tanh %256 : vector<2x128xf32>
    %258 = arith.mulf %254, %197 : vector<2x128xf32>
    %259 = arith.mulf %253, %257 : vector<2x128xf32>
    %260 = arith.addf %258, %259 : vector<2x128xf32>
    %261 = math.tanh %260 : vector<2x128xf32>
    %262 = arith.mulf %255, %261 : vector<2x128xf32>
    %263 = arith.truncf %238 : vector<2x128xf32> to vector<2x128xbf16>
    %264 = arith.truncf %262 : vector<2x128xf32> to vector<2x128xbf16>
    %c0_146 = arith.constant 0 : index
    %c0_147 = arith.constant 0 : index
    %265 = vector.load %arg9[%c0_146, %c0_147] : memref<256x512xbf16, #tpu.memory_space<vmem>>, vector<128x512xbf16>
    %cst_148 = arith.constant dense<0.000000e+00> : vector<2x512xf32>
    %266 = tpu.matmul %263, %265, %cst_148 {dimension_numbers = #tpu.dot_dimension_numbers<[1], [0], [0], [1], [0, 0, 1, 1], [], []>} : vector<2x128xbf16>, vector<128x512xbf16>, vector<2x512xf32> -> vector<2x512xf32>
    %c0_149 = arith.constant 0 : index
    %c0_150 = arith.constant 0 : index
    %267 = vector.load %arg11[%c0_149, %c0_150] : memref<1x512xf32, #tpu.memory_space<vmem>>, vector<1x512xf32>
    %268 = vector.broadcast %267 : vector<1x512xf32> to vector<2x512xf32>
    %269 = arith.addf %266, %268 : vector<2x512xf32>
    %c2_151 = arith.constant 2 : index
    %c0_152 = arith.constant 0 : index
    %c0_153 = arith.constant 0 : index
    %270 = vector.load %arg21[%c2_151, %c0_152, %c0_153] : memref<5x2x512xf32, #tpu.memory_space<vmem>>, vector<1x2x512xf32>
    %271 = vector.shape_cast %270 : vector<1x2x512xf32> to vector<2x512xf32>
    %272 = vector.shape_cast %269 : vector<2x512xf32> to vector<1x2x512xf32>
    tpu.vector_store %arg21[%c2_151, %c0_152, %c0_153], %272 {strides = array<i32>} : memref<5x2x512xf32, #tpu.memory_space<vmem>>, vector<1x2x512xf32>,
    %c128_154 = arith.constant 128 : index
    %c0_155 = arith.constant 0 : index
    %273 = vector.load %arg9[%c128_154, %c0_155] : memref<256x512xbf16, #tpu.memory_space<vmem>>, vector<128x512xbf16>
    %cst_156 = arith.constant dense<0.000000e+00> : vector<2x512xf32>
    %274 = tpu.matmul %264, %273, %cst_156 {dimension_numbers = #tpu.dot_dimension_numbers<[1], [0], [0], [1], [0, 0, 1, 1], [], []>} : vector<2x128xbf16>, vector<128x512xbf16>, vector<2x512xf32> -> vector<2x512xf32>
    %c2_157 = arith.constant 2 : index
    %c0_158 = arith.constant 0 : index
    %c0_159 = arith.constant 0 : index
    %275 = vector.load %arg22[%c2_157, %c0_158, %c0_159] : memref<5x2x512xf32, #tpu.memory_space<vmem>>, vector<1x2x512xf32>
    %276 = vector.shape_cast %275 : vector<1x2x512xf32> to vector<2x512xf32>
    %277 = vector.shape_cast %274 : vector<2x512xf32> to vector<1x2x512xf32>
    tpu.vector_store %arg22[%c2_157, %c0_158, %c0_159], %277 {strides = array<i32>} : memref<5x2x512xf32, #tpu.memory_space<vmem>>, vector<1x2x512xf32>,
    %c3_160 = arith.constant 3 : index
    %c0_161 = arith.constant 0 : index
    %c0_162 = arith.constant 0 : index
    %278 = vector.load %arg20[%c3_160, %c0_161, %c0_162] : memref<5x2x1024xf32, #tpu.memory_space<vmem>>, vector<1x2x1024xf32>
    %279 = vector.shape_cast %278 : vector<1x2x1024xf32> to vector<2x1024xf32>
    %280 = vector.extract_strided_slice %279 {offsets = [0, 0], sizes = [2, 512], strides = [1, 1]} : vector<2x1024xf32> to vector<2x512xf32>
    %281 = arith.truncf %238 : vector<2x128xf32> to vector<2x128xbf16>
    %c0_163 = arith.constant 0 : index
    %c0_164 = arith.constant 0 : index
    %282 = vector.load %arg7[%c0_163, %c0_164] : memref<128x512xbf16, #tpu.memory_space<vmem>>, vector<128x512xbf16>
    %cst_165 = arith.constant dense<0.000000e+00> : vector<2x512xf32>
    %283 = tpu.matmul %281, %282, %cst_165 {dimension_numbers = #tpu.dot_dimension_numbers<[1], [0], [0], [1], [0, 0, 1, 1], [], []>} : vector<2x128xbf16>, vector<128x512xbf16>, vector<2x512xf32> -> vector<2x512xf32>
    %284 = arith.addf %280, %283 : vector<2x512xf32>
    %285 = vector.extract_strided_slice %284 {offsets = [0, 0], sizes = [2, 384], strides = [1, 1]} : vector<2x512xf32> to vector<2x384xf32>
    %cst_166 = arith.constant 0.000000e+00 : f32
    %286 = vector.broadcast %cst_166 : f32 to vector<2x384xf32>
    %287 = arith.subf %286, %285 : vector<2x384xf32>
    %288 = math.exp %287 : vector<2x384xf32>
    %cst_167 = arith.constant 1.000000e+00 : f32
    %289 = vector.broadcast %cst_167 : f32 to vector<2x384xf32>
    %290 = arith.addf %289, %288 : vector<2x384xf32>
    %291 = tpu.reciprocal %290 {approx = true} : vector<2x384xf32> -> vector<2x384xf32>
    %292 = vector.extract_strided_slice %291 {offsets = [0, 0], sizes = [2, 128], strides = [1, 1]} : vector<2x384xf32> to vector<2x128xf32>
    %293 = vector.extract_strided_slice %291 {offsets = [0, 128], sizes = [2, 128], strides = [1, 1]} : vector<2x384xf32> to vector<2x128xf32>
    %294 = vector.extract_strided_slice %291 {offsets = [0, 256], sizes = [2, 128], strides = [1, 1]} : vector<2x384xf32> to vector<2x128xf32>
    %295 = vector.extract_strided_slice %284 {offsets = [0, 384], sizes = [2, 128], strides = [1, 1]} : vector<2x512xf32> to vector<2x128xf32>
    %296 = math.tanh %295 : vector<2x128xf32>
    %297 = arith.mulf %293, %236 : vector<2x128xf32>
    %298 = arith.mulf %292, %296 : vector<2x128xf32>
    %299 = arith.addf %297, %298 : vector<2x128xf32>
    %300 = math.tanh %299 : vector<2x128xf32>
    %301 = arith.mulf %294, %300 : vector<2x128xf32>
    %c1_168 = arith.constant 1 : index
    %c0_169 = arith.constant 0 : index
    %c0_170 = arith.constant 0 : index
    %302 = vector.load %arg20[%c1_168, %c0_169, %c0_170] : memref<5x2x1024xf32, #tpu.memory_space<vmem>>, vector<1x2x1024xf32>
    %303 = vector.shape_cast %302 : vector<1x2x1024xf32> to vector<2x1024xf32>
    %304 = vector.extract_strided_slice %303 {offsets = [0, 512], sizes = [2, 512], strides = [1, 1]} : vector<2x1024xf32> to vector<2x512xf32>
    %305 = arith.truncf %262 : vector<2x128xf32> to vector<2x128xbf16>
    %c0_171 = arith.constant 0 : index
    %c0_172 = arith.constant 0 : index
    %306 = vector.load %arg8[%c0_171, %c0_172] : memref<128x512xbf16, #tpu.memory_space<vmem>>, vector<128x512xbf16>
    %cst_173 = arith.constant dense<0.000000e+00> : vector<2x512xf32>
    %307 = tpu.matmul %305, %306, %cst_173 {dimension_numbers = #tpu.dot_dimension_numbers<[1], [0], [0], [1], [0, 0, 1, 1], [], []>} : vector<2x128xbf16>, vector<128x512xbf16>, vector<2x512xf32> -> vector<2x512xf32>
    %308 = arith.addf %304, %307 : vector<2x512xf32>
    %309 = vector.extract_strided_slice %308 {offsets = [0, 0], sizes = [2, 384], strides = [1, 1]} : vector<2x512xf32> to vector<2x384xf32>
    %cst_174 = arith.constant 0.000000e+00 : f32
    %310 = vector.broadcast %cst_174 : f32 to vector<2x384xf32>
    %311 = arith.subf %310, %309 : vector<2x384xf32>
    %312 = math.exp %311 : vector<2x384xf32>
    %cst_175 = arith.constant 1.000000e+00 : f32
    %313 = vector.broadcast %cst_175 : f32 to vector<2x384xf32>
    %314 = arith.addf %313, %312 : vector<2x384xf32>
    %315 = tpu.reciprocal %314 {approx = true} : vector<2x384xf32> -> vector<2x384xf32>
    %316 = vector.extract_strided_slice %315 {offsets = [0, 0], sizes = [2, 128], strides = [1, 1]} : vector<2x384xf32> to vector<2x128xf32>
    %317 = vector.extract_strided_slice %315 {offsets = [0, 128], sizes = [2, 128], strides = [1, 1]} : vector<2x384xf32> to vector<2x128xf32>
    %318 = vector.extract_strided_slice %315 {offsets = [0, 256], sizes = [2, 128], strides = [1, 1]} : vector<2x384xf32> to vector<2x128xf32>
    %319 = vector.extract_strided_slice %308 {offsets = [0, 384], sizes = [2, 128], strides = [1, 1]} : vector<2x512xf32> to vector<2x128xf32>
    %320 = math.tanh %319 : vector<2x128xf32>
    %321 = arith.mulf %317, %260 : vector<2x128xf32>
    %322 = arith.mulf %316, %320 : vector<2x128xf32>
    %323 = arith.addf %321, %322 : vector<2x128xf32>
    %324 = math.tanh %323 : vector<2x128xf32>
    %325 = arith.mulf %318, %324 : vector<2x128xf32>
    %326 = arith.truncf %301 : vector<2x128xf32> to vector<2x128xbf16>
    %327 = arith.truncf %325 : vector<2x128xf32> to vector<2x128xbf16>
    %c0_176 = arith.constant 0 : index
    %c0_177 = arith.constant 0 : index
    %328 = vector.load %arg9[%c0_176, %c0_177] : memref<256x512xbf16, #tpu.memory_space<vmem>>, vector<128x512xbf16>
    %cst_178 = arith.constant dense<0.000000e+00> : vector<2x512xf32>
    %329 = tpu.matmul %326, %328, %cst_178 {dimension_numbers = #tpu.dot_dimension_numbers<[1], [0], [0], [1], [0, 0, 1, 1], [], []>} : vector<2x128xbf16>, vector<128x512xbf16>, vector<2x512xf32> -> vector<2x512xf32>
    %c0_179 = arith.constant 0 : index
    %c0_180 = arith.constant 0 : index
    %330 = vector.load %arg11[%c0_179, %c0_180] : memref<1x512xf32, #tpu.memory_space<vmem>>, vector<1x512xf32>
    %331 = vector.broadcast %330 : vector<1x512xf32> to vector<2x512xf32>
    %332 = arith.addf %329, %331 : vector<2x512xf32>
    %c3_181 = arith.constant 3 : index
    %c0_182 = arith.constant 0 : index
    %c0_183 = arith.constant 0 : index
    %333 = vector.load %arg21[%c3_181, %c0_182, %c0_183] : memref<5x2x512xf32, #tpu.memory_space<vmem>>, vector<1x2x512xf32>
    %334 = vector.shape_cast %333 : vector<1x2x512xf32> to vector<2x512xf32>
    %335 = vector.shape_cast %332 : vector<2x512xf32> to vector<1x2x512xf32>
    tpu.vector_store %arg21[%c3_181, %c0_182, %c0_183], %335 {strides = array<i32>} : memref<5x2x512xf32, #tpu.memory_space<vmem>>, vector<1x2x512xf32>,
    %c128_184 = arith.constant 128 : index
    %c0_185 = arith.constant 0 : index
    %336 = vector.load %arg9[%c128_184, %c0_185] : memref<256x512xbf16, #tpu.memory_space<vmem>>, vector<128x512xbf16>
    %cst_186 = arith.constant dense<0.000000e+00> : vector<2x512xf32>
    %337 = tpu.matmul %327, %336, %cst_186 {dimension_numbers = #tpu.dot_dimension_numbers<[1], [0], [0], [1], [0, 0, 1, 1], [], []>} : vector<2x128xbf16>, vector<128x512xbf16>, vector<2x512xf32> -> vector<2x512xf32>
    %c1_187 = arith.constant 1 : index
    %c0_188 = arith.constant 0 : index
    %c0_189 = arith.constant 0 : index
    %338 = vector.load %arg22[%c1_187, %c0_188, %c0_189] : memref<5x2x512xf32, #tpu.memory_space<vmem>>, vector<1x2x512xf32>
    %339 = vector.shape_cast %338 : vector<1x2x512xf32> to vector<2x512xf32>
    %340 = vector.shape_cast %337 : vector<2x512xf32> to vector<1x2x512xf32>
    tpu.vector_store %arg22[%c1_187, %c0_188, %c0_189], %340 {strides = array<i32>} : memref<5x2x512xf32, #tpu.memory_space<vmem>>, vector<1x2x512xf32>,
    %c4_190 = arith.constant 4 : index
    %c0_191 = arith.constant 0 : index
    %c0_192 = arith.constant 0 : index
    %341 = vector.load %arg20[%c4_190, %c0_191, %c0_192] : memref<5x2x1024xf32, #tpu.memory_space<vmem>>, vector<1x2x1024xf32>
    %342 = vector.shape_cast %341 : vector<1x2x1024xf32> to vector<2x1024xf32>
    %343 = vector.extract_strided_slice %342 {offsets = [0, 0], sizes = [2, 512], strides = [1, 1]} : vector<2x1024xf32> to vector<2x512xf32>
    %344 = arith.truncf %301 : vector<2x128xf32> to vector<2x128xbf16>
    %c0_193 = arith.constant 0 : index
    %c0_194 = arith.constant 0 : index
    %345 = vector.load %arg7[%c0_193, %c0_194] : memref<128x512xbf16, #tpu.memory_space<vmem>>, vector<128x512xbf16>
    %cst_195 = arith.constant dense<0.000000e+00> : vector<2x512xf32>
    %346 = tpu.matmul %344, %345, %cst_195 {dimension_numbers = #tpu.dot_dimension_numbers<[1], [0], [0], [1], [0, 0, 1, 1], [], []>} : vector<2x128xbf16>, vector<128x512xbf16>, vector<2x512xf32> -> vector<2x512xf32>
    %347 = arith.addf %343, %346 : vector<2x512xf32>
    %348 = vector.extract_strided_slice %347 {offsets = [0, 0], sizes = [2, 384], strides = [1, 1]} : vector<2x512xf32> to vector<2x384xf32>
    %cst_196 = arith.constant 0.000000e+00 : f32
    %349 = vector.broadcast %cst_196 : f32 to vector<2x384xf32>
    %350 = arith.subf %349, %348 : vector<2x384xf32>
    %351 = math.exp %350 : vector<2x384xf32>
    %cst_197 = arith.constant 1.000000e+00 : f32
    %352 = vector.broadcast %cst_197 : f32 to vector<2x384xf32>
    %353 = arith.addf %352, %351 : vector<2x384xf32>
    %354 = tpu.reciprocal %353 {approx = true} : vector<2x384xf32> -> vector<2x384xf32>
    %355 = vector.extract_strided_slice %354 {offsets = [0, 0], sizes = [2, 128], strides = [1, 1]} : vector<2x384xf32> to vector<2x128xf32>
    %356 = vector.extract_strided_slice %354 {offsets = [0, 128], sizes = [2, 128], strides = [1, 1]} : vector<2x384xf32> to vector<2x128xf32>
    %357 = vector.extract_strided_slice %354 {offsets = [0, 256], sizes = [2, 128], strides = [1, 1]} : vector<2x384xf32> to vector<2x128xf32>
    %358 = vector.extract_strided_slice %347 {offsets = [0, 384], sizes = [2, 128], strides = [1, 1]} : vector<2x512xf32> to vector<2x128xf32>
    %359 = math.tanh %358 : vector<2x128xf32>
    %360 = arith.mulf %356, %299 : vector<2x128xf32>
    %361 = arith.mulf %355, %359 : vector<2x128xf32>
    %362 = arith.addf %360, %361 : vector<2x128xf32>
    %363 = math.tanh %362 : vector<2x128xf32>
    %364 = arith.mulf %357, %363 : vector<2x128xf32>
    %c0_198 = arith.constant 0 : index
    %c0_199 = arith.constant 0 : index
    %c0_200 = arith.constant 0 : index
    %365 = vector.load %arg20[%c0_198, %c0_199, %c0_200] : memref<5x2x1024xf32, #tpu.memory_space<vmem>>, vector<1x2x1024xf32>
    %366 = vector.shape_cast %365 : vector<1x2x1024xf32> to vector<2x1024xf32>
    %367 = vector.extract_strided_slice %366 {offsets = [0, 512], sizes = [2, 512], strides = [1, 1]} : vector<2x1024xf32> to vector<2x512xf32>
    %368 = arith.truncf %325 : vector<2x128xf32> to vector<2x128xbf16>
    %c0_201 = arith.constant 0 : index
    %c0_202 = arith.constant 0 : index
    %369 = vector.load %arg8[%c0_201, %c0_202] : memref<128x512xbf16, #tpu.memory_space<vmem>>, vector<128x512xbf16>
    %cst_203 = arith.constant dense<0.000000e+00> : vector<2x512xf32>
    %370 = tpu.matmul %368, %369, %cst_203 {dimension_numbers = #tpu.dot_dimension_numbers<[1], [0], [0], [1], [0, 0, 1, 1], [], []>} : vector<2x128xbf16>, vector<128x512xbf16>, vector<2x512xf32> -> vector<2x512xf32>
    %371 = arith.addf %367, %370 : vector<2x512xf32>
    %372 = vector.extract_strided_slice %371 {offsets = [0, 0], sizes = [2, 384], strides = [1, 1]} : vector<2x512xf32> to vector<2x384xf32>
    %cst_204 = arith.constant 0.000000e+00 : f32
    %373 = vector.broadcast %cst_204 : f32 to vector<2x384xf32>
    %374 = arith.subf %373, %372 : vector<2x384xf32>
    %375 = math.exp %374 : vector<2x384xf32>
    %cst_205 = arith.constant 1.000000e+00 : f32
    %376 = vector.broadcast %cst_205 : f32 to vector<2x384xf32>
    %377 = arith.addf %376, %375 : vector<2x384xf32>
    %378 = tpu.reciprocal %377 {approx = true} : vector<2x384xf32> -> vector<2x384xf32>
    %379 = vector.extract_strided_slice %378 {offsets = [0, 0], sizes = [2, 128], strides = [1, 1]} : vector<2x384xf32> to vector<2x128xf32>
    %380 = vector.extract_strided_slice %378 {offsets = [0, 128], sizes = [2, 128], strides = [1, 1]} : vector<2x384xf32> to vector<2x128xf32>
    %381 = vector.extract_strided_slice %378 {offsets = [0, 256], sizes = [2, 128], strides = [1, 1]} : vector<2x384xf32> to vector<2x128xf32>
    %382 = vector.extract_strided_slice %371 {offsets = [0, 384], sizes = [2, 128], strides = [1, 1]} : vector<2x512xf32> to vector<2x128xf32>
    %383 = math.tanh %382 : vector<2x128xf32>
    %384 = arith.mulf %380, %323 : vector<2x128xf32>
    %385 = arith.mulf %379, %383 : vector<2x128xf32>
    %386 = arith.addf %384, %385 : vector<2x128xf32>
    %387 = math.tanh %386 : vector<2x128xf32>
    %388 = arith.mulf %381, %387 : vector<2x128xf32>
    %389 = arith.truncf %364 : vector<2x128xf32> to vector<2x128xbf16>
    %390 = arith.truncf %388 : vector<2x128xf32> to vector<2x128xbf16>
    %c0_206 = arith.constant 0 : index
    %c0_207 = arith.constant 0 : index
    %391 = vector.load %arg9[%c0_206, %c0_207] : memref<256x512xbf16, #tpu.memory_space<vmem>>, vector<128x512xbf16>
    %cst_208 = arith.constant dense<0.000000e+00> : vector<2x512xf32>
    %392 = tpu.matmul %389, %391, %cst_208 {dimension_numbers = #tpu.dot_dimension_numbers<[1], [0], [0], [1], [0, 0, 1, 1], [], []>} : vector<2x128xbf16>, vector<128x512xbf16>, vector<2x512xf32> -> vector<2x512xf32>
    %c0_209 = arith.constant 0 : index
    %c0_210 = arith.constant 0 : index
    %393 = vector.load %arg11[%c0_209, %c0_210] : memref<1x512xf32, #tpu.memory_space<vmem>>, vector<1x512xf32>
    %394 = vector.broadcast %393 : vector<1x512xf32> to vector<2x512xf32>
    %395 = arith.addf %392, %394 : vector<2x512xf32>
    %c4_211 = arith.constant 4 : index
    %c0_212 = arith.constant 0 : index
    %c0_213 = arith.constant 0 : index
    %396 = vector.load %arg21[%c4_211, %c0_212, %c0_213] : memref<5x2x512xf32, #tpu.memory_space<vmem>>, vector<1x2x512xf32>
    %397 = vector.shape_cast %396 : vector<1x2x512xf32> to vector<2x512xf32>
    %398 = vector.shape_cast %395 : vector<2x512xf32> to vector<1x2x512xf32>
    tpu.vector_store %arg21[%c4_211, %c0_212, %c0_213], %398 {strides = array<i32>} : memref<5x2x512xf32, #tpu.memory_space<vmem>>, vector<1x2x512xf32>,
    %c128_214 = arith.constant 128 : index
    %c0_215 = arith.constant 0 : index
    %399 = vector.load %arg9[%c128_214, %c0_215] : memref<256x512xbf16, #tpu.memory_space<vmem>>, vector<128x512xbf16>
    %cst_216 = arith.constant dense<0.000000e+00> : vector<2x512xf32>
    %400 = tpu.matmul %390, %399, %cst_216 {dimension_numbers = #tpu.dot_dimension_numbers<[1], [0], [0], [1], [0, 0, 1, 1], [], []>} : vector<2x128xbf16>, vector<128x512xbf16>, vector<2x512xf32> -> vector<2x512xf32>
    %c0_217 = arith.constant 0 : index
    %c0_218 = arith.constant 0 : index
    %c0_219 = arith.constant 0 : index
    %401 = vector.load %arg22[%c0_217, %c0_218, %c0_219] : memref<5x2x512xf32, #tpu.memory_space<vmem>>, vector<1x2x512xf32>
    %402 = vector.shape_cast %401 : vector<1x2x512xf32> to vector<2x512xf32>
    %403 = vector.shape_cast %400 : vector<2x512xf32> to vector<1x2x512xf32>
    tpu.vector_store %arg22[%c0_217, %c0_218, %c0_219], %403 {strides = array<i32>} : memref<5x2x512xf32, #tpu.memory_space<vmem>>, vector<1x2x512xf32>,
    %c0_220 = arith.constant 0 : index
    %c0_221 = arith.constant 0 : index
    %404 = vector.load %arg12[%c0_220, %c0_221] : memref<256x512xbf16, #tpu.memory_space<vmem>>, vector<128x512xbf16>
    %cst_222 = arith.constant dense<0.000000e+00> : vector<2x512xf32>
    %405 = tpu.matmul %389, %404, %cst_222 {dimension_numbers = #tpu.dot_dimension_numbers<[1], [0], [0], [1], [0, 0, 1, 1], [], []>} : vector<2x128xbf16>, vector<128x512xbf16>, vector<2x512xf32> -> vector<2x512xf32>
    %406 = arith.addf %151, %405 : vector<2x512xf32>
    %c0_223 = arith.constant 0 : index
    %c0_224 = arith.constant 0 : index
    %c0_225 = arith.constant 0 : index
    %407 = vector.load %arg21[%c0_223, %c0_224, %c0_225] : memref<5x2x512xf32, #tpu.memory_space<vmem>>, vector<1x2x512xf32>
    %408 = vector.shape_cast %407 : vector<1x2x512xf32> to vector<2x512xf32>
    %c0_226 = arith.constant 0 : index
    %c0_227 = arith.constant 0 : index
    %c0_228 = arith.constant 0 : index
    %409 = vector.load %arg22[%c0_226, %c0_227, %c0_228] : memref<5x2x512xf32, #tpu.memory_space<vmem>>, vector<1x2x512xf32>
    %410 = vector.shape_cast %409 : vector<1x2x512xf32> to vector<2x512xf32>
    %411 = arith.addf %408, %410 : vector<2x512xf32>
    %412 = vector.extract_strided_slice %411 {offsets = [0, 0], sizes = [2, 384], strides = [1, 1]} : vector<2x512xf32> to vector<2x384xf32>
    %cst_229 = arith.constant 0.000000e+00 : f32
    %413 = vector.broadcast %cst_229 : f32 to vector<2x384xf32>
    %414 = arith.subf %413, %412 : vector<2x384xf32>
    %415 = math.exp %414 : vector<2x384xf32>
    %cst_230 = arith.constant 1.000000e+00 : f32
    %416 = vector.broadcast %cst_230 : f32 to vector<2x384xf32>
    %417 = arith.addf %416, %415 : vector<2x384xf32>
    %418 = tpu.reciprocal %417 {approx = true} : vector<2x384xf32> -> vector<2x384xf32>
    %419 = vector.extract_strided_slice %418 {offsets = [0, 0], sizes = [2, 128], strides = [1, 1]} : vector<2x384xf32> to vector<2x128xf32>
    %420 = vector.extract_strided_slice %418 {offsets = [0, 256], sizes = [2, 128], strides = [1, 1]} : vector<2x384xf32> to vector<2x128xf32>
    %421 = vector.extract_strided_slice %411 {offsets = [0, 384], sizes = [2, 128], strides = [1, 1]} : vector<2x512xf32> to vector<2x128xf32>
    %422 = math.tanh %421 : vector<2x128xf32>
    %423 = arith.mulf %419, %422 : vector<2x128xf32>
    %424 = math.tanh %423 : vector<2x128xf32>
    %425 = arith.mulf %420, %424 : vector<2x128xf32>
    %c1_231 = arith.constant 1 : index
    %c0_232 = arith.constant 0 : index
    %c0_233 = arith.constant 0 : index
    %426 = vector.load %arg21[%c1_231, %c0_232, %c0_233] : memref<5x2x512xf32, #tpu.memory_space<vmem>>, vector<1x2x512xf32>
    %427 = vector.shape_cast %426 : vector<1x2x512xf32> to vector<2x512xf32>
    %c1_234 = arith.constant 1 : index
    %c0_235 = arith.constant 0 : index
    %c0_236 = arith.constant 0 : index
    %428 = vector.load %arg22[%c1_234, %c0_235, %c0_236] : memref<5x2x512xf32, #tpu.memory_space<vmem>>, vector<1x2x512xf32>
    %429 = vector.shape_cast %428 : vector<1x2x512xf32> to vector<2x512xf32>
    %430 = arith.addf %427, %429 : vector<2x512xf32>
    %431 = arith.truncf %425 : vector<2x128xf32> to vector<2x128xbf16>
    %c0_237 = arith.constant 0 : index
    %c0_238 = arith.constant 0 : index
    %432 = vector.load %arg10[%c0_237, %c0_238] : memref<128x512xbf16, #tpu.memory_space<vmem>>, vector<128x512xbf16>
    %cst_239 = arith.constant dense<0.000000e+00> : vector<2x512xf32>
    %433 = tpu.matmul %431, %432, %cst_239 {dimension_numbers = #tpu.dot_dimension_numbers<[1], [0], [0], [1], [0, 0, 1, 1], [], []>} : vector<2x128xbf16>, vector<128x512xbf16>, vector<2x512xf32> -> vector<2x512xf32>
    %434 = arith.addf %430, %433 : vector<2x512xf32>
    %435 = vector.extract_strided_slice %434 {offsets = [0, 0], sizes = [2, 384], strides = [1, 1]} : vector<2x512xf32> to vector<2x384xf32>
    %cst_240 = arith.constant 0.000000e+00 : f32
    %436 = vector.broadcast %cst_240 : f32 to vector<2x384xf32>
    %437 = arith.subf %436, %435 : vector<2x384xf32>
    %438 = math.exp %437 : vector<2x384xf32>
    %cst_241 = arith.constant 1.000000e+00 : f32
    %439 = vector.broadcast %cst_241 : f32 to vector<2x384xf32>
    %440 = arith.addf %439, %438 : vector<2x384xf32>
    %441 = tpu.reciprocal %440 {approx = true} : vector<2x384xf32> -> vector<2x384xf32>
    %442 = vector.extract_strided_slice %441 {offsets = [0, 0], sizes = [2, 128], strides = [1, 1]} : vector<2x384xf32> to vector<2x128xf32>
    %443 = vector.extract_strided_slice %441 {offsets = [0, 128], sizes = [2, 128], strides = [1, 1]} : vector<2x384xf32> to vector<2x128xf32>
    %444 = vector.extract_strided_slice %441 {offsets = [0, 256], sizes = [2, 128], strides = [1, 1]} : vector<2x384xf32> to vector<2x128xf32>
    %445 = vector.extract_strided_slice %434 {offsets = [0, 384], sizes = [2, 128], strides = [1, 1]} : vector<2x512xf32> to vector<2x128xf32>
    %446 = math.tanh %445 : vector<2x128xf32>
    %447 = arith.mulf %443, %423 : vector<2x128xf32>
    %448 = arith.mulf %442, %446 : vector<2x128xf32>
    %449 = arith.addf %447, %448 : vector<2x128xf32>
    %450 = math.tanh %449 : vector<2x128xf32>
    %451 = arith.mulf %444, %450 : vector<2x128xf32>
    %c2_242 = arith.constant 2 : index
    %c0_243 = arith.constant 0 : index
    %c0_244 = arith.constant 0 : index
    %452 = vector.load %arg21[%c2_242, %c0_243, %c0_244] : memref<5x2x512xf32, #tpu.memory_space<vmem>>, vector<1x2x512xf32>
    %453 = vector.shape_cast %452 : vector<1x2x512xf32> to vector<2x512xf32>
    %c2_245 = arith.constant 2 : index
    %c0_246 = arith.constant 0 : index
    %c0_247 = arith.constant 0 : index
    %454 = vector.load %arg22[%c2_245, %c0_246, %c0_247] : memref<5x2x512xf32, #tpu.memory_space<vmem>>, vector<1x2x512xf32>
    %455 = vector.shape_cast %454 : vector<1x2x512xf32> to vector<2x512xf32>
    %456 = arith.addf %453, %455 : vector<2x512xf32>
    %457 = arith.truncf %451 : vector<2x128xf32> to vector<2x128xbf16>
    %c0_248 = arith.constant 0 : index
    %c0_249 = arith.constant 0 : index
    %458 = vector.load %arg10[%c0_248, %c0_249] : memref<128x512xbf16, #tpu.memory_space<vmem>>, vector<128x512xbf16>
    %cst_250 = arith.constant dense<0.000000e+00> : vector<2x512xf32>
    %459 = tpu.matmul %457, %458, %cst_250 {dimension_numbers = #tpu.dot_dimension_numbers<[1], [0], [0], [1], [0, 0, 1, 1], [], []>} : vector<2x128xbf16>, vector<128x512xbf16>, vector<2x512xf32> -> vector<2x512xf32>
    %460 = arith.addf %456, %459 : vector<2x512xf32>
    %461 = vector.extract_strided_slice %460 {offsets = [0, 0], sizes = [2, 384], strides = [1, 1]} : vector<2x512xf32> to vector<2x384xf32>
    %cst_251 = arith.constant 0.000000e+00 : f32
    %462 = vector.broadcast %cst_251 : f32 to vector<2x384xf32>
    %463 = arith.subf %462, %461 : vector<2x384xf32>
    %464 = math.exp %463 : vector<2x384xf32>
    %cst_252 = arith.constant 1.000000e+00 : f32
    %465 = vector.broadcast %cst_252 : f32 to vector<2x384xf32>
    %466 = arith.addf %465, %464 : vector<2x384xf32>
    %467 = tpu.reciprocal %466 {approx = true} : vector<2x384xf32> -> vector<2x384xf32>
    %468 = vector.extract_strided_slice %467 {offsets = [0, 0], sizes = [2, 128], strides = [1, 1]} : vector<2x384xf32> to vector<2x128xf32>
    %469 = vector.extract_strided_slice %467 {offsets = [0, 128], sizes = [2, 128], strides = [1, 1]} : vector<2x384xf32> to vector<2x128xf32>
    %470 = vector.extract_strided_slice %467 {offsets = [0, 256], sizes = [2, 128], strides = [1, 1]} : vector<2x384xf32> to vector<2x128xf32>
    %471 = vector.extract_strided_slice %460 {offsets = [0, 384], sizes = [2, 128], strides = [1, 1]} : vector<2x512xf32> to vector<2x128xf32>
    %472 = math.tanh %471 : vector<2x128xf32>
    %473 = arith.mulf %469, %449 : vector<2x128xf32>
    %474 = arith.mulf %468, %472 : vector<2x128xf32>
    %475 = arith.addf %473, %474 : vector<2x128xf32>
    %476 = math.tanh %475 : vector<2x128xf32>
    %477 = arith.mulf %470, %476 : vector<2x128xf32>
    %c3_253 = arith.constant 3 : index
    %c0_254 = arith.constant 0 : index
    %c0_255 = arith.constant 0 : index
    %478 = vector.load %arg21[%c3_253, %c0_254, %c0_255] : memref<5x2x512xf32, #tpu.memory_space<vmem>>, vector<1x2x512xf32>
    %479 = vector.shape_cast %478 : vector<1x2x512xf32> to vector<2x512xf32>
    %c3_256 = arith.constant 3 : index
    %c0_257 = arith.constant 0 : index
    %c0_258 = arith.constant 0 : index
    %480 = vector.load %arg22[%c3_256, %c0_257, %c0_258] : memref<5x2x512xf32, #tpu.memory_space<vmem>>, vector<1x2x512xf32>
    %481 = vector.shape_cast %480 : vector<1x2x512xf32> to vector<2x512xf32>
    %482 = arith.addf %479, %481 : vector<2x512xf32>
    %483 = arith.truncf %477 : vector<2x128xf32> to vector<2x128xbf16>
    %c0_259 = arith.constant 0 : index
    %c0_260 = arith.constant 0 : index
    %484 = vector.load %arg10[%c0_259, %c0_260] : memref<128x512xbf16, #tpu.memory_space<vmem>>, vector<128x512xbf16>
    %cst_261 = arith.constant dense<0.000000e+00> : vector<2x512xf32>
    %485 = tpu.matmul %483, %484, %cst_261 {dimension_numbers = #tpu.dot_dimension_numbers<[1], [0], [0], [1], [0, 0, 1, 1], [], []>} : vector<2x128xbf16>, vector<128x512xbf16>, vector<2x512xf32> -> vector<2x512xf32>
    %486 = arith.addf %482, %485 : vector<2x512xf32>
    %487 = vector.extract_strided_slice %486 {offsets = [0, 0], sizes = [2, 384], strides = [1, 1]} : vector<2x512xf32> to vector<2x384xf32>
    %cst_262 = arith.constant 0.000000e+00 : f32
    %488 = vector.broadcast %cst_262 : f32 to vector<2x384xf32>
    %489 = arith.subf %488, %487 : vector<2x384xf32>
    %490 = math.exp %489 : vector<2x384xf32>
    %cst_263 = arith.constant 1.000000e+00 : f32
    %491 = vector.broadcast %cst_263 : f32 to vector<2x384xf32>
    %492 = arith.addf %491, %490 : vector<2x384xf32>
    %493 = tpu.reciprocal %492 {approx = true} : vector<2x384xf32> -> vector<2x384xf32>
    %494 = vector.extract_strided_slice %493 {offsets = [0, 0], sizes = [2, 128], strides = [1, 1]} : vector<2x384xf32> to vector<2x128xf32>
    %495 = vector.extract_strided_slice %493 {offsets = [0, 128], sizes = [2, 128], strides = [1, 1]} : vector<2x384xf32> to vector<2x128xf32>
    %496 = vector.extract_strided_slice %493 {offsets = [0, 256], sizes = [2, 128], strides = [1, 1]} : vector<2x384xf32> to vector<2x128xf32>
    %497 = vector.extract_strided_slice %486 {offsets = [0, 384], sizes = [2, 128], strides = [1, 1]} : vector<2x512xf32> to vector<2x128xf32>
    %498 = math.tanh %497 : vector<2x128xf32>
    %499 = arith.mulf %495, %475 : vector<2x128xf32>
    %500 = arith.mulf %494, %498 : vector<2x128xf32>
    %501 = arith.addf %499, %500 : vector<2x128xf32>
    %502 = math.tanh %501 : vector<2x128xf32>
    %503 = arith.mulf %496, %502 : vector<2x128xf32>
    %c4_264 = arith.constant 4 : index
    %c0_265 = arith.constant 0 : index
    %c0_266 = arith.constant 0 : index
    %504 = vector.load %arg21[%c4_264, %c0_265, %c0_266] : memref<5x2x512xf32, #tpu.memory_space<vmem>>, vector<1x2x512xf32>
    %505 = vector.shape_cast %504 : vector<1x2x512xf32> to vector<2x512xf32>
    %c4_267 = arith.constant 4 : index
    %c0_268 = arith.constant 0 : index
    %c0_269 = arith.constant 0 : index
    %506 = vector.load %arg22[%c4_267, %c0_268, %c0_269] : memref<5x2x512xf32, #tpu.memory_space<vmem>>, vector<1x2x512xf32>
    %507 = vector.shape_cast %506 : vector<1x2x512xf32> to vector<2x512xf32>
    %508 = arith.addf %505, %507 : vector<2x512xf32>
    %509 = arith.truncf %503 : vector<2x128xf32> to vector<2x128xbf16>
    %c0_270 = arith.constant 0 : index
    %c0_271 = arith.constant 0 : index
    %510 = vector.load %arg10[%c0_270, %c0_271] : memref<128x512xbf16, #tpu.memory_space<vmem>>, vector<128x512xbf16>
    %cst_272 = arith.constant dense<0.000000e+00> : vector<2x512xf32>
    %511 = tpu.matmul %509, %510, %cst_272 {dimension_numbers = #tpu.dot_dimension_numbers<[1], [0], [0], [1], [0, 0, 1, 1], [], []>} : vector<2x128xbf16>, vector<128x512xbf16>, vector<2x512xf32> -> vector<2x512xf32>
    %512 = arith.addf %508, %511 : vector<2x512xf32>
    %513 = vector.extract_strided_slice %512 {offsets = [0, 0], sizes = [2, 384], strides = [1, 1]} : vector<2x512xf32> to vector<2x384xf32>
    %cst_273 = arith.constant 0.000000e+00 : f32
    %514 = vector.broadcast %cst_273 : f32 to vector<2x384xf32>
    %515 = arith.subf %514, %513 : vector<2x384xf32>
    %516 = math.exp %515 : vector<2x384xf32>
    %cst_274 = arith.constant 1.000000e+00 : f32
    %517 = vector.broadcast %cst_274 : f32 to vector<2x384xf32>
    %518 = arith.addf %517, %516 : vector<2x384xf32>
    %519 = tpu.reciprocal %518 {approx = true} : vector<2x384xf32> -> vector<2x384xf32>
    %520 = vector.extract_strided_slice %519 {offsets = [0, 0], sizes = [2, 128], strides = [1, 1]} : vector<2x384xf32> to vector<2x128xf32>
    %521 = vector.extract_strided_slice %519 {offsets = [0, 128], sizes = [2, 128], strides = [1, 1]} : vector<2x384xf32> to vector<2x128xf32>
    %522 = vector.extract_strided_slice %519 {offsets = [0, 256], sizes = [2, 128], strides = [1, 1]} : vector<2x384xf32> to vector<2x128xf32>
    %523 = vector.extract_strided_slice %512 {offsets = [0, 384], sizes = [2, 128], strides = [1, 1]} : vector<2x512xf32> to vector<2x128xf32>
    %524 = math.tanh %523 : vector<2x128xf32>
    %525 = arith.mulf %521, %501 : vector<2x128xf32>
    %526 = arith.mulf %520, %524 : vector<2x128xf32>
    %527 = arith.addf %525, %526 : vector<2x128xf32>
    %528 = math.tanh %527 : vector<2x128xf32>
    %529 = arith.mulf %522, %528 : vector<2x128xf32>
    %530 = vector.extract_strided_slice %406 {offsets = [0, 0], sizes = [2, 384], strides = [1, 1]} : vector<2x512xf32> to vector<2x384xf32>
    %cst_275 = arith.constant 0.000000e+00 : f32
    %531 = vector.broadcast %cst_275 : f32 to vector<2x384xf32>
    %532 = arith.subf %531, %530 : vector<2x384xf32>
    %533 = math.exp %532 : vector<2x384xf32>
    %cst_276 = arith.constant 1.000000e+00 : f32
    %534 = vector.broadcast %cst_276 : f32 to vector<2x384xf32>
    %535 = arith.addf %534, %533 : vector<2x384xf32>
    %536 = tpu.reciprocal %535 {approx = true} : vector<2x384xf32> -> vector<2x384xf32>
    %537 = vector.extract_strided_slice %536 {offsets = [0, 0], sizes = [2, 128], strides = [1, 1]} : vector<2x384xf32> to vector<2x128xf32>
    %538 = vector.extract_strided_slice %536 {offsets = [0, 256], sizes = [2, 128], strides = [1, 1]} : vector<2x384xf32> to vector<2x128xf32>
    %539 = vector.extract_strided_slice %406 {offsets = [0, 384], sizes = [2, 128], strides = [1, 1]} : vector<2x512xf32> to vector<2x128xf32>
    %540 = math.tanh %539 : vector<2x128xf32>
    %541 = arith.mulf %537, %540 : vector<2x128xf32>
    %542 = math.tanh %541 : vector<2x128xf32>
    %543 = arith.mulf %538, %542 : vector<2x128xf32>
    %544 = arith.truncf %529 : vector<2x128xf32> to vector<2x128xbf16>
    %c0_277 = arith.constant 0 : index
    %c0_278 = arith.constant 0 : index
    %545 = vector.load %arg15[%c0_277, %c0_278] : memref<256x128xbf16, #tpu.memory_space<vmem>>, vector<128x128xbf16>
    %cst_279 = arith.constant dense<0.000000e+00> : vector<2x128xf32>
    %546 = tpu.matmul %544, %545, %cst_279 {dimension_numbers = #tpu.dot_dimension_numbers<[1], [0], [0], [1], [0, 0, 1, 1], [], []>} : vector<2x128xbf16>, vector<128x128xbf16>, vector<2x128xf32> -> vector<2x128xf32>
    %547 = arith.truncf %543 : vector<2x128xf32> to vector<2x128xbf16>
    %c128_280 = arith.constant 128 : index
    %c0_281 = arith.constant 0 : index
    %548 = vector.load %arg15[%c128_280, %c0_281] : memref<256x128xbf16, #tpu.memory_space<vmem>>, vector<128x128xbf16>
    %cst_282 = arith.constant dense<0.000000e+00> : vector<2x128xf32>
    %549 = tpu.matmul %547, %548, %cst_282 {dimension_numbers = #tpu.dot_dimension_numbers<[1], [0], [0], [1], [0, 0, 1, 1], [], []>} : vector<2x128xbf16>, vector<128x128xbf16>, vector<2x128xf32> -> vector<2x128xf32>
    %550 = arith.addf %546, %549 : vector<2x128xf32>
    %c0_283 = arith.constant 0 : index
    %c0_284 = arith.constant 0 : index
    %551 = vector.load %arg16[%c0_283, %c0_284] : memref<1x128xf32, #tpu.memory_space<vmem>>, vector<1x128xf32>
    %552 = vector.broadcast %551 : vector<1x128xf32> to vector<2x128xf32>
    %553 = arith.addf %550, %552 : vector<2x128xf32>
    %cst_285 = arith.constant 0.000000e+00 : f32
    %554 = vector.broadcast %cst_285 : f32 to vector<2x128xf32>
    %555 = arith.maximumf %553, %554 : vector<2x128xf32>
    %556 = arith.truncf %555 : vector<2x128xf32> to vector<2x128xbf16>
    %c0_286 = arith.constant 0 : index
    %c0_287 = arith.constant 0 : index
    %557 = vector.load %arg17[%c0_286, %c0_287] : memref<128x128xbf16, #tpu.memory_space<vmem>>, vector<128x128xbf16>
    %cst_288 = arith.constant dense<0.000000e+00> : vector<2x128xf32>
    %558 = tpu.matmul %556, %557, %cst_288 {dimension_numbers = #tpu.dot_dimension_numbers<[1], [0], [0], [1], [0, 0, 1, 1], [], []>} : vector<2x128xbf16>, vector<128x128xbf16>, vector<2x128xf32> -> vector<2x128xf32>
    %c0_289 = arith.constant 0 : index
    %c0_290 = arith.constant 0 : index
    %559 = vector.load %arg18[%c0_289, %c0_290] : memref<1x128xf32, #tpu.memory_space<vmem>>, vector<1x128xf32>
    %560 = vector.broadcast %559 : vector<1x128xf32> to vector<2x128xf32>
    %561 = arith.addf %558, %560 : vector<2x128xf32>
    %c0_291 = arith.constant 0 : index
    %c0_292 = arith.constant 0 : index
    %562 = vector.load %arg19[%c0_291, %c0_292] : memref<2x128xf32, #tpu.memory_space<vmem>>, vector<2x128xf32>
    tpu.vector_store %arg19[%c0_291, %c0_292], %561 {strides = array<i32>} : memref<2x128xf32, #tpu.memory_space<vmem>>, vector<2x128xf32>,
    return
  }
}

</mosaic_0001>

<bundles_post_ra>
// kernel: skeleton_lstm_forward.1
= control target key start
LH: loop header
LB: loop body
LE: loop exit
PB: predicated region body
PF: predicated region fallthrough
CT: control target
= control target key end

     0   :  { %s18130_s0 = inlined_call_operand.vmem [shape: f32[2,210], index: 0, kind: input, shape index: {}]   ;;  %s18131_s1 = inlined_call_operand.hbm [shape: f32[210,1280], index: 1, kind: input, shape index: {}]   ;;  %s18132_s2 = inlined_call_operand.hbm [shape: f32[1,1280], index: 2, kind: input, shape index: {}]   ;;  %s18133_s3 = inlined_call_operand.hbm [shape: bf16[256,128], index: 3, kind: input, shape index: {}]   ;;  %s18134_s4 = inlined_call_operand.hbm [shape: f32[1,128], index: 4, kind: input, shape index: {}]   ;;  %s18135_s5 = inlined_call_operand.hbm [shape: bf16[128,1024], index: 5, kind: input, shape index: {}]   ;;  %s18136_s6 = inlined_call_operand.hbm [shape: f32[1,1024], index: 6, kind: input, shape index: {}]   ;;  %s18137_s7 = inlined_call_operand.hbm [shape: bf16[128,512], index: 7, kind: input, shape index: {}]   ;;  %s18138_s8 = inlined_call_operand.hbm [shape: bf16[128,512], index: 8, kind: input, shape index: {}]   ;;  %s18139_s9 = inlined_call_operand.hbm [shape: bf16[256,512], index: 9, kind: input, shape index: {}]   ;;  %s18140_s10 = inlined_call_operand.hbm [shape: bf16[128,512], index: 10, kind: input, shape index: {}]   ;;  %s18141_s11 = inlined_call_operand.hbm [shape: f32[1,512], index: 11, kind: input, shape index: {}]   ;;  %s18142_s12 = inlined_call_operand.hbm [shape: bf16[256,512], index: 12, kind: input, shape index: {}]   ;;  %s18143_s13 = inlined_call_operand.hbm [shape: bf16[128,512], index: 13, kind: input, shape index: {}]   ;;  %s18144_s14 = inlined_call_operand.hbm [shape: f32[1,512], index: 14, kind: input, shape index: {}]   ;;  %s18145_s15 = inlined_call_operand.hbm [shape: bf16[256,128], index: 15, kind: input, shape index: {}]   ;;  %s18146_s16 = inlined_call_operand.hbm [shape: f32[1,128], index: 16, kind: input, shape index: {}]   ;;  %s18147_s17 = inlined_call_operand.hbm [shape: bf16[128,128], index: 17, kind: input, shape index: {}]   ;;  %s18148_s18 = inlined_call_operand.hbm [shape: f32[1,128], index: 18, kind: input, shape index: {}]   ;;  %s18149_s19 = inlined_call_operand.hbm [shape: f32[2,128], index: 19, kind: output, shape index: {}]  }
   0x1   :  { %18383 = sst [smem:[#allocation140_spill]] %s18130_s0 }
   0x2   :  { %18384 = sst [smem:[#allocation141_spill]] %s18131_s1 }
   0x3   :  { %18385 = sst [smem:[#allocation142_spill]] %s18132_s2 }
   0x4   :  { %18386 = sst [smem:[#allocation143_spill]] %s18133_s3 }
   0x5   :  { %24 = vsyncpa [#allocation6], 0 }
   0x6   :  { %25 = vsyncpa [#allocation9], 0 }
   0x7   :  { %26 = vsyncpa [#allocation12], 0 }
   0x8   :  { %27 = vsyncpa [#allocation15], 0 }
   0x9   :  { %28 = vsyncpa [#allocation18], 0 }
   0xa   :  { %29 = vsyncpa [#allocation21], 0 }
   0xb   :  { %30 = vsyncpa [#allocation24], 0 }
   0xc   :  { %31 = vsyncpa [#allocation27], 0 }
   0xd   :  { %32 = vsyncpa [#allocation30], 0 }
   0xe   :  { %33 = vsyncpa [#allocation33], 0 }
   0xf   :  { %34 = vsyncpa [#allocation7], 0  ;;  %s15351_s0 = smov [#allocation8]   ;;  %s15352_s20 = smov [#allocation11]  }
  0x10   :  { %s55_s30 = sshll.u32 %s15351_s0, 4  ;;  %s77_s21 = sshll.u32 %s15352_s20, 4  ;;  %s56_s30 = int_to_ptr.vmem [resolvable:$true] %s55_s30  ;;  %s78_s21 = int_to_ptr.vmem [resolvable:$true] %s77_s21 }
  0x11   :  { %s18387_s2 = sld [smem:[#allocation142_spill]] }
  0x17   :  { %s14911_s23 = scalar_lea.hbm %s18387_s2, 160 }
  0x18   :  { %p14912_p0 = scmp.ne.s32.totalorder %s18387_s2, %s14911_s23  ;;  %p14915_p1 = scmp.lt.u32.totalorder %s14911_s23, %s18387_s2 }
  0x1a   :  { %p14917_p2 = pnand %p14915_p1, %p14912_p0 }
  0x1c   :  { %14920 = shalt.err (!%p14917_p2)
}
  0x1d   :  { %s14921_s27 = scalar_lea.vmem %s56_s30, 160  ;;  %p14926_p4 = scmp.lt.s32.totalorder %s56_s30, %s56_s30 }
  0x1e   :  { %p14922_p3 = scmp.ne.s32.totalorder %s56_s30, %s14921_s27  ;;  %p14927_p5 = scmp.lt.s32.totalorder %s14921_s27, %s14921_s27 }
  0x20   :  { %p14928_p6 = por %p14927_p5, %p14926_p4 }
  0x22   :  { %p14929_p7 = pnand %p14928_p6, %p14922_p3 }
  0x24   :  { %14932 = shalt.err (!%p14929_p7)
}
  0x25   :  { %58 = dma.hbm_to_vmem [thread:$0]  %s18387_s2, 160, %s56_s30, [#allocation9]  }
  0x26   :  { %s14933_s1 = scalar_lea.hbm %s18134_s4, 16 }
  0x27   :  { %p14934_p8 = scmp.ne.s32.totalorder %s18134_s4, %s14933_s1  ;;  %p14937_p9 = scmp.lt.u32.totalorder %s14933_s1, %s18134_s4 }
  0x29   :  { %p14939_p10 = pnand %p14937_p9, %p14934_p8 }
  0x2b   :  { %14942 = shalt.err (!%p14939_p10)
}
  0x2c   :  { %s14943_s3 = scalar_lea.vmem %s78_s21, 16  ;;  %s14947_s26 = scalar_lea.vmem %s78_s21, 32 }
  0x2d   :  { %p14944_p11 = scmp.ne.s32.totalorder %s78_s21, %s14943_s3  ;;  %p14948_p12 = scmp.lt.s32.totalorder %s78_s21, %s78_s21 }
  0x2e   :  { %p14949_p13 = scmp.lt.s32.totalorder %s14947_s26, %s14943_s3 }
  0x30   :  { %p14950_p0 = por %p14949_p13, %p14948_p12 }
  0x32   :  { %p14951_p1 = pnand %p14950_p0, %p14944_p11 }
  0x34   :  { %14954 = shalt.err (!%p14951_p1)
}
  0x35   :  { %80 = dma.hbm_to_vmem [thread:$0]  %s18134_s4, 16, %s78_s21, [#allocation12]  }
  0x36   :  { %s15353_s27 = smov [#allocation14]   ;;  %s14955_s20 = scalar_lea.hbm %s18136_s6, 128 }
  0x37   :  { %s99_s28 = sshll.u32 %s15353_s27, 4  ;;  %p14956_p2 = scmp.ne.s32.totalorder %s18136_s6, %s14955_s20  ;;  %s100_s28 = int_to_ptr.vmem [resolvable:$true] %s99_s28 }
  0x38   :  { %p14959_p3 = scmp.lt.u32.totalorder %s14955_s20, %s18136_s6 }
  0x3a   :  { %p14961_p4 = pnand %p14959_p3, %p14956_p2 }
  0x3c   :  { %14964 = shalt.err (!%p14961_p4)
}
  0x3d   :  { %s14965_s25 = scalar_lea.vmem %s100_s28, 128  ;;  %p14970_p6 = scmp.lt.s32.totalorder %s100_s28, %s100_s28 }
  0x3e   :  { %p14966_p5 = scmp.ne.s32.totalorder %s100_s28, %s14965_s25  ;;  %p14971_p7 = scmp.lt.s32.totalorder %s14965_s25, %s14965_s25 }
  0x40   :  { %p14972_p8 = por %p14971_p7, %p14970_p6 }
  0x42   :  { %p14973_p9 = pnand %p14972_p8, %p14966_p5 }
  0x44   :  { %14976 = shalt.err (!%p14973_p9)
}
  0x45   :  { %102 = dma.hbm_to_vmem [thread:$0]  %s18136_s6, 128, %s100_s28, [#allocation15]  }
  0x46   :  { %s15354_s3 = smov [#allocation17]   ;;  %s15355_s30 = smov [#allocation20]  }
  0x47   :  { %s120_s26 = sshll.u32 %s15354_s3, 4  ;;  %s144_s2 = sshll.u32 %s15355_s30, 4  ;;  %s121_s26 = int_to_ptr.vmem [resolvable:$true] %s120_s26  ;;  %s145_s2 = int_to_ptr.vmem [resolvable:$true] %s144_s2 }
  0x48   :  { %s14977_s0 = scalar_lea.hbm %s18138_s8, 4096 }
  0x49   :  { %p14978_p10 = scmp.ne.s32.totalorder %s18138_s8, %s14977_s0  ;;  %p14981_p11 = scmp.lt.u32.totalorder %s14977_s0, %s18138_s8 }
  0x4b   :  { %p14983_p12 = pnand %p14981_p11, %p14978_p10 }
  0x4d   :  { %14986 = shalt.err (!%p14983_p12)
}
  0x4e   :  { %s14987_s6 = scalar_lea.vmem %s121_s26, 4096  ;;  %p14992_p0 = scmp.lt.s32.totalorder %s121_s26, %s121_s26 }
  0x4f   :  { %p14988_p13 = scmp.ne.s32.totalorder %s121_s26, %s14987_s6  ;;  %p14993_p1 = scmp.lt.s32.totalorder %s14987_s6, %s14987_s6 }
  0x51   :  { %p14994_p2 = por %p14993_p1, %p14992_p0 }
  0x53   :  { %p14995_p3 = pnand %p14994_p2, %p14988_p13 }
  0x55   :  { %14998 = shalt.err (!%p14995_p3)
}
  0x56   :  { %s15356_s28 = smov 256   ;;  %s15357_s23 = smov 16  }
  0x57   :  { %126 = dma.hbm_to_vmem [thread:$0]  %s18138_s8, 4096, %s121_s26, [#allocation18], %s15356_s28, %s15356_s28, %s15357_s23  }
  0x58   :  { %s14999_s30 = scalar_lea.hbm %s18140_s10, 4096 }
  0x59   :  { %p15000_p4 = scmp.ne.s32.totalorder %s18140_s10, %s14999_s30  ;;  %p15003_p5 = scmp.lt.u32.totalorder %s14999_s30, %s18140_s10 }
  0x5b   :  { %p15005_p6 = pnand %p15003_p5, %p15000_p4 }
  0x5d   :  { %15008 = shalt.err (!%p15005_p6)
}
  0x5e   :  { %s15009_s1 = scalar_lea.vmem %s145_s2, 4096  ;;  %p15014_p8 = scmp.lt.s32.totalorder %s145_s2, %s145_s2 }
  0x5f   :  { %p15010_p7 = scmp.ne.s32.totalorder %s145_s2, %s15009_s1  ;;  %p15015_p9 = scmp.lt.s32.totalorder %s15009_s1, %s15009_s1 }
  0x61   :  { %p15016_p10 = por %p15015_p9, %p15014_p8 }
  0x63   :  { %p15017_p11 = pnand %p15016_p10, %p15010_p7 }
  0x65   :  { %15020 = shalt.err (!%p15017_p11)
}
  0x66   :  { %150 = dma.hbm_to_vmem [thread:$0]  %s18140_s10, 4096, %s145_s2, [#allocation21], %s15356_s28, %s15356_s28, %s15357_s23  }
  0x67   :  { %s15358_s22 = smov [#allocation23]   ;;  %s15359_s6 = smov [#allocation26]  }
  0x68   :  { %s166_s24 = sshll.u32 %s15358_s22, 4  ;;  %s191_s25 = sshll.u32 %s15359_s6, 4  ;;  %s167_s24 = int_to_ptr.vmem [resolvable:$true] %s166_s24  ;;  %s192_s25 = int_to_ptr.vmem [resolvable:$true] %s191_s25 }
  0x69   :  { %s15021_s3 = scalar_lea.hbm %s18142_s12, 8192 }
  0x6a   :  { %p15022_p12 = scmp.ne.s32.totalorder %s18142_s12, %s15021_s3  ;;  %p15025_p13 = scmp.lt.u32.totalorder %s15021_s3, %s18142_s12 }
  0x6c   :  { %p15027_p0 = pnand %p15025_p13, %p15022_p12 }
  0x6e   :  { %15030 = shalt.err (!%p15027_p0)
}
  0x6f   :  { %s15031_s10 = scalar_lea.vmem %s167_s24, 8192  ;;  %p15036_p2 = scmp.lt.s32.totalorder %s167_s24, %s167_s24 }
  0x70   :  { %p15032_p1 = scmp.ne.s32.totalorder %s167_s24, %s15031_s10  ;;  %p15037_p3 = scmp.lt.s32.totalorder %s15031_s10, %s15031_s10 }
  0x72   :  { %p15038_p4 = por %p15037_p3, %p15036_p2 }
  0x74   :  { %p15039_p5 = pnand %p15038_p4, %p15032_p1 }
  0x76   :  { %15042 = shalt.err (!%p15039_p5)
}
  0x77   :  { %172 = dma.hbm_to_vmem [thread:$0]  %s18142_s12, 8192, %s167_s24, [#allocation24], %s15356_s28, %s15356_s28, %s15357_s23  }
  0x78   :  { %s15043_s26 = scalar_lea.hbm %s18144_s14, 64 }
  0x79   :  { %p15044_p6 = scmp.ne.s32.totalorder %s18144_s14, %s15043_s26  ;;  %p15047_p7 = scmp.lt.u32.totalorder %s15043_s26, %s18144_s14 }
  0x7b   :  { %p15049_p8 = pnand %p15047_p7, %p15044_p6 }
  0x7d   :  { %15052 = shalt.err (!%p15049_p8)
}
  0x7e   :  { %s15053_s3 = scalar_lea.vmem %s192_s25, 64  ;;  %p15058_p10 = scmp.lt.s32.totalorder %s192_s25, %s192_s25 }
  0x7f   :  { %p15054_p9 = scmp.ne.s32.totalorder %s192_s25, %s15053_s3  ;;  %p15059_p11 = scmp.lt.s32.totalorder %s15053_s3, %s15053_s3 }
  0x81   :  { %p15060_p12 = por %p15059_p11, %p15058_p10 }
  0x83   :  { %p15061_p13 = pnand %p15060_p12, %p15054_p9 }
  0x85   :  { %15064 = shalt.err (!%p15061_p13)
}
  0x86   :  { %194 = dma.hbm_to_vmem [thread:$0]  %s18144_s14, 64, %s192_s25, [#allocation27]  }
  0x87   :  { %s15360_s30 = smov [#allocation29]   ;;  %s15361_s29 = smov [#allocation5]  }
  0x88   :  { %s213_s27 = sshll.u32 %s15360_s30, 4  ;;  %s42_s0 = sshll.u32 %s15361_s29, 4  ;;  %s214_s27 = int_to_ptr.vmem [resolvable:$true] %s213_s27  ;;  %s43_s0 = int_to_ptr.vmem [resolvable:$true] %s42_s0 }
  0x89   :  { %s15065_s20 = scalar_lea.hbm %s18146_s16, 16 }
  0x8a   :  { %p15066_p0 = scmp.ne.s32.totalorder %s18146_s16, %s15065_s20  ;;  %p15069_p1 = scmp.lt.u32.totalorder %s15065_s20, %s18146_s16 }
  0x8c   :  { %p15071_p2 = pnand %p15069_p1, %p15066_p0 }
  0x8e   :  { %15074 = shalt.err (!%p15071_p2)
}
  0x8f   :  { %s15075_s14 = scalar_lea.vmem %s214_s27, 16  ;;  %s15079_s25 = scalar_lea.vmem %s214_s27, 32 }
  0x90   :  { %p15076_p3 = scmp.ne.s32.totalorder %s214_s27, %s15075_s14  ;;  %p15080_p4 = scmp.lt.s32.totalorder %s214_s27, %s214_s27 }
  0x91   :  { %p15081_p5 = scmp.lt.s32.totalorder %s15079_s25, %s15075_s14 }
  0x93   :  { %p15082_p6 = por %p15081_p5, %p15080_p4 }
  0x95   :  { %p15083_p7 = pnand %p15082_p6, %p15076_p3 }
  0x97   :  { %15086 = shalt.err (!%p15083_p7)
}
  0x98   :  { %216 = dma.hbm_to_vmem [thread:$0]  %s18146_s16, 16, %s214_s27, [#allocation30]  }
  0x99   :  { %s18388_s12 = sld [smem:[#allocation141_spill]] }
  0x9f   :  { %s15087_s24 = scalar_lea.hbm %s18388_s12, 34560 }
  0xa0   :  { %p15088_p8 = scmp.ne.s32.totalorder %s18388_s12, %s15087_s24  ;;  %p15091_p9 = scmp.lt.u32.totalorder %s15087_s24, %s18388_s12 }
  0xa2   :  { %p15093_p10 = pnand %p15091_p9, %p15088_p8 }
  0xa4   :  { %15096 = shalt.err (!%p15093_p10)
}
  0xa5   :  { %s15097_s20 = scalar_lea.vmem %s43_s0, 34560  ;;  %p15102_p12 = scmp.lt.s32.totalorder %s43_s0, %s43_s0 }
  0xa6   :  { %p15098_p11 = scmp.ne.s32.totalorder %s43_s0, %s15097_s20  ;;  %p15103_p13 = scmp.lt.s32.totalorder %s15097_s20, %s15097_s20 }
  0xa8   :  { %p15104_p0 = por %p15103_p13, %p15102_p12 }
  0xaa   :  { %p15105_p1 = pnand %p15104_p0, %p15098_p11 }
  0xac   :  { %15108 = shalt.err (!%p15105_p1)
}
  0xad   :  { %s15362_s16 = smov 1280   ;;  %s15363_s27 = smov 80  }
  0xae   :  { %48 = dma.hbm_to_vmem [thread:$0]  %s18388_s12, 34560, %s43_s0, [#allocation6], %s15362_s16, %s15362_s16, %s15363_s27  }
  0xaf   :  { %s15364_s26 = smov [#allocation10]   ;;  %s18389_s6 = sld [smem:[#allocation143_spill]] }
  0xb0   :  { %s64_s22 = sshll.u32 %s15364_s26, 4  ;;  %s65_s22 = int_to_ptr.vmem [resolvable:$true] %s64_s22 }
  0xb5   :  { %s15109_s4 = scalar_lea.hbm %s18389_s6, 2048 }
  0xb6   :  { %p15110_p2 = scmp.ne.s32.totalorder %s18389_s6, %s15109_s4  ;;  %p15113_p3 = scmp.lt.u32.totalorder %s15109_s4, %s18389_s6 }
  0xb8   :  { %p15115_p4 = pnand %p15113_p3, %p15110_p2 }
  0xba   :  { %15118 = shalt.err (!%p15115_p4)
}
  0xbb   :  { %s15119_s29 = scalar_lea.vmem %s65_s22, 2048  ;;  %p15124_p6 = scmp.lt.s32.totalorder %s65_s22, %s65_s22 }
  0xbc   :  { %p15120_p5 = scmp.ne.s32.totalorder %s65_s22, %s15119_s29  ;;  %p15125_p7 = scmp.lt.s32.totalorder %s15119_s29, %s15119_s29 }
  0xbe   :  { %p15126_p8 = por %p15125_p7, %p15124_p6 }
  0xc0   :  { %p15127_p9 = pnand %p15126_p8, %p15120_p5 }
  0xc2   :  { %15130 = shalt.err (!%p15127_p9)
}
  0xc3   :  { %s15365_s0 = smov 64   ;;  %s15366_s12 = smov 4  }
  0xc4   :  { %70 = dma.hbm_to_vmem [thread:$0]  %s18389_s6, 2048, %s65_s22, [#allocation9], %s15365_s0, %s15365_s0, %s15366_s12  }
  0xc5   :  { %s15367_s20 = smov [#allocation13]   ;;  %s15131_s8 = scalar_lea.hbm %s18135_s5, 8192 }
  0xc6   :  { %s86_s16 = sshll.u32 %s15367_s20, 4  ;;  %p15132_p10 = scmp.ne.s32.totalorder %s18135_s5, %s15131_s8  ;;  %s87_s16 = int_to_ptr.vmem [resolvable:$true] %s86_s16 }
  0xc7   :  { %p15135_p11 = scmp.lt.u32.totalorder %s15131_s8, %s18135_s5 }
  0xc9   :  { %p15137_p12 = pnand %p15135_p11, %p15132_p10 }
  0xcb   :  { %15140 = shalt.err (!%p15137_p12)
}
  0xcc   :  { %s15141_s21 = scalar_lea.vmem %s87_s16, 8192  ;;  %p15146_p0 = scmp.lt.s32.totalorder %s87_s16, %s87_s16 }
  0xcd   :  { %p15142_p13 = scmp.ne.s32.totalorder %s87_s16, %s15141_s21  ;;  %p15147_p1 = scmp.lt.s32.totalorder %s15141_s21, %s15141_s21 }
  0xcf   :  { %p15148_p2 = por %p15147_p1, %p15146_p0 }
  0xd1   :  { %p15149_p3 = pnand %p15148_p2, %p15142_p13 }
  0xd3   :  { %15152 = shalt.err (!%p15149_p3)
}
  0xd4   :  { %s15368_s22 = smov 512   ;;  %s15369_s6 = smov 32  }
  0xd5   :  { %92 = dma.hbm_to_vmem [thread:$0]  %s18135_s5, 8192, %s87_s16, [#allocation12], %s15368_s22, %s15368_s22, %s15369_s6  }
  0xd6   :  { %s15370_s30 = smov [#allocation16]   ;;  %s15371_s10 = smov [#allocation19]  }
  0xd7   :  { %s108_s29 = sshll.u32 %s15370_s30, 4  ;;  %s132_s2 = sshll.u32 %s15371_s10, 4  ;;  %s109_s29 = int_to_ptr.vmem [resolvable:$true] %s108_s29  ;;  %s133_s2 = int_to_ptr.vmem [resolvable:$true] %s132_s2 }
  0xd8   :  { %s15153_s1 = scalar_lea.hbm %s18137_s7, 4096 }
  0xd9   :  { %p15154_p4 = scmp.ne.s32.totalorder %s18137_s7, %s15153_s1  ;;  %p15157_p5 = scmp.lt.u32.totalorder %s15153_s1, %s18137_s7 }
  0xdb   :  { %p15159_p6 = pnand %p15157_p5, %p15154_p4 }
  0xdd   :  { %15162 = shalt.err (!%p15159_p6)
}
  0xde   :  { %s15163_s5 = scalar_lea.vmem %s109_s29, 4096  ;;  %p15168_p8 = scmp.lt.s32.totalorder %s109_s29, %s109_s29 }
  0xdf   :  { %p15164_p7 = scmp.ne.s32.totalorder %s109_s29, %s15163_s5  ;;  %p15169_p9 = scmp.lt.s32.totalorder %s15163_s5, %s15163_s5 }
  0xe1   :  { %p15170_p10 = por %p15169_p9, %p15168_p8 }
  0xe3   :  { %p15171_p11 = pnand %p15170_p10, %p15164_p7 }
  0xe5   :  { %15174 = shalt.err (!%p15171_p11)
}
  0xe6   :  { %114 = dma.hbm_to_vmem [thread:$0]  %s18137_s7, 4096, %s109_s29, [#allocation15], %s15356_s28, %s15356_s28, %s15357_s23  }
  0xe7   :  { %s15175_s6 = scalar_lea.hbm %s18139_s9, 8192 }
  0xe8   :  { %p15176_p12 = scmp.ne.s32.totalorder %s18139_s9, %s15175_s6  ;;  %p15179_p13 = scmp.lt.u32.totalorder %s15175_s6, %s18139_s9 }
  0xea   :  { %p15181_p0 = pnand %p15179_p13, %p15176_p12 }
  0xec   :  { %15184 = shalt.err (!%p15181_p0)
}
  0xed   :  { %s15185_s20 = scalar_lea.vmem %s133_s2, 8192  ;;  %p15190_p2 = scmp.lt.s32.totalorder %s133_s2, %s133_s2 }
  0xee   :  { %p15186_p1 = scmp.ne.s32.totalorder %s133_s2, %s15185_s20  ;;  %p15191_p3 = scmp.lt.s32.totalorder %s15185_s20, %s15185_s20 }
  0xf0   :  { %p15192_p4 = por %p15191_p3, %p15190_p2 }
  0xf2   :  { %p15193_p5 = pnand %p15192_p4, %p15186_p1 }
  0xf4   :  { %15196 = shalt.err (!%p15193_p5)
}
  0xf5   :  { %138 = dma.hbm_to_vmem [thread:$0]  %s18139_s9, 8192, %s133_s2, [#allocation18], %s15356_s28, %s15356_s28, %s15357_s23  }
  0xf6   :  { %s15372_s27 = smov [#allocation22]   ;;  %s15373_s8 = smov [#allocation25]  }
  0xf7   :  { %s157_s1 = sshll.u32 %s15372_s27, 4  ;;  %s178_s26 = sshll.u32 %s15373_s8, 4  ;;  %s158_s1 = int_to_ptr.vmem [resolvable:$true] %s157_s1  ;;  %s179_s26 = int_to_ptr.vmem [resolvable:$true] %s178_s26 }
  0xf8   :  { %s15197_s5 = scalar_lea.hbm %s18141_s11, 64 }
  0xf9   :  { %p15198_p6 = scmp.ne.s32.totalorder %s18141_s11, %s15197_s5  ;;  %p15201_p7 = scmp.lt.u32.totalorder %s15197_s5, %s18141_s11 }
  0xfb   :  { %p15203_p8 = pnand %p15201_p7, %p15198_p6 }
  0xfd   :  { %15206 = shalt.err (!%p15203_p8)
}
  0xfe   :  { %s15207_s9 = scalar_lea.vmem %s158_s1, 64  ;;  %p15212_p10 = scmp.lt.s32.totalorder %s158_s1, %s158_s1 }
  0xff   :  { %p15208_p9 = scmp.ne.s32.totalorder %s158_s1, %s15207_s9  ;;  %p15213_p11 = scmp.lt.s32.totalorder %s15207_s9, %s15207_s9 }
 0x101   :  { %p15214_p12 = por %p15213_p11, %p15212_p10 }
 0x103   :  { %p15215_p13 = pnand %p15214_p12, %p15208_p9 }
 0x105   :  { %15218 = shalt.err (!%p15215_p13)
}
 0x106   :  { %160 = dma.hbm_to_vmem [thread:$0]  %s18141_s11, 64, %s158_s1, [#allocation21]  }
 0x107   :  { %s15219_s30 = scalar_lea.hbm %s18143_s13, 4096 }
 0x108   :  { %p15220_p0 = scmp.ne.s32.totalorder %s18143_s13, %s15219_s30  ;;  %p15223_p1 = scmp.lt.u32.totalorder %s15219_s30, %s18143_s13 }
 0x10a   :  { %p15225_p2 = pnand %p15223_p1, %p15220_p0 }
 0x10c   :  { %15228 = shalt.err (!%p15225_p2)
}
 0x10d   :  { %s15229_s27 = scalar_lea.vmem %s179_s26, 4096  ;;  %p15234_p4 = scmp.lt.s32.totalorder %s179_s26, %s179_s26 }
 0x10e   :  { %p15230_p3 = scmp.ne.s32.totalorder %s179_s26, %s15229_s27  ;;  %p15235_p5 = scmp.lt.s32.totalorder %s15229_s27, %s15229_s27 }
 0x110   :  { %p15236_p6 = por %p15235_p5, %p15234_p4 }
 0x112   :  { %p15237_p7 = pnand %p15236_p6, %p15230_p3 }
 0x114   :  { %15240 = shalt.err (!%p15237_p7)
}
 0x115   :  { %184 = dma.hbm_to_vmem [thread:$0]  %s18143_s13, 4096, %s179_s26, [#allocation24], %s15356_s28, %s15356_s28, %s15357_s23  }
 0x116   :  { %s15374_s8 = smov [#allocation28]   ;;  %s15375_s25 = smov [#allocation31]  }
 0x117   :  { %s200_s14 = sshll.u32 %s15374_s8, 4  ;;  %s222_s5 = sshll.u32 %s15375_s25, 4  ;;  %s201_s14 = int_to_ptr.vmem [resolvable:$true] %s200_s14  ;;  %s223_s5 = int_to_ptr.vmem [resolvable:$true] %s222_s5 }
 0x118   :  { %s15241_s21 = scalar_lea.hbm %s18145_s15, 2048 }
 0x119   :  { %p15242_p8 = scmp.ne.s32.totalorder %s18145_s15, %s15241_s21  ;;  %p15245_p9 = scmp.lt.u32.totalorder %s15241_s21, %s18145_s15 }
 0x11b   :  { %p15247_p10 = pnand %p15245_p9, %p15242_p8 }
 0x11d   :  { %15250 = shalt.err (!%p15247_p10)
}
 0x11e   :  { %s15251_s13 = scalar_lea.vmem %s201_s14, 2048  ;;  %p15256_p12 = scmp.lt.s32.totalorder %s201_s14, %s201_s14 }
 0x11f   :  { %p15252_p11 = scmp.ne.s32.totalorder %s201_s14, %s15251_s13  ;;  %p15257_p13 = scmp.lt.s32.totalorder %s15251_s13, %s15251_s13 }
 0x121   :  { %p15258_p0 = por %p15257_p13, %p15256_p12 }
 0x123   :  { %p15259_p1 = pnand %p15258_p0, %p15252_p11 }
 0x125   :  { %15262 = shalt.err (!%p15259_p1)
}
 0x126   :  { %206 = dma.hbm_to_vmem [thread:$0]  %s18145_s15, 2048, %s201_s14, [#allocation27], %s15365_s0, %s15365_s0, %s15366_s12  }
 0x127   :  { %s15263_s24 = scalar_lea.hbm %s18147_s17, 1024 }
 0x128   :  { %p15264_p2 = scmp.ne.s32.totalorder %s18147_s17, %s15263_s24  ;;  %p15267_p3 = scmp.lt.u32.totalorder %s15263_s24, %s18147_s17 }
 0x12a   :  { %p15269_p4 = pnand %p15267_p3, %p15264_p2 }
 0x12c   :  { %15272 = shalt.err (!%p15269_p4)
}
 0x12d   :  { %s15273_s29 = scalar_lea.vmem %s223_s5, 1024  ;;  %p15278_p6 = scmp.lt.s32.totalorder %s223_s5, %s223_s5 }
 0x12e   :  { %p15274_p5 = scmp.ne.s32.totalorder %s223_s5, %s15273_s29  ;;  %p15279_p7 = scmp.lt.s32.totalorder %s15273_s29, %s15273_s29 }
 0x130   :  { %p15280_p8 = por %p15279_p7, %p15278_p6 }
 0x132   :  { %p15281_p9 = pnand %p15280_p8, %p15274_p5 }
 0x134   :  { %15284 = shalt.err (!%p15281_p9)
}
 0x135   :  { %228 = dma.hbm_to_vmem [thread:$0]  %s18147_s17, 1024, %s223_s5, [#allocation30], %s15365_s0, %s15365_s0, %s15366_s12  }
 0x136   :  { %s15376_s11 = smov [#allocation32]   ;;  %s15285_s25 = scalar_lea.hbm %s18148_s18, 16 }
 0x137   :  { %s235_s1 = sshll.u32 %s15376_s11, 4  ;;  %p15286_p10 = scmp.ne.s32.totalorder %s18148_s18, %s15285_s25  ;;  %s236_s1 = int_to_ptr.vmem [resolvable:$true] %s235_s1 }
 0x138   :  { %p15289_p11 = scmp.lt.u32.totalorder %s15285_s25, %s18148_s18 }
 0x13a   :  { %p15291_p12 = pnand %p15289_p11, %p15286_p10 }
 0x13c   :  { %15294 = shalt.err (!%p15291_p12)
}
 0x13d   :  { %s15295_s9 = scalar_lea.vmem %s236_s1, 16  ;;  %s15299_s17 = scalar_lea.vmem %s236_s1, 32 }
 0x13e   :  { %p15296_p13 = scmp.ne.s32.totalorder %s236_s1, %s15295_s9  ;;  %p15300_p0 = scmp.lt.s32.totalorder %s236_s1, %s236_s1 }
 0x13f   :  { %p15301_p1 = scmp.lt.s32.totalorder %s15299_s17, %s15295_s9 }
 0x141   :  { %p15302_p2 = por %p15301_p1, %p15300_p0 }
 0x143   :  { %p15303_p3 = pnand %p15302_p2, %p15296_p13 }
 0x145   :  { %15306 = shalt.err (!%p15303_p3)
}
 0x146   :  { %238 = dma.hbm_to_vmem [thread:$0]  %s18148_s18, 16, %s236_s1, [#allocation33]  }
 0x147   :  { %15329 = dma.done.wait [#allocation6], 34560  }
 0x148   :  { %15330 = vsyncadd [#allocation6], 4294932736 }
 0x149   :  { %15331 = dma.done.wait [#allocation9], 2208  }
 0x14a   :  { %15332 = vsyncadd [#allocation9], 4294965088 }
 0x14b   :  { %15333 = dma.done.wait [#allocation12], 8208  }
 0x14c   :  { %15334 = vsyncadd [#allocation12], 4294959088 }
 0x14d   :  { %15335 = dma.done.wait [#allocation15], 4224  }
 0x14e   :  { %15336 = vsyncadd [#allocation15], 4294963072 }
 0x14f   :  { %15337 = dma.done.wait [#allocation18], 12288  }
 0x150   :  { %15338 = vsyncadd [#allocation18], 4294955008 }
 0x151   :  { %15339 = dma.done.wait [#allocation21], 4160  }
 0x152   :  { %15340 = vsyncadd [#allocation21], 4294963136 }
 0x153   :  { %15341 = dma.done.wait [#allocation24], 12288  }
 0x154   :  { %15342 = vsyncadd [#allocation24], 4294955008 }
 0x155   :  { %15343 = dma.done.wait [#allocation27], 2112  }
 0x156   :  { %15344 = vsyncadd [#allocation27], 4294965184 }
 0x157   :  { %15345 = dma.done.wait [#allocation30], 1040  }
 0x158   :  { %15346 = vsyncadd [#allocation30], 4294966256 }
 0x159   :  { %15347 = dma.done.wait [#allocation33], 16  }
 0x15a   :  { %15348 = vsyncadd [#allocation33], 4294967280  ;;  %v296_v0 = vld [vmem:[#allocation5 + $0x8] sm:$0xff]  ;;  %v306_v1 = vld [vmem:[#allocation5 + $0x58] sm:$0xff]  ;;  %vm629_vm0 = vcmask 670720   ;;  %s18390_s2 = sld [smem:[#allocation140_spill]] }
 0x15b   :  { %v295_v2 = vld [vmem:[#allocation5] sm:$0xff]  ;;  %v13747_v3 = vpack.c.bf16 %v306_v1, %v296_v0  ;;  %v305_v4 = vld [vmem:[#allocation5 + $0x50] sm:$0xff]  ;;  %v316_v5 = vld [vmem:[#allocation5 + $0xa8] sm:$0xff]  ;;  %vm632_vm1 = vcmask 1041408   ;;  %vm15380_vm2 = vmmov 0   ;;  %s15381_s28 = smov [#allocation34]  }
 0x15c   :  { %v326_v6 = vld [vmem:[#allocation5 + $0xf8] sm:$0xff]  ;;  %v13749_v7 = vpack.c.bf16 %v305_v4, %v295_v2  ;;  %v315_v9 = vld [vmem:[#allocation5 + $0xa0] sm:$0xff]  ;;  %v325_v10 = vld [vmem:[#allocation5 + $0xf0] sm:$0xff]  ;;  %s12413_s23 = sshll.u32 %s15381_s28, 4  ;;  %s12414_s23 = int_to_ptr.vmem [resolvable:$true] %s12413_s23 }
 0x15d   :  { %v13751_v8 = vpack.c.bf16 %v326_v6, %v316_v5  ;;  %v336_v11 = vld [vmem:[#allocation5 + $0x148] sm:$0xff]  ;;  %13748 = vmatprep.subr.bf16.mxu0 %v13747_v3  ;;  %v346_v12 = vld [vmem:[#allocation5 + $0x198] sm:$0xff]  ;;  %v13753_v13 = vpack.c.bf16 %v325_v10, %v315_v9  ;;  %v335_v15 = vld [vmem:[#allocation5 + $0x140] sm:$0xff]  ;;  %s15307_s26 = scalar_lea.vmem %s12414_s23, 32  ;;  %p15312_p5 = scmp.lt.s32.totalorder %s12414_s23, %s12414_s23 }
 0x15e   :  { %13750 = vmatpush1.bf16.msra.mxu0 %v13749_v7  ;;  %v13755_v14 = vpack.c.bf16 %v346_v12, %v336_v11  ;;  %v345_v16 = vld [vmem:[#allocation5 + $0x190] sm:$0xff]  ;;  %v356_v17 = vld [vmem:[#allocation5 + $0x1e8] sm:$0xff]  ;;  %v366_v18 = vld [vmem:[#allocation5 + $0x238] sm:$0xff]  ;;  %p15308_p4 = scmp.ne.s32.totalorder %s12414_s23, %s15307_s26  ;;  %p15313_p6 = scmp.lt.s32.totalorder %s15307_s26, %s15307_s26 }
 0x15f   :  { %13752 = vmatprep.subr.bf16.mxu0 %v13751_v8  ;;  %v13757_v19 = vpack.c.bf16 %v345_v16, %v335_v15  ;;  %v13759_v20 = vpack.c.bf16 %v366_v18, %v356_v17  ;;  %v355_v21 = vld [vmem:[#allocation5 + $0x1e0] sm:$0xff]  ;;  %v365_v22 = vld [vmem:[#allocation5 + $0x230] sm:$0xff]  ;;  %v376_v23 = vld [vmem:[#allocation5 + $0x288] sm:$0xff] }
 0x160   :  { %v386_v24 = vld [vmem:[#allocation5 + $0x2d8] sm:$0xff]  ;;  %v13761_v25 = vpack.c.bf16 %v365_v22, %v355_v21  ;;  %v375_v27 = vld [vmem:[#allocation5 + $0x280] sm:$0xff]  ;;  %v385_v28 = vld [vmem:[#allocation5 + $0x2d0] sm:$0xff]  ;;  %p15314_p7 = por %p15313_p6, %p15312_p5 }
 0x161   :  { %v13763_v26 = vpack.c.bf16 %v386_v24, %v376_v23  ;;  %v396_v29 = vld [vmem:[#allocation5 + $0x328] sm:$0xff]  ;;  %v406_v30 = vld [vmem:[#allocation5 + $0x378] sm:$0xff]  ;;  %v13765_v31 = vpack.c.bf16 %v385_v28, %v375_v27  ;;  %v395_v32 = vld [vmem:[#allocation5 + $0x320] sm:$0xff] }
 0x162   :  { %13754 = vmatpush1.bf16.msra.mxu0 %v13753_v13  ;;  %v13767_v33 = vpack.c.bf16 %v406_v30, %v396_v29  ;;  %v405_v34 = vld [vmem:[#allocation5 + $0x370] sm:$0xff]  ;;  %v416_v35 = vld [vmem:[#allocation5 + $0x3c8] sm:$0xff]  ;;  %v426_v36 = vld [vmem:[#allocation5 + $0x418] sm:$0xff]  ;;  %p15315_p8 = pnand %p15314_p7, %p15308_p4 }
 0x163   :  { %13756 = vmatprep.subr.bf16.mxu0 %v13755_v14  ;;  %v15728_v37 = vld.sshfl [vmem:[%s18390_s2] sm:$0x33 pattern:$0x76325410]  ;;  %v298_v38 = vld [vmem:[#allocation5 + $0x18] sm:$0xff]  ;;  %v308_v39 = vld [vmem:[#allocation5 + $0x68] sm:$0xff]  ;;  %v13769_v46 = vpack.c.bf16 %v405_v34, %v395_v32  ;;  %v13771_v51 = vpack.c.bf16 %v426_v36, %v416_v35 }
 0x164   :  { %v415_v40 = vld [vmem:[#allocation5 + $0x3c0] sm:$0xff]  ;;  %v15732_v41 = vcombine.high %v15728_v37, %v15728_v37  ;;  %v13799_v42 = vpack.c.bf16 %v308_v39, %v298_v38  ;;  %v297_v43 = vld [vmem:[#allocation5 + $0x10] sm:$0xff]  ;;  %v318_v45 = vld [vmem:[#allocation5 + $0xb8] sm:$0xff] }
 0x165   :  { %v307_v44 = vld [vmem:[#allocation5 + $0x60] sm:$0xff]  ;;  %v328_v48 = vld [vmem:[#allocation5 + $0x108] sm:$0xff]  ;;  %v317_v49 = vld [vmem:[#allocation5 + $0xb0] sm:$0xff] }
 0x166   :  { %13758 = vmatpush1.bf16.msra.mxu0 %v13757_v19  ;;  %v13801_v47 = vpack.c.bf16 %v307_v44, %v297_v43  ;;  %v327_v50 = vld [vmem:[#allocation5 + $0x100] sm:$0xff]  ;;  %v425_v52 = vld [vmem:[#allocation5 + $0x410] sm:$0xff]  ;;  %12434 = vmatprep.mubr.msk.f32.mxu0 %vm629_vm0, %v15732_v41  ;;  %v13803_v53 = vpack.c.bf16 %v328_v48, %v318_v45  ;;  %v338_v54 = vld [vmem:[#allocation5 + $0x158] sm:$0xff] }
 0x167   :  { %13760 = vmatprep.subr.bf16.mxu0 %v13759_v20  ;;  %v348_v55 = vld [vmem:[#allocation5 + $0x1a8] sm:$0xff]  ;;  %v446_v57 = vld [vmem:[#allocation5 + $0x4b8] sm:$0xff]  ;;  %13800 = vmatprep.subr.bf16.mxu1 %v13799_v42  ;;  %v13805_v58 = vpack.c.bf16 %v327_v50, %v317_v49  ;;  %v13773_v59 = vpack.c.bf16 %v425_v52, %v415_v40  ;;  %v435_v60 = vld [vmem:[#allocation5 + $0x460] sm:$0xff] }
 0x168   :  { %v436_v56 = vld [vmem:[#allocation5 + $0x468] sm:$0xff]  ;;  %12437 = vmatprep.mubr.msk.f32.mxu1 %vm629_vm0, %v15732_v41  ;;  %13802 = vmatpush1.bf16.msra.mxu1 %v13801_v47  ;;  %v13807_v61 = vpack.c.bf16 %v348_v55, %v338_v54  ;;  %v337_v62 = vld [vmem:[#allocation5 + $0x150] sm:$0xff]  ;;  %v347_v63 = vld [vmem:[#allocation5 + $0x1a0] sm:$0xff] }
 0x169   :  { %13804 = vmatprep.subr.bf16.mxu1 %v13803_v53  ;;  %v13775_v0 = vpack.c.bf16 %v446_v57, %v436_v56  ;;  %v445_v1 = vld [vmem:[#allocation5 + $0x4b0] sm:$0xff]  ;;  %v358_v2 = vld [vmem:[#allocation5 + $0x1f8] sm:$0xff]  ;;  %v368_v3 = vld [vmem:[#allocation5 + $0x248] sm:$0xff]  ;;  %v13809_v6 = vpack.c.bf16 %v347_v63, %v337_v62 }
 0x16a   :  { %13762 = vmatpush1.bf16.msra.mxu0 %v13761_v25  ;;  %v456_v4 = vld [vmem:[#allocation5 + $0x508] sm:$0xff]  ;;  %v466_v5 = vld [vmem:[#allocation5 + $0x558] sm:$0xff]  ;;  %v13777_v7 = vpack.c.bf16 %v445_v1, %v435_v60  ;;  %v455_v8 = vld [vmem:[#allocation5 + $0x500] sm:$0xff]  ;;  %v13811_v9 = vpack.c.bf16 %v368_v3, %v358_v2 }
 0x16b   :  { %13764 = vmatprep.subr.bf16.mxu0 %v13763_v26  ;;  %v357_v10 = vld [vmem:[#allocation5 + $0x1f0] sm:$0xff]  ;;  %v367_v11 = vld [vmem:[#allocation5 + $0x240] sm:$0xff]  ;;  %v13779_v12 = vpack.c.bf16 %v466_v5, %v456_v4  ;;  %v378_v14 = vld [vmem:[#allocation5 + $0x298] sm:$0xff] }
 0x16c   :  { %13806 = vmatpush1.bf16.msra.mxu1 %v13805_v58  ;;  %v465_v13 = vld [vmem:[#allocation5 + $0x550] sm:$0xff]  ;;  %v388_v15 = vld [vmem:[#allocation5 + $0x2e8] sm:$0xff]  ;;  %v486_v17 = vld [vmem:[#allocation5 + $0x5f8] sm:$0xff]  ;;  %v13813_v18 = vpack.c.bf16 %v367_v11, %v357_v10 }
 0x16d   :  { %13808 = vmatprep.subr.bf16.mxu1 %v13807_v61  ;;  %v476_v16 = vld [vmem:[#allocation5 + $0x5a8] sm:$0xff]  ;;  %v13781_v19 = vpack.c.bf16 %v465_v13, %v455_v8  ;;  %v475_v20 = vld [vmem:[#allocation5 + $0x5a0] sm:$0xff]  ;;  %v13815_v21 = vpack.c.bf16 %v388_v15, %v378_v14  ;;  %v377_v22 = vld [vmem:[#allocation5 + $0x290] sm:$0xff] }
 0x16e   :  { %13766 = vmatpush1.bf16.msra.mxu0 %v13765_v31  ;;  %v387_v23 = vld [vmem:[#allocation5 + $0x2e0] sm:$0xff]  ;;  %v13783_v24 = vpack.c.bf16 %v486_v17, %v476_v16  ;;  %v485_v25 = vld [vmem:[#allocation5 + $0x5f0] sm:$0xff]  ;;  %v398_v26 = vld [vmem:[#allocation5 + $0x338] sm:$0xff] }
 0x16f   :  { %13768 = vmatprep.subr.bf16.mxu0 %v13767_v33  ;;  %v408_v27 = vld [vmem:[#allocation5 + $0x388] sm:$0xff]  ;;  %v506_v29 = vld [vmem:[#allocation5 + $0x698] sm:$0xff]  ;;  %v13817_v30 = vpack.c.bf16 %v387_v23, %v377_v22  ;;  %v13785_v31 = vpack.c.bf16 %v485_v25, %v475_v20  ;;  %v495_v32 = vld [vmem:[#allocation5 + $0x640] sm:$0xff] }
 0x170   :  { %13810 = vmatpush1.bf16.msra.mxu1 %v13809_v6  ;;  %v496_v28 = vld [vmem:[#allocation5 + $0x648] sm:$0xff]  ;;  %v13819_v33 = vpack.c.bf16 %v408_v27, %v398_v26  ;;  %v397_v34 = vld [vmem:[#allocation5 + $0x330] sm:$0xff]  ;;  %v407_v35 = vld [vmem:[#allocation5 + $0x380] sm:$0xff] }
 0x171   :  { %13812 = vmatprep.subr.bf16.mxu1 %v13811_v9  ;;  %v13787_v36 = vpack.c.bf16 %v506_v29, %v496_v28  ;;  %v505_v38 = vld [vmem:[#allocation5 + $0x690] sm:$0xff]  ;;  %v418_v39 = vld [vmem:[#allocation5 + $0x3d8] sm:$0xff]  ;;  %v428_v40 = vld [vmem:[#allocation5 + $0x428] sm:$0xff]  ;;  %v13821_v44 = vpack.c.bf16 %v407_v35, %v397_v34 }
 0x172   :  { %13770 = vmatpush1.bf16.msra.mxu0 %v13769_v46  ;;  %v516_v42 = vld [vmem:[#allocation5 + $0x6e8] sm:$0xff]  ;;  %v526_v43 = vld [vmem:[#allocation5 + $0x738] sm:$0xff]  ;;  %v13789_v45 = vpack.c.bf16 %v505_v38, %v495_v32  ;;  %v515_v46 = vld [vmem:[#allocation5 + $0x6e0] sm:$0xff]  ;;  %v13823_v47 = vpack.c.bf16 %v428_v40, %v418_v39 }
 0x173   :  { %13772 = vmatprep.subr.bf16.mxu0 %v13771_v51  ;;  %v417_v48 = vld [vmem:[#allocation5 + $0x3d0] sm:$0xff]  ;;  %v427_v49 = vld [vmem:[#allocation5 + $0x420] sm:$0xff]  ;;  %v13791_v50 = vpack.c.bf16 %v526_v43, %v516_v42  ;;  %v438_v52 = vld [vmem:[#allocation5 + $0x478] sm:$0xff] }
 0x174   :  { %13814 = vmatpush1.bf16.msra.mxu1 %v13813_v18  ;;  %v525_v51 = vld [vmem:[#allocation5 + $0x730] sm:$0xff]  ;;  %v448_v53 = vld [vmem:[#allocation5 + $0x4c8] sm:$0xff]  ;;  %v546_v55 = vld [vmem:[#allocation5 + $0x7d8] sm:$0xff]  ;;  %v13825_v56 = vpack.c.bf16 %v427_v49, %v417_v48 }
 0x175   :  { %13816 = vmatprep.subr.bf16.mxu1 %v13815_v21  ;;  %v536_v54 = vld [vmem:[#allocation5 + $0x788] sm:$0xff]  ;;  %v13793_v57 = vpack.c.bf16 %v525_v51, %v515_v46  ;;  %v535_v58 = vld [vmem:[#allocation5 + $0x780] sm:$0xff]  ;;  %v437_v60 = vld [vmem:[#allocation5 + $0x470] sm:$0xff] }
 0x176   :  { %13774 = vmatpush1.bf16.msra.mxu0 %v13773_v59  ;;  %v13827_v59 = vpack.c.bf16 %v448_v53, %v438_v52  ;;  %v447_v61 = vld [vmem:[#allocation5 + $0x4c0] sm:$0xff]  ;;  %v13795_v62 = vpack.c.bf16 %v546_v55, %v536_v54  ;;  %v545_v63 = vld [vmem:[#allocation5 + $0x7d0] sm:$0xff]  ;;  %v468_v1 = vld [vmem:[#allocation5 + $0x568] sm:$0xff] }
 0x177   :  { %13776 = vmatprep.subr.bf16.mxu0 %v13775_v0  ;;  %v458_v0 = vld [vmem:[#allocation5 + $0x518] sm:$0xff]  ;;  %v13829_v2 = vpack.c.bf16 %v447_v61, %v437_v60  ;;  %v13797_v3 = vpack.c.bf16 %v545_v63, %v535_v58  ;;  %v457_v5 = vld [vmem:[#allocation5 + $0x510] sm:$0xff]  ;;  %v467_v6 = vld [vmem:[#allocation5 + $0x560] sm:$0xff] }
 0x178   :  { %13818 = vmatpush1.bf16.msra.mxu1 %v13817_v30  ;;  %v13831_v4 = vpack.c.bf16 %v468_v1, %v458_v0  ;;  %v488_v8 = vld [vmem:[#allocation5 + $0x608] sm:$0xff]  ;;  %v13833_v10 = vpack.c.bf16 %v467_v6, %v457_v5  ;;  %v487_v13 = vld [vmem:[#allocation5 + $0x600] sm:$0xff]  ;;  %v498_v15 = vld [vmem:[#allocation5 + $0x658] sm:$0xff] }
 0x179   :  { %13820 = vmatprep.subr.bf16.mxu1 %v13819_v33  ;;  %v556_v9 = vld [vmem:[#allocation5 + $0x828] sm:$0x3]  ;;  %v555_v14 = vld [vmem:[#allocation5 + $0x820] sm:$0x3]  ;;  %v497_v17 = vld [vmem:[#allocation5 + $0x650] sm:$0xff] }
 0x17a   :  { %13778 = vmatpush1.bf16.msra.mxu0 %v13777_v7  ;;  %v478_v7 = vld [vmem:[#allocation5 + $0x5b8] sm:$0xff]  ;;  %v508_v16 = vld [vmem:[#allocation5 + $0x6a8] sm:$0xff]  ;;  %v517_v23 = vld [vmem:[#allocation5 + $0x6f0] sm:$0xff] }
 0x17b   :  { %13780 = vmatprep.subr.bf16.mxu0 %v13779_v12  ;;  %v13835_v11 = vpack.c.bf16 %v488_v8, %v478_v7  ;;  %v477_v12 = vld [vmem:[#allocation5 + $0x5b0] sm:$0xff]  ;;  %v13839_v20 = vpack.c.bf16 %v508_v16, %v498_v15  ;;  %v518_v21 = vld [vmem:[#allocation5 + $0x6f8] sm:$0xff]  ;;  %v528_v22 = vld [vmem:[#allocation5 + $0x748] sm:$0xff] }
 0x17c   :  { %13822 = vmatpush1.bf16.msra.mxu1 %v13821_v44  ;;  %v13837_v18 = vpack.c.bf16 %v487_v13, %v477_v12  ;;  %v527_v25 = vld [vmem:[#allocation5 + $0x740] sm:$0xff]  ;;  %v13843_v26 = vpack.c.bf16 %v528_v22, %v518_v21  ;;  %v538_v27 = vld [vmem:[#allocation5 + $0x798] sm:$0xff]  ;;  %v548_v28 = vld [vmem:[#allocation5 + $0x7e8] sm:$0xff] }
 0x17d   :  { %13824 = vmatprep.subr.bf16.mxu1 %v13823_v47  ;;  %v13845_v29 = vpack.c.bf16 %v527_v25, %v517_v23  ;;  %v537_v30 = vld [vmem:[#allocation5 + $0x790] sm:$0xff]  ;;  %v547_v32 = vld [vmem:[#allocation5 + $0x7e0] sm:$0xff]  ;;  %v558_v34 = vld [vmem:[#allocation5 + $0x838] sm:$0x3] }
 0x17e   :  { %13782 = vmatpush1.bf16.msra.mxu0 %v13781_v19  ;;  %v507_v19 = vld [vmem:[#allocation5 + $0x6a0] sm:$0xff]  ;;  %v13849_v33 = vpack.c.bf16 %v547_v32, %v537_v30  ;;  %v302_v35 = vld [vmem:[#allocation5 + $0x38] sm:$0xff]  ;;  %v301_v38 = vld [vmem:[#allocation5 + $0x30] sm:$0xff] }
 0x17f   :  { %13784 = vmatprep.subr.bf16.mxu0 %v13783_v24  ;;  %v13841_v24 = vpack.c.bf16 %v507_v19, %v497_v17  ;;  %v311_v39 = vld [vmem:[#allocation5 + $0x80] sm:$0xff]  ;;  %v322_v40 = vld [vmem:[#allocation5 + $0xd8] sm:$0xff]  ;;  %v332_v42 = vld [vmem:[#allocation5 + $0x128] sm:$0xff] }
 0x180   :  { %13826 = vmatpush1.bf16.msra.mxu1 %v13825_v56  ;;  %v557_v43 = vld [vmem:[#allocation5 + $0x830] sm:$0x3]  ;;  %v331_v46 = vld [vmem:[#allocation5 + $0x120] sm:$0xff]  ;;  %v13905_v47 = vpack.c.bf16 %v311_v39, %v301_v38  ;;  %v342_v48 = vld [vmem:[#allocation5 + $0x178] sm:$0xff] }
 0x181   :  { %13828 = vmatprep.subr.bf16.mxu1 %v13827_v59  ;;  %v352_v49 = vld [vmem:[#allocation5 + $0x1c8] sm:$0xff]  ;;  %v341_v51 = vld [vmem:[#allocation5 + $0x170] sm:$0xff]  ;;  %v351_v52 = vld [vmem:[#allocation5 + $0x1c0] sm:$0xff] }
 0x182   :  { %13786 = vmatpush1.bf16.msra.mxu0 %v13785_v31  ;;  %v13847_v31 = vpack.c.bf16 %v548_v28, %v538_v27  ;;  %v362_v54 = vld [vmem:[#allocation5 + $0x218] sm:$0xff]  ;;  %v372_v55 = vld [vmem:[#allocation5 + $0x268] sm:$0xff]  ;;  %v13911_v56 = vpack.c.bf16 %v352_v49, %v342_v48  ;;  %v371_v58 = vld [vmem:[#allocation5 + $0x260] sm:$0xff]  ;;  %v13913_v59 = vpack.c.bf16 %v351_v52, %v341_v51 }
 0x183   :  { %13788 = vmatprep.subr.bf16.mxu0 %v13787_v36  ;;  %v312_v36 = vld [vmem:[#allocation5 + $0x88] sm:$0xff]  ;;  %v382_v60 = vld [vmem:[#allocation5 + $0x2b8] sm:$0xff]  ;;  %v381_v63 = vld [vmem:[#allocation5 + $0x2b0] sm:$0xff] }
 0x184   :  { %13830 = vmatpush1.bf16.msra.mxu1 %v13829_v2  ;;  %v13903_v44 = vpack.c.bf16 %v312_v36, %v302_v35  ;;  %v392_v61 = vld [vmem:[#allocation5 + $0x308] sm:$0xff]  ;;  %v391_v0 = vld [vmem:[#allocation5 + $0x300] sm:$0xff]  ;;  %v402_v2 = vld [vmem:[#allocation5 + $0x358] sm:$0xff] }
 0x185   :  { %13832 = vmatprep.subr.bf16.mxu1 %v13831_v4  ;;  %v13919_v4 = vpack.c.bf16 %v392_v61, %v382_v60  ;;  %v401_v5 = vld [vmem:[#allocation5 + $0x350] sm:$0xff]  ;;  %v411_v6 = vld [vmem:[#allocation5 + $0x3a0] sm:$0xff]  ;;  %v13921_v7 = vpack.c.bf16 %v391_v0, %v381_v63  ;;  %v422_v8 = vld [vmem:[#allocation5 + $0x3f8] sm:$0xff] }
 0x186   :  { %13790 = vmatpush1.bf16.msra.mxu0 %v13789_v45  ;;  %v321_v45 = vld [vmem:[#allocation5 + $0xd0] sm:$0xff]  ;;  %v431_v12 = vld [vmem:[#allocation5 + $0x440] sm:$0xff]  ;;  %v13925_v13 = vpack.c.bf16 %v411_v6, %v401_v5  ;;  %v452_v15 = vld [vmem:[#allocation5 + $0x4e8] sm:$0xff] }
 0x187   :  { %13792 = vmatprep.subr.bf16.mxu0 %v13791_v50  ;;  %v13907_v50 = vpack.c.bf16 %v332_v42, %v322_v40  ;;  %v13909_v53 = vpack.c.bf16 %v331_v46, %v321_v45  ;;  %v441_v17 = vld [vmem:[#allocation5 + $0x490] sm:$0xff]  ;;  %v472_v21 = vld [vmem:[#allocation5 + $0x588] sm:$0xff]  ;;  %v491_v30 = vld [vmem:[#allocation5 + $0x620] sm:$0xff] }
 0x188   :  { %13834 = vmatpush1.bf16.msra.mxu1 %v13833_v10  ;;  %v461_v23 = vld [vmem:[#allocation5 + $0x530] sm:$0xff]  ;;  %v492_v27 = vld [vmem:[#allocation5 + $0x628] sm:$0xff]  ;;  %v502_v32 = vld [vmem:[#allocation5 + $0x678] sm:$0xff] }
 0x189   :  { %13836 = vmatprep.subr.bf16.mxu1 %v13835_v11  ;;  %v421_v11 = vld [vmem:[#allocation5 + $0x3f0] sm:$0xff]  ;;  %v511_v36 = vld [vmem:[#allocation5 + $0x6c0] sm:$0xff]  ;;  %v522_v39 = vld [vmem:[#allocation5 + $0x718] sm:$0xff] }
 0x18a   :  { %13794 = vmatpush1.bf16.msra.mxu0 %v13793_v57  ;;  %v361_v57 = vld [vmem:[#allocation5 + $0x210] sm:$0xff]  ;;  %v13929_v19 = vpack.c.bf16 %v431_v12, %v421_v11  ;;  %v532_v40 = vld [vmem:[#allocation5 + $0x768] sm:$0xff]  ;;  %v542_v46 = vld [vmem:[#allocation5 + $0x7b8] sm:$0xff] }
 0x18b   :  { %13796 = vmatprep.subr.bf16.mxu0 %v13795_v62  ;;  %v13915_v62 = vpack.c.bf16 %v372_v55, %v362_v54  ;;  %v13917_v1 = vpack.c.bf16 %v371_v58, %v361_v57  ;;  %v501_v35 = vld [vmem:[#allocation5 + $0x670] sm:$0xff]  ;;  %v13947_v48 = vpack.c.bf16 %v532_v40, %v522_v39  ;;  %v562_v54 = vld [vmem:[#allocation5 + $0x858] sm:$0x3]  ;;  %v14050_v57 = vld [vmem:[#allocation10] sm:$0xff]  }
 0x18c   :  { %13838 = vmatpush1.bf16.msra.mxu1 %v13837_v18  ;;  %v451_v18 = vld [vmem:[#allocation5 + $0x4e0] sm:$0xff]  ;;  %v13945_v45 = vpack.c.bf16 %v511_v36, %v501_v35  ;;  %v541_v49 = vld [vmem:[#allocation5 + $0x7b0] sm:$0xff]  ;;  %v300_v5 = vld [vmem:[#allocation5 + $0x28] sm:$0xff] }
 0x18d   :  { %13840 = vmatprep.subr.bf16.mxu1 %v13839_v20  ;;  %v462_v20 = vld [vmem:[#allocation5 + $0x538] sm:$0xff]  ;;  %v13933_v25 = vpack.c.bf16 %v451_v18, %v441_v17  ;;  %v561_v55 = vld [vmem:[#allocation5 + $0x850] sm:$0x3]  ;;  %v14051_v58 = vld [vmem:[#allocation10 + $0x48] sm:$0xff]  }
 0x18e   :  { %13798 = vmatpush1.bf16.msra.mxu0 %v13797_v3  ;;  %v412_v3 = vld [vmem:[#allocation5 + $0x3a8] sm:$0xff]  ;;  %v13935_v28 = vpack.c.bf16 %v472_v21, %v462_v20  ;;  %v14056_v63 = vld [vmem:[#allocation10 + $0x18] sm:$0xff]   ;;  %v14057_v0 = vld [vmem:[#allocation10 + $0x60] sm:$0xff]  }
 0x18f   :  { %12432 = vmatprep.subr.msk.mxu0 %vm632_vm1, %v556_v9  ;;  %v432_v9 = vld [vmem:[#allocation5 + $0x448] sm:$0xff]  ;;  %v13923_v10 = vpack.c.bf16 %v412_v3, %v402_v2  ;;  %v310_v6 = vld [vmem:[#allocation5 + $0x78] sm:$0xff]  ;;  %v339_v21 = vld [vmem:[#allocation5 + $0x160] sm:$0xff] }
 0x190   :  { %13842 = vmatpush1.bf16.msra.mxu1 %v13841_v24  ;;  %v13927_v16 = vpack.c.bf16 %v432_v9, %v422_v8  ;;  %v471_v24 = vld [vmem:[#allocation5 + $0x580] sm:$0xff]  ;;  %v14053_v60 = vld [vmem:[#allocation10 + $0x50] sm:$0xff]   ;;  %v13851_v8 = vpack.c.bf16 %v310_v6, %v300_v5  ;;  %v330_v11 = vld [vmem:[#allocation5 + $0x118] sm:$0xff] }
 0x191   :  { %13844 = vmatprep.subr.bf16.mxu1 %v13843_v26  ;;  %v482_v26 = vld [vmem:[#allocation5 + $0x5d8] sm:$0xff]  ;;  %v14054_v61 = vld [vmem:[#allocation10 + $0x10] sm:$0xff]   ;;  %v14059_v2 = vld [vmem:[#allocation10 + $0x68] sm:$0xff]  }
 0x192   :  { %12433 = vmatpush1.msk.msra.mxu0 %vm632_vm1, %v555_v14  ;;  %v442_v14 = vld [vmem:[#allocation5 + $0x498] sm:$0xff]  ;;  %v14060_v3 = vld [vmem:[#allocation10 + $0x28] sm:$0xff]   ;;  %v309_v9 = vld [vmem:[#allocation5 + $0x70] sm:$0xff] }
 0x193   :  { %728 = vmatmul.mubr.f32.vlgmr.msra.gmra.mrb[0].mxu0 %v15728_v37  ;;  %v13931_v22 = vpack.c.bf16 %v452_v15, %v442_v14  ;;  %v319_v14 = vld [vmem:[#allocation5 + $0xc0] sm:$0xff]  ;;  %v329_v15 = vld [vmem:[#allocation5 + $0x110] sm:$0xff]  ;;  %13852 = vmatprep.subr.bf16.mxu0 %v13851_v8  ;;  %v350_v18 = vld [vmem:[#allocation5 + $0x1b8] sm:$0xff] }
 0x194   :  { %12440 = vmatprep.mubr.msk.f32.mxu0 %vm629_vm0, %v15732_v41  ;;  %13846 = vmatpush1.bf16.msra.mxu1 %v13845_v29  ;;  %v481_v29 = vld [vmem:[#allocation5 + $0x5d0] sm:$0xff]  ;;  %v400_v36 = vld [vmem:[#allocation5 + $0x348] sm:$0xff]  ;;  %v499_v5 = vld [vmem:[#allocation5 + $0x660] sm:$0xff] }
 0x195   :  { %13848 = vmatprep.subr.bf16.mxu1 %v13847_v31  ;;  %v13937_v31 = vpack.c.bf16 %v471_v24, %v461_v23  ;;  %v13941_v38 = vpack.c.bf16 %v491_v30, %v481_v29  ;;  %v14063_v17 = vld [vmem:[#allocation10 + $0x78] sm:$0xff]   ;;  %v360_v24 = vld [vmem:[#allocation5 + $0x208] sm:$0xff] }
 0x196   :  { %v14064_v23 = vld [vmem:[#allocation10 + $0x38] sm:$0xff]   ;;  %v380_v30 = vld [vmem:[#allocation5 + $0x2a8] sm:$0xff] }
 0x197   :  { %v369_v29 = vld [vmem:[#allocation5 + $0x250] sm:$0xff]  ;;  %v520_v8 = vld [vmem:[#allocation5 + $0x708] sm:$0xff] }
 0x198   :  { %13850 = vmatpush1.bf16.msra.mxu1 %v13849_v33  ;;  %v512_v33 = vld [vmem:[#allocation5 + $0x6c8] sm:$0xff]  ;;  %v389_v35 = vld [vmem:[#allocation5 + $0x2f0] sm:$0xff] }
 0x199   :  { %12435 = vmatprep.subr.msk.mxu1 %vm632_vm1, %v558_v34  ;;  %v13939_v34 = vpack.c.bf16 %v492_v27, %v482_v26  ;;  %v13943_v42 = vpack.c.bf16 %v512_v33, %v502_v32  ;;  %v509_v6 = vld [vmem:[#allocation5 + $0x6b0] sm:$0xff] }
 0x19c   :  { %12436 = vmatpush1.msk.msra.mxu1 %vm632_vm1, %v557_v43  ;;  %v521_v43 = vld [vmem:[#allocation5 + $0x710] sm:$0xff] }
 0x19d   :  { %799 = vmatmul.mubr.f32.vlgmr.msra.gmra.mrb[0].mxu1 %v15728_v37  ;;  %13904 = vmatprep.subr.bf16.mxu1 %v13903_v44  ;;  %v531_v44 = vld [vmem:[#allocation5 + $0x760] sm:$0xff] }
 0x19e   :  { %13906 = vmatpush1.bf16.msra.mxu1 %v13905_v47  ;;  %12443 = vmatprep.mubr.msk.f32.mxu1 %vm629_vm0, %v15732_v41  ;;  %v552_v47 = vld [vmem:[#allocation5 + $0x808] sm:$0xff]  ;;  %v13949_v51 = vpack.c.bf16 %v531_v44, %v521_v43  ;;  %v409_v43 = vld [vmem:[#allocation5 + $0x390] sm:$0xff] }
 0x19f   :  { %13908 = vmatprep.subr.bf16.mxu1 %v13907_v50  ;;  %v551_v50 = vld [vmem:[#allocation5 + $0x800] sm:$0xff]  ;;  %v13951_v52 = vpack.c.bf16 %v552_v47, %v542_v46  ;;  %v420_v44 = vld [vmem:[#allocation5 + $0x3e8] sm:$0xff] }
 0x1a2   :  { %13910 = vmatpush1.bf16.msra.mxu1 %v13909_v53  ;;  %v13953_v53 = vpack.c.bf16 %v551_v50, %v541_v49  ;;  %v429_v49 = vld [vmem:[#allocation5 + $0x430] sm:$0xff]  ;;  %v440_v50 = vld [vmem:[#allocation5 + $0x488] sm:$0xff] }
 0x1a3   :  { %13912 = vmatprep.subr.bf16.mxu1 %v13911_v56  ;;  %v14049_v56 = vld [vmem:[#allocation10 + $0x40] sm:$0xff]  }
 0x1a6   :  { %13914 = vmatpush1.bf16.msra.mxu1 %v13913_v59  ;;  %v14052_v59 = vld [vmem:[#allocation10 + $0x8] sm:$0xff]  }
 0x1a7   :  { %13916 = vmatprep.subr.bf16.mxu1 %v13915_v62  ;;  %v14055_v62 = vld [vmem:[#allocation10 + $0x58] sm:$0xff]  }
 0x1aa   :  { %13918 = vmatpush1.bf16.msra.mxu1 %v13917_v1  ;;  %v14058_v1 = vld [vmem:[#allocation10 + $0x20] sm:$0xff]  }
 0x1ab   :  { %13920 = vmatprep.subr.bf16.mxu1 %v13919_v4  ;;  %v14061_v4 = vld [vmem:[#allocation10 + $0x70] sm:$0xff]  }
 0x1ae   :  { %13922 = vmatpush1.bf16.msra.mxu1 %v13921_v7  ;;  %v299_v7 = vld [vmem:[#allocation5 + $0x20] sm:$0xff] }
 0x1af   :  { %13924 = vmatprep.subr.bf16.mxu1 %v13923_v10  ;;  %v320_v10 = vld [vmem:[#allocation5 + $0xc8] sm:$0xff]  ;;  %v13853_v12 = vpack.c.bf16 %v309_v9, %v299_v7  ;;  %v530_v9 = vld [vmem:[#allocation5 + $0x758] sm:$0xff] }
 0x1b1   :  { %13854 = vmatpush1.bf16.msra.mxu0 %v13853_v12  ;;  %v529_v12 = vld [vmem:[#allocation5 + $0x750] sm:$0xff] }
 0x1b2   :  { %13926 = vmatpush1.bf16.msra.mxu1 %v13925_v13  ;;  %v13855_v13 = vpack.c.bf16 %v330_v11, %v320_v10  ;;  %v519_v11 = vld [vmem:[#allocation5 + $0x700] sm:$0xff] }
 0x1b3   :  { %13928 = vmatprep.subr.bf16.mxu1 %v13927_v16  ;;  %v340_v16 = vld [vmem:[#allocation5 + $0x168] sm:$0xff] }
 0x1b4   :  { %13856 = vmatprep.subr.bf16.mxu0 %v13855_v13  ;;  %v13859_v20 = vpack.c.bf16 %v350_v18, %v340_v16  ;;  %v13893_v13 = vpack.c.bf16 %v509_v6, %v499_v5  ;;  %v13895_v16 = vpack.c.bf16 %v530_v9, %v520_v8  ;;  %v549_v18 = vld [vmem:[#allocation5 + $0x7f0] sm:$0xff]  ;;  %v444_v5 = vld [vmem:[#allocation5 + $0x4a8] sm:$0xff]  ;;  %v454_v6 = vld [vmem:[#allocation5 + $0x4f8] sm:$0xff] }
 0x1b5   :  { %v443_v8 = vld [vmem:[#allocation5 + $0x4a0] sm:$0xff]  ;;  %v13983_v9 = vpack.c.bf16 %v454_v6, %v444_v5 }
 0x1b6   :  { %13930 = vmatpush1.bf16.msra.mxu1 %v13929_v19  ;;  %v13857_v19 = vpack.c.bf16 %v329_v15, %v319_v14  ;;  %v540_v14 = vld [vmem:[#allocation5 + $0x7a8] sm:$0xff]  ;;  %v550_v15 = vld [vmem:[#allocation5 + $0x7f8] sm:$0xff] }
 0x1b7   :  { %13932 = vmatprep.subr.bf16.mxu1 %v13931_v22  ;;  %v349_v22 = vld [vmem:[#allocation5 + $0x1b0] sm:$0xff] }
 0x1b8   :  { %13858 = vmatpush1.bf16.msra.mxu0 %v13857_v19  ;;  %v13861_v26 = vpack.c.bf16 %v349_v22, %v339_v21  ;;  %v13897_v19 = vpack.c.bf16 %v529_v12, %v519_v11  ;;  %v560_v22 = vld [vmem:[#allocation5 + $0x848] sm:$0x3]  ;;  %v474_v12 = vld [vmem:[#allocation5 + $0x598] sm:$0xff] }
 0x1b9   :  { %13860 = vmatprep.subr.bf16.mxu0 %v13859_v20  ;;  %v13899_v20 = vpack.c.bf16 %v550_v15, %v540_v14  ;;  %v464_v11 = vld [vmem:[#allocation5 + $0x548] sm:$0xff]  ;;  %v473_v14 = vld [vmem:[#allocation5 + $0x590] sm:$0xff] }
 0x1ba   :  { %13934 = vmatpush1.bf16.msra.mxu1 %v13933_v25  ;;  %v370_v25 = vld [vmem:[#allocation5 + $0x258] sm:$0xff] }
 0x1bb   :  { %13936 = vmatprep.subr.bf16.mxu1 %v13935_v28  ;;  %v13863_v27 = vpack.c.bf16 %v370_v25, %v360_v24  ;;  %v359_v28 = vld [vmem:[#allocation5 + $0x200] sm:$0xff]  ;;  %v314_v24 = vld [vmem:[#allocation5 + $0x98] sm:$0xff] }
 0x1bc   :  { %13862 = vmatpush1.bf16.msra.mxu0 %v13861_v26  ;;  %v13865_v32 = vpack.c.bf16 %v369_v29, %v359_v28  ;;  %v303_v25 = vld [vmem:[#allocation5 + $0x40] sm:$0xff]  ;;  %v313_v26 = vld [vmem:[#allocation5 + $0x90] sm:$0xff]  ;;  %v334_v28 = vld [vmem:[#allocation5 + $0x138] sm:$0xff] }
 0x1bd   :  { %13864 = vmatprep.subr.bf16.mxu0 %v13863_v27  ;;  %v324_v27 = vld [vmem:[#allocation5 + $0xe8] sm:$0xff]  ;;  %v559_v29 = vld [vmem:[#allocation5 + $0x840] sm:$0x3] }
 0x1be   :  { %13938 = vmatpush1.bf16.msra.mxu1 %v13937_v31  ;;  %v390_v31 = vld [vmem:[#allocation5 + $0x2f8] sm:$0xff] }
 0x1bf   :  { %13940 = vmatprep.subr.bf16.mxu1 %v13939_v34  ;;  %v13867_v33 = vpack.c.bf16 %v390_v31, %v380_v30  ;;  %v379_v34 = vld [vmem:[#allocation5 + $0x2a0] sm:$0xff] }
 0x1c0   :  { %13866 = vmatpush1.bf16.msra.mxu0 %v13865_v32  ;;  %v13869_v39 = vpack.c.bf16 %v389_v35, %v379_v34  ;;  %v323_v31 = vld [vmem:[#allocation5 + $0xe0] sm:$0xff]  ;;  %v333_v32 = vld [vmem:[#allocation5 + $0x130] sm:$0xff]  ;;  %v344_v34 = vld [vmem:[#allocation5 + $0x188] sm:$0xff] }
 0x1c1   :  { %13868 = vmatprep.subr.bf16.mxu0 %v13867_v33  ;;  %v13957_v33 = vpack.c.bf16 %v313_v26, %v303_v25  ;;  %v354_v35 = vld [vmem:[#allocation5 + $0x1d8] sm:$0xff]  ;;  %v503_v25 = vld [vmem:[#allocation5 + $0x680] sm:$0xff]  ;;  %v513_v26 = vld [vmem:[#allocation5 + $0x6d0] sm:$0xff] }
 0x1c2   :  { %13942 = vmatpush1.bf16.msra.mxu1 %v13941_v38  ;;  %v410_v38 = vld [vmem:[#allocation5 + $0x398] sm:$0xff] }
 0x1c3   :  { %13944 = vmatprep.subr.bf16.mxu1 %v13943_v42  ;;  %v13871_v40 = vpack.c.bf16 %v410_v38, %v400_v36  ;;  %v399_v42 = vld [vmem:[#allocation5 + $0x340] sm:$0xff]  ;;  %v13959_v36 = vpack.c.bf16 %v334_v28, %v324_v27  ;;  %v524_v28 = vld [vmem:[#allocation5 + $0x728] sm:$0xff] }
 0x1c4   :  { %13870 = vmatpush1.bf16.msra.mxu0 %v13869_v39  ;;  %v13873_v46 = vpack.c.bf16 %v409_v43, %v399_v42  ;;  %v15756_v38 = vld.sshfl [vmem:[%s18390_s2] sm:$0x33 pattern:$0x76325410]  ;;  %v13961_v42 = vpack.c.bf16 %v333_v32, %v323_v31  ;;  %v364_v43 = vld [vmem:[#allocation5 + $0x228] sm:$0xff]  ;;  %v533_v32 = vld [vmem:[#allocation5 + $0x770] sm:$0xff] }
 0x1c5   :  { %13872 = vmatprep.subr.bf16.mxu0 %v13871_v40  ;;  %v343_v39 = vld [vmem:[#allocation5 + $0x180] sm:$0xff]  ;;  %v353_v40 = vld [vmem:[#allocation5 + $0x1d0] sm:$0xff] }
 0x1c6   :  { %13946 = vmatpush1.bf16.msra.mxu1 %v13945_v45  ;;  %v430_v45 = vld [vmem:[#allocation5 + $0x438] sm:$0xff]  ;;  %v523_v31 = vld [vmem:[#allocation5 + $0x720] sm:$0xff] }
 0x1c7   :  { %13948 = vmatprep.subr.bf16.mxu1 %v13947_v48  ;;  %v13875_v47 = vpack.c.bf16 %v430_v45, %v420_v44  ;;  %v419_v48 = vld [vmem:[#allocation5 + $0x3e0] sm:$0xff]  ;;  %v374_v44 = vld [vmem:[#allocation5 + $0x278] sm:$0xff]  ;;  %v13963_v45 = vpack.c.bf16 %v354_v35, %v344_v34  ;;  %v544_v34 = vld [vmem:[#allocation5 + $0x7c8] sm:$0xff] }
 0x1c8   :  { %13874 = vmatpush1.bf16.msra.mxu0 %v13873_v46  ;;  %v363_v46 = vld [vmem:[#allocation5 + $0x220] sm:$0xff]  ;;  %v554_v35 = vld [vmem:[#allocation5 + $0x818] sm:$0xff] }
 0x1c9   :  { %13876 = vmatprep.subr.bf16.mxu0 %v13875_v47  ;;  %v373_v47 = vld [vmem:[#allocation5 + $0x270] sm:$0xff] }
 0x1ca   :  { %13950 = vmatpush1.bf16.msra.mxu1 %v13949_v51  ;;  %v450_v51 = vld [vmem:[#allocation5 + $0x4d8] sm:$0xff] }
 0x1cb   :  { %13952 = vmatprep.subr.bf16.mxu1 %v13951_v52  ;;  %v13877_v52 = vpack.c.bf16 %v429_v49, %v419_v48  ;;  %v13965_v48 = vpack.c.bf16 %v353_v40, %v343_v39  ;;  %v384_v49 = vld [vmem:[#allocation5 + $0x2c8] sm:$0xff]  ;;  %v543_v39 = vld [vmem:[#allocation5 + $0x7c0] sm:$0xff]  ;;  %v553_v40 = vld [vmem:[#allocation5 + $0x810] sm:$0xff] }
 0x1cd   :  { %13878 = vmatpush1.bf16.msra.mxu0 %v13877_v52  ;;  %v383_v52 = vld [vmem:[#allocation5 + $0x2c0] sm:$0xff] }
 0x1ce   :  { %13954 = vmatpush1.bf16.msra.mxu1 %v13953_v53  ;;  %v13879_v53 = vpack.c.bf16 %v450_v51, %v440_v50  ;;  %v394_v50 = vld [vmem:[#allocation5 + $0x318] sm:$0xff]  ;;  %v13967_v51 = vpack.c.bf16 %v374_v44, %v364_v43  ;;  %v14003_v43 = vpack.c.bf16 %v554_v35, %v544_v34  ;;  %v14005_v44 = vpack.c.bf16 %v553_v40, %v543_v39 }
 0x1cf   :  { %12441 = vmatprep.subr.msk.mxu1 %vm632_vm1, %v562_v54  ;;  %v439_v54 = vld [vmem:[#allocation5 + $0x480] sm:$0xff] }
 0x1d0   :  { %13880 = vmatprep.subr.bf16.mxu0 %v13879_v53  ;;  %v393_v53 = vld [vmem:[#allocation5 + $0x310] sm:$0xff]  ;;  %v1247_v35 = vld [vmem:[#allocation13 + $0x140] sm:$0xff] }
 0x1d2   :  { %12442 = vmatpush1.msk.msra.mxu1 %vm632_vm1, %v561_v55  ;;  %v449_v55 = vld [vmem:[#allocation5 + $0x4d0] sm:$0xff] }
 0x1d3   :  { %941 = vmatmul.mubr.f32.vlgmr.msra.gmra.mrb[2].mxu1 %v15728_v37  ;;  %13550 = vmatprep.subr.bf16.mxu1 %v14049_v56  ;;  %v14062_v37 = vld [vmem:[#allocation10 + $0x30] sm:$0xff]  }
 0x1d4   :  { %13551 = vmatpush3.bf16.msra.mxu1 %v14050_v57  ;;  %v460_v56 = vld [vmem:[#allocation5 + $0x528] sm:$0xff]  ;;  %v470_v57 = vld [vmem:[#allocation5 + $0x578] sm:$0xff] }
 0x1d5   :  { %13552 = vmatprep.subr.bf16.mxu1 %v14051_v58  ;;  %v13881_v58 = vpack.c.bf16 %v449_v55, %v439_v54  ;;  %v13969_v54 = vpack.c.bf16 %v373_v47, %v363_v46  ;;  %v404_v55 = vld [vmem:[#allocation5 + $0x368] sm:$0xff] }
 0x1d6   :  { %v1208_v46 = vld [vmem:[#allocation13 + $0x8] sm:$0xff] }
 0x1d7   :  { %13882 = vmatpush1.bf16.msra.mxu0 %v13881_v58  ;;  %v1212_v47 = vld [vmem:[#allocation13 + $0x28] sm:$0xff] }
 0x1d8   :  { %13553 = vmatpush3.bf16.msra.mxu1 %v14052_v59  ;;  %v13883_v59 = vpack.c.bf16 %v470_v57, %v460_v56  ;;  %v414_v56 = vld [vmem:[#allocation5 + $0x3b8] sm:$0xff]  ;;  %v13971_v57 = vpack.c.bf16 %v394_v50, %v384_v49  ;;  %v1216_v49 = vld [vmem:[#allocation13 + $0x48] sm:$0xff] }
 0x1d9   :  { %13554 = vmatprep.subr.bf16.mxu1 %v14053_v60  ;;  %v459_v60 = vld [vmem:[#allocation5 + $0x520] sm:$0xff]  ;;  %v13975_v58 = vpack.c.bf16 %v414_v56, %v404_v55 }
 0x1da   :  { %13884 = vmatprep.subr.bf16.mxu0 %v13883_v59  ;;  %v403_v59 = vld [vmem:[#allocation5 + $0x360] sm:$0xff] }
 0x1db   :  { %v1220_v50 = vld [vmem:[#allocation13 + $0x68] sm:$0xff] }
 0x1dc   :  { %13555 = vmatpush3.bf16.msra.mxu1 %v14054_v61  ;;  %v469_v61 = vld [vmem:[#allocation5 + $0x570] sm:$0xff]  ;;  %v1224_v55 = vld [vmem:[#allocation13 + $0x88] sm:$0xff] }
 0x1dd   :  { %13556 = vmatprep.subr.bf16.mxu1 %v14055_v62  ;;  %v480_v62 = vld [vmem:[#allocation5 + $0x5c8] sm:$0xff] }
 0x1de   :  { %v1228_v56 = vld [vmem:[#allocation13 + $0xa8] sm:$0xff] }
 0x1e0   :  { %13557 = vmatpush3.bf16.msra.mxu1 %v14056_v63  ;;  %v490_v63 = vld [vmem:[#allocation5 + $0x618] sm:$0xff] }
 0x1e1   :  { %13558 = vmatprep.subr.bf16.mxu1 %v14057_v0  ;;  %v13885_v0 = vpack.c.bf16 %v469_v61, %v459_v60  ;;  %v413_v60 = vld [vmem:[#allocation5 + $0x3b0] sm:$0xff]  ;;  %v424_v61 = vld [vmem:[#allocation5 + $0x408] sm:$0xff] }
 0x1e3   :  { %13886 = vmatpush1.bf16.msra.mxu0 %v13885_v0  ;;  %v15763_v0 = vld [vmem:[#allocation13 + $0x20] sm:$0xff] }
 0x1e4   :  { %13559 = vmatpush3.bf16.msra.mxu1 %v14058_v1  ;;  %v479_v1 = vld [vmem:[#allocation5 + $0x5c0] sm:$0xff] }
 0x1e5   :  { %13560 = vmatprep.subr.bf16.mxu1 %v14059_v2  ;;  %v489_v2 = vld [vmem:[#allocation5 + $0x610] sm:$0xff] }
 0x1e6   :  { %v13889_v7 = vpack.c.bf16 %v489_v2, %v479_v1  ;;  %v13977_v2 = vpack.c.bf16 %v413_v60, %v403_v59  ;;  %v15788_v59 = vcombine.low %v1216_v49, %v1220_v50  ;;  %v1232_v60 = vld [vmem:[#allocation13 + $0xc8] sm:$0xff] }
 0x1e8   :  { %13561 = vmatpush3.bf16.msra.mxu1 %v14060_v3  ;;  %v500_v3 = vld [vmem:[#allocation5 + $0x668] sm:$0xff] }
 0x1e9   :  { %13562 = vmatprep.subr.bf16.mxu1 %v14061_v4  ;;  %v13887_v4 = vpack.c.bf16 %v490_v63, %v480_v62  ;;  %v434_v62 = vld [vmem:[#allocation5 + $0x458] sm:$0xff] }
 0x1ea   :  { %v15761_v63 = vld [vmem:[#allocation13] sm:$0xff] }
 0x1eb   :  { %13888 = vmatprep.subr.bf16.mxu0 %v13887_v4  ;;  %v15767_v1 = vcombine.high %v15761_v63, %v15763_v0  ;;  %v423_v4 = vld [vmem:[#allocation5 + $0x400] sm:$0xff] }
 0x1ec   :  { %13563 = vmatpush3.bf16.msra.mxu1 %v14062_v37  ;;  %v510_v37 = vld [vmem:[#allocation5 + $0x6b8] sm:$0xff]  ;;  %13890 = vmatpush1.bf16.msra.mxu0 %v13889_v7 }
 0x1ed   :  { %13564 = vmatprep.subr.bf16.mxu1 %v14063_v17  ;;  %v13891_v10 = vpack.c.bf16 %v510_v37, %v500_v3  ;;  %v539_v17 = vld [vmem:[#allocation5 + $0x7a0] sm:$0xff]  ;;  %v13979_v3 = vpack.c.bf16 %v434_v62, %v424_v61  ;;  %v433_v37 = vld [vmem:[#allocation5 + $0x450] sm:$0xff] }
 0x1ee   :  { %v13901_v21 = vpack.c.bf16 %v549_v18, %v539_v17  ;;  %v13981_v7 = vpack.c.bf16 %v433_v37, %v423_v4  ;;  %v494_v17 = vld [vmem:[#allocation5 + $0x638] sm:$0xff]  ;;  %v13987_v18 = vpack.c.bf16 %v474_v12, %v464_v11  ;;  %v1236_v61 = vld [vmem:[#allocation13 + $0xe8] sm:$0xff] }
 0x1ef   :  { %13892 = vmatprep.subr.bf16.mxu0 %v13891_v10  ;;  %v453_v10 = vld [vmem:[#allocation5 + $0x4f0] sm:$0xff]  ;;  %v1240_v4 = vld [vmem:[#allocation13 + $0x108] sm:$0xff]  ;;  %v15804_v6 = vcombine.high %v1232_v60, %v1236_v61 }
 0x1f0   :  { %13565 = vmatpush3.bf16.msra.mxu1 %v14064_v23  ;;  %13894 = vmatpush1.bf16.msra.mxu0 %v13893_v13  ;;  %v304_v23 = vld [vmem:[#allocation5 + $0x48] sm:$0xff]  ;;  %v463_v13 = vld [vmem:[#allocation5 + $0x540] sm:$0xff]  ;;  %v13985_v15 = vpack.c.bf16 %v453_v10, %v443_v8  ;;  %v15807_v10 = vcombine.low %v1232_v60, %v1236_v61 }
 0x1f1   :  { %13896 = vmatprep.subr.bf16.mxu0 %v13895_v16  ;;  %v13955_v30 = vpack.c.bf16 %v314_v24, %v304_v23  ;;  %1633 = vmatprep.subr.bf16.mxu1 %v15767_v1  ;;  %v484_v16 = vld [vmem:[#allocation5 + $0x5e8] sm:$0xff]  ;;  %v514_v23 = vld [vmem:[#allocation5 + $0x6d8] sm:$0xff] }
 0x1f2   :  { %v13991_v24 = vpack.c.bf16 %v494_v17, %v484_v16  ;;  %v1244_v37 = vld [vmem:[#allocation13 + $0x128] sm:$0xff] }
 0x1f3   :  { %v1248_v11 = vld [vmem:[#allocation13 + $0x148] sm:$0xff]  ;;  %v15810_v16 = vcombine.high %v1240_v4, %v1244_v37 }
 0x1f4   :  { %13898 = vmatpush1.bf16.msra.mxu0 %v13897_v19  ;;  %v483_v19 = vld [vmem:[#allocation5 + $0x5e0] sm:$0xff] }
 0x1f5   :  { %13900 = vmatprep.subr.bf16.mxu0 %v13899_v20  ;;  %v493_v20 = vld [vmem:[#allocation5 + $0x630] sm:$0xff]  ;;  %v1252_v12 = vld [vmem:[#allocation13 + $0x168] sm:$0xff] }
 0x1f6   :  { %v13993_v27 = vpack.c.bf16 %v493_v20, %v483_v19  ;;  %v15813_v19 = vcombine.low %v1240_v4, %v1244_v37  ;;  %v1267_v4 = vld [vmem:[#allocation13 + $0x1e0] sm:$0xff]  ;;  %v1264_v37 = vld [vmem:[#allocation13 + $0x1c8] sm:$0xff] }
 0x1f8   :  { %13902 = vmatpush1.bf16.msra.mxu0 %v13901_v21  ;;  %v13989_v21 = vpack.c.bf16 %v473_v14, %v463_v13  ;;  %v1215_v14 = vld [vmem:[#allocation13 + $0x40] sm:$0xff] }
 0x1f9   :  { %12438 = vmatprep.subr.msk.mxu0 %vm632_vm1, %v560_v22  ;;  %v504_v22 = vld [vmem:[#allocation5 + $0x688] sm:$0xff] }
 0x1fc   :  { %12439 = vmatpush1.msk.msra.mxu0 %vm632_vm1, %v559_v29  ;;  %v534_v29 = vld [vmem:[#allocation5 + $0x778] sm:$0xff] }
 0x1fd   :  { %13956 = vmatprep.subr.bf16.mxu0 %v13955_v30  ;;  %870 = vmatmul.mubr.f32.vlgmr.msra.gmra.mrb[2].mxu0 %v15756_v38  ;;  %v13995_v30 = vpack.c.bf16 %v514_v23, %v504_v22  ;;  %v1223_v22 = vld [vmem:[#allocation13 + $0x80] sm:$0xff] }
 0x1fe   :  { %13958 = vmatpush1.bf16.msra.mxu0 %v13957_v33  ;;  %12446 = vmatprep.mubr.msk.f32.mxu0 %vm629_vm0, %v15732_v41  ;;  %v13973_v41 = vpack.c.bf16 %v393_v53, %v383_v52  ;;  %v13997_v33 = vpack.c.bf16 %v513_v26, %v503_v25  ;;  %v15771_v52 = vcombine.high %v1208_v46, %v1212_v47  ;;  %v1227_v23 = vld [vmem:[#allocation13 + $0xa0] sm:$0xff] }
 0x1ff   :  { %13960 = vmatprep.subr.bf16.mxu0 %v13959_v36  ;;  %v13999_v36 = vpack.c.bf16 %v534_v29, %v524_v28  ;;  %v15832_v29 = vcombine.high %v1223_v22, %v1227_v23 }
 0x202   :  { %13962 = vmatpush1.bf16.msra.mxu0 %v13961_v42  ;;  %v14001_v42 = vpack.c.bf16 %v533_v32, %v523_v31  ;;  %v1239_v31 = vld [vmem:[#allocation13 + $0x100] sm:$0xff] }
 0x203   :  { %13964 = vmatprep.subr.bf16.mxu0 %v13963_v45  ;;  %v564_v45 = vld [vmem:[#allocation5 + $0x868] sm:$0x3]  ;;  %v1243_v32 = vld [vmem:[#allocation13 + $0x120] sm:$0xff] }
 0x204   :  { %v15847_v40 = vcombine.high %v1239_v31, %v1243_v32 }
 0x206   :  { %13966 = vmatpush1.bf16.msra.mxu0 %v13965_v48  ;;  %v569_v48 = vlaneseq }
 0x207   :  { %13968 = vmatprep.subr.bf16.mxu0 %v13967_v51  ;;  %v563_v51 = vld [vmem:[#allocation5 + $0x860] sm:$0x3] }
 0x208   :  { %v15773_v53 = vshrl.u32 %v569_v48, 7  ;;  %v1255_v48 = vld [vmem:[#allocation13 + $0x180] sm:$0xff] }
 0x20a   :  { %13970 = vmatpush1.bf16.msra.mxu0 %v13969_v54  ;;  %v15775_v54 = vcombine.low %v1208_v46, %v1212_v47  ;;  %v15791_v62 = vsub.s32 1, %v15773_v53 }
 0x20b   :  { %13972 = vmatprep.subr.bf16.mxu0 %v13971_v57  ;;  %v15777_v57 = vcombine.high %v1216_v49, %v1220_v50  ;;  %v1259_v49 = vld [vmem:[#allocation13 + $0x1a0] sm:$0xff]  ;;  %v1256_v50 = vld [vmem:[#allocation13 + $0x188] sm:$0xff] }
 0x20c   :  { %18392 = vst [vmem:[#allocation47_spill] sm:$0xff] %v15791_v62 }
 0x20e   :  { %13974 = vmatpush1.bf16.msra.mxu0 %v13973_v41  ;;  %v15780_v41 = vld [vmem:[#allocation8] sm:$0xff] }
 0x20f   :  { %13976 = vmatprep.subr.bf16.mxu0 %v13975_v58  ;;  %v15785_v58 = vsub.s32 0, %v15773_v53  ;;  %v576_v5 = vrot.slane %v15780_v41, %v15791_v62 }
 0x211   :  { %18391 = vst [vmem:[#allocation46_spill] sm:$0xff] %v15785_v58 }
 0x212   :  { %13978 = vmatpush1.bf16.msra.mxu0 %v13977_v2  ;;  %v15794_v2 = vcombine.high %v1224_v55, %v1228_v56 }
 0x213   :  { %13980 = vmatprep.subr.bf16.mxu0 %v13979_v3  ;;  %v572_v3 = vrot.slane %v15780_v41, %v15785_v58 }
 0x216   :  { %13982 = vmatpush1.bf16.msra.mxu0 %v13981_v7 }
 0x217   :  { %13984 = vmatprep.subr.bf16.mxu0 %v13983_v9 }
 0x21a   :  { %13986 = vmatpush1.bf16.msra.mxu0 %v13985_v15  ;;  %v1219_v15 = vld [vmem:[#allocation13 + $0x60] sm:$0xff] }
 0x21b   :  { %13988 = vmatprep.subr.bf16.mxu0 %v13987_v18  ;;  %v15822_v26 = vcombine.high %v1215_v14, %v1219_v15  ;;  %v15828_v28 = vcombine.low %v1215_v14, %v1219_v15  ;;  %v1210_v14 = vld [vmem:[#allocation13 + $0x18] sm:$0xff] }
 0x21e   :  { %13990 = vmatpush1.bf16.msra.mxu0 %v13989_v21  ;;  %v15817_v21 = vcombine.low %v15761_v63, %v15763_v0  ;;  %v1231_v63 = vld [vmem:[#allocation13 + $0xc0] sm:$0xff] }
 0x21f   :  { %13992 = vmatprep.subr.bf16.mxu0 %v13991_v24  ;;  %v15820_v24 = vcombine.high %v1248_v11, %v1252_v12  ;;  %v1235_v0 = vld [vmem:[#allocation13 + $0xe0] sm:$0xff] }
 0x220   :  { %v15842_v34 = vcombine.low %v1231_v63, %v1235_v0 }
 0x222   :  { %13994 = vmatpush1.bf16.msra.mxu0 %v13993_v27  ;;  %v15825_v27 = vcombine.low %v1248_v11, %v1252_v12  ;;  %v1209_v12 = vld [vmem:[#allocation13 + $0x10] sm:$0xff] }
 0x223   :  { %13996 = vmatprep.subr.bf16.mxu0 %v13995_v30  ;;  %v15836_v30 = vcombine.low %v1223_v22, %v1227_v23  ;;  %v18154_v23 = vmov 0  }
 0x226   :  { %13998 = vmatpush1.bf16.msra.mxu0 %v13997_v33  ;;  %v15839_v33 = vcombine.high %v1231_v63, %v1235_v0 }
 0x227   :  { %14000 = vmatprep.subr.bf16.mxu0 %v13999_v36  ;;  %v1251_v36 = vld [vmem:[#allocation13 + $0x160] sm:$0xff] }
 0x22a   :  { %14002 = vmatpush1.bf16.msra.mxu0 %v14001_v42 }
 0x22b   :  { %14004 = vmatprep.subr.bf16.mxu0 %v14003_v43  ;;  %v15852_v43 = vcombine.low %v1239_v31, %v1243_v32 }
 0x22e   :  { %14006 = vmatpush1.bf16.msra.mxu0 %v14005_v44  ;;  %v15855_v44 = vcombine.high %v1247_v35, %v1251_v36 }
 0x22f   :  { %12444 = vmatprep.subr.msk.mxu0 %vm632_vm1, %v564_v45  ;;  %v15858_v45 = vcombine.low %v1247_v35, %v1251_v36  ;;  %v15910_v35 = vld [vmem:[#allocation11] ss:$0 sm:$0xff] }
 0x232   :  { %12445 = vmatpush1.msk.msra.mxu0 %vm632_vm1, %v563_v51  ;;  %v15866_v51 = vcombine.high %v1255_v48, %v1259_v49 }
 0x233   :  { %1674 = vmatprep.subr.bf16.mxu0 %v15771_v52  ;;  %1012 = vmatmul.mubr.f32.vlgmr.msra.gmra.mrb[4].mxu0 %v15756_v38  ;;  %v15799_v38 = vcombine.low %v1224_v55, %v1228_v56  ;;  %v1260_v55 = vld [vmem:[#allocation13 + $0x1a8] sm:$0xff]  ;;  %v15868_v56 = vcombine.low %v1255_v48, %v1259_v49 }
 0x234   :  { %1675 = vmatpush1.bf16.msra.mxu0 %v15775_v54  ;;  %v15870_v60 = vcombine.low %v1256_v50, %v1260_v55  ;;  %v15872_v61 = vcombine.high %v1256_v50, %v1260_v55  ;;  %1706 = vmatprep.mubr.bf16.mxu0 %v18154_v23 }
 0x235   :  { %1676 = vmatprep.subr.bf16.mxu0 %v15777_v57 }
 0x238   :  { %1677 = vmatpush1.bf16.msra.mxu0 %v15788_v59 }
 0x239   :  { %1678 = vmatprep.subr.bf16.mxu0 %v15794_v2 }
 0x23c   :  { %1679 = vmatpush1.bf16.msra.mxu0 %v15799_v38 }
 0x23d   :  { %1680 = vmatprep.subr.bf16.mxu0 %v15804_v6 }
 0x240   :  { %1681 = vmatpush1.bf16.msra.mxu0 %v15807_v10 }
 0x241   :  { %1682 = vmatprep.subr.bf16.mxu0 %v15810_v16 }
 0x244   :  { %1683 = vmatpush1.bf16.msra.mxu0 %v15813_v19 }
 0x245   :  { %1684 = vmatprep.subr.bf16.mxu0 %v15820_v24 }
 0x248   :  { %1685 = vmatpush1.bf16.msra.mxu0 %v15825_v27 }
 0x249   :  { %1686 = vmatprep.subr.bf16.mxu0 %v15872_v61 }
 0x24c   :  { %1687 = vmatpush1.bf16.msra.mxu0 %v15870_v60 }
 0x266   :  { %v729_v7 = vpop.f32.mrb[0].mxu0 }
 0x267   :  { %v730_v8 = vadd.f32 %v729_v7, %v572_v3  ;;  %v731_v9 = vpop.f32.mrb[1].mxu0  ;;  %v1263_v3 = vld [vmem:[#allocation13 + $0x1c0] sm:$0xff]  ;;  %v1268_v7 = vld [vmem:[#allocation13 + $0x1e8] sm:$0xff] }
 0x268   :  { %v732_v13 = vadd.f32 %v731_v9, %v576_v5  ;;  %v15878_v5 = vcombine.high %v1263_v3, %v1267_v4  ;;  %v15882_v9 = vcombine.low %v1264_v37, %v1268_v7  ;;  %v15884_v11 = vcombine.high %v1264_v37, %v1268_v7  ;;  %v1218_v37 = vld [vmem:[#allocation13 + $0x58] sm:$0xff] }
 0x269   :  { %v1018_v17 = vmax.f32 %v730_v8, 0.0  ;;  %v15880_v8 = vcombine.low %v1263_v3, %v1267_v4  ;;  %v1217_v3 = vld [vmem:[#allocation13 + $0x50] sm:$0xff]  ;;  %v1222_v7 = vld [vmem:[#allocation13 + $0x78] sm:$0xff] }
 0x26a   :  { %v1019_v18 = vmax.f32 %v732_v13, 0.0  ;;  %1688 = vmatprep.subr.bf16.mxu0 %v15884_v11  ;;  %v1213_v13 = vld [vmem:[#allocation13 + $0x30] sm:$0xff] }
 0x26b   :  { %v1028_v25 = vpack.c.bf16 %v1018_v17, %v1018_v17  ;;  %1689 = vmatpush1.bf16.msra.mxu0 %v15882_v9  ;;  %v15890_v15 = vcombine.high %v1209_v12, %v1213_v13  ;;  %v1214_v17 = vld [vmem:[#allocation13 + $0x38] sm:$0xff]  ;;  %v1221_v4 = vld [vmem:[#allocation13 + $0x70] sm:$0xff] }
 0x26c   :  { %v1029_v20 = vpack.c.bf16 %v1019_v18, %v1019_v18  ;;  %v15892_v18 = vcombine.low %v1209_v12, %v1213_v13  ;;  %v15896_v22 = vcombine.high %v1210_v14, %v1214_v17 }
 0x26e   :  { %1197 = vmatprep.mubr.bf16.mxu1 %v1029_v20  ;;  %18395 = vst [vmem:[#allocation50_spill] sm:$0xff] %v15892_v18  ;;  %v15894_v20 = vcombine.low %v1210_v14, %v1214_v17  ;;  %1756 = vmatprep.subr.bf16.mxu0 %v15896_v22  ;;  %v15915_v14 = vcombine.high %v1217_v3, %v1221_v4 }
 0x26f   :  { %1198 = vmatmul.mubr.bf16.vlgmr.msra.gmra.mrb[4].mxu1 %v1028_v25  ;;  %v15917_v17 = vcombine.high %v1218_v37, %v1222_v7 }
 0x270   :  { %1634 = vmatpush1.bf16.msra.mxu1 %v15817_v21  ;;  %v15844_v39 = vpop.f32.mrb[0].mxu1  ;;  %18396 = vst [vmem:[#allocation51_spill] sm:$0xff] %v15894_v20  ;;  %1665 = vmatprep.mubr.bf16.mxu1 %v18154_v23  ;;  %18401 = vst [vmem:[#allocation56_spill] sm:$0xff] %v15915_v14  ;;  %v1225_v23 = vld [vmem:[#allocation13 + $0x90] sm:$0xff] }
 0x271   :  { %1635 = vmatprep.subr.bf16.mxu1 %v15822_v26  ;;  %v15849_v42 = vpop.f32.mrb[1].mxu1  ;;  %18402 = vst [vmem:[#allocation57_spill] sm:$0xff] %v15917_v17 }
 0x274   :  { %1636 = vmatpush1.bf16.msra.mxu1 %v15828_v28 }
 0x275   :  { %1637 = vmatprep.subr.bf16.mxu1 %v15832_v29 }
 0x278   :  { %1638 = vmatpush1.bf16.msra.mxu1 %v15836_v30 }
 0x279   :  { %1639 = vmatprep.subr.bf16.mxu1 %v15839_v33 }
 0x27c   :  { %1640 = vmatpush1.bf16.msra.mxu1 %v15842_v34 }
 0x27d   :  { %1641 = vmatprep.subr.bf16.mxu1 %v15847_v40 }
 0x280   :  { %1642 = vmatpush1.bf16.msra.mxu1 %v15852_v43 }
 0x281   :  { %1643 = vmatprep.subr.bf16.mxu1 %v15855_v44 }
 0x284   :  { %1644 = vmatpush1.bf16.msra.mxu1 %v15858_v45 }
 0x285   :  { %1645 = vmatprep.subr.bf16.mxu1 %v15866_v51 }
 0x288   :  { %1646 = vmatpush1.bf16.msra.mxu1 %v15868_v56 }
 0x289   :  { %1647 = vmatprep.subr.bf16.mxu1 %v15878_v5 }
 0x28c   :  { %1648 = vmatpush1.bf16.msra.mxu1 %v15880_v8 }
 0x28d   :  { %1715 = vmatprep.subr.bf16.mxu1 %v15890_v15 }
 0x2a6   :  { %v15862_v46 = vpop.f32.mrb[2].mxu1 }
 0x2a7   :  { %18393 = vst [vmem:[#allocation48_spill] sm:$0xff] %v15862_v46  ;;  %v15864_v47 = vpop.f32.mrb[3].mxu1  ;;  %v1230_v46 = vld [vmem:[#allocation13 + $0xb8] sm:$0xff] }
 0x2a8   :  { %18394 = vst [vmem:[#allocation49_spill] sm:$0xff] %v15864_v47  ;;  %v1238_v47 = vld [vmem:[#allocation13 + $0xf8] sm:$0xff] }
 0x2d0   :  { %v15902_v25 = vpop.f32.mrb[2].mxu0 }
 0x2d1   :  { %18397 = vst [vmem:[#allocation52_spill] sm:$0xff] %v15902_v25  ;;  %v15904_v63 = vpop.f32.mrb[3].mxu0  ;;  %v18407_v25 = vmov 0  }
 0x2d2   :  { %18398 = vst [vmem:[#allocation53_spill] sm:$0xff] %v15904_v63  ;;  %v1241_v63 = vld [vmem:[#allocation13 + $0x110] sm:$0xff] }
 0x306   :  { %v15906_v0 = vpop.f32.mrb[4].mxu0 }
 0x307   :  { %18399 = vst [vmem:[#allocation54_spill] sm:$0xff] %v15906_v0  ;;  %v15908_v31 = vpop.f32.mrb[5].mxu0  ;;  %v1229_v0 = vld [vmem:[#allocation13 + $0xb0] sm:$0xff] }
 0x308   :  { %18400 = vst [vmem:[#allocation55_spill] sm:$0xff] %v15908_v31  ;;  %v1226_v31 = vld [vmem:[#allocation13 + $0x98] sm:$0xff] }
 0x342   :  { %v13566_v32 = vpop.f32.mrb[4].mxu1 }
 0x343   :  { %v13567_v36 = vpop.f32.mrb[5].mxu1 }
 0x344   :  { %v13568_v48 = vadd.f32 %v13567_v36, %v13566_v32  ;;  %v13569_v49 = vpop.f32.mrb[6].mxu1  ;;  %v15923_v32 = vcombine.low %v1217_v3, %v1221_v4  ;;  %v15925_v36 = vcombine.low %v1218_v37, %v1222_v7  ;;  %v15937_v3 = vcombine.low %v1225_v23, %v1229_v0 }
 0x345   :  { %v13570_v50 = vpop.f32.mrb[7].mxu1  ;;  %v15931_v49 = vcombine.high %v1226_v31, %v1230_v46  ;;  %v15939_v4 = vcombine.low %v1226_v31, %v1230_v46 }
 0x346   :  { %v1200_v55 = vadd.f32 %v13568_v48, %v15910_v35  ;;  %18403 = vst [vmem:[#allocation58_spill] sm:$0xff] %v15923_v32  ;;  %18404 = vst [vmem:[#allocation59_spill] sm:$0xff] %v15925_v36  ;;  %v15929_v48 = vcombine.high %v1225_v23, %v1229_v0  ;;  %v1233_v50 = vld [vmem:[#allocation13 + $0xd0] sm:$0xff] }
 0x347   :  { %18406 = vst [vmem:[#allocation61_spill] sm:$0xff] %v15931_v49  ;;  %18408 = vst [vmem:[#allocation62_spill] sm:$0xff] %v15937_v3 }
 0x348   :  { %v1205_v12 = vmax.f32 %v1200_v55, 0.0  ;;  %18405 = vst [vmem:[#allocation60_spill] sm:$0xff] %v15929_v48  ;;  %v1237_v55 = vld [vmem:[#allocation13 + $0xf0] sm:$0xff]  ;;  %18409 = vst [vmem:[#allocation63_spill] sm:$0xff] %v15939_v4 }
 0x349   :  { %v15943_v37 = vcombine.high %v1233_v50, %v1237_v55  ;;  %v15949_v23 = vcombine.low %v1233_v50, %v1237_v55 }
 0x34a   :  { %v15913_v13 = vpack.c.bf16 %v1205_v12, %v1205_v12  ;;  %v1234_v12 = vld [vmem:[#allocation13 + $0xd8] sm:$0xff] }
 0x34b   :  { %18410 = vst [vmem:[#allocation64_spill] sm:$0xff] %v15943_v37  ;;  %v15945_v7 = vcombine.high %v1234_v12, %v1238_v47  ;;  %18412 = vst [vmem:[#allocation66_spill] sm:$0xff] %v15949_v23  ;;  %v15951_v46 = vcombine.low %v1234_v12, %v1238_v47 }
 0x34c   :  { %1666 = vmatmul.mubr.bf16.vlgmr.msra.gmra.mrb[8].mxu1 %v15913_v13  ;;  %1707 = vmatmul.mubr.bf16.vlgmr.msra.gmra.mrb[8].mxu0 %v15913_v13 }
 0x34d   :  { %1716 = vmatpush1.bf16.msra.mxu1 %v15892_v18  ;;  %1757 = vmatpush1.bf16.msra.mxu0 %v15894_v20  ;;  %18411 = vst [vmem:[#allocation65_spill] sm:$0xff] %v15945_v7  ;;  %v1246_v20 = vld [vmem:[#allocation13 + $0x138] sm:$0xff]  ;;  %18413 = vst [vmem:[#allocation67_spill] sm:$0xff] %v15951_v46 }
 0x34e   :  { %1717 = vmatprep.subr.bf16.mxu1 %v15915_v14  ;;  %1758 = vmatprep.subr.bf16.mxu0 %v15917_v17  ;;  %v1245_v17 = vld [vmem:[#allocation13 + $0x130] sm:$0xff]  ;;  %v1242_v14 = vld [vmem:[#allocation13 + $0x118] sm:$0xff] }
 0x34f   :  { %1747 = vmatprep.mubr.bf16.mxu1 %v18407_v25  ;;  %1788 = vmatprep.mubr.bf16.mxu0 %v18407_v25  ;;  %v15955_v0 = vcombine.high %v1241_v63, %v1245_v17  ;;  %v15957_v31 = vcombine.high %v1242_v14, %v1246_v20  ;;  %v15961_v50 = vcombine.low %v1241_v63, %v1245_v17  ;;  %v1270_v18 = vld [vmem:[#allocation13 + $0x1f8] sm:$0xff] }
 0x350   :  { %v15963_v47 = vcombine.low %v1242_v14, %v1246_v20 }
 0x351   :  { %1718 = vmatpush1.bf16.msra.mxu1 %v15923_v32  ;;  %1759 = vmatpush1.bf16.msra.mxu0 %v15925_v36  ;;  %18414 = vst [vmem:[#allocation68_spill] sm:$0xff] %v15955_v0  ;;  %18415 = vst [vmem:[#allocation69_spill] sm:$0xff] %v15957_v31  ;;  %v1250_v36 = vld [vmem:[#allocation13 + $0x158] sm:$0xff] }
 0x352   :  { %1719 = vmatprep.subr.bf16.mxu1 %v15929_v48  ;;  %1760 = vmatprep.subr.bf16.mxu0 %v15931_v49  ;;  %v1249_v49 = vld [vmem:[#allocation13 + $0x150] sm:$0xff]  ;;  %v1254_v32 = vld [vmem:[#allocation13 + $0x178] sm:$0xff]  ;;  %18416 = vst [vmem:[#allocation70_spill] sm:$0xff] %v15961_v50 }
 0x353   :  { %v1253_v48 = vld [vmem:[#allocation13 + $0x170] sm:$0xff]  ;;  %v15969_v12 = vcombine.high %v1250_v36, %v1254_v32  ;;  %v15978_v63 = vcombine.low %v1250_v36, %v1254_v32 }
 0x354   :  { %v15967_v55 = vcombine.high %v1249_v49, %v1253_v48  ;;  %v15976_v20 = vcombine.low %v1249_v49, %v1253_v48 }
 0x355   :  { %1720 = vmatpush1.bf16.msra.mxu1 %v15937_v3  ;;  %1761 = vmatpush1.bf16.msra.mxu0 %v15939_v4  ;;  %18417 = vst [vmem:[#allocation71_spill] sm:$0xff] %v15969_v12  ;;  %v1261_v4 = vld [vmem:[#allocation13 + $0x1b0] sm:$0xff]  ;;  %v1262_v3 = vld [vmem:[#allocation13 + $0x1b8] sm:$0xff] }
 0x356   :  { %1721 = vmatprep.subr.bf16.mxu1 %v15943_v37  ;;  %1762 = vmatprep.subr.bf16.mxu0 %v15945_v7  ;;  %v1257_v7 = vld [vmem:[#allocation13 + $0x190] sm:$0xff]  ;;  %v15972_v37 = vsub.s32 3, %v15773_v53  ;;  %18419 = vst [vmem:[#allocation73_spill] sm:$0xff] %v15976_v20 }
 0x357   :  { %v15982_v14 = vcombine.high %v1257_v7, %v1261_v4  ;;  %v15990_v32 = vcombine.low %v1257_v7, %v1261_v4 }
 0x358   :  { %18418 = vst [vmem:[#allocation72_spill] sm:$0xff] %v15972_v37 }
 0x359   :  { %1722 = vmatpush1.bf16.msra.mxu1 %v15949_v23  ;;  %1763 = vmatpush1.bf16.msra.mxu0 %v15951_v46  ;;  %v1258_v23 = vld [vmem:[#allocation13 + $0x198] sm:$0xff]  ;;  %v1269_v46 = vld [vmem:[#allocation13 + $0x1f0] sm:$0xff] }
 0x35a   :  { %1723 = vmatprep.subr.bf16.mxu1 %v15955_v0  ;;  %1764 = vmatprep.subr.bf16.mxu0 %v15957_v31  ;;  %v15984_v17 = vcombine.high %v1258_v23, %v1262_v3  ;;  %v1265_v31 = vld [vmem:[#allocation13 + $0x1d0] sm:$0xff]  ;;  %v584_v0 = vrot.slane %v15780_v41, %v15972_v37  ;;  %v15992_v36 = vcombine.low %v1258_v23, %v1262_v3  ;;  %v14065_v3 = vld [vmem:[#allocation10 + $0x40] sm:$0xff]  }
 0x35b   :  { %v15996_v48 = vcombine.high %v1265_v31, %v1269_v46  ;;  %v14066_v23 = vld [vmem:[#allocation10] sm:$0xff]  }
 0x35d   :  { %1724 = vmatpush1.bf16.msra.mxu1 %v15961_v50  ;;  %1765 = vmatpush1.bf16.msra.mxu0 %v15963_v47  ;;  %v1266_v50 = vld [vmem:[#allocation13 + $0x1d8] sm:$0xff] }
 0x35e   :  { %1725 = vmatprep.subr.bf16.mxu1 %v15967_v55  ;;  %1766 = vmatprep.subr.bf16.mxu0 %v15969_v12  ;;  %v15998_v49 = vcombine.high %v1266_v50, %v1270_v18  ;;  %v803_v12 = vadd.f32 %v15849_v42, %v584_v0  ;;  %v16005_v4 = vcombine.low %v1266_v50, %v1270_v18  ;;  %v14067_v42 = vld [vmem:[#allocation10 + $0x48] sm:$0xff]   ;;  %v14073_v50 = vld [vmem:[#allocation10 + $0x60] sm:$0xff]  }
 0x35f   :  { %v14068_v18 = vld [vmem:[#allocation10 + $0x8] sm:$0xff]  }
 0x360   :  { %v1021_v7 = vmax.f32 %v803_v12, 0.0  ;;  %v14075_v12 = vld [vmem:[#allocation10 + $0x68] sm:$0xff]  }
 0x361   :  { %1726 = vmatpush1.bf16.msra.mxu1 %v15976_v20  ;;  %1767 = vmatpush1.bf16.msra.mxu0 %v15978_v63  ;;  %v16003_v20 = vcombine.low %v1265_v31, %v1269_v46  ;;  %v14069_v46 = vld [vmem:[#allocation10 + $0x50] sm:$0xff]  }
 0x362   :  { %1727 = vmatprep.subr.bf16.mxu1 %v15982_v14  ;;  %1768 = vmatprep.subr.bf16.mxu0 %v15984_v17  ;;  %v1844_v0 = vpack.c.bf16 %v1021_v7, %v1021_v7  ;;  %v14070_v31 = vld [vmem:[#allocation10 + $0x10] sm:$0xff]   ;;  %v14079_v7 = vld [vmem:[#allocation10 + $0x78] sm:$0xff]  }
 0x365   :  { %1728 = vmatpush1.bf16.msra.mxu1 %v15990_v32  ;;  %1769 = vmatpush1.bf16.msra.mxu0 %v15992_v36 }
 0x366   :  { %1729 = vmatprep.subr.bf16.mxu1 %v15996_v48  ;;  %1770 = vmatprep.subr.bf16.mxu0 %v15998_v49 }
 0x369   :  { %1730 = vmatpush1.bf16.msra.mxu1 %v16003_v20  ;;  %1771 = vmatpush1.bf16.msra.mxu0 %v16005_v4 }
 0x36a   :  { %13572 = vmatprep.subr.bf16.mxu1 %v14065_v3  ;;  %2448 = vmatprep.subr.bf16.mxu0 %v15767_v1  ;;  %v14071_v1 = vld [vmem:[#allocation10 + $0x58] sm:$0xff]  }
 0x36c   :  { %1748 = vmatmul.mubr.bf16.vlgmr.msra.gmra.mrb[12].mxu1 %v15913_v13  ;;  %1789 = vmatmul.mubr.bf16.vlgmr.msra.gmra.mrb[12].mxu0 %v15913_v13  ;;  %v14072_v13 = vld [vmem:[#allocation10 + $0x18] sm:$0xff]  }
 0x36d   :  { %13573 = vmatpush3.bf16.msra.mxu1 %v14066_v23  ;;  %2012 = vmatprep.mubr.bf16.mxu1 %v1844_v0  ;;  %v16079_v23 = vsub.s32 4, %v15773_v53  ;;  %v16085_v0 = vsub.s32 6, %v15773_v53 }
 0x36e   :  { %13574 = vmatprep.subr.bf16.mxu1 %v14067_v42  ;;  %2449 = vmatpush1.bf16.msra.mxu0 %v15817_v21  ;;  %v14074_v21 = vld [vmem:[#allocation10 + $0x20] sm:$0xff]   ;;  %v16082_v42 = vsub.s32 5, %v15773_v53 }
 0x36f   :  { %2450 = vmatprep.subr.bf16.mxu0 %v15822_v26  ;;  %2480 = vmatprep.mubr.bf16.mxu0 %v18407_v25  ;;  %v16022_v26 = vsub.s32 2, %v15773_v53  ;;  %18422 = vst [vmem:[#allocation76_spill] sm:$0xff] %v16079_v23 }
 0x370   :  { %18423 = vst [vmem:[#allocation77_spill] sm:$0xff] %v16082_v42 }
 0x371   :  { %13575 = vmatpush3.bf16.msra.mxu1 %v14068_v18  ;;  %18420 = vst [vmem:[#allocation74_spill] sm:$0xff] %v16022_v26  ;;  %v16088_v18 = vsub.s32 7, %v15773_v53 }
 0x372   :  { %13576 = vmatprep.subr.bf16.mxu1 %v14069_v46  ;;  %2451 = vmatpush1.bf16.msra.mxu0 %v15828_v28  ;;  %v14076_v28 = vld [vmem:[#allocation10 + $0x28] sm:$0xff]  }
 0x373   :  { %2452 = vmatprep.subr.bf16.mxu0 %v15832_v29  ;;  %v580_v29 = vrot.slane %v15780_v41, %v16022_v26 }
 0x375   :  { %13577 = vmatpush3.bf16.msra.mxu1 %v14070_v31  ;;  %v801_v3 = vadd.f32 %v15844_v39, %v580_v29 }
 0x376   :  { %13578 = vmatprep.subr.bf16.mxu1 %v14071_v1  ;;  %2453 = vmatpush1.bf16.msra.mxu0 %v15836_v30  ;;  %v14077_v30 = vld [vmem:[#allocation10 + $0x70] sm:$0xff]  }
 0x377   :  { %2454 = vmatprep.subr.bf16.mxu0 %v15839_v33  ;;  %v14078_v33 = vld [vmem:[#allocation10 + $0x30] sm:$0xff]  }
 0x379   :  { %13579 = vmatpush3.bf16.msra.mxu1 %v14072_v13 }
 0x37a   :  { %13580 = vmatprep.subr.bf16.mxu1 %v14073_v50  ;;  %2455 = vmatpush1.bf16.msra.mxu0 %v15842_v34  ;;  %v14080_v34 = vld [vmem:[#allocation10 + $0x38] sm:$0xff]  }
 0x37b   :  { %2456 = vmatprep.subr.bf16.mxu0 %v15847_v40  ;;  %v1020_v40 = vmax.f32 %v801_v3, 0.0 }
 0x37d   :  { %13581 = vmatpush3.bf16.msra.mxu1 %v14074_v21  ;;  %v1843_v41 = vpack.c.bf16 %v1020_v40, %v1020_v40 }
 0x37e   :  { %13582 = vmatprep.subr.bf16.mxu1 %v14075_v12  ;;  %2457 = vmatpush1.bf16.msra.mxu0 %v15852_v43 }
 0x37f   :  { %2458 = vmatprep.subr.bf16.mxu0 %v15855_v44 }
 0x381   :  { %13583 = vmatpush3.bf16.msra.mxu1 %v14076_v28 }
 0x382   :  { %13584 = vmatprep.subr.bf16.mxu1 %v14077_v30  ;;  %2459 = vmatpush1.bf16.msra.mxu0 %v15858_v45 }
 0x383   :  { %2460 = vmatprep.subr.bf16.mxu0 %v15866_v51 }
 0x385   :  { %13585 = vmatpush3.bf16.msra.mxu1 %v14078_v33 }
 0x386   :  { %13586 = vmatprep.subr.bf16.mxu1 %v14079_v7  ;;  %2461 = vmatpush1.bf16.msra.mxu0 %v15868_v56 }
 0x387   :  { %2462 = vmatprep.subr.bf16.mxu0 %v15878_v5 }
 0x389   :  { %13587 = vmatpush3.bf16.msra.mxu1 %v14080_v34 }
 0x38a   :  { %2489 = vmatprep.subr.bf16.mxu1 %v15771_v52  ;;  %2463 = vmatpush1.bf16.msra.mxu0 %v15880_v8  ;;  %v15378_v52 = vmov 1983009808  }
 0x38b   :  { %2530 = vmatprep.subr.bf16.mxu0 %v15890_v15 }
 0x38c   :  { %2013 = vmatmul.mubr.bf16.vlgmr.msra.gmra.mrb[16].mxu1 %v1843_v41 }
 0x38d   :  { %2490 = vmatpush1.bf16.msra.mxu1 %v15775_v54  ;;  %2521 = vmatprep.mubr.bf16.mxu1 %v18407_v25  ;;  %v1808_v54 = vunpack.c.l.s4 %v15378_v52 }
 0x38e   :  { %2491 = vmatprep.subr.bf16.mxu1 %v15777_v57  ;;  %v1271_v57 = vld [vmem:[#allocation14] sm:$0xff] }
 0x38f   :  { %v16091_v46 = vrot.slane %v1271_v57, %v16079_v23  ;;  %v16094_v31 = vrot.slane %v1271_v57, %v16085_v0  ;;  %v16097_v1 = vrot.slane %v1271_v57, %v16082_v42  ;;  %v16100_v13 = vrot.slane %v1271_v57, %v16088_v18 }
 0x391   :  { %2492 = vmatpush1.bf16.msra.mxu1 %v15788_v59  ;;  %v16056_v59 = vrot.slane %v1271_v57, %v15785_v58 }
 0x392   :  { %2493 = vmatprep.subr.bf16.mxu1 %v15794_v2  ;;  %v16059_v2 = vrot.slane %v1271_v57, %v16022_v26 }
 0x395   :  { %2494 = vmatpush1.bf16.msra.mxu1 %v15799_v38  ;;  %v1809_v38 = vunpack.c.0.s8 %v1808_v54 }
 0x396   :  { %2495 = vmatprep.subr.bf16.mxu1 %v15804_v6  ;;  %v16062_v6 = vrot.slane %v1271_v57, %v15791_v62 }
 0x397   :  { %v16070_v44 = vsub.s32 %v1809_v38, %v15773_v53 }
 0x399   :  { %2496 = vmatpush1.bf16.msra.mxu1 %v15807_v10  ;;  %v16065_v10 = vrot.slane %v1271_v57, %v15972_v37 }
 0x39a   :  { %2497 = vmatprep.subr.bf16.mxu1 %v15810_v16 }
 0x39d   :  { %2498 = vmatpush1.bf16.msra.mxu1 %v15813_v19 }
 0x39e   :  { %2499 = vmatprep.subr.bf16.mxu1 %v15820_v24 }
 0x3a1   :  { %2500 = vmatpush1.bf16.msra.mxu1 %v15825_v27 }
 0x3a2   :  { %2501 = vmatprep.subr.bf16.mxu1 %v15872_v61 }
 0x3a5   :  { %2502 = vmatpush1.bf16.msra.mxu1 %v15870_v60 }
 0x3a6   :  { %2503 = vmatprep.subr.bf16.mxu1 %v15884_v11 }
 0x3a9   :  { %2504 = vmatpush1.bf16.msra.mxu1 %v15882_v9 }
 0x3aa   :  { %2571 = vmatprep.subr.bf16.mxu1 %v15896_v22 }
 0x41f   :  { %v1667_v16 = vpop.f32.mrb[8].mxu1  ;;  %v1708_v19 = vpop.f32.mrb[8].mxu0 }
 0x420   :  { %v1668_v24 = vadd.f32 %v1667_v16, %v16056_v59  ;;  %v1709_v27 = vadd.f32 %v1708_v19, %v16059_v2  ;;  %v1669_v39 = vpop.f32.mrb[9].mxu1  ;;  %v1710_v43 = vpop.f32.mrb[9].mxu0 }
 0x421   :  { %v1670_v45 = vadd.f32 %v1669_v39, %v16062_v6  ;;  %v1711_v51 = vadd.f32 %v1710_v43, %v16065_v10  ;;  %v1671_v56 = vpop.f32.mrb[10].mxu1  ;;  %v1712_v60 = vpop.f32.mrb[10].mxu0 }
 0x422   :  { %v1672_v61 = vpop.f32.mrb[11].mxu1  ;;  %v1713_v5 = vpop.f32.mrb[11].mxu0  ;;  %v18426_v56 = vld [vmem:[#allocation50_spill] sm:$0xff]  ;;  %v18427_v60 = vld [vmem:[#allocation51_spill] sm:$0xff] }
 0x423   :  { %v1805_v8 = vcombine.low %v1668_v24, %v1670_v45  ;;  %v1806_v9 = vcombine.low %v1709_v27, %v1711_v51  ;;  %v18428_v61 = vld [vmem:[#allocation56_spill] sm:$0xff]  ;;  %v18429_v5 = vld [vmem:[#allocation57_spill] sm:$0xff] }
 0x425   :  { %v1813_v11 = vrot.slane %v1805_v8, %v16070_v44  ;;  %v1820_v15 = vrot.slane %v1806_v9, %v16070_v44  ;;  %v18430_v8 = vld [vmem:[#allocation58_spill] sm:$0xff]  ;;  %v18431_v9 = vld [vmem:[#allocation59_spill] sm:$0xff] }
 0x427   :  { %v16076_v22 = vcombine.low %v1813_v11, %v1820_v15  ;;  %v18433_v11 = vld [vmem:[#allocation61_spill] sm:$0xff]  ;;  %v18434_v15 = vld [vmem:[#allocation62_spill] sm:$0xff] }
 0x429   :  { %18421 = vst [vmem:[#allocation75_spill] sm:$0xff] %v16076_v22 }
 0x43f   :  { %v1749_v50 = vpop.f32.mrb[12].mxu1  ;;  %v1790_v21 = vpop.f32.mrb[12].mxu0 }
 0x440   :  { %v1750_v12 = vadd.f32 %v1749_v50, %v16091_v46  ;;  %v1791_v28 = vadd.f32 %v1790_v21, %v16094_v31  ;;  %v1751_v53 = vpop.f32.mrb[13].mxu1  ;;  %v1792_v29 = vpop.f32.mrb[13].mxu0  ;;  %v18435_v50 = vld [vmem:[#allocation63_spill] sm:$0xff]  ;;  %v18436_v21 = vld [vmem:[#allocation64_spill] sm:$0xff] }
 0x441   :  { %v1752_v30 = vadd.f32 %v1751_v53, %v16097_v1  ;;  %v1793_v33 = vadd.f32 %v1792_v29, %v16100_v13  ;;  %v1753_v3 = vpop.f32.mrb[14].mxu1  ;;  %v1794_v7 = vpop.f32.mrb[14].mxu0  ;;  %v18439_v53 = vld [vmem:[#allocation67_spill] sm:$0xff]  ;;  %v18440_v29 = vld [vmem:[#allocation68_spill] sm:$0xff] }
 0x442   :  { %v1754_v34 = vpop.f32.mrb[15].mxu1  ;;  %v1795_v40 = vpop.f32.mrb[15].mxu0  ;;  %v18442_v7 = vld [vmem:[#allocation70_spill] sm:$0xff] }
 0x443   :  { %v1822_v41 = vcombine.low %v1750_v12, %v1752_v30  ;;  %v1823_v52 = vcombine.low %v1791_v28, %v1793_v33  ;;  %v18437_v12 = vld [vmem:[#allocation65_spill] sm:$0xff]  ;;  %v18438_v28 = vld [vmem:[#allocation66_spill] sm:$0xff]  ;;  %v18443_v34 = vld [vmem:[#allocation71_spill] sm:$0xff] }
 0x444   :  { %v18441_v30 = vld [vmem:[#allocation69_spill] sm:$0xff] }
 0x445   :  { %v16107_v54 = vrot.slane %v1822_v41, %v16070_v44  ;;  %v16110_v57 = vrot.slane %v1823_v52, %v16070_v44  ;;  %v16133_v33 = vld [vmem:[#allocation8] sm:$0xff] }
 0x446   :  { %v592_v3 = vrot.slane %v16133_v33, %v16082_v42  ;;  %v18444_v40 = vld [vmem:[#allocation53_spill] sm:$0xff] }
 0x447   :  { %18424 = vst [vmem:[#allocation78_spill] sm:$0xff] %v16107_v54  ;;  %18425 = vst [vmem:[#allocation79_spill] sm:$0xff] %v16110_v57  ;;  %v18445_v52 = vld [vmem:[#allocation73_spill] sm:$0xff] }
 0x448   :  { %v874_v41 = vadd.f32 %v18444_v40, %v592_v3  ;;  %v2851_v3 = vld [vmem:[#allocation13 + $0x68] sm:$0xff] }
 0x45f   :  { %v13588_v16 = vpop.f32.mrb[16].mxu1 }
 0x460   :  { %v13589_v19 = vpop.f32.mrb[17].mxu1 }
 0x461   :  { %v13590_v24 = vadd.f32 %v13589_v19, %v13588_v16  ;;  %v13591_v27 = vpop.f32.mrb[18].mxu1  ;;  %v1023_v16 = vmax.f32 %v874_v41, 0.0  ;;  %v14091_v19 = vld [vmem:[#allocation10 + $0x68] sm:$0xff]  }
 0x462   :  { %v13592_v39 = vpop.f32.mrb[19].mxu1  ;;  %v588_v27 = vrot.slane %v16133_v33, %v16079_v23 }
 0x463   :  { %v2015_v43 = vadd.f32 %v13590_v24, %v15910_v35  ;;  %v18432_v35 = vld [vmem:[#allocation60_spill] sm:$0xff]  ;;  %v14093_v39 = vld [vmem:[#allocation10 + $0x70] sm:$0xff]  }
 0x464   :  { %v14092_v24 = vld [vmem:[#allocation10 + $0x28] sm:$0xff]  }
 0x465   :  { %v2020_v45 = vmax.f32 %v2015_v43, 0.0  ;;  %v14094_v43 = vld [vmem:[#allocation10 + $0x30] sm:$0xff]  }
 0x467   :  { %v2021_v51 = vpack.c.bf16 %v2020_v45, %v2020_v45  ;;  %v18446_v45 = vld [vmem:[#allocation52_spill] sm:$0xff] }
 0x469   :  { %2481 = vmatmul.mubr.bf16.vlgmr.msra.gmra.mrb[16].mxu0 %v2021_v51  ;;  %2522 = vmatmul.mubr.bf16.vlgmr.msra.gmra.mrb[20].mxu1 %v2021_v51 }
 0x46a   :  { %2531 = vmatpush1.bf16.msra.mxu0 %v18426_v56  ;;  %2572 = vmatpush1.bf16.msra.mxu1 %v18427_v60  ;;  %v14095_v56 = vld [vmem:[#allocation10 + $0x78] sm:$0xff]  }
 0x46b   :  { %2532 = vmatprep.subr.bf16.mxu0 %v18428_v61  ;;  %2573 = vmatprep.subr.bf16.mxu1 %v18429_v5  ;;  %v14096_v60 = vld [vmem:[#allocation10 + $0x38] sm:$0xff]  }
 0x46c   :  { %2562 = vmatprep.mubr.bf16.mxu0 %v18407_v25  ;;  %2603 = vmatprep.mubr.bf16.mxu1 %v18407_v25 }
 0x46e   :  { %2533 = vmatpush1.bf16.msra.mxu0 %v18430_v8  ;;  %2574 = vmatpush1.bf16.msra.mxu1 %v18431_v9  ;;  %v2838_v8 = vld [vmem:[#allocation13] sm:$0xff] }
 0x46f   :  { %2534 = vmatprep.subr.bf16.mxu0 %v18432_v35  ;;  %2575 = vmatprep.subr.bf16.mxu1 %v18433_v11  ;;  %v2842_v9 = vld [vmem:[#allocation13 + $0x20] sm:$0xff]  ;;  %v2839_v35 = vld [vmem:[#allocation13 + $0x8] sm:$0xff] }
 0x470   :  { %v16157_v11 = vcombine.high %v2838_v8, %v2842_v9 }
 0x472   :  { %2535 = vmatpush1.bf16.msra.mxu0 %v18434_v15  ;;  %2576 = vmatpush1.bf16.msra.mxu1 %v18435_v50  ;;  %v2843_v15 = vld [vmem:[#allocation13 + $0x28] sm:$0xff]  ;;  %v16159_v50 = vcombine.low %v2838_v8, %v2842_v9 }
 0x473   :  { %2536 = vmatprep.subr.bf16.mxu0 %v18436_v21  ;;  %2577 = vmatprep.subr.bf16.mxu1 %v18437_v12  ;;  %v16161_v21 = vcombine.low %v2839_v35, %v2843_v15  ;;  %v16163_v12 = vcombine.high %v2839_v35, %v2843_v15  ;;  %v2883_v8 = vld [vmem:[#allocation13 + $0x168] sm:$0xff] }
 0x476   :  { %2537 = vmatpush1.bf16.msra.mxu0 %v18438_v28  ;;  %2578 = vmatpush1.bf16.msra.mxu1 %v18439_v53  ;;  %v2846_v28 = vld [vmem:[#allocation13 + $0x40] sm:$0xff] }
 0x477   :  { %2538 = vmatprep.subr.bf16.mxu0 %v18440_v29  ;;  %2579 = vmatprep.subr.bf16.mxu1 %v18441_v30  ;;  %v2850_v53 = vld [vmem:[#allocation13 + $0x60] sm:$0xff]  ;;  %v2847_v29 = vld [vmem:[#allocation13 + $0x48] sm:$0xff] }
 0x478   :  { %v16166_v30 = vcombine.high %v2846_v28, %v2850_v53  ;;  %v16170_v40 = vcombine.low %v2846_v28, %v2850_v53  ;;  %v16172_v41 = vcombine.high %v2847_v29, %v2851_v3 }
 0x47a   :  { %2539 = vmatpush1.bf16.msra.mxu0 %v18442_v7  ;;  %2580 = vmatpush1.bf16.msra.mxu1 %v15963_v47  ;;  %v14081_v47 = vld [vmem:[#allocation10 + $0x40] sm:$0xff]  }
 0x47b   :  { %2540 = vmatprep.subr.bf16.mxu0 %v15967_v55  ;;  %2581 = vmatprep.subr.bf16.mxu1 %v18443_v34  ;;  %v2660_v55 = vpack.c.bf16 %v1023_v16, %v1023_v16  ;;  %v2854_v7 = vld [vmem:[#allocation13 + $0x80] sm:$0xff]  ;;  %v2859_v16 = vld [vmem:[#allocation13 + $0xa8] sm:$0xff] }
 0x47c   :  { %v2858_v34 = vld [vmem:[#allocation13 + $0xa0] sm:$0xff] }
 0x47e   :  { %2541 = vmatpush1.bf16.msra.mxu0 %v18445_v52  ;;  %2582 = vmatpush1.bf16.msra.mxu1 %v15978_v63  ;;  %v14082_v63 = vld [vmem:[#allocation10] sm:$0xff]   ;;  %v2855_v52 = vld [vmem:[#allocation13 + $0x88] sm:$0xff] }
 0x47f   :  { %2542 = vmatprep.subr.bf16.mxu0 %v15982_v14  ;;  %2583 = vmatprep.subr.bf16.mxu1 %v15984_v17  ;;  %v14083_v14 = vld [vmem:[#allocation10 + $0x48] sm:$0xff]  }
 0x480   :  { %v14084_v17 = vld [vmem:[#allocation10 + $0x8] sm:$0xff]  }
 0x482   :  { %2543 = vmatpush1.bf16.msra.mxu0 %v15990_v32  ;;  %2584 = vmatpush1.bf16.msra.mxu1 %v15992_v36  ;;  %v14085_v32 = vld [vmem:[#allocation10 + $0x50] sm:$0xff]  }
 0x483   :  { %2544 = vmatprep.subr.bf16.mxu0 %v15996_v48  ;;  %2585 = vmatprep.subr.bf16.mxu1 %v15998_v49  ;;  %v14086_v36 = vld [vmem:[#allocation10 + $0x10] sm:$0xff]   ;;  %v14087_v48 = vld [vmem:[#allocation10 + $0x58] sm:$0xff]   ;;  %v14089_v49 = vld [vmem:[#allocation10 + $0x60] sm:$0xff]  }
 0x486   :  { %2545 = vmatpush1.bf16.msra.mxu0 %v16003_v20  ;;  %2586 = vmatpush1.bf16.msra.mxu1 %v16005_v4  ;;  %v14088_v20 = vld [vmem:[#allocation10 + $0x18] sm:$0xff]   ;;  %v14090_v4 = vld [vmem:[#allocation10 + $0x20] sm:$0xff]  }
 0x487   :  { %13594 = vmatprep.subr.bf16.mxu0 %v14081_v47  ;;  %3264 = vmatprep.subr.bf16.mxu1 %v16157_v11  ;;  %v16176_v47 = vcombine.low %v2847_v29, %v2851_v3  ;;  %v2886_v3 = vld [vmem:[#allocation13 + $0x180] sm:$0xff] }
 0x489   :  { %2563 = vmatmul.mubr.bf16.vlgmr.msra.gmra.mrb[20].mxu0 %v2021_v51  ;;  %2604 = vmatmul.mubr.bf16.vlgmr.msra.gmra.mrb[24].mxu1 %v2021_v51  ;;  %v872_v51 = vadd.f32 %v18446_v45, %v588_v27  ;;  %v2871_v27 = vld [vmem:[#allocation13 + $0x108] sm:$0xff] }
 0x48a   :  { %13595 = vmatpush3.bf16.msra.mxu0 %v14082_v63  ;;  %2828 = vmatprep.mubr.bf16.mxu0 %v2660_v55  ;;  %v16178_v55 = vcombine.high %v2854_v7, %v2858_v34  ;;  %v16181_v63 = vcombine.high %v2855_v52, %v2859_v16 }
 0x48b   :  { %13596 = vmatprep.subr.bf16.mxu0 %v14083_v14  ;;  %3296 = vmatprep.mubr.bf16.mxu1 %v18407_v25  ;;  %v1022_v61 = vmax.f32 %v872_v51, 0.0  ;;  %v2862_v14 = vld [vmem:[#allocation13 + $0xc0] sm:$0xff] }
 0x48c   :  { %3265 = vmatpush1.bf16.msra.mxu1 %v16159_v50 }
 0x48d   :  { %v2659_v5 = vpack.c.bf16 %v1022_v61, %v1022_v61  ;;  %3266 = vmatprep.subr.bf16.mxu1 %v16166_v30  ;;  %v2882_v61 = vld [vmem:[#allocation13 + $0x160] sm:$0xff] }
 0x48e   :  { %13597 = vmatpush3.bf16.msra.mxu0 %v14084_v17  ;;  %v2866_v17 = vld [vmem:[#allocation13 + $0xe0] sm:$0xff] }
 0x48f   :  { %13598 = vmatprep.subr.bf16.mxu0 %v14085_v32  ;;  %v2863_v32 = vld [vmem:[#allocation13 + $0xc8] sm:$0xff] }
 0x490   :  { %3267 = vmatpush1.bf16.msra.mxu1 %v16170_v40 }
 0x491   :  { %3268 = vmatprep.subr.bf16.mxu1 %v16178_v55 }
 0x492   :  { %13599 = vmatpush3.bf16.msra.mxu0 %v14086_v36  ;;  %v2867_v36 = vld [vmem:[#allocation13 + $0xe8] sm:$0xff] }
 0x493   :  { %13600 = vmatprep.subr.bf16.mxu0 %v14087_v48  ;;  %v16184_v48 = vcombine.low %v2854_v7, %v2858_v34  ;;  %v16200_v45 = vcombine.low %v2863_v32, %v2867_v36  ;;  %v2890_v7 = vld [vmem:[#allocation13 + $0x1a0] sm:$0xff]  ;;  %v2887_v34 = vld [vmem:[#allocation13 + $0x188] sm:$0xff] }
 0x495   :  { %3269 = vmatpush1.bf16.msra.mxu1 %v16184_v48 }
 0x496   :  { %13601 = vmatpush3.bf16.msra.mxu0 %v14088_v20  ;;  %v16188_v20 = vcombine.low %v2855_v52, %v2859_v16  ;;  %v16229_v52 = vcombine.high %v2886_v3, %v2890_v7  ;;  %v2891_v16 = vld [vmem:[#allocation13 + $0x1a8] sm:$0xff] }
 0x497   :  { %13602 = vmatprep.subr.bf16.mxu0 %v14089_v49  ;;  %v16190_v49 = vcombine.high %v2862_v14, %v2866_v17 }
 0x499   :  { %3270 = vmatprep.subr.bf16.mxu1 %v16190_v49 }
 0x49a   :  { %13603 = vmatpush3.bf16.msra.mxu0 %v14090_v4  ;;  %v16193_v4 = vcombine.high %v2863_v32, %v2867_v36  ;;  %v16235_v32 = vcombine.high %v2887_v34, %v2891_v16  ;;  %v2894_v36 = vld [vmem:[#allocation13 + $0x1c0] sm:$0xff] }
 0x49b   :  { %13604 = vmatprep.subr.bf16.mxu0 %v14091_v19  ;;  %v2870_v19 = vld [vmem:[#allocation13 + $0x100] sm:$0xff] }
 0x49e   :  { %13605 = vmatpush3.bf16.msra.mxu0 %v14092_v24  ;;  %v2874_v24 = vld [vmem:[#allocation13 + $0x120] sm:$0xff] }
 0x49f   :  { %13606 = vmatprep.subr.bf16.mxu0 %v14093_v39  ;;  %v2875_v39 = vld [vmem:[#allocation13 + $0x128] sm:$0xff]  ;;  %v16202_v51 = vcombine.high %v2870_v19, %v2874_v24  ;;  %v16208_v9 = vcombine.low %v2870_v19, %v2874_v24  ;;  %v2898_v19 = vld [vmem:[#allocation13 + $0x1e0] sm:$0xff] }
 0x4a0   :  { %v16212_v35 = vcombine.low %v2871_v27, %v2875_v39  ;;  %v2895_v24 = vld [vmem:[#allocation13 + $0x1c8] sm:$0xff] }
 0x4a2   :  { %13607 = vmatpush3.bf16.msra.mxu0 %v14094_v43  ;;  %v16196_v43 = vcombine.low %v2862_v14, %v2866_v17  ;;  %v16231_v14 = vcombine.low %v2886_v3, %v2890_v7  ;;  %v16233_v17 = vcombine.low %v2887_v34, %v2891_v16  ;;  %v2844_v3 = vld [vmem:[#allocation13 + $0x30] sm:$0xff]  ;;  %v2841_v7 = vld [vmem:[#allocation13 + $0x18] sm:$0xff] }
 0x4a3   :  { %13608 = vmatprep.subr.bf16.mxu0 %v14095_v56  ;;  %v16205_v56 = vcombine.high %v2871_v27, %v2875_v39  ;;  %v16241_v27 = vcombine.high %v2894_v36, %v2898_v19  ;;  %v2899_v39 = vld [vmem:[#allocation13 + $0x1e8] sm:$0xff]  ;;  %v2845_v16 = vld [vmem:[#allocation13 + $0x38] sm:$0xff] }
 0x4a4   :  { %3271 = vmatpush1.bf16.msra.mxu1 %v16196_v43 }
 0x4a5   :  { %3272 = vmatprep.subr.bf16.mxu1 %v16202_v51 }
 0x4a6   :  { %13609 = vmatpush3.bf16.msra.mxu0 %v14096_v60  ;;  %v2878_v60 = vld [vmem:[#allocation13 + $0x140] sm:$0xff] }
 0x4a7   :  { %3305 = vmatprep.subr.bf16.mxu0 %v16163_v12  ;;  %v16214_v15 = vcombine.high %v2878_v60, %v2882_v61  ;;  %v16220_v53 = vcombine.low %v2878_v60, %v2882_v61  ;;  %v16243_v60 = vcombine.low %v2894_v36, %v2898_v19  ;;  %v16245_v61 = vcombine.low %v2895_v24, %v2899_v39 }
 0x4a8   :  { %3273 = vmatpush1.bf16.msra.mxu1 %v16208_v9  ;;  %v16257_v19 = vcombine.low %v2841_v7, %v2845_v16 }
 0x4a9   :  { %2829 = vmatmul.mubr.bf16.vlgmr.msra.gmra.mrb[24].mxu0 %v2659_v5  ;;  %v2879_v5 = vld [vmem:[#allocation13 + $0x148] sm:$0xff]  ;;  %3274 = vmatprep.subr.bf16.mxu1 %v16214_v15 }
 0x4aa   :  { %3337 = vmatprep.mubr.bf16.mxu0 %v18407_v25  ;;  %3306 = vmatpush1.bf16.msra.mxu0 %v16161_v21  ;;  %v16217_v28 = vcombine.high %v2879_v5, %v2883_v8  ;;  %v16224_v29 = vcombine.low %v2879_v5, %v2883_v8  ;;  %v16247_v5 = vcombine.high %v2895_v24, %v2899_v39  ;;  %v2840_v8 = vld [vmem:[#allocation13 + $0x10] sm:$0xff] }
 0x4ab   :  { %3307 = vmatprep.subr.bf16.mxu0 %v16172_v41  ;;  %v16253_v34 = vcombine.high %v2840_v8, %v2844_v3  ;;  %v16255_v36 = vcombine.low %v2840_v8, %v2844_v3  ;;  %v16259_v24 = vcombine.high %v2841_v7, %v2845_v16 }
 0x4ac   :  { %3275 = vmatpush1.bf16.msra.mxu1 %v16220_v53 }
 0x4ad   :  { %3276 = vmatprep.subr.bf16.mxu1 %v16229_v52  ;;  %18447 = vst [vmem:[#allocation50_spill] sm:$0xff] %v16259_v24 }
 0x4ae   :  { %3308 = vmatpush1.bf16.msra.mxu0 %v16176_v47 }
 0x4af   :  { %3309 = vmatprep.subr.bf16.mxu0 %v16181_v63 }
 0x4b0   :  { %3277 = vmatpush1.bf16.msra.mxu1 %v16231_v14 }
 0x4b1   :  { %3278 = vmatprep.subr.bf16.mxu1 %v16241_v27 }
 0x4b2   :  { %3310 = vmatpush1.bf16.msra.mxu0 %v16188_v20 }
 0x4b3   :  { %3311 = vmatprep.subr.bf16.mxu0 %v16193_v4 }
 0x4b4   :  { %3279 = vmatpush1.bf16.msra.mxu1 %v16243_v60 }
 0x4b5   :  { %3346 = vmatprep.subr.bf16.mxu1 %v16253_v34 }
 0x4b6   :  { %3312 = vmatpush1.bf16.msra.mxu0 %v16200_v45 }
 0x4b7   :  { %3313 = vmatprep.subr.bf16.mxu0 %v16205_v56 }
 0x4ba   :  { %3314 = vmatpush1.bf16.msra.mxu0 %v16212_v35 }
 0x4bb   :  { %3315 = vmatprep.subr.bf16.mxu0 %v16217_v28 }
 0x4be   :  { %3316 = vmatpush1.bf16.msra.mxu0 %v16224_v29 }
 0x4bf   :  { %3317 = vmatprep.subr.bf16.mxu0 %v16235_v32 }
 0x4c2   :  { %3318 = vmatpush1.bf16.msra.mxu0 %v16233_v17 }
 0x4c3   :  { %3319 = vmatprep.subr.bf16.mxu0 %v16247_v5 }
 0x4c6   :  { %3320 = vmatpush1.bf16.msra.mxu0 %v16245_v61 }
 0x4c7   :  { %3387 = vmatprep.subr.bf16.mxu0 %v16259_v24 }
 0x53c   :  { %v2482_v39 = vpop.f32.mrb[16].mxu0  ;;  %v2523_v38 = vpop.f32.mrb[20].mxu1 }
 0x53d   :  { %v2483_v57 = vadd.f32 %v2482_v39, %v16056_v59  ;;  %v2524_v54 = vadd.f32 %v2523_v38, %v16059_v2  ;;  %v2484_v22 = vpop.f32.mrb[17].mxu0  ;;  %v2525_v42 = vpop.f32.mrb[21].mxu1  ;;  %v2869_v59 = vld [vmem:[#allocation13 + $0xf8] sm:$0xff] }
 0x53e   :  { %v2485_v23 = vadd.f32 %v2484_v22, %v16062_v6  ;;  %v2526_v8 = vadd.f32 %v2525_v42, %v16065_v10  ;;  %v2486_v3 = vpop.f32.mrb[18].mxu0  ;;  %v2527_v37 = vpop.f32.mrb[22].mxu1 }
 0x53f   :  { %v2487_v7 = vpop.f32.mrb[19].mxu0  ;;  %v2528_v16 = vpop.f32.mrb[23].mxu1 }
 0x540   :  { %v2620_v62 = vcombine.low %v2483_v57, %v2485_v23  ;;  %v2621_v26 = vcombine.low %v2524_v54, %v2526_v8  ;;  %v16287_v16 = vld [vmem:[#allocation11] ss:$0 sm:$0xff] }
 0x542   :  { %v16268_v58 = vrot.slane %v2620_v62, %v16070_v44  ;;  %v16271_v24 = vrot.slane %v2621_v26, %v16070_v44 }
 0x544   :  { %18448 = vst [vmem:[#allocation51_spill] sm:$0xff] %v16268_v58  ;;  %18449 = vst [vmem:[#allocation56_spill] sm:$0xff] %v16271_v24  ;;  %v2873_v24 = vld [vmem:[#allocation13 + $0x118] sm:$0xff] }
 0x545   :  { %v2877_v58 = vld [vmem:[#allocation13 + $0x138] sm:$0xff] }
 0x55c   :  { %v2564_v2 = vpop.f32.mrb[20].mxu0  ;;  %v2605_v38 = vpop.f32.mrb[24].mxu1 }
 0x55d   :  { %v2565_v6 = vadd.f32 %v2564_v2, %v16091_v46  ;;  %v2606_v10 = vadd.f32 %v2605_v38, %v16094_v31  ;;  %v2566_v37 = vpop.f32.mrb[21].mxu0  ;;  %v2607_v22 = vpop.f32.mrb[25].mxu1  ;;  %v2861_v46 = vld [vmem:[#allocation13 + $0xb8] sm:$0xff] }
 0x55e   :  { %v2567_v23 = vadd.f32 %v2566_v37, %v16097_v1  ;;  %v2608_v42 = vadd.f32 %v2607_v22, %v16100_v13  ;;  %v2568_v62 = vpop.f32.mrb[22].mxu0  ;;  %v2609_v54 = vpop.f32.mrb[26].mxu1  ;;  %v2849_v22 = vld [vmem:[#allocation13 + $0x58] sm:$0xff] }
 0x55f   :  { %v2569_v57 = vpop.f32.mrb[23].mxu0  ;;  %v2610_v26 = vpop.f32.mrb[27].mxu1 }
 0x560   :  { %v2637_v39 = vcombine.low %v2565_v6, %v2567_v23  ;;  %v2638_v8 = vcombine.low %v2606_v10, %v2608_v42  ;;  %v2848_v6 = vld [vmem:[#allocation13 + $0x50] sm:$0xff]  ;;  %v2853_v23 = vld [vmem:[#allocation13 + $0x78] sm:$0xff] }
 0x561   :  { %v2852_v10 = vld [vmem:[#allocation13 + $0x70] sm:$0xff]  ;;  %v16294_v57 = vcombine.high %v2849_v22, %v2853_v23 }
 0x562   :  { %v16280_v3 = vrot.slane %v2637_v39, %v16070_v44  ;;  %v16283_v7 = vrot.slane %v2638_v8, %v16070_v44  ;;  %v16292_v54 = vcombine.high %v2848_v6, %v2852_v10  ;;  %v2856_v26 = vld [vmem:[#allocation13 + $0x90] sm:$0xff]  ;;  %v2857_v8 = vld [vmem:[#allocation13 + $0x98] sm:$0xff] }
 0x563   :  { %v2860_v39 = vld [vmem:[#allocation13 + $0xb0] sm:$0xff] }
 0x564   :  { %18450 = vst [vmem:[#allocation57_spill] sm:$0xff] %v16280_v3  ;;  %18451 = vst [vmem:[#allocation58_spill] sm:$0xff] %v16283_v7  ;;  %v2872_v7 = vld [vmem:[#allocation13 + $0x110] sm:$0xff] }
 0x565   :  { %v2876_v3 = vld [vmem:[#allocation13 + $0x130] sm:$0xff] }
 0x57c   :  { %v13610_v31 = vpop.f32.mrb[24].mxu0 }
 0x57d   :  { %v13611_v1 = vpop.f32.mrb[25].mxu0 }
 0x57e   :  { %v13612_v13 = vadd.f32 %v13611_v1, %v13610_v31  ;;  %v13613_v2 = vpop.f32.mrb[26].mxu0  ;;  %v16300_v31 = vcombine.low %v2848_v6, %v2852_v10  ;;  %v16302_v1 = vcombine.low %v2849_v22, %v2853_v23  ;;  %v16314_v6 = vcombine.low %v2856_v26, %v2860_v39 }
 0x57f   :  { %v13614_v38 = vpop.f32.mrb[27].mxu0  ;;  %v16308_v2 = vcombine.high %v2857_v8, %v2861_v46  ;;  %v16316_v10 = vcombine.low %v2857_v8, %v2861_v46  ;;  %v16334_v8 = vcombine.high %v2873_v24, %v2877_v58 }
 0x580   :  { %v2831_v37 = vadd.f32 %v13612_v13, %v16287_v16  ;;  %18452 = vst [vmem:[#allocation59_spill] sm:$0xff] %v16300_v31  ;;  %18453 = vst [vmem:[#allocation60_spill] sm:$0xff] %v16302_v1  ;;  %v16306_v13 = vcombine.high %v2856_v26, %v2860_v39  ;;  %v2864_v38 = vld [vmem:[#allocation13 + $0xd0] sm:$0xff]  ;;  %v16332_v39 = vcombine.high %v2872_v7, %v2876_v3 }
 0x581   :  { %18455 = vst [vmem:[#allocation62_spill] sm:$0xff] %v16308_v2  ;;  %18456 = vst [vmem:[#allocation63_spill] sm:$0xff] %v16314_v6 }
 0x582   :  { %v2836_v42 = vmax.f32 %v2831_v37, 0.0  ;;  %18454 = vst [vmem:[#allocation61_spill] sm:$0xff] %v16306_v13  ;;  %v2868_v37 = vld [vmem:[#allocation13 + $0xf0] sm:$0xff]  ;;  %18457 = vst [vmem:[#allocation64_spill] sm:$0xff] %v16316_v10 }
 0x583   :  { %v16320_v22 = vcombine.high %v2864_v38, %v2868_v37  ;;  %v16326_v26 = vcombine.low %v2864_v38, %v2868_v37  ;;  %18462 = vst [vmem:[#allocation69_spill] sm:$0xff] %v16332_v39  ;;  %18463 = vst [vmem:[#allocation70_spill] sm:$0xff] %v16334_v8  ;;  %v16338_v38 = vcombine.low %v2872_v7, %v2876_v3 }
 0x584   :  { %v16290_v62 = vpack.c.bf16 %v2836_v42, %v2836_v42  ;;  %v2865_v42 = vld [vmem:[#allocation13 + $0xd8] sm:$0xff] }
 0x585   :  { %18458 = vst [vmem:[#allocation65_spill] sm:$0xff] %v16320_v22  ;;  %v16322_v23 = vcombine.high %v2865_v42, %v2869_v59  ;;  %18460 = vst [vmem:[#allocation67_spill] sm:$0xff] %v16326_v26  ;;  %v16328_v46 = vcombine.low %v2865_v42, %v2869_v59  ;;  %v16340_v59 = vcombine.low %v2873_v24, %v2877_v58 }
 0x586   :  { %3297 = vmatmul.mubr.bf16.vlgmr.msra.gmra.mrb[28].mxu1 %v16290_v62  ;;  %3338 = vmatmul.mubr.bf16.vlgmr.msra.gmra.mrb[28].mxu0 %v16290_v62  ;;  %18464 = vst [vmem:[#allocation71_spill] sm:$0xff] %v16338_v38 }
 0x587   :  { %3347 = vmatpush1.bf16.msra.mxu1 %v16255_v36  ;;  %3388 = vmatpush1.bf16.msra.mxu0 %v16257_v19  ;;  %18459 = vst [vmem:[#allocation66_spill] sm:$0xff] %v16322_v23  ;;  %18461 = vst [vmem:[#allocation68_spill] sm:$0xff] %v16328_v46 }
 0x588   :  { %3348 = vmatprep.subr.bf16.mxu1 %v16292_v54  ;;  %3389 = vmatprep.subr.bf16.mxu0 %v16294_v57 }
 0x589   :  { %3378 = vmatprep.mubr.bf16.mxu1 %v18407_v25  ;;  %3419 = vmatprep.mubr.bf16.mxu0 %v18407_v25 }
 0x58b   :  { %3349 = vmatpush1.bf16.msra.mxu1 %v16300_v31  ;;  %3390 = vmatpush1.bf16.msra.mxu0 %v16302_v1  ;;  %v2881_v1 = vld [vmem:[#allocation13 + $0x158] sm:$0xff] }
 0x58c   :  { %3350 = vmatprep.subr.bf16.mxu1 %v16306_v13  ;;  %3391 = vmatprep.subr.bf16.mxu0 %v16308_v2  ;;  %v2880_v2 = vld [vmem:[#allocation13 + $0x150] sm:$0xff]  ;;  %v2885_v31 = vld [vmem:[#allocation13 + $0x178] sm:$0xff] }
 0x58d   :  { %v2884_v13 = vld [vmem:[#allocation13 + $0x170] sm:$0xff]  ;;  %v16346_v42 = vcombine.high %v2881_v1, %v2885_v31  ;;  %v16352_v58 = vcombine.low %v2881_v1, %v2885_v31 }
 0x58e   :  { %v16344_v37 = vcombine.high %v2880_v2, %v2884_v13  ;;  %v16350_v3 = vcombine.low %v2880_v2, %v2884_v13 }
 0x58f   :  { %3351 = vmatpush1.bf16.msra.mxu1 %v16314_v6  ;;  %3392 = vmatpush1.bf16.msra.mxu0 %v16316_v10  ;;  %18466 = vst [vmem:[#allocation73_spill] sm:$0xff] %v16346_v42  ;;  %v2889_v10 = vld [vmem:[#allocation13 + $0x198] sm:$0xff] }
 0x590   :  { %3352 = vmatprep.subr.bf16.mxu1 %v16320_v22  ;;  %3393 = vmatprep.subr.bf16.mxu0 %v16322_v23  ;;  %18465 = vst [vmem:[#allocation53_spill] sm:$0xff] %v16344_v37  ;;  %v2888_v23 = vld [vmem:[#allocation13 + $0x190] sm:$0xff]  ;;  %v2893_v6 = vld [vmem:[#allocation13 + $0x1b8] sm:$0xff]  ;;  %18467 = vst [vmem:[#allocation52_spill] sm:$0xff] %v16350_v3 }
 0x591   :  { %v2892_v22 = vld [vmem:[#allocation13 + $0x1b0] sm:$0xff]  ;;  %v16358_v7 = vcombine.high %v2889_v10, %v2893_v6  ;;  %v16366_v1 = vcombine.low %v2889_v10, %v2893_v6  ;;  %v14097_v6 = vld [vmem:[#allocation10 + $0x40] sm:$0xff]  }
 0x592   :  { %v16356_v24 = vcombine.high %v2888_v23, %v2892_v22  ;;  %v16364_v31 = vcombine.low %v2888_v23, %v2892_v22  ;;  %v14098_v23 = vld [vmem:[#allocation10] sm:$0xff]  }
 0x593   :  { %3353 = vmatpush1.bf16.msra.mxu1 %v16326_v26  ;;  %3394 = vmatpush1.bf16.msra.mxu0 %v16328_v46  ;;  %v2900_v46 = vld [vmem:[#allocation13 + $0x1f0] sm:$0xff]  ;;  %v2901_v26 = vld [vmem:[#allocation13 + $0x1f8] sm:$0xff] }
 0x594   :  { %3354 = vmatprep.subr.bf16.mxu1 %v16332_v39  ;;  %3395 = vmatprep.subr.bf16.mxu0 %v16334_v8  ;;  %v2896_v8 = vld [vmem:[#allocation13 + $0x1d0] sm:$0xff]  ;;  %v600_v39 = vrot.slane %v16133_v33, %v16088_v18 }
 0x595   :  { %v16370_v13 = vcombine.high %v2896_v8, %v2900_v46 }
 0x597   :  { %3355 = vmatpush1.bf16.msra.mxu1 %v16338_v38  ;;  %3396 = vmatpush1.bf16.msra.mxu0 %v16340_v59  ;;  %v2897_v38 = vld [vmem:[#allocation13 + $0x1d8] sm:$0xff] }
 0x598   :  { %3356 = vmatprep.subr.bf16.mxu1 %v16344_v37  ;;  %3397 = vmatprep.subr.bf16.mxu0 %v16346_v42  ;;  %v16372_v2 = vcombine.high %v2897_v38, %v2901_v26  ;;  %v18468_v42 = vld [vmem:[#allocation49_spill] sm:$0xff]  ;;  %v16379_v22 = vcombine.low %v2897_v38, %v2901_v26  ;;  %v14100_v26 = vld [vmem:[#allocation10 + $0x8] sm:$0xff]   ;;  %v14105_v38 = vld [vmem:[#allocation10 + $0x60] sm:$0xff]  }
 0x599   :  { %v945_v37 = vadd.f32 %v18468_v42, %v600_v39  ;;  %v14099_v39 = vld [vmem:[#allocation10 + $0x48] sm:$0xff]  }
 0x59b   :  { %3357 = vmatpush1.bf16.msra.mxu1 %v16350_v3  ;;  %3398 = vmatpush1.bf16.msra.mxu0 %v16352_v58  ;;  %v16377_v3 = vcombine.low %v2896_v8, %v2900_v46  ;;  %v1025_v10 = vmax.f32 %v945_v37, 0.0  ;;  %v14101_v46 = vld [vmem:[#allocation10 + $0x50] sm:$0xff]  }
 0x59c   :  { %3358 = vmatprep.subr.bf16.mxu1 %v16356_v24  ;;  %3399 = vmatprep.subr.bf16.mxu0 %v16358_v7  ;;  %v14102_v8 = vld [vmem:[#allocation10 + $0x10] sm:$0xff]  }
 0x59d   :  { %v3476_v42 = vpack.c.bf16 %v1025_v10, %v1025_v10  ;;  %v14109_v37 = vld [vmem:[#allocation10 + $0x70] sm:$0xff]   ;;  %v14111_v10 = vld [vmem:[#allocation10 + $0x78] sm:$0xff]  }
 0x59f   :  { %3359 = vmatpush1.bf16.msra.mxu1 %v16364_v31  ;;  %3400 = vmatpush1.bf16.msra.mxu0 %v16366_v1 }
 0x5a0   :  { %3360 = vmatprep.subr.bf16.mxu1 %v16370_v13  ;;  %3401 = vmatprep.subr.bf16.mxu0 %v16372_v2 }
 0x5a3   :  { %3361 = vmatpush1.bf16.msra.mxu1 %v16377_v3  ;;  %3402 = vmatpush1.bf16.msra.mxu0 %v16379_v22 }
 0x5a4   :  { %13616 = vmatprep.subr.bf16.mxu1 %v14097_v6  ;;  %4080 = vmatprep.subr.bf16.mxu0 %v16157_v11  ;;  %v14103_v11 = vld [vmem:[#allocation10 + $0x58] sm:$0xff]  }
 0x5a6   :  { %3379 = vmatmul.mubr.bf16.vlgmr.msra.gmra.mrb[32].mxu1 %v16290_v62  ;;  %3420 = vmatmul.mubr.bf16.vlgmr.msra.gmra.mrb[32].mxu0 %v16290_v62  ;;  %v14104_v62 = vld [vmem:[#allocation10 + $0x18] sm:$0xff]  }
 0x5a7   :  { %13617 = vmatpush3.bf16.msra.mxu1 %v14098_v23  ;;  %3644 = vmatprep.mubr.bf16.mxu1 %v3476_v42  ;;  %v16733_v42 = vld [vmem:[#allocation17 + $0x44] ss:$16 sps:$4 sm:$0xff]  }
 0x5a8   :  { %13618 = vmatprep.subr.bf16.mxu1 %v14099_v39  ;;  %4081 = vmatpush1.bf16.msra.mxu0 %v16159_v50  ;;  %v14106_v50 = vld [vmem:[#allocation10 + $0x20] sm:$0xff]  }
 0x5a9   :  { %4082 = vmatprep.subr.bf16.mxu0 %v16166_v30  ;;  %4112 = vmatprep.mubr.bf16.mxu0 %v18407_v25  ;;  %v14107_v30 = vld [vmem:[#allocation10 + $0x68] sm:$0xff]  }
 0x5ab   :  { %13619 = vmatpush3.bf16.msra.mxu1 %v14100_v26  ;;  %v18477_v26 = vld [vmem:[#allocation76_spill] sm:$0xff] }
 0x5ac   :  { %13620 = vmatprep.subr.bf16.mxu1 %v14101_v46  ;;  %4083 = vmatpush1.bf16.msra.mxu0 %v16170_v40  ;;  %v14108_v40 = vld [vmem:[#allocation10 + $0x28] sm:$0xff]  }
 0x5ad   :  { %4084 = vmatprep.subr.bf16.mxu0 %v16178_v55  ;;  %v596_v55 = vrot.slane %v16133_v33, %v16085_v0 }
 0x5af   :  { %13621 = vmatpush3.bf16.msra.mxu1 %v14102_v8 }
 0x5b0   :  { %13622 = vmatprep.subr.bf16.mxu1 %v14103_v11  ;;  %4085 = vmatpush1.bf16.msra.mxu0 %v16184_v48  ;;  %v14110_v48 = vld [vmem:[#allocation10 + $0x30] sm:$0xff]  }
 0x5b1   :  { %4086 = vmatprep.subr.bf16.mxu0 %v16190_v49  ;;  %v18469_v49 = vld [vmem:[#allocation48_spill] sm:$0xff]  ;;  %v18478_v11 = vld [vmem:[#allocation77_spill] sm:$0xff] }
 0x5b2   :  { %v943_v6 = vadd.f32 %v18469_v49, %v596_v55 }
 0x5b3   :  { %13623 = vmatpush3.bf16.msra.mxu1 %v14104_v62 }
 0x5b4   :  { %13624 = vmatprep.subr.bf16.mxu1 %v14105_v38  ;;  %4087 = vmatpush1.bf16.msra.mxu0 %v16196_v43  ;;  %v14112_v43 = vld [vmem:[#allocation10 + $0x38] sm:$0xff]  }
 0x5b5   :  { %4088 = vmatprep.subr.bf16.mxu0 %v16202_v51  ;;  %v1024_v51 = vmax.f32 %v943_v6, 0.0 }
 0x5b7   :  { %13625 = vmatpush3.bf16.msra.mxu1 %v14106_v50  ;;  %v3475_v33 = vpack.c.bf16 %v1024_v51, %v1024_v51 }
 0x5b8   :  { %13626 = vmatprep.subr.bf16.mxu1 %v14107_v30  ;;  %4089 = vmatpush1.bf16.msra.mxu0 %v16208_v9 }
 0x5b9   :  { %4090 = vmatprep.subr.bf16.mxu0 %v16214_v15 }
 0x5bb   :  { %13627 = vmatpush3.bf16.msra.mxu1 %v14108_v40 }
 0x5bc   :  { %13628 = vmatprep.subr.bf16.mxu1 %v14109_v37  ;;  %4091 = vmatpush1.bf16.msra.mxu0 %v16220_v53 }
 0x5bd   :  { %4092 = vmatprep.subr.bf16.mxu0 %v16229_v52 }
 0x5bf   :  { %13629 = vmatpush3.bf16.msra.mxu1 %v14110_v48 }
 0x5c0   :  { %13630 = vmatprep.subr.bf16.mxu1 %v14111_v10  ;;  %4093 = vmatpush1.bf16.msra.mxu0 %v16231_v14 }
 0x5c1   :  { %4094 = vmatprep.subr.bf16.mxu0 %v16241_v27 }
 0x5c3   :  { %13631 = vmatpush3.bf16.msra.mxu1 %v14112_v43 }
 0x5c4   :  { %4121 = vmatprep.subr.bf16.mxu1 %v16163_v12  ;;  %4095 = vmatpush1.bf16.msra.mxu0 %v16243_v60  ;;  %v2902_v12 = vld [vmem:[#allocation14] sm:$0xff] }
 0x5c5   :  { %4162 = vmatprep.subr.bf16.mxu0 %v16253_v34  ;;  %v16451_v46 = vrot.slane %v2902_v12, %v18477_v26  ;;  %v16454_v8 = vrot.slane %v2902_v12, %v16085_v0  ;;  %v16457_v62 = vrot.slane %v2902_v12, %v18478_v11  ;;  %v16460_v38 = vrot.slane %v2902_v12, %v16088_v18 }
 0x5c6   :  { %3645 = vmatmul.mubr.bf16.vlgmr.msra.gmra.mrb[36].mxu1 %v3475_v33 }
 0x5c7   :  { %4122 = vmatpush1.bf16.msra.mxu1 %v16161_v21  ;;  %4153 = vmatprep.mubr.bf16.mxu1 %v18407_v25  ;;  %v18470_v21 = vld [vmem:[#allocation50_spill] sm:$0xff] }
 0x5c8   :  { %4123 = vmatprep.subr.bf16.mxu1 %v16172_v41  ;;  %v18471_v41 = vld [vmem:[#allocation46_spill] sm:$0xff] }
 0x5cb   :  { %4124 = vmatpush1.bf16.msra.mxu1 %v16176_v47  ;;  %v16427_v47 = vrot.slane %v2902_v12, %v18471_v41 }
 0x5cc   :  { %4125 = vmatprep.subr.bf16.mxu1 %v16181_v63  ;;  %v18472_v63 = vld [vmem:[#allocation74_spill] sm:$0xff] }
 0x5cf   :  { %4126 = vmatpush1.bf16.msra.mxu1 %v16188_v20  ;;  %v16430_v20 = vrot.slane %v2902_v12, %v18472_v63 }
 0x5d0   :  { %4127 = vmatprep.subr.bf16.mxu1 %v16193_v4  ;;  %v18473_v4 = vld [vmem:[#allocation47_spill] sm:$0xff] }
 0x5d3   :  { %4128 = vmatpush1.bf16.msra.mxu1 %v16200_v45  ;;  %v16433_v45 = vrot.slane %v2902_v12, %v18473_v4 }
 0x5d4   :  { %4129 = vmatprep.subr.bf16.mxu1 %v16205_v56  ;;  %v18474_v56 = vld [vmem:[#allocation72_spill] sm:$0xff] }
 0x5d5   :  { %v16436_v9 = vrot.slane %v2902_v12, %v18474_v56 }
 0x5d7   :  { %4130 = vmatpush1.bf16.msra.mxu1 %v16212_v35 }
 0x5d8   :  { %4131 = vmatprep.subr.bf16.mxu1 %v16217_v28 }
 0x5db   :  { %4132 = vmatpush1.bf16.msra.mxu1 %v16224_v29 }
 0x5dc   :  { %4133 = vmatprep.subr.bf16.mxu1 %v16235_v32 }
 0x5df   :  { %4134 = vmatpush1.bf16.msra.mxu1 %v16233_v17 }
 0x5e0   :  { %4135 = vmatprep.subr.bf16.mxu1 %v16247_v5 }
 0x5e3   :  { %4136 = vmatpush1.bf16.msra.mxu1 %v16245_v61 }
 0x5e4   :  { %4203 = vmatprep.subr.bf16.mxu1 %v18470_v21 }
 0x659   :  { %v3298_v35 = vpop.f32.mrb[28].mxu1  ;;  %v3339_v15 = vpop.f32.mrb[28].mxu0 }
 0x65a   :  { %v3299_v28 = vadd.f32 %v3298_v35, %v16427_v47  ;;  %v3340_v53 = vadd.f32 %v3339_v15, %v16430_v20  ;;  %v3300_v29 = vpop.f32.mrb[29].mxu1  ;;  %v3341_v52 = vpop.f32.mrb[29].mxu0 }
 0x65b   :  { %v3301_v14 = vadd.f32 %v3300_v29, %v16433_v45  ;;  %v3342_v17 = vadd.f32 %v3341_v52, %v16436_v9  ;;  %v3302_v32 = vpop.f32.mrb[30].mxu1  ;;  %v3343_v27 = vpop.f32.mrb[30].mxu0 }
 0x65c   :  { %v3303_v60 = vpop.f32.mrb[31].mxu1  ;;  %v3344_v61 = vpop.f32.mrb[31].mxu0 }
 0x65d   :  { %v3436_v5 = vcombine.low %v3299_v28, %v3301_v14  ;;  %v3437_v34 = vcombine.low %v3340_v53, %v3342_v17  ;;  %v18481_v61 = vld [vmem:[#allocation59_spill] sm:$0xff] }
 0x65e   :  { %v16729_v28 = vld [vmem:[#allocation17 + $0x28] ss:$16 sps:$4 sm:$0xff]  }
 0x65f   :  { %v16443_v23 = vrot.slane %v3436_v5, %v16070_v44  ;;  %v16446_v39 = vrot.slane %v3437_v34, %v16070_v44  ;;  %v18482_v5 = vld [vmem:[#allocation60_spill] sm:$0xff]  ;;  %v18484_v34 = vld [vmem:[#allocation62_spill] sm:$0xff] }
 0x661   :  { %18475 = vst [vmem:[#allocation49_spill] sm:$0xff] %v16443_v23  ;;  %18476 = vst [vmem:[#allocation48_spill] sm:$0xff] %v16446_v39  ;;  %v16767_v39 = vld [vmem:[#allocation17 + $0x88] ss:$16 sps:$4 sm:$0xff]   ;;  %v16771_v23 = vld [vmem:[#allocation17 + $0xa4] ss:$16 sps:$4 sm:$0xff]  }
 0x662   :  { %18520 = vst [vmem:[#allocation80_spill] sm:$0xff] %v16767_v39  ;;  %18521 = vst [vmem:[#allocation81_spill] sm:$0xff] %v16771_v23 }
 0x679   :  { %v3380_v50 = vpop.f32.mrb[32].mxu1  ;;  %v3421_v30 = vpop.f32.mrb[32].mxu0 }
 0x67a   :  { %v3381_v40 = vadd.f32 %v3380_v50, %v16451_v46  ;;  %v3422_v55 = vadd.f32 %v3421_v30, %v16454_v8  ;;  %v3382_v37 = vpop.f32.mrb[33].mxu1  ;;  %v3423_v48 = vpop.f32.mrb[33].mxu0  ;;  %v18485_v50 = vld [vmem:[#allocation63_spill] sm:$0xff]  ;;  %v18490_v30 = vld [vmem:[#allocation68_spill] sm:$0xff] }
 0x67b   :  { %v3383_v49 = vadd.f32 %v3382_v37, %v16457_v62  ;;  %v3424_v6 = vadd.f32 %v3423_v48, %v16460_v38  ;;  %v3384_v10 = vpop.f32.mrb[34].mxu1  ;;  %v3425_v43 = vpop.f32.mrb[34].mxu0  ;;  %v566_v37 = vld [vmem:[#allocation8 + $0x8] sm:$0x3]  ;;  %v18493_v48 = vld [vmem:[#allocation71_spill] sm:$0xff] }
 0x67c   :  { %v3385_v51 = vpop.f32.mrb[35].mxu1  ;;  %v3426_v33 = vpop.f32.mrb[35].mxu0  ;;  %v608_v10 = vrot.slane %v566_v37, %v18473_v4  ;;  %v18496_v43 = vld [vmem:[#allocation52_spill] sm:$0xff] }
 0x67d   :  { %v3453_v21 = vcombine.low %v3381_v40, %v3383_v49  ;;  %v3454_v35 = vcombine.low %v3422_v55, %v3424_v6  ;;  %v18491_v40 = vld [vmem:[#allocation69_spill] sm:$0xff]  ;;  %v18492_v55 = vld [vmem:[#allocation70_spill] sm:$0xff]  ;;  %v18497_v51 = vld [vmem:[#allocation55_spill] sm:$0xff] }
 0x67e   :  { %v18494_v49 = vld [vmem:[#allocation53_spill] sm:$0xff]  ;;  %v1016_v33 = vadd.f32 %v18497_v51, %v608_v10  ;;  %v4486_v10 = vld [vmem:[#allocation13 + $0x80] sm:$0xff] }
 0x67f   :  { %v16467_v12 = vrot.slane %v3453_v21, %v16070_v44  ;;  %v16470_v15 = vrot.slane %v3454_v35, %v16070_v44  ;;  %v18495_v6 = vld [vmem:[#allocation73_spill] sm:$0xff]  ;;  %v14122_v35 = vld [vmem:[#allocation10 + $0x20] sm:$0xff]  }
 0x680   :  { %v1027_v21 = vmax.f32 %v1016_v33, 0.0 }
 0x681   :  { %18479 = vst [vmem:[#allocation50_spill] sm:$0xff] %v16467_v12  ;;  %18480 = vst [vmem:[#allocation76_spill] sm:$0xff] %v16470_v15  ;;  %v16761_v15 = vld [vmem:[#allocation17 + $0x8c] ss:$16 sps:$4 sm:$0xff]   ;;  %v16765_v12 = vld [vmem:[#allocation17 + $0x80] ss:$16 sps:$4 sm:$0xff]  }
 0x699   :  { %v13632_v53 = vpop.f32.mrb[36].mxu1 }
 0x69a   :  { %v13633_v29 = vpop.f32.mrb[37].mxu1 }
 0x69b   :  { %v13634_v52 = vadd.f32 %v13633_v29, %v13632_v53  ;;  %v13635_v14 = vpop.f32.mrb[38].mxu1  ;;  %v14123_v53 = vld [vmem:[#allocation10 + $0x68] sm:$0xff]  }
 0x69c   :  { %v13636_v17 = vpop.f32.mrb[39].mxu1  ;;  %v14124_v29 = vld [vmem:[#allocation10 + $0x28] sm:$0xff]   ;;  %v14125_v14 = vld [vmem:[#allocation10 + $0x70] sm:$0xff]  }
 0x69d   :  { %v3647_v32 = vadd.f32 %v13634_v52, %v16287_v16  ;;  %v18483_v16 = vld [vmem:[#allocation61_spill] sm:$0xff]  ;;  %v604_v52 = vrot.slane %v566_v37, %v18471_v41  ;;  %v4482_v37 = vld [vmem:[#allocation13 + $0x60] sm:$0xff] }
 0x69e   :  { %v14126_v17 = vld [vmem:[#allocation10 + $0x30] sm:$0xff]  }
 0x69f   :  { %v3652_v27 = vmax.f32 %v3647_v32, 0.0  ;;  %v18498_v32 = vld [vmem:[#allocation54_spill] sm:$0xff] }
 0x6a0   :  { %18518 = vst [vmem:[#allocation54_spill] sm:$0xff] %v16761_v15 }
 0x6a1   :  { %v3653_v60 = vpack.c.bf16 %v3652_v27, %v3652_v27  ;;  %v1014_v27 = vadd.f32 %v18498_v32, %v604_v52  ;;  %v4506_v52 = vld [vmem:[#allocation13 + $0x120] sm:$0xff] }
 0x6a3   :  { %4113 = vmatmul.mubr.bf16.vlgmr.msra.gmra.mrb[36].mxu0 %v3653_v60  ;;  %4154 = vmatmul.mubr.bf16.vlgmr.msra.gmra.mrb[40].mxu1 %v3653_v60 }
 0x6a4   :  { %4163 = vmatpush1.bf16.msra.mxu0 %v16255_v36  ;;  %4204 = vmatpush1.bf16.msra.mxu1 %v16257_v19  ;;  %v18486_v36 = vld [vmem:[#allocation64_spill] sm:$0xff]  ;;  %v18487_v19 = vld [vmem:[#allocation65_spill] sm:$0xff] }
 0x6a5   :  { %4164 = vmatprep.subr.bf16.mxu0 %v16292_v54  ;;  %4205 = vmatprep.subr.bf16.mxu1 %v16294_v57  ;;  %v18488_v54 = vld [vmem:[#allocation66_spill] sm:$0xff]  ;;  %v18489_v57 = vld [vmem:[#allocation67_spill] sm:$0xff] }
 0x6a6   :  { %4194 = vmatprep.mubr.bf16.mxu0 %v18407_v25  ;;  %4235 = vmatprep.mubr.bf16.mxu1 %v18407_v25  ;;  %18508 = vst [vmem:[#allocation66_spill] sm:$0xff] %v16729_v28  ;;  %18509 = vst [vmem:[#allocation67_spill] sm:$0xff] %v16733_v42 }
 0x6a8   :  { %4165 = vmatpush1.bf16.msra.mxu0 %v18481_v61  ;;  %4206 = vmatpush1.bf16.msra.mxu1 %v18482_v5  ;;  %v14128_v61 = vld [vmem:[#allocation10 + $0x38] sm:$0xff]   ;;  %v1026_v5 = vmax.f32 %v1014_v27, 0.0 }
 0x6a9   :  { %4166 = vmatprep.subr.bf16.mxu0 %v18483_v16  ;;  %4207 = vmatprep.subr.bf16.mxu1 %v18484_v34  ;;  %v4470_v34 = vld [vmem:[#allocation13] sm:$0xff] }
 0x6aa   :  { %v4291_v16 = vpack.c.bf16 %v1026_v5, %v1026_v5  ;;  %v4510_v5 = vld [vmem:[#allocation13 + $0x140] sm:$0xff] }
 0x6ac   :  { %4167 = vmatpush1.bf16.msra.mxu0 %v18485_v50  ;;  %4208 = vmatpush1.bf16.msra.mxu1 %v18486_v36  ;;  %v4474_v50 = vld [vmem:[#allocation13 + $0x20] sm:$0xff]  ;;  %v4471_v36 = vld [vmem:[#allocation13 + $0x8] sm:$0xff] }
 0x6ad   :  { %4168 = vmatprep.subr.bf16.mxu0 %v18487_v19  ;;  %4209 = vmatprep.subr.bf16.mxu1 %v18488_v54  ;;  %v12789_v19 = vcombine.high %v4470_v34, %v4474_v50  ;;  %v4475_v54 = vld [vmem:[#allocation13 + $0x28] sm:$0xff] }
 0x6b0   :  { %4169 = vmatpush1.bf16.msra.mxu0 %v18489_v57  ;;  %4210 = vmatpush1.bf16.msra.mxu1 %v18490_v30  ;;  %v12788_v57 = vcombine.low %v4470_v34, %v4474_v50  ;;  %v12790_v30 = vcombine.low %v4471_v36, %v4475_v54  ;;  %v4511_v34 = vld [vmem:[#allocation13 + $0x148] sm:$0xff] }
 0x6b1   :  { %4170 = vmatprep.subr.bf16.mxu0 %v18491_v40  ;;  %4211 = vmatprep.subr.bf16.mxu1 %v18492_v55  ;;  %v12791_v40 = vcombine.high %v4471_v36, %v4475_v54  ;;  %v4478_v55 = vld [vmem:[#allocation13 + $0x40] sm:$0xff]  ;;  %v4515_v50 = vld [vmem:[#allocation13 + $0x168] sm:$0xff] }
 0x6b2   :  { %v12796_v51 = vcombine.low %v4478_v55, %v4482_v37 }
 0x6b4   :  { %4171 = vmatpush1.bf16.msra.mxu0 %v18493_v48  ;;  %4212 = vmatpush1.bf16.msra.mxu1 %v16340_v59  ;;  %v14113_v59 = vld [vmem:[#allocation10 + $0x40] sm:$0xff]   ;;  %v4479_v48 = vld [vmem:[#allocation13 + $0x48] sm:$0xff] }
 0x6b5   :  { %4172 = vmatprep.subr.bf16.mxu0 %v18494_v49  ;;  %4213 = vmatprep.subr.bf16.mxu1 %v18495_v6  ;;  %v12797_v49 = vcombine.high %v4478_v55, %v4482_v37  ;;  %v4483_v6 = vld [vmem:[#allocation13 + $0x68] sm:$0xff]  ;;  %v4518_v55 = vld [vmem:[#allocation13 + $0x180] sm:$0xff] }
 0x6b6   :  { %v12799_v33 = vcombine.high %v4479_v48, %v4483_v6  ;;  %v4522_v37 = vld [vmem:[#allocation13 + $0x1a0] sm:$0xff] }
 0x6b8   :  { %4173 = vmatpush1.bf16.msra.mxu0 %v18496_v43  ;;  %4214 = vmatpush1.bf16.msra.mxu1 %v16352_v58  ;;  %v14114_v58 = vld [vmem:[#allocation10] sm:$0xff]  }
 0x6b9   :  { %4174 = vmatprep.subr.bf16.mxu0 %v16356_v24  ;;  %4215 = vmatprep.subr.bf16.mxu1 %v16358_v7  ;;  %v14115_v24 = vld [vmem:[#allocation10 + $0x48] sm:$0xff]   ;;  %v4292_v7 = vpack.c.bf16 %v1027_v21, %v1027_v21 }
 0x6ba   :  { %v4490_v43 = vld [vmem:[#allocation13 + $0xa0] sm:$0xff]  ;;  %v4491_v21 = vld [vmem:[#allocation13 + $0xa8] sm:$0xff] }
 0x6bc   :  { %4175 = vmatpush1.bf16.msra.mxu0 %v16364_v31  ;;  %4216 = vmatpush1.bf16.msra.mxu1 %v16366_v1  ;;  %v14116_v31 = vld [vmem:[#allocation10 + $0x8] sm:$0xff]   ;;  %v14117_v1 = vld [vmem:[#allocation10 + $0x50] sm:$0xff]  }
 0x6bd   :  { %4176 = vmatprep.subr.bf16.mxu0 %v16370_v13  ;;  %4217 = vmatprep.subr.bf16.mxu1 %v16372_v2  ;;  %v14118_v13 = vld [vmem:[#allocation10 + $0x10] sm:$0xff]   ;;  %v14119_v2 = vld [vmem:[#allocation10 + $0x58] sm:$0xff]  }
 0x6c0   :  { %4177 = vmatpush1.bf16.msra.mxu0 %v16377_v3  ;;  %4218 = vmatpush1.bf16.msra.mxu1 %v16379_v22  ;;  %v14120_v3 = vld [vmem:[#allocation10 + $0x18] sm:$0xff]   ;;  %v14121_v22 = vld [vmem:[#allocation10 + $0x60] sm:$0xff]  }
 0x6c1   :  { %13638 = vmatprep.subr.bf16.mxu0 %v14113_v59  ;;  %4896 = vmatprep.subr.bf16.mxu1 %v12789_v19  ;;  %v4487_v59 = vld [vmem:[#allocation13 + $0x88] sm:$0xff] }
 0x6c3   :  { %4195 = vmatmul.mubr.bf16.vlgmr.msra.gmra.mrb[40].mxu0 %v3653_v60  ;;  %4236 = vmatmul.mubr.bf16.vlgmr.msra.gmra.mrb[44].mxu1 %v3653_v60  ;;  %v14127_v60 = vld [vmem:[#allocation10 + $0x78] sm:$0xff]  }
 0x6c4   :  { %13639 = vmatpush3.bf16.msra.mxu0 %v14114_v58  ;;  %4460 = vmatprep.mubr.bf16.mxu0 %v4292_v7  ;;  %v12798_v58 = vcombine.low %v4479_v48, %v4483_v6  ;;  %v12807_v7 = vcombine.high %v4487_v59, %v4491_v21  ;;  %v4519_v48 = vld [vmem:[#allocation13 + $0x188] sm:$0xff] }
 0x6c5   :  { %13640 = vmatprep.subr.bf16.mxu0 %v14115_v24  ;;  %4928 = vmatprep.mubr.bf16.mxu1 %v18407_v25  ;;  %v12805_v24 = vcombine.high %v4486_v10, %v4490_v43  ;;  %v4523_v6 = vld [vmem:[#allocation13 + $0x1a8] sm:$0xff] }
 0x6c6   :  { %4897 = vmatpush1.bf16.msra.mxu1 %v12788_v57  ;;  %v12831_v57 = vcombine.high %v4511_v34, %v4515_v50 }
 0x6c7   :  { %4898 = vmatprep.subr.bf16.mxu1 %v12797_v49  ;;  %v12837_v49 = vcombine.high %v4518_v55, %v4522_v37 }
 0x6c8   :  { %13641 = vmatpush3.bf16.msra.mxu0 %v14116_v31  ;;  %v4494_v31 = vld [vmem:[#allocation13 + $0xc0] sm:$0xff] }
 0x6c9   :  { %13642 = vmatprep.subr.bf16.mxu0 %v14117_v1  ;;  %v4498_v1 = vld [vmem:[#allocation13 + $0xe0] sm:$0xff] }
 0x6ca   :  { %4899 = vmatpush1.bf16.msra.mxu1 %v12796_v51  ;;  %v12812_v32 = vcombine.low %v4494_v31, %v4498_v1  ;;  %v12839_v51 = vcombine.high %v4519_v48, %v4523_v6 }
 0x6cb   :  { %4900 = vmatprep.subr.bf16.mxu1 %v12805_v24  ;;  %v4531_v24 = vld [vmem:[#allocation13 + $0x1e8] sm:$0xff] }
 0x6cc   :  { %13643 = vmatpush3.bf16.msra.mxu0 %v14118_v13  ;;  %v4495_v13 = vld [vmem:[#allocation13 + $0xc8] sm:$0xff] }
 0x6cd   :  { %13644 = vmatprep.subr.bf16.mxu0 %v14119_v2  ;;  %v4499_v2 = vld [vmem:[#allocation13 + $0xe8] sm:$0xff] }
 0x6ce   :  { %v12814_v27 = vcombine.low %v4495_v13, %v4499_v2 }
 0x6d0   :  { %13645 = vmatpush3.bf16.msra.mxu0 %v14120_v3  ;;  %v12804_v3 = vcombine.low %v4486_v10, %v4490_v43  ;;  %v12836_v10 = vcombine.low %v4518_v55, %v4522_v37  ;;  %v12838_v43 = vcombine.low %v4519_v48, %v4523_v6 }
 0x6d1   :  { %13646 = vmatprep.subr.bf16.mxu0 %v14121_v22  ;;  %v12806_v22 = vcombine.low %v4487_v59, %v4491_v21  ;;  %v4530_v59 = vld [vmem:[#allocation13 + $0x1e0] sm:$0xff]  ;;  %v4527_v21 = vld [vmem:[#allocation13 + $0x1c8] sm:$0xff] }
 0x6d2   :  { %4901 = vmatpush1.bf16.msra.mxu1 %v12804_v3  ;;  %v16517_v3 = vld [vmem:[#allocation13 + $0x18] sm:$0xff] }
 0x6d4   :  { %13647 = vmatpush3.bf16.msra.mxu0 %v14122_v35  ;;  %v12813_v35 = vcombine.high %v4494_v31, %v4498_v1  ;;  %v12846_v31 = vcombine.low %v4527_v21, %v4531_v24  ;;  %v12847_v1 = vcombine.high %v4527_v21, %v4531_v24 }
 0x6d5   :  { %13648 = vmatprep.subr.bf16.mxu0 %v14123_v53  ;;  %v12815_v53 = vcombine.high %v4495_v13, %v4499_v2  ;;  %v16513_v13 = vld [vmem:[#allocation13 + $0x10] sm:$0xff] }
 0x6d6   :  { %4902 = vmatprep.subr.bf16.mxu1 %v12813_v35  ;;  %v16515_v2 = vld [vmem:[#allocation13 + $0x30] sm:$0xff]  ;;  %v4477_v35 = vld [vmem:[#allocation13 + $0x38] sm:$0xff] }
 0x6d7   :  { %4903 = vmatpush1.bf16.msra.mxu1 %v12812_v32 }
 0x6d8   :  { %13649 = vmatpush3.bf16.msra.mxu0 %v14124_v29  ;;  %v4502_v29 = vld [vmem:[#allocation13 + $0x100] sm:$0xff] }
 0x6d9   :  { %13650 = vmatprep.subr.bf16.mxu0 %v14125_v14  ;;  %v4503_v14 = vld [vmem:[#allocation13 + $0x108] sm:$0xff]  ;;  %v12820_v36 = vcombine.low %v4502_v29, %v4506_v52 }
 0x6dc   :  { %13651 = vmatpush3.bf16.msra.mxu0 %v14126_v17  ;;  %v4507_v17 = vld [vmem:[#allocation13 + $0x128] sm:$0xff] }
 0x6dd   :  { %13652 = vmatprep.subr.bf16.mxu0 %v14127_v60  ;;  %v12821_v60 = vcombine.high %v4502_v29, %v4506_v52  ;;  %v12822_v19 = vcombine.low %v4503_v14, %v4507_v17  ;;  %v12794_v29 = vcombine.low %v16517_v3, %v4477_v35  ;;  %v12795_v52 = vcombine.high %v16517_v3, %v4477_v35  ;;  %v4484_v3 = vld [vmem:[#allocation13 + $0x70] sm:$0xff]  ;;  %v4485_v35 = vld [vmem:[#allocation13 + $0x78] sm:$0xff] }
 0x6df   :  { %4904 = vmatprep.subr.bf16.mxu1 %v12821_v60 }
 0x6e0   :  { %13653 = vmatpush3.bf16.msra.mxu0 %v14128_v61  ;;  %v12823_v61 = vcombine.high %v4503_v14, %v4507_v17  ;;  %4905 = vmatpush1.bf16.msra.mxu1 %v12820_v36 }
 0x6e1   :  { %4937 = vmatprep.subr.bf16.mxu0 %v12791_v40  ;;  %v12830_v40 = vcombine.low %v4511_v34, %v4515_v50 }
 0x6e3   :  { %4461 = vmatmul.mubr.bf16.vlgmr.msra.gmra.mrb[44].mxu0 %v4291_v16  ;;  %v4514_v16 = vld [vmem:[#allocation13 + $0x160] sm:$0xff] }
 0x6e4   :  { %4969 = vmatprep.mubr.bf16.mxu0 %v18407_v25  ;;  %4938 = vmatpush1.bf16.msra.mxu0 %v12790_v30  ;;  %v12829_v54 = vcombine.high %v4510_v5, %v4514_v16  ;;  %v12828_v30 = vcombine.low %v4510_v5, %v4514_v16 }
 0x6e5   :  { %4939 = vmatprep.subr.bf16.mxu0 %v12799_v33  ;;  %v4526_v33 = vld [vmem:[#allocation13 + $0x1c0] sm:$0xff] }
 0x6e6   :  { %4906 = vmatprep.subr.bf16.mxu1 %v12829_v54 }
 0x6e7   :  { %4907 = vmatpush1.bf16.msra.mxu1 %v12828_v30 }
 0x6e8   :  { %4940 = vmatpush1.bf16.msra.mxu0 %v12798_v58  ;;  %4908 = vmatprep.subr.bf16.mxu1 %v12837_v49  ;;  %v12845_v58 = vcombine.high %v4526_v33, %v4530_v59 }
 0x6e9   :  { %4941 = vmatprep.subr.bf16.mxu0 %v12807_v7  ;;  %v12844_v7 = vcombine.low %v4526_v33, %v4530_v59 }
 0x6eb   :  { %4909 = vmatpush1.bf16.msra.mxu1 %v12836_v10 }
 0x6ec   :  { %4942 = vmatpush1.bf16.msra.mxu0 %v12806_v22  ;;  %4910 = vmatprep.subr.bf16.mxu1 %v12845_v58  ;;  %v12793_v22 = vcombine.high %v16513_v13, %v16515_v2 }
 0x6ed   :  { %4943 = vmatprep.subr.bf16.mxu0 %v12815_v53  ;;  %v12792_v53 = vcombine.low %v16513_v13, %v16515_v2  ;;  %v4480_v2 = vld [vmem:[#allocation13 + $0x50] sm:$0xff] }
 0x6ef   :  { %4911 = vmatpush1.bf16.msra.mxu1 %v12844_v7  ;;  %v12771_v7 = vld [vmem:[#allocation11] ss:$0 sm:$0xff] }
 0x6f0   :  { %4944 = vmatpush1.bf16.msra.mxu0 %v12814_v27  ;;  %4978 = vmatprep.subr.bf16.mxu1 %v12793_v22  ;;  %v4481_v22 = vld [vmem:[#allocation13 + $0x58] sm:$0xff] }
 0x6f1   :  { %4945 = vmatprep.subr.bf16.mxu0 %v12823_v61 }
 0x6f4   :  { %4946 = vmatpush1.bf16.msra.mxu0 %v12822_v19 }
 0x6f5   :  { %4947 = vmatprep.subr.bf16.mxu0 %v12831_v57 }
 0x6f8   :  { %4948 = vmatpush1.bf16.msra.mxu0 %v12830_v40 }
 0x6f9   :  { %4949 = vmatprep.subr.bf16.mxu0 %v12839_v51 }
 0x6fc   :  { %4950 = vmatpush1.bf16.msra.mxu0 %v12838_v43 }
 0x6fd   :  { %4951 = vmatprep.subr.bf16.mxu0 %v12847_v1 }
 0x700   :  { %4952 = vmatpush1.bf16.msra.mxu0 %v12846_v31 }
 0x701   :  { %5019 = vmatprep.subr.bf16.mxu0 %v12795_v52 }
 0x776   :  { %v4114_v14 = vpop.f32.mrb[36].mxu0  ;;  %v4155_v17 = vpop.f32.mrb[40].mxu1 }
 0x777   :  { %v4115_v32 = vadd.f32 %v4114_v14, %v16427_v47  ;;  %v4156_v27 = vadd.f32 %v4155_v17, %v16430_v20  ;;  %v4116_v60 = vpop.f32.mrb[37].mxu0  ;;  %v4157_v61 = vpop.f32.mrb[41].mxu1  ;;  %v12801_v17 = vcombine.high %v4480_v2, %v4484_v3  ;;  %v16727_v47 = vld [vmem:[#allocation17 + $0x20] ss:$16 sps:$4 sm:$0xff]  }
 0x778   :  { %v4117_v5 = vadd.f32 %v4116_v60, %v16433_v45  ;;  %v4158_v16 = vadd.f32 %v4157_v61, %v16436_v9  ;;  %v4118_v34 = vpop.f32.mrb[38].mxu0  ;;  %v4159_v50 = vpop.f32.mrb[42].mxu1  ;;  %v4492_v60 = vld [vmem:[#allocation13 + $0xb0] sm:$0xff]  ;;  %v4489_v61 = vld [vmem:[#allocation13 + $0x98] sm:$0xff]  ;;  %18507 = vst [vmem:[#allocation65_spill] sm:$0xff] %v16727_v47 }
 0x779   :  { %v4119_v36 = vpop.f32.mrb[39].mxu0  ;;  %v4160_v19 = vpop.f32.mrb[43].mxu1  ;;  %v12802_v34 = vcombine.low %v4481_v22, %v4485_v35 }
 0x77a   :  { %v4252_v54 = vcombine.low %v4115_v32, %v4117_v5  ;;  %v4253_v57 = vcombine.low %v4156_v27, %v4158_v16  ;;  %v12803_v32 = vcombine.high %v4481_v22, %v4485_v35  ;;  %v4488_v27 = vld [vmem:[#allocation13 + $0x90] sm:$0xff]  ;;  %v4493_v5 = vld [vmem:[#allocation13 + $0xb8] sm:$0xff]  ;;  %v12800_v16 = vcombine.low %v4480_v2, %v4484_v3 }
 0x77b   :  { %v12809_v50 = vcombine.high %v4488_v27, %v4492_v60  ;;  %v12811_v36 = vcombine.high %v4489_v61, %v4493_v5  ;;  %v4496_v19 = vld [vmem:[#allocation13 + $0xd0] sm:$0xff]  ;;  %v4521_v35 = vld [vmem:[#allocation13 + $0x198] sm:$0xff] }
 0x77c   :  { %v16530_v30 = vrot.slane %v4252_v54, %v16070_v44  ;;  %v16533_v40 = vrot.slane %v4253_v57, %v16070_v44  ;;  %v18501_v54 = vld [vmem:[#allocation75_spill] sm:$0xff]  ;;  %v4520_v3 = vld [vmem:[#allocation13 + $0x190] sm:$0xff] }
 0x77d   :  { %v5108_v57 = vsub.f32 0.0, %v18501_v54  ;;  %v4524_v22 = vld [vmem:[#allocation13 + $0x1b0] sm:$0xff]  ;;  %18519 = vst [vmem:[#allocation75_spill] sm:$0xff] %v16765_v12 }
 0x77e   :  { %18499 = vst [vmem:[#allocation77_spill] sm:$0xff] %v16530_v30  ;;  %18500 = vst [vmem:[#allocation59_spill] sm:$0xff] %v16533_v40  ;;  %v16755_v40 = vld [vmem:[#allocation17 + $0x68] ss:$16 sps:$4 sm:$0xff]   ;;  %v16759_v30 = vld [vmem:[#allocation17 + $0x84] ss:$16 sps:$4 sm:$0xff]  }
 0x77f   :  { %18516 = vst [vmem:[#allocation52_spill] sm:$0xff] %v16755_v40  ;;  %18517 = vst [vmem:[#allocation55_spill] sm:$0xff] %v16759_v30 }
 0x796   :  { %v4196_v20 = vpop.f32.mrb[40].mxu0  ;;  %v4237_v55 = vpop.f32.mrb[44].mxu1 }
 0x797   :  { %v4197_v45 = vadd.f32 %v4196_v20, %v16451_v46  ;;  %v4238_v9 = vadd.f32 %v4237_v55, %v16454_v8  ;;  %v4198_v37 = vpop.f32.mrb[41].mxu0  ;;  %v4239_v48 = vpop.f32.mrb[45].mxu1  ;;  %v4500_v20 = vld [vmem:[#allocation13 + $0xf0] sm:$0xff]  ;;  %v4497_v55 = vld [vmem:[#allocation13 + $0xd8] sm:$0xff] }
 0x798   :  { %v4199_v49 = vadd.f32 %v4198_v37, %v16457_v62  ;;  %v4240_v6 = vadd.f32 %v4239_v48, %v16460_v38  ;;  %v4200_v10 = vpop.f32.mrb[42].mxu0  ;;  %v4241_v43 = vpop.f32.mrb[46].mxu1  ;;  %v4504_v48 = vld [vmem:[#allocation13 + $0x110] sm:$0xff] }
 0x799   :  { %v4201_v51 = vpop.f32.mrb[43].mxu0  ;;  %v4242_v33 = vpop.f32.mrb[47].mxu1  ;;  %v4505_v10 = vld [vmem:[#allocation13 + $0x118] sm:$0xff]  ;;  %v16735_v46 = vld [vmem:[#allocation17 + $0x4c] ss:$16 sps:$4 sm:$0xff]  }
 0x79a   :  { %v4269_v59 = vcombine.low %v4197_v45, %v4199_v49  ;;  %v4270_v21 = vcombine.low %v4238_v9, %v4240_v6  ;;  %v4501_v45 = vld [vmem:[#allocation13 + $0xf8] sm:$0xff]  ;;  %v12817_v9 = vcombine.high %v4496_v19, %v4500_v20  ;;  %v5109_v49 = vmul.f32 1.442695, %v5108_v57  ;;  %v4508_v6 = vld [vmem:[#allocation13 + $0x130] sm:$0xff]  ;;  %18510 = vst [vmem:[#allocation68_spill] sm:$0xff] %v16735_v46 }
 0x79b   :  { %v12819_v37 = vcombine.high %v4497_v55, %v4501_v45  ;;  %v4509_v43 = vld [vmem:[#allocation13 + $0x138] sm:$0xff]  ;;  %v12816_v51 = vcombine.low %v4496_v19, %v4500_v20  ;;  %v12818_v33 = vcombine.low %v4497_v55, %v4501_v45 }
 0x79c   :  { %v16542_v58 = vrot.slane %v4269_v59, %v16070_v44  ;;  %v16545_v24 = vrot.slane %v4270_v21, %v16070_v44  ;;  %v12825_v59 = vcombine.high %v4504_v48, %v4508_v6  ;;  %v12827_v21 = vcombine.high %v4505_v10, %v4509_v43 }
 0x79d   :  { %14777 = vpow2.f32 %v5109_v49  ;;  %v14132_v49 = vld [vmem:[#allocation19 + $0x8] ss:$16 sps:$4 sm:$0xff]  }
 0x7b6   :  { %v13654_v8 = vpop.f32.mrb[44].mxu0 }
 0x7b7   :  { %v13655_v62 = vpop.f32.mrb[45].mxu0 }
 0x7b8   :  { %v13656_v31 = vadd.f32 %v13655_v62, %v13654_v8  ;;  %v13657_v38 = vpop.f32.mrb[46].mxu0  ;;  %v4512_v8 = vld [vmem:[#allocation13 + $0x150] sm:$0xff]  ;;  %v4513_v62 = vld [vmem:[#allocation13 + $0x158] sm:$0xff] }
 0x7b9   :  { %v13658_v1 = vpop.f32.mrb[47].mxu0  ;;  %v12824_v38 = vcombine.low %v4504_v48, %v4508_v6  ;;  %v14129_v48 = vld [vmem:[#allocation19] ss:$16 sps:$4 sm:$0xff]   ;;  %v14137_v6 = vld [vmem:[#allocation19 + $0x24] ss:$16 sps:$4 sm:$0xff]  }
 0x7ba   :  { %v4463_v13 = vadd.f32 %v13656_v31, %v12771_v7  ;;  %v4516_v7 = vld [vmem:[#allocation13 + $0x170] sm:$0xff]  ;;  %v4517_v31 = vld [vmem:[#allocation13 + $0x178] sm:$0xff]  ;;  %v12826_v1 = vcombine.low %v4505_v10, %v4509_v43 }
 0x7bb   :  { %v12835_v2 = vcombine.high %v4513_v62, %v4517_v31  ;;  %v14140_v10 = vld [vmem:[#allocation19 + $0x2c] ss:$16 sps:$4 sm:$0xff]   ;;  %v14138_v43 = vld [vmem:[#allocation19 + $0x28] ss:$16 sps:$4 sm:$0xff]  }
 0x7bc   :  { %v4468_v52 = vmax.f32 %v4463_v13, 0.0  ;;  %v12833_v13 = vcombine.high %v4512_v8, %v4516_v7 }
 0x7be   :  { %v16549_v14 = vpack.c.bf16 %v4468_v52, %v4468_v52  ;;  %v4525_v52 = vld [vmem:[#allocation13 + $0x1b8] sm:$0xff] }
 0x7bf   :  { %v12842_v19 = vcombine.low %v4521_v35, %v4525_v52 }
 0x7c0   :  { %4929 = vmatmul.mubr.bf16.vlgmr.msra.gmra.mrb[48].mxu1 %v16549_v14  ;;  %4970 = vmatmul.mubr.bf16.vlgmr.msra.gmra.mrb[48].mxu0 %v16549_v14 }
 0x7c1   :  { %4979 = vmatpush1.bf16.msra.mxu1 %v12792_v53  ;;  %5020 = vmatpush1.bf16.msra.mxu0 %v12794_v29  ;;  %v12808_v53 = vcombine.low %v4488_v27, %v4492_v60  ;;  %v12810_v29 = vcombine.low %v4489_v61, %v4493_v5  ;;  %v12841_v27 = vcombine.high %v4520_v3, %v4524_v22  ;;  %v4528_v61 = vld [vmem:[#allocation13 + $0x1d0] sm:$0xff] }
 0x7c2   :  { %4980 = vmatprep.subr.bf16.mxu1 %v12801_v17  ;;  %5021 = vmatprep.subr.bf16.mxu0 %v12803_v32  ;;  %v12832_v17 = vcombine.low %v4512_v8, %v4516_v7  ;;  %v12834_v32 = vcombine.low %v4513_v62, %v4517_v31  ;;  %v12843_v60 = vcombine.high %v4521_v35, %v4525_v52  ;;  %v4532_v5 = vld [vmem:[#allocation13 + $0x1f0] sm:$0xff]  ;;  %v14161_v35 = vld [vmem:[#allocation19 + $0xa4] ss:$16 sps:$4 sm:$0xff]  }
 0x7c3   :  { %5010 = vmatprep.mubr.bf16.mxu1 %v18407_v25  ;;  %5051 = vmatprep.mubr.bf16.mxu0 %v18407_v25  ;;  %v12849_v57 = vcombine.high %v4528_v61, %v4532_v5  ;;  %v12848_v45 = vcombine.low %v4528_v61, %v4532_v5  ;;  %v14152_v7 = vld [vmem:[#allocation19 + $0x6c] ss:$16 sps:$4 sm:$0xff]   ;;  %v14165_v61 = vld [vmem:[#allocation19 + $0xc0] ss:$16 sps:$4 sm:$0xff]   ;;  %v14168_v5 = vld [vmem:[#allocation19 + $0xc8] ss:$16 sps:$4 sm:$0xff]  }
 0x7c4   :  { %v14164_v52 = vld [vmem:[#allocation19 + $0xac] ss:$16 sps:$4 sm:$0xff]  }
 0x7c5   :  { %4981 = vmatpush1.bf16.msra.mxu1 %v12800_v16  ;;  %5022 = vmatpush1.bf16.msra.mxu0 %v12802_v34  ;;  %v4529_v16 = vld [vmem:[#allocation13 + $0x1d8] sm:$0xff] }
 0x7c6   :  { %4982 = vmatprep.subr.bf16.mxu1 %v12809_v50  ;;  %5023 = vmatprep.subr.bf16.mxu0 %v12811_v36  ;;  %v4533_v34 = vld [vmem:[#allocation13 + $0x1f8] sm:$0xff]  ;;  %v14778_v50 = vpop.eup %14777  ;;  %v12840_v36 = vcombine.low %v4520_v3, %v4524_v22  ;;  %v14156_v22 = vld [vmem:[#allocation19 + $0x88] ss:$16 sps:$4 sm:$0xff]  }
 0x7c7   :  { %v12851_v20 = vcombine.high %v4529_v16, %v4533_v34  ;;  %v5111_v55 = vadd.f32 1.0, %v14778_v50  ;;  %v14153_v3 = vld [vmem:[#allocation19 + $0x80] ss:$16 sps:$4 sm:$0xff]  }
 0x7c9   :  { %4983 = vmatpush1.bf16.msra.mxu1 %v12808_v53  ;;  %5024 = vmatpush1.bf16.msra.mxu0 %v12810_v29  ;;  %v12850_v53 = vcombine.low %v4529_v16, %v4533_v34  ;;  %v5114_v29 = vrot.slane %v18501_v54, 6  ;;  %14779 = vrcp.f32 %v5111_v55  ;;  %v14135_v54 = vld [vmem:[#allocation19 + $0x20] ss:$16 sps:$4 sm:$0xff]   ;;  %v14173_v16 = vld [vmem:[#allocation19 + $0xe4] ss:$16 sps:$4 sm:$0xff]  }
 0x7ca   :  { %4984 = vmatprep.subr.bf16.mxu1 %v12817_v9  ;;  %5025 = vmatprep.subr.bf16.mxu0 %v12819_v37  ;;  %v14131_v9 = vld [vmem:[#allocation19 + $0x4] ss:$16 sps:$4 sm:$0xff]   ;;  %v14134_v37 = vld [vmem:[#allocation19 + $0xc] ss:$16 sps:$4 sm:$0xff]  }
 0x7cb   :  { %14781 = vtanh.f32 %v5114_v29  ;;  %v14176_v34 = vld [vmem:[#allocation19 + $0xec] ss:$16 sps:$4 sm:$0xff]   ;;  %v14177_v29 = vld [vmem:[#allocation19 + $0x100] ss:$16 sps:$4 sm:$0xff]  }
 0x7cd   :  { %4985 = vmatpush1.bf16.msra.mxu1 %v12816_v51  ;;  %5026 = vmatpush1.bf16.msra.mxu0 %v12818_v33  ;;  %v14143_v51 = vld [vmem:[#allocation19 + $0x44] ss:$16 sps:$4 sm:$0xff]   ;;  %v14146_v33 = vld [vmem:[#allocation19 + $0x4c] ss:$16 sps:$4 sm:$0xff]  }
 0x7ce   :  { %4986 = vmatprep.subr.bf16.mxu1 %v12825_v59  ;;  %5027 = vmatprep.subr.bf16.mxu0 %v12827_v21  ;;  %v14141_v59 = vld [vmem:[#allocation19 + $0x40] ss:$16 sps:$4 sm:$0xff]   ;;  %v14144_v21 = vld [vmem:[#allocation19 + $0x48] ss:$16 sps:$4 sm:$0xff]  }
 0x7d1   :  { %4987 = vmatpush1.bf16.msra.mxu1 %v12824_v38  ;;  %5028 = vmatpush1.bf16.msra.mxu0 %v12826_v1  ;;  %v14147_v38 = vld [vmem:[#allocation19 + $0x60] ss:$16 sps:$4 sm:$0xff]   ;;  %v14150_v1 = vld [vmem:[#allocation19 + $0x68] ss:$16 sps:$4 sm:$0xff]  }
 0x7d2   :  { %4988 = vmatprep.subr.bf16.mxu1 %v12833_v13  ;;  %5029 = vmatprep.subr.bf16.mxu0 %v12835_v2  ;;  %v14155_v13 = vld [vmem:[#allocation19 + $0x84] ss:$16 sps:$4 sm:$0xff]   ;;  %v14158_v2 = vld [vmem:[#allocation19 + $0x8c] ss:$16 sps:$4 sm:$0xff]  }
 0x7d3   :  { %v14780_v8 = vpop.eup %14779 }
 0x7d5   :  { %4989 = vmatpush1.bf16.msra.mxu1 %v12832_v17  ;;  %5030 = vmatpush1.bf16.msra.mxu0 %v12834_v32  ;;  %v14782_v62 = vpop.eup %14781  ;;  %v14159_v17 = vld [vmem:[#allocation19 + $0xa0] ss:$16 sps:$4 sm:$0xff]   ;;  %v14162_v32 = vld [vmem:[#allocation19 + $0xa8] ss:$16 sps:$4 sm:$0xff]  }
 0x7d6   :  { %4990 = vmatprep.subr.bf16.mxu1 %v12841_v27  ;;  %5031 = vmatprep.subr.bf16.mxu0 %v12843_v60  ;;  %v16561_v31 = vmul.f32 %v14782_v62, %v14780_v8  ;;  %v14167_v27 = vld [vmem:[#allocation19 + $0xc4] ss:$16 sps:$4 sm:$0xff]   ;;  %v14170_v60 = vld [vmem:[#allocation19 + $0xcc] ss:$16 sps:$4 sm:$0xff]   ;;  %v14201_v62 = vld [vmem:[#allocation19 + $0x180] ss:$16 sps:$4 sm:$0xff]  }
 0x7d8   :  { %14783 = vtanh.f32 %v16561_v31 }
 0x7d9   :  { %4991 = vmatpush1.bf16.msra.mxu1 %v12840_v36  ;;  %5032 = vmatpush1.bf16.msra.mxu0 %v12842_v19  ;;  %v5120_v36 = vrot.slane %v14780_v8, 4  ;;  %v14171_v19 = vld [vmem:[#allocation19 + $0xe0] ss:$16 sps:$4 sm:$0xff]   ;;  %v14198_v8 = vld [vmem:[#allocation19 + $0x168] ss:$16 sps:$4 sm:$0xff]  }
 0x7da   :  { %4992 = vmatprep.subr.bf16.mxu1 %v12849_v57  ;;  %5033 = vmatprep.subr.bf16.mxu0 %v12851_v20  ;;  %v14174_v57 = vld [vmem:[#allocation19 + $0xe8] ss:$16 sps:$4 sm:$0xff]  }
 0x7dd   :  { %4993 = vmatpush1.bf16.msra.mxu1 %v12848_v45  ;;  %5034 = vmatpush1.bf16.msra.mxu0 %v12850_v53  ;;  %v14179_v45 = vld [vmem:[#allocation19 + $0x104] ss:$16 sps:$4 sm:$0xff]   ;;  %v14182_v53 = vld [vmem:[#allocation19 + $0x10c] ss:$16 sps:$4 sm:$0xff]  }
 0x7de   :  { %5355 = vmatprep.subr.bf16.mxu1 %v14131_v9  ;;  %5396 = vmatprep.subr.bf16.mxu0 %v14134_v37  ;;  %v14180_v9 = vld [vmem:[#allocation19 + $0x108] ss:$16 sps:$4 sm:$0xff]   ;;  %v14185_v37 = vld [vmem:[#allocation19 + $0x124] ss:$16 sps:$4 sm:$0xff]  }
 0x7e0   :  { %5011 = vmatmul.mubr.bf16.vlgmr.msra.gmra.mrb[52].mxu1 %v16549_v14  ;;  %5052 = vmatmul.mubr.bf16.vlgmr.msra.gmra.mrb[52].mxu0 %v16549_v14  ;;  %v14149_v14 = vld [vmem:[#allocation19 + $0x64] ss:$16 sps:$4 sm:$0xff]  }
 0x7e1   :  { %5356 = vmatpush1.bf16.msra.mxu1 %v14129_v48  ;;  %5397 = vmatpush1.bf16.msra.mxu0 %v14132_v49  ;;  %v14188_v48 = vld [vmem:[#allocation19 + $0x12c] ss:$16 sps:$4 sm:$0xff]   ;;  %v14183_v49 = vld [vmem:[#allocation19 + $0x120] ss:$16 sps:$4 sm:$0xff]  }
 0x7e2   :  { %5357 = vmatprep.subr.bf16.mxu1 %v14137_v6  ;;  %5398 = vmatprep.subr.bf16.mxu0 %v14140_v10  ;;  %v14784_v50 = vpop.eup %14783  ;;  %v14186_v6 = vld [vmem:[#allocation19 + $0x128] ss:$16 sps:$4 sm:$0xff]   ;;  %v14191_v10 = vld [vmem:[#allocation19 + $0x144] ss:$16 sps:$4 sm:$0xff]  }
 0x7e3   :  { %5387 = vmatprep.mubr.bf16.mxu1 %v18407_v25  ;;  %5428 = vmatprep.mubr.bf16.mxu0 %v18407_v25  ;;  %v5122_v20 = vmul.f32 %v14784_v50, %v5120_v36 }
 0x7e5   :  { %5358 = vmatpush1.bf16.msra.mxu1 %v14135_v54  ;;  %5399 = vmatpush1.bf16.msra.mxu0 %v14138_v43  ;;  %v16564_v55 = vpack.c.bf16 %v5122_v20, %v5122_v20  ;;  %v14194_v54 = vld [vmem:[#allocation19 + $0x14c] ss:$16 sps:$4 sm:$0xff]   ;;  %v14189_v43 = vld [vmem:[#allocation19 + $0x140] ss:$16 sps:$4 sm:$0xff]  }
 0x7e6   :  { %5359 = vmatprep.subr.bf16.mxu1 %v14143_v51  ;;  %5400 = vmatprep.subr.bf16.mxu0 %v14146_v33  ;;  %v14192_v51 = vld [vmem:[#allocation19 + $0x148] ss:$16 sps:$4 sm:$0xff]   ;;  %v14197_v33 = vld [vmem:[#allocation19 + $0x164] ss:$16 sps:$4 sm:$0xff]  }
 0x7e9   :  { %5360 = vmatpush1.bf16.msra.mxu1 %v14141_v59  ;;  %5401 = vmatpush1.bf16.msra.mxu0 %v14144_v21  ;;  %v14200_v59 = vld [vmem:[#allocation19 + $0x16c] ss:$16 sps:$4 sm:$0xff]   ;;  %v14195_v21 = vld [vmem:[#allocation19 + $0x160] ss:$16 sps:$4 sm:$0xff]  }
 0x7ea   :  { %5361 = vmatprep.subr.bf16.mxu1 %v14149_v14  ;;  %5402 = vmatprep.subr.bf16.mxu0 %v14152_v7  ;;  %v14203_v14 = vld [vmem:[#allocation19 + $0x184] ss:$16 sps:$4 sm:$0xff]   ;;  %v14206_v7 = vld [vmem:[#allocation19 + $0x18c] ss:$16 sps:$4 sm:$0xff]  }
 0x7ed   :  { %5362 = vmatpush1.bf16.msra.mxu1 %v14147_v38  ;;  %5403 = vmatpush1.bf16.msra.mxu0 %v14150_v1  ;;  %v14204_v38 = vld [vmem:[#allocation19 + $0x188] ss:$16 sps:$4 sm:$0xff]   ;;  %v14207_v1 = vld [vmem:[#allocation19 + $0x1a0] ss:$16 sps:$4 sm:$0xff]  }
 0x7ee   :  { %5363 = vmatprep.subr.bf16.mxu1 %v14155_v13  ;;  %5404 = vmatprep.subr.bf16.mxu0 %v14158_v2  ;;  %v14209_v13 = vld [vmem:[#allocation19 + $0x1a4] ss:$16 sps:$4 sm:$0xff]   ;;  %v14210_v2 = vld [vmem:[#allocation19 + $0x1a8] ss:$16 sps:$4 sm:$0xff]  }
 0x7f1   :  { %5364 = vmatpush1.bf16.msra.mxu1 %v14153_v3  ;;  %5405 = vmatpush1.bf16.msra.mxu0 %v14156_v22  ;;  %v14212_v3 = vld [vmem:[#allocation19 + $0x1ac] ss:$16 sps:$4 sm:$0xff]   ;;  %v14215_v22 = vld [vmem:[#allocation19 + $0x1c4] ss:$16 sps:$4 sm:$0xff]  }
 0x7f2   :  { %5365 = vmatprep.subr.bf16.mxu1 %v14161_v35  ;;  %5406 = vmatprep.subr.bf16.mxu0 %v14164_v52  ;;  %v14218_v35 = vld [vmem:[#allocation19 + $0x1cc] ss:$16 sps:$4 sm:$0xff]   ;;  %v14213_v52 = vld [vmem:[#allocation19 + $0x1c0] ss:$16 sps:$4 sm:$0xff]  }
 0x7f5   :  { %5366 = vmatpush1.bf16.msra.mxu1 %v14159_v17  ;;  %5407 = vmatpush1.bf16.msra.mxu0 %v14162_v32  ;;  %v14216_v17 = vld [vmem:[#allocation19 + $0x1c8] ss:$16 sps:$4 sm:$0xff]   ;;  %v14221_v32 = vld [vmem:[#allocation19 + $0x1e4] ss:$16 sps:$4 sm:$0xff]  }
 0x7f6   :  { %5367 = vmatprep.subr.bf16.mxu1 %v14167_v27  ;;  %5408 = vmatprep.subr.bf16.mxu0 %v14170_v60  ;;  %v14224_v27 = vld [vmem:[#allocation19 + $0x1ec] ss:$16 sps:$4 sm:$0xff]   ;;  %v14219_v60 = vld [vmem:[#allocation19 + $0x1e0] ss:$16 sps:$4 sm:$0xff]  }
 0x7f9   :  { %5368 = vmatpush1.bf16.msra.mxu1 %v14165_v61  ;;  %5409 = vmatpush1.bf16.msra.mxu0 %v14168_v5  ;;  %v14222_v61 = vld [vmem:[#allocation19 + $0x1e8] ss:$16 sps:$4 sm:$0xff]  }
 0x7fa   :  { %5369 = vmatprep.subr.bf16.mxu1 %v14173_v16  ;;  %5410 = vmatprep.subr.bf16.mxu0 %v14176_v34  ;;  %v14227_v5 = vld [vmem:[#allocation23 + $0x104] ss:$16 sps:$4 sm:$0xff]   ;;  %v14230_v16 = vld [vmem:[#allocation23 + $0x10c] ss:$16 sps:$4 sm:$0xff]  }
 0x7fb   :  { %v4534_v34 = vld [vmem:[#allocation14] sm:$0xff] }
 0x7fc   :  { %v4539_v50 = vrot.slane %v4534_v34, %v18471_v41  ;;  %v4547_v36 = vrot.slane %v4534_v34, %v18472_v63 }
 0x7fd   :  { %5370 = vmatpush1.bf16.msra.mxu1 %v14171_v19  ;;  %5411 = vmatpush1.bf16.msra.mxu0 %v14174_v57  ;;  %v4543_v19 = vrot.slane %v4534_v34, %v18473_v4  ;;  %v4551_v57 = vrot.slane %v4534_v34, %v18474_v56 }
 0x7fe   :  { %5652 = vmatprep.subr.bf16.mxu1 %v14179_v45  ;;  %5693 = vmatprep.subr.bf16.mxu0 %v14182_v53 }
 0x800   :  { %5388 = vmatmul.mubr.bf16.vlgmr.msra.gmra.mrb[56].mxu1 %v16564_v55  ;;  %5429 = vmatmul.mubr.bf16.vlgmr.msra.gmra.mrb[56].mxu0 %v16564_v55 }
 0x801   :  { %5684 = vmatprep.mubr.bf16.mxu1 %v18407_v25  ;;  %5725 = vmatprep.mubr.bf16.mxu0 %v18407_v25 }
 0x802   :  { %5653 = vmatpush1.bf16.msra.mxu1 %v14177_v29  ;;  %5694 = vmatpush1.bf16.msra.mxu0 %v14180_v9 }
 0x803   :  { %5654 = vmatprep.subr.bf16.mxu1 %v14185_v37  ;;  %5695 = vmatprep.subr.bf16.mxu0 %v14188_v48 }
 0x806   :  { %5655 = vmatpush1.bf16.msra.mxu1 %v14183_v49  ;;  %5696 = vmatpush1.bf16.msra.mxu0 %v14186_v6 }
 0x807   :  { %5656 = vmatprep.subr.bf16.mxu1 %v14191_v10  ;;  %5697 = vmatprep.subr.bf16.mxu0 %v14194_v54 }
 0x80a   :  { %5657 = vmatpush1.bf16.msra.mxu1 %v14189_v43  ;;  %5698 = vmatpush1.bf16.msra.mxu0 %v14192_v51 }
 0x80b   :  { %5658 = vmatprep.subr.bf16.mxu1 %v14197_v33  ;;  %5699 = vmatprep.subr.bf16.mxu0 %v14200_v59 }
 0x80e   :  { %5659 = vmatpush1.bf16.msra.mxu1 %v14195_v21  ;;  %5700 = vmatpush1.bf16.msra.mxu0 %v14198_v8  ;;  %v16721_v8 = vld [vmem:[#allocation17 + $0x2c] ss:$16 sps:$4 sm:$0xff]  }
 0x80f   :  { %5660 = vmatprep.subr.bf16.mxu1 %v14203_v14  ;;  %5701 = vmatprep.subr.bf16.mxu0 %v14206_v7  ;;  %v4555_v14 = vrot.slane %v4534_v34, %v18477_v26  ;;  %v4563_v7 = vrot.slane %v4534_v34, %v16085_v0  ;;  %18506 = vst [vmem:[#allocation64_spill] sm:$0xff] %v16721_v8 }
 0x812   :  { %5661 = vmatpush1.bf16.msra.mxu1 %v14201_v62  ;;  %5702 = vmatpush1.bf16.msra.mxu0 %v14204_v38  ;;  %v4559_v62 = vrot.slane %v4534_v34, %v18478_v11  ;;  %v4567_v38 = vrot.slane %v4534_v34, %v16088_v18 }
 0x813   :  { %5662 = vmatprep.subr.bf16.mxu1 %v14209_v13  ;;  %5703 = vmatprep.subr.bf16.mxu0 %v14212_v3 }
 0x816   :  { %5663 = vmatpush1.bf16.msra.mxu1 %v14207_v1  ;;  %5704 = vmatpush1.bf16.msra.mxu0 %v14210_v2 }
 0x817   :  { %5664 = vmatprep.subr.bf16.mxu1 %v14215_v22  ;;  %5705 = vmatprep.subr.bf16.mxu0 %v14218_v35 }
 0x81a   :  { %5665 = vmatpush1.bf16.msra.mxu1 %v14213_v52  ;;  %5706 = vmatpush1.bf16.msra.mxu0 %v14216_v17 }
 0x81b   :  { %5666 = vmatprep.subr.bf16.mxu1 %v14221_v32  ;;  %5707 = vmatprep.subr.bf16.mxu0 %v14224_v27 }
 0x81e   :  { %5667 = vmatpush1.bf16.msra.mxu1 %v14219_v60  ;;  %5708 = vmatpush1.bf16.msra.mxu0 %v14222_v61 }
 0x81f   :  { %5967 = vmatprep.subr.bf16.mxu1 %v14227_v5  ;;  %6007 = vmatprep.subr.bf16.mxu0 %v14230_v16 }
 0x893   :  { %v4930_v20 = vpop.f32.mrb[48].mxu1  ;;  %v4971_v45 = vpop.f32.mrb[48].mxu0 }
 0x894   :  { %v4931_v53 = vadd.f32 %v4930_v20, %v4539_v50  ;;  %v4972_v29 = vadd.f32 %v4971_v45, %v4547_v36  ;;  %v4932_v9 = vpop.f32.mrb[49].mxu1  ;;  %v4973_v37 = vpop.f32.mrb[49].mxu0 }
 0x895   :  { %v4933_v48 = vadd.f32 %v4932_v9, %v4543_v19  ;;  %v4974_v49 = vadd.f32 %v4973_v37, %v4551_v57  ;;  %v4934_v6 = vpop.f32.mrb[50].mxu1  ;;  %v4975_v10 = vpop.f32.mrb[50].mxu0  ;;  %v5173_v57 = vld [vmem:[#allocation22] sm:$0xf] }
 0x896   :  { %v4935_v54 = vpop.f32.mrb[51].mxu1  ;;  %v4976_v43 = vpop.f32.mrb[51].mxu0  ;;  %v5178_v20 = vrot.slane %v5173_v57, %v18471_v41  ;;  %v5186_v45 = vrot.slane %v5173_v57, %v18472_v63  ;;  %v16779_v63 = vld [vmem:[#allocation17 + $0xa8] ss:$16 sps:$4 sm:$0xff]   ;;  %v16783_v41 = vld [vmem:[#allocation17 + $0xc4] ss:$16 sps:$4 sm:$0xff]  }
 0x897   :  { %v5068_v51 = vcombine.low %v4931_v53, %v4933_v48  ;;  %v5069_v33 = vcombine.low %v4972_v29, %v4974_v49  ;;  %v5182_v53 = vrot.slane %v5173_v57, %v18473_v4  ;;  %v5190_v29 = vrot.slane %v5173_v57, %v18474_v56  ;;  %v14243_v57 = vld [vmem:[#allocation23 + $0x160] ss:$16 sps:$4 sm:$0xff]   ;;  %v16773_v56 = vld [vmem:[#allocation17 + $0xac] ss:$16 sps:$4 sm:$0xff]   ;;  %v16777_v4 = vld [vmem:[#allocation17 + $0xa0] ss:$16 sps:$4 sm:$0xff]  }
 0x898   :  { %18522 = vst [vmem:[#allocation82_spill] sm:$0xff] %v16773_v56  ;;  %18523 = vst [vmem:[#allocation83_spill] sm:$0xff] %v16777_v4 }
 0x899   :  { %v16575_v59 = vrot.slane %v5068_v51, %v16070_v44  ;;  %v16578_v21 = vrot.slane %v5069_v33, %v16070_v44  ;;  %18524 = vst [vmem:[#allocation84_spill] sm:$0xff] %v16779_v63  ;;  %18525 = vst [vmem:[#allocation85_spill] sm:$0xff] %v16783_v41 }
 0x89b   :  { %18502 = vst [vmem:[#allocation60_spill] sm:$0xff] %v16575_v59  ;;  %18503 = vst [vmem:[#allocation61_spill] sm:$0xff] %v16578_v21  ;;  %v16749_v21 = vld [vmem:[#allocation17 + $0x6c] ss:$16 sps:$4 sm:$0xff]   ;;  %v16753_v59 = vld [vmem:[#allocation17 + $0x60] ss:$16 sps:$4 sm:$0xff]  }
 0x89c   :  { %18514 = vst [vmem:[#allocation53_spill] sm:$0xff] %v16749_v21  ;;  %18515 = vst [vmem:[#allocation73_spill] sm:$0xff] %v16753_v59 }
 0x8b3   :  { %v5012_v1 = vpop.f32.mrb[52].mxu1  ;;  %v5053_v13 = vpop.f32.mrb[52].mxu0 }
 0x8b4   :  { %v5013_v2 = vadd.f32 %v5012_v1, %v4555_v14  ;;  %v5054_v3 = vadd.f32 %v5053_v13, %v4563_v7  ;;  %v5014_v22 = vpop.f32.mrb[53].mxu1  ;;  %v5055_v35 = vpop.f32.mrb[53].mxu0 }
 0x8b5   :  { %v5015_v52 = vadd.f32 %v5014_v22, %v4559_v62  ;;  %v5056_v17 = vadd.f32 %v5055_v35, %v4567_v38  ;;  %v5016_v32 = vpop.f32.mrb[54].mxu1  ;;  %v5057_v27 = vpop.f32.mrb[54].mxu0  ;;  %v16719_v35 = vld [vmem:[#allocation17 + $0x24] ss:$16 sps:$4 sm:$0xff]  }
 0x8b6   :  { %v5017_v60 = vpop.f32.mrb[55].mxu1  ;;  %v5058_v61 = vpop.f32.mrb[55].mxu0  ;;  %v14225_v27 = vld [vmem:[#allocation23 + $0x100] ss:$16 sps:$4 sm:$0xff]  }
 0x8b7   :  { %v5085_v5 = vcombine.low %v5013_v2, %v5015_v52  ;;  %v5086_v26 = vcombine.low %v5054_v3, %v5056_v17  ;;  %v14228_v60 = vld [vmem:[#allocation23 + $0x108] ss:$16 sps:$4 sm:$0xff]  }
 0x8b9   :  { %v5093_v0 = vrot.slane %v5085_v5, %v16070_v44  ;;  %v5100_v11 = vrot.slane %v5086_v26, %v16070_v44  ;;  %v14233_v5 = vld [vmem:[#allocation23 + $0x124] ss:$16 sps:$4 sm:$0xff]   ;;  %v14236_v26 = vld [vmem:[#allocation23 + $0x12c] ss:$16 sps:$4 sm:$0xff]  }
 0x8bb   :  { %v5101_v16 = vcombine.low %v5093_v0, %v5100_v11  ;;  %v14231_v0 = vld [vmem:[#allocation23 + $0x120] ss:$16 sps:$4 sm:$0xff]   ;;  %v14234_v11 = vld [vmem:[#allocation23 + $0x128] ss:$16 sps:$4 sm:$0xff]  }
 0x8bd   :  { %v5124_v18 = vsub.f32 0.0, %v5101_v16  ;;  %v5130_v50 = vrot.slane %v5101_v16, 6  ;;  %v14239_v16 = vld [vmem:[#allocation23 + $0x144] ss:$16 sps:$4 sm:$0xff]  }
 0x8bf   :  { %v5125_v34 = vmul.f32 1.442695, %v5124_v18  ;;  %v14242_v18 = vld [vmem:[#allocation23 + $0x14c] ss:$16 sps:$4 sm:$0xff]  }
 0x8c1   :  { %14785 = vpow2.f32 %v5125_v34  ;;  %v14237_v34 = vld [vmem:[#allocation23 + $0x140] ss:$16 sps:$4 sm:$0xff]  }
 0x8c2   :  { %14787 = vtanh.f32 %v5130_v50  ;;  %v14240_v50 = vld [vmem:[#allocation23 + $0x148] ss:$16 sps:$4 sm:$0xff]  }
 0x8cb   :  { %v14786_v36 = vpop.eup %14785 }
 0x8cc   :  { %v5127_v19 = vadd.f32 1.0, %v14786_v36  ;;  %v14788_v62 = vpop.eup %14787  ;;  %v14245_v36 = vld [vmem:[#allocation23 + $0x164] ss:$16 sps:$4 sm:$0xff]  }
 0x8ce   :  { %14789 = vrcp.f32 %v5127_v19  ;;  %v14248_v19 = vld [vmem:[#allocation23 + $0x16c] ss:$16 sps:$4 sm:$0xff]  }
 0x8d3   :  { %v5389_v9 = vpop.f32.mrb[56].mxu1  ;;  %v5430_v37 = vpop.f32.mrb[56].mxu0 }
 0x8d4   :  { %v5390_v48 = vadd.f32 %v5389_v9, %v5178_v20  ;;  %v5431_v49 = vadd.f32 %v5430_v37, %v5186_v45  ;;  %v5391_v6 = vpop.f32.mrb[57].mxu1  ;;  %v5432_v10 = vpop.f32.mrb[57].mxu0  ;;  %v14246_v20 = vld [vmem:[#allocation23 + $0x168] ss:$16 sps:$4 sm:$0xff]   ;;  %v14251_v45 = vld [vmem:[#allocation23 + $0x184] ss:$16 sps:$4 sm:$0xff]  }
 0x8d5   :  { %v5392_v54 = vadd.f32 %v5391_v6, %v5182_v53  ;;  %v5433_v43 = vadd.f32 %v5432_v10, %v5190_v29  ;;  %v5393_v51 = vpop.f32.mrb[58].mxu1  ;;  %v5434_v33 = vpop.f32.mrb[58].mxu0  ;;  %v14254_v53 = vld [vmem:[#allocation23 + $0x18c] ss:$16 sps:$4 sm:$0xff]   ;;  %v14249_v29 = vld [vmem:[#allocation23 + $0x180] ss:$16 sps:$4 sm:$0xff]  }
 0x8d6   :  { %v5394_v14 = vpop.f32.mrb[59].mxu1  ;;  %v5435_v7 = vpop.f32.mrb[59].mxu0  ;;  %v14252_v9 = vld [vmem:[#allocation23 + $0x188] ss:$16 sps:$4 sm:$0xff]   ;;  %v14257_v37 = vld [vmem:[#allocation23 + $0x1a4] ss:$16 sps:$4 sm:$0xff]  }
 0x8d7   :  { %v5441_v38 = vcombine.low %v5390_v48, %v5392_v54  ;;  %v5442_v1 = vcombine.low %v5431_v49, %v5433_v43  ;;  %v14260_v48 = vld [vmem:[#allocation23 + $0x1ac] ss:$16 sps:$4 sm:$0xff]   ;;  %v14255_v49 = vld [vmem:[#allocation23 + $0x1a0] ss:$16 sps:$4 sm:$0xff]   ;;  %v14258_v6 = vld [vmem:[#allocation23 + $0x1a8] ss:$16 sps:$4 sm:$0xff]  }
 0x8d8   :  { %v14790_v13 = vpop.eup %14789  ;;  %v14263_v10 = vld [vmem:[#allocation23 + $0x1c4] ss:$16 sps:$4 sm:$0xff]   ;;  %v14266_v54 = vld [vmem:[#allocation23 + $0x1cc] ss:$16 sps:$4 sm:$0xff]   ;;  %v14261_v43 = vld [vmem:[#allocation23 + $0x1c0] ss:$16 sps:$4 sm:$0xff]  }
 0x8d9   :  { %v16592_v2 = vmul.f32 %v14790_v13, %v14788_v62  ;;  %v16595_v3 = vrot.slane %v5441_v38, %v16070_v44  ;;  %v16598_v22 = vrot.slane %v5442_v1, %v16070_v44  ;;  %v5136_v52 = vrot.slane %v14790_v13, 4  ;;  %v14264_v51 = vld [vmem:[#allocation23 + $0x1c8] ss:$16 sps:$4 sm:$0xff]   ;;  %v14269_v33 = vld [vmem:[#allocation23 + $0x1e4] ss:$16 sps:$4 sm:$0xff]  }
 0x8da   :  { %v14272_v14 = vld [vmem:[#allocation23 + $0x1ec] ss:$16 sps:$4 sm:$0xff]   ;;  %v14267_v7 = vld [vmem:[#allocation23 + $0x1e0] ss:$16 sps:$4 sm:$0xff]   ;;  %v14270_v62 = vld [vmem:[#allocation23 + $0x1e8] ss:$16 sps:$4 sm:$0xff]  }
 0x8db   :  { %18504 = vst [vmem:[#allocation62_spill] sm:$0xff] %v16595_v3  ;;  %18505 = vst [vmem:[#allocation63_spill] sm:$0xff] %v16598_v22  ;;  %14791 = vtanh.f32 %v16592_v2  ;;  %v16609_v38 = vld [vmem:[#allocation16 + $0x4] ss:$16 sps:$4 sm:$0xff]   ;;  %v16611_v1 = vld [vmem:[#allocation16 + $0xc] ss:$16 sps:$4 sm:$0xff]  }
 0x8dc   :  { %v16613_v13 = vld [vmem:[#allocation16] ss:$16 sps:$4 sm:$0xff]   ;;  %v16743_v22 = vld [vmem:[#allocation17 + $0x48] ss:$16 sps:$4 sm:$0xff]   ;;  %v16747_v3 = vld [vmem:[#allocation17 + $0x64] ss:$16 sps:$4 sm:$0xff]  }
 0x8dd   :  { %18512 = vst [vmem:[#allocation70_spill] sm:$0xff] %v16743_v22  ;;  %18513 = vst [vmem:[#allocation71_spill] sm:$0xff] %v16747_v3 }
 0x8e5   :  { %v14792_v17 = vpop.eup %14791 }
 0x8e6   :  { %v5138_v32 = vmul.f32 %v14792_v17, %v5136_v52  ;;  %v16615_v52 = vld [vmem:[#allocation16 + $0x8] ss:$16 sps:$4 sm:$0xff]   ;;  %v16619_v17 = vld [vmem:[#allocation16 + $0x24] ss:$16 sps:$4 sm:$0xff]  }
 0x8e8   :  { %v16603_v61 = vpack.c.bf16 %v5138_v32, %v5138_v32  ;;  %v16621_v32 = vld [vmem:[#allocation16 + $0x2c] ss:$16 sps:$4 sm:$0xff]  }
 0x8ea   :  { %5685 = vmatmul.mubr.bf16.vlgmr.msra.gmra.mrb[60].mxu1 %v16603_v61  ;;  %5726 = vmatmul.mubr.bf16.vlgmr.msra.gmra.mrb[60].mxu0 %v16603_v61 }
 0x8eb   :  { %5968 = vmatpush1.bf16.msra.mxu1 %v14225_v27  ;;  %6008 = vmatpush1.bf16.msra.mxu0 %v14228_v60  ;;  %v16627_v27 = vld [vmem:[#allocation16 + $0x20] ss:$16 sps:$4 sm:$0xff]   ;;  %v16629_v60 = vld [vmem:[#allocation16 + $0x28] ss:$16 sps:$4 sm:$0xff]  }
 0x8ec   :  { %5969 = vmatprep.subr.bf16.mxu1 %v14233_v5  ;;  %6009 = vmatprep.subr.bf16.mxu0 %v14236_v26  ;;  %v16633_v5 = vld [vmem:[#allocation16 + $0x44] ss:$16 sps:$4 sm:$0xff]   ;;  %v16635_v26 = vld [vmem:[#allocation16 + $0x4c] ss:$16 sps:$4 sm:$0xff]  }
 0x8ed   :  { %5999 = vmatprep.mubr.bf16.mxu1 %v18407_v25  ;;  %6039 = vmatprep.mubr.bf16.mxu0 %v18407_v25 }
 0x8ef   :  { %5970 = vmatpush1.bf16.msra.mxu1 %v14231_v0  ;;  %6010 = vmatpush1.bf16.msra.mxu0 %v14234_v11  ;;  %v16641_v0 = vld [vmem:[#allocation16 + $0x40] ss:$16 sps:$4 sm:$0xff]   ;;  %v16643_v11 = vld [vmem:[#allocation16 + $0x48] ss:$16 sps:$4 sm:$0xff]  }
 0x8f0   :  { %5971 = vmatprep.subr.bf16.mxu1 %v14239_v16  ;;  %6011 = vmatprep.subr.bf16.mxu0 %v14242_v18  ;;  %v16647_v16 = vld [vmem:[#allocation16 + $0x64] ss:$16 sps:$4 sm:$0xff]   ;;  %v16649_v18 = vld [vmem:[#allocation16 + $0x6c] ss:$16 sps:$4 sm:$0xff]  }
 0x8f3   :  { %5972 = vmatpush1.bf16.msra.mxu1 %v14237_v34  ;;  %6012 = vmatpush1.bf16.msra.mxu0 %v14240_v50  ;;  %v16653_v34 = vld [vmem:[#allocation16 + $0x60] ss:$16 sps:$4 sm:$0xff]   ;;  %v16655_v50 = vld [vmem:[#allocation16 + $0x68] ss:$16 sps:$4 sm:$0xff]  }
 0x8f4   :  { %5973 = vmatprep.subr.bf16.mxu1 %v14245_v36  ;;  %6013 = vmatprep.subr.bf16.mxu0 %v14248_v19  ;;  %v16659_v36 = vld [vmem:[#allocation16 + $0x84] ss:$16 sps:$4 sm:$0xff]   ;;  %v16661_v19 = vld [vmem:[#allocation16 + $0x8c] ss:$16 sps:$4 sm:$0xff]  }
 0x8f7   :  { %5974 = vmatpush1.bf16.msra.mxu1 %v14243_v57  ;;  %6014 = vmatpush1.bf16.msra.mxu0 %v14246_v20  ;;  %v16665_v57 = vld [vmem:[#allocation16 + $0x80] ss:$16 sps:$4 sm:$0xff]   ;;  %v16667_v20 = vld [vmem:[#allocation16 + $0x88] ss:$16 sps:$4 sm:$0xff]  }
 0x8f8   :  { %5975 = vmatprep.subr.bf16.mxu1 %v14251_v45  ;;  %6015 = vmatprep.subr.bf16.mxu0 %v14254_v53  ;;  %v16671_v45 = vld [vmem:[#allocation16 + $0xa4] ss:$16 sps:$4 sm:$0xff]   ;;  %v16673_v53 = vld [vmem:[#allocation16 + $0xac] ss:$16 sps:$4 sm:$0xff]  }
 0x8fb   :  { %5976 = vmatpush1.bf16.msra.mxu1 %v14249_v29  ;;  %6016 = vmatpush1.bf16.msra.mxu0 %v14252_v9  ;;  %v16677_v29 = vld [vmem:[#allocation16 + $0xa0] ss:$16 sps:$4 sm:$0xff]   ;;  %v16679_v9 = vld [vmem:[#allocation16 + $0xa8] ss:$16 sps:$4 sm:$0xff]  }
 0x8fc   :  { %5977 = vmatprep.subr.bf16.mxu1 %v14257_v37  ;;  %6017 = vmatprep.subr.bf16.mxu0 %v14260_v48  ;;  %v16683_v37 = vld [vmem:[#allocation16 + $0xc4] ss:$16 sps:$4 sm:$0xff]   ;;  %v16685_v48 = vld [vmem:[#allocation16 + $0xcc] ss:$16 sps:$4 sm:$0xff]  }
 0x8ff   :  { %5978 = vmatpush1.bf16.msra.mxu1 %v14255_v49  ;;  %6018 = vmatpush1.bf16.msra.mxu0 %v14258_v6  ;;  %v16689_v49 = vld [vmem:[#allocation16 + $0xc0] ss:$16 sps:$4 sm:$0xff]   ;;  %v16691_v6 = vld [vmem:[#allocation16 + $0xc8] ss:$16 sps:$4 sm:$0xff]  }
 0x900   :  { %5979 = vmatprep.subr.bf16.mxu1 %v14263_v10  ;;  %6019 = vmatprep.subr.bf16.mxu0 %v14266_v54  ;;  %v16695_v10 = vld [vmem:[#allocation16 + $0xe4] ss:$16 sps:$4 sm:$0xff]   ;;  %v16697_v54 = vld [vmem:[#allocation16 + $0xec] ss:$16 sps:$4 sm:$0xff]  }
 0x903   :  { %5980 = vmatpush1.bf16.msra.mxu1 %v14261_v43  ;;  %6020 = vmatpush1.bf16.msra.mxu0 %v14264_v51  ;;  %v16701_v43 = vld [vmem:[#allocation16 + $0xe0] ss:$16 sps:$4 sm:$0xff]   ;;  %v16703_v51 = vld [vmem:[#allocation16 + $0xe8] ss:$16 sps:$4 sm:$0xff]  }
 0x904   :  { %5981 = vmatprep.subr.bf16.mxu1 %v14269_v33  ;;  %6021 = vmatprep.subr.bf16.mxu0 %v14272_v14  ;;  %v16707_v33 = vld [vmem:[#allocation17 + $0x4] ss:$16 sps:$4 sm:$0xff]   ;;  %v16709_v14 = vld [vmem:[#allocation17 + $0xc] ss:$16 sps:$4 sm:$0xff]  }
 0x907   :  { %5982 = vmatpush1.bf16.msra.mxu1 %v14267_v7  ;;  %6022 = vmatpush1.bf16.msra.mxu0 %v14270_v62  ;;  %v16713_v7 = vld [vmem:[#allocation17] ss:$16 sps:$4 sm:$0xff]   ;;  %v16715_v62 = vld [vmem:[#allocation17 + $0x8] ss:$16 sps:$4 sm:$0xff]  }
 0x908   :  { %6241 = vmatprep.subr.bf16.mxu1 %v16609_v38  ;;  %6282 = vmatprep.subr.bf16.mxu0 %v16611_v1 }
 0x90a   :  { %6000 = vmatmul.mubr.bf16.vlgmr.msra.gmra.mrb[64].mxu1 %v16603_v61  ;;  %6040 = vmatmul.mubr.bf16.vlgmr.msra.gmra.mrb[64].mxu0 %v16603_v61 }
 0x90b   :  { %6242 = vmatpush1.bf16.msra.mxu1 %v16613_v13  ;;  %6283 = vmatpush1.bf16.msra.mxu0 %v16615_v52 }
 0x90c   :  { %6243 = vmatprep.subr.bf16.mxu1 %v16619_v17  ;;  %6284 = vmatprep.subr.bf16.mxu0 %v16621_v32 }
 0x90d   :  { %6273 = vmatprep.mubr.bf16.mxu1 %v18407_v25  ;;  %6314 = vmatprep.mubr.bf16.mxu0 %v18407_v25 }
 0x90f   :  { %6244 = vmatpush1.bf16.msra.mxu1 %v16627_v27  ;;  %6285 = vmatpush1.bf16.msra.mxu0 %v16629_v60 }
 0x910   :  { %6245 = vmatprep.subr.bf16.mxu1 %v16633_v5  ;;  %6286 = vmatprep.subr.bf16.mxu0 %v16635_v26 }
 0x913   :  { %6246 = vmatpush1.bf16.msra.mxu1 %v16641_v0  ;;  %6287 = vmatpush1.bf16.msra.mxu0 %v16643_v11 }
 0x914   :  { %6247 = vmatprep.subr.bf16.mxu1 %v16647_v16  ;;  %6288 = vmatprep.subr.bf16.mxu0 %v16649_v18 }
 0x917   :  { %6248 = vmatpush1.bf16.msra.mxu1 %v16653_v34  ;;  %6289 = vmatpush1.bf16.msra.mxu0 %v16655_v50 }
 0x918   :  { %6249 = vmatprep.subr.bf16.mxu1 %v16659_v36  ;;  %6290 = vmatprep.subr.bf16.mxu0 %v16661_v19 }
 0x91b   :  { %6250 = vmatpush1.bf16.msra.mxu1 %v16665_v57  ;;  %6291 = vmatpush1.bf16.msra.mxu0 %v16667_v20 }
 0x91c   :  { %6251 = vmatprep.subr.bf16.mxu1 %v16671_v45  ;;  %6292 = vmatprep.subr.bf16.mxu0 %v16673_v53 }
 0x91f   :  { %6252 = vmatpush1.bf16.msra.mxu1 %v16677_v29  ;;  %6293 = vmatpush1.bf16.msra.mxu0 %v16679_v9 }
 0x920   :  { %6253 = vmatprep.subr.bf16.mxu1 %v16683_v37  ;;  %6294 = vmatprep.subr.bf16.mxu0 %v16685_v48 }
 0x923   :  { %6254 = vmatpush1.bf16.msra.mxu1 %v16689_v49  ;;  %6295 = vmatpush1.bf16.msra.mxu0 %v16691_v6 }
 0x924   :  { %6255 = vmatprep.subr.bf16.mxu1 %v16695_v10  ;;  %6296 = vmatprep.subr.bf16.mxu0 %v16697_v54 }
 0x927   :  { %6256 = vmatpush1.bf16.msra.mxu1 %v16701_v43  ;;  %6297 = vmatpush1.bf16.msra.mxu0 %v16703_v51 }
 0x928   :  { %6558 = vmatprep.subr.bf16.mxu1 %v16707_v33  ;;  %6599 = vmatprep.subr.bf16.mxu0 %v16709_v14 }
 0x92a   :  { %6274 = vmatmul.mubr.bf16.vlgmr.msra.gmra.mrb[68].mxu1 %v16564_v55  ;;  %6315 = vmatmul.mubr.bf16.vlgmr.msra.gmra.mrb[68].mxu0 %v16564_v55  ;;  %v16741_v55 = vld [vmem:[#allocation17 + $0x40] ss:$16 sps:$4 sm:$0xff]  }
 0x92b   :  { %6559 = vmatpush1.bf16.msra.mxu1 %v16713_v7  ;;  %6600 = vmatpush1.bf16.msra.mxu0 %v16715_v62  ;;  %18511 = vst [vmem:[#allocation69_spill] sm:$0xff] %v16741_v55 }
 0x92c   :  { %6560 = vmatprep.subr.bf16.mxu1 %v16719_v35  ;;  %6601 = vmatprep.subr.bf16.mxu0 %v16721_v8 }
 0x92d   :  { %6590 = vmatprep.mubr.bf16.mxu1 %v18407_v25  ;;  %6631 = vmatprep.mubr.bf16.mxu0 %v18407_v25 }
 0x92f   :  { %6561 = vmatpush1.bf16.msra.mxu1 %v16727_v47  ;;  %6602 = vmatpush1.bf16.msra.mxu0 %v16729_v28 }
 0x930   :  { %6562 = vmatprep.subr.bf16.mxu1 %v16733_v42  ;;  %6603 = vmatprep.subr.bf16.mxu0 %v16735_v46 }
 0x933   :  { %6563 = vmatpush1.bf16.msra.mxu1 %v16741_v55  ;;  %6604 = vmatpush1.bf16.msra.mxu0 %v16743_v22 }
 0x934   :  { %6564 = vmatprep.subr.bf16.mxu1 %v16747_v3  ;;  %6605 = vmatprep.subr.bf16.mxu0 %v16749_v21 }
 0x937   :  { %6565 = vmatpush1.bf16.msra.mxu1 %v16753_v59  ;;  %6606 = vmatpush1.bf16.msra.mxu0 %v16755_v40 }
 0x938   :  { %6566 = vmatprep.subr.bf16.mxu1 %v16759_v30  ;;  %6607 = vmatprep.subr.bf16.mxu0 %v16761_v15  ;;  %v16785_v30 = vld [vmem:[#allocation17 + $0xcc] ss:$16 sps:$4 sm:$0xff]   ;;  %v16789_v15 = vld [vmem:[#allocation17 + $0xc0] ss:$16 sps:$4 sm:$0xff]  }
 0x939   :  { %18526 = vst [vmem:[#allocation86_spill] sm:$0xff] %v16785_v30  ;;  %18527 = vst [vmem:[#allocation87_spill] sm:$0xff] %v16789_v15 }
 0x93b   :  { %6567 = vmatpush1.bf16.msra.mxu1 %v16765_v12  ;;  %6608 = vmatpush1.bf16.msra.mxu0 %v16767_v39  ;;  %v16791_v12 = vld [vmem:[#allocation17 + $0xc8] ss:$16 sps:$4 sm:$0xff]   ;;  %v16795_v39 = vld [vmem:[#allocation17 + $0xe4] ss:$16 sps:$4 sm:$0xff]  }
 0x93c   :  { %6568 = vmatprep.subr.bf16.mxu1 %v16771_v23  ;;  %6609 = vmatprep.subr.bf16.mxu0 %v16773_v56  ;;  %18528 = vst [vmem:[#allocation88_spill] sm:$0xff] %v16791_v12  ;;  %18529 = vst [vmem:[#allocation89_spill] sm:$0xff] %v16795_v39  ;;  %v16797_v23 = vld [vmem:[#allocation17 + $0xec] ss:$16 sps:$4 sm:$0xff]   ;;  %v16801_v56 = vld [vmem:[#allocation17 + $0xe0] ss:$16 sps:$4 sm:$0xff]  }
 0x93d   :  { %18530 = vst [vmem:[#allocation90_spill] sm:$0xff] %v16797_v23  ;;  %18531 = vst [vmem:[#allocation91_spill] sm:$0xff] %v16801_v56 }
 0x93f   :  { %6569 = vmatpush1.bf16.msra.mxu1 %v16777_v4  ;;  %6610 = vmatpush1.bf16.msra.mxu0 %v16779_v63  ;;  %v16803_v4 = vld [vmem:[#allocation17 + $0xe8] ss:$16 sps:$4 sm:$0xff]  }
 0x940   :  { %6570 = vmatprep.subr.bf16.mxu1 %v16783_v41  ;;  %6611 = vmatprep.subr.bf16.mxu0 %v16785_v30  ;;  %18532 = vst [vmem:[#allocation92_spill] sm:$0xff] %v16803_v4  ;;  %v16817_v30 = vld [vmem:[#allocation19] ss:$16 sps:$4 sm:$0xff]  }
 0x941   :  { %18535 = vst [vmem:[#allocation95_spill] sm:$0xff] %v16817_v30 }
 0x943   :  { %6571 = vmatpush1.bf16.msra.mxu1 %v16789_v15  ;;  %6612 = vmatpush1.bf16.msra.mxu0 %v16791_v12  ;;  %v16813_v12 = vld [vmem:[#allocation19 + $0x4] ss:$16 sps:$4 sm:$0xff]   ;;  %v16815_v15 = vld [vmem:[#allocation19 + $0xc] ss:$16 sps:$4 sm:$0xff]  }
 0x944   :  { %6572 = vmatprep.subr.bf16.mxu1 %v16795_v39  ;;  %6613 = vmatprep.subr.bf16.mxu0 %v16797_v23  ;;  %18533 = vst [vmem:[#allocation93_spill] sm:$0xff] %v16813_v12  ;;  %18534 = vst [vmem:[#allocation94_spill] sm:$0xff] %v16815_v15  ;;  %v16819_v39 = vld [vmem:[#allocation19 + $0x8] ss:$16 sps:$4 sm:$0xff]  }
 0x945   :  { %18536 = vst [vmem:[#allocation96_spill] sm:$0xff] %v16819_v39  ;;  %v16831_v23 = vld [vmem:[#allocation19 + $0x28] ss:$16 sps:$4 sm:$0xff]  }
 0x946   :  { %18540 = vst [vmem:[#allocation100_spill] sm:$0xff] %v16831_v23 }
 0x947   :  { %6573 = vmatpush1.bf16.msra.mxu1 %v16801_v56  ;;  %6614 = vmatpush1.bf16.msra.mxu0 %v16803_v4  ;;  %v16827_v4 = vld [vmem:[#allocation19 + $0x2c] ss:$16 sps:$4 sm:$0xff]   ;;  %v16829_v56 = vld [vmem:[#allocation19 + $0x20] ss:$16 sps:$4 sm:$0xff]  }
 0x948   :  { %6898 = vmatprep.subr.bf16.mxu1 %v16813_v12  ;;  %6939 = vmatprep.subr.bf16.mxu0 %v16815_v15  ;;  %18538 = vst [vmem:[#allocation98_spill] sm:$0xff] %v16827_v4  ;;  %18539 = vst [vmem:[#allocation99_spill] sm:$0xff] %v16829_v56  ;;  %v16837_v15 = vld [vmem:[#allocation19 + $0x44] ss:$16 sps:$4 sm:$0xff]   ;;  %v16843_v12 = vld [vmem:[#allocation19 + $0x48] ss:$16 sps:$4 sm:$0xff]  }
 0x949   :  { %18541 = vst [vmem:[#allocation101_spill] sm:$0xff] %v16837_v15  ;;  %18544 = vst [vmem:[#allocation104_spill] sm:$0xff] %v16843_v12 }
 0x94a   :  { %6591 = vmatmul.mubr.bf16.vlgmr.msra.gmra.mrb[72].mxu1 %v16603_v61  ;;  %6632 = vmatmul.mubr.bf16.vlgmr.msra.gmra.mrb[72].mxu0 %v16603_v61  ;;  %v16825_v61 = vld [vmem:[#allocation19 + $0x24] ss:$16 sps:$4 sm:$0xff]  }
 0x94b   :  { %6930 = vmatprep.mubr.bf16.mxu1 %v18407_v25  ;;  %6971 = vmatprep.mubr.bf16.mxu0 %v18407_v25  ;;  %18537 = vst [vmem:[#allocation97_spill] sm:$0xff] %v16825_v61 }
 0x94c   :  { %6899 = vmatpush1.bf16.msra.mxu1 %v16817_v30  ;;  %6940 = vmatpush1.bf16.msra.mxu0 %v16819_v39  ;;  %v16839_v30 = vld [vmem:[#allocation19 + $0x4c] ss:$16 sps:$4 sm:$0xff]   ;;  %v16841_v39 = vld [vmem:[#allocation19 + $0x40] ss:$16 sps:$4 sm:$0xff]  }
 0x94d   :  { %6900 = vmatprep.subr.bf16.mxu1 %v16825_v61  ;;  %6941 = vmatprep.subr.bf16.mxu0 %v16827_v4  ;;  %18542 = vst [vmem:[#allocation102_spill] sm:$0xff] %v16839_v30  ;;  %18543 = vst [vmem:[#allocation103_spill] sm:$0xff] %v16841_v39  ;;  %v16849_v4 = vld [vmem:[#allocation19 + $0x64] ss:$16 sps:$4 sm:$0xff]   ;;  %v16855_v61 = vld [vmem:[#allocation19 + $0x68] ss:$16 sps:$4 sm:$0xff]  }
 0x94e   :  { %18545 = vst [vmem:[#allocation105_spill] sm:$0xff] %v16849_v4  ;;  %18548 = vst [vmem:[#allocation108_spill] sm:$0xff] %v16855_v61 }
 0x950   :  { %6901 = vmatpush1.bf16.msra.mxu1 %v16829_v56  ;;  %6942 = vmatpush1.bf16.msra.mxu0 %v16831_v23  ;;  %v16851_v56 = vld [vmem:[#allocation19 + $0x6c] ss:$16 sps:$4 sm:$0xff]   ;;  %v16853_v23 = vld [vmem:[#allocation19 + $0x60] ss:$16 sps:$4 sm:$0xff]  }
 0x951   :  { %6902 = vmatprep.subr.bf16.mxu1 %v16837_v15  ;;  %6943 = vmatprep.subr.bf16.mxu0 %v16839_v30  ;;  %18546 = vst [vmem:[#allocation106_spill] sm:$0xff] %v16851_v56  ;;  %18547 = vst [vmem:[#allocation107_spill] sm:$0xff] %v16853_v23  ;;  %v16861_v30 = vld [vmem:[#allocation19 + $0x84] ss:$16 sps:$4 sm:$0xff]   ;;  %v16867_v15 = vld [vmem:[#allocation19 + $0x88] ss:$16 sps:$4 sm:$0xff]  }
 0x952   :  { %18549 = vst [vmem:[#allocation109_spill] sm:$0xff] %v16861_v30  ;;  %18552 = vst [vmem:[#allocation112_spill] sm:$0xff] %v16867_v15 }
 0x954   :  { %6903 = vmatpush1.bf16.msra.mxu1 %v16841_v39  ;;  %6944 = vmatpush1.bf16.msra.mxu0 %v16843_v12  ;;  %v16863_v39 = vld [vmem:[#allocation19 + $0x8c] ss:$16 sps:$4 sm:$0xff]   ;;  %v16865_v12 = vld [vmem:[#allocation19 + $0x80] ss:$16 sps:$4 sm:$0xff]  }
 0x955   :  { %6904 = vmatprep.subr.bf16.mxu1 %v16849_v4  ;;  %6945 = vmatprep.subr.bf16.mxu0 %v16851_v56  ;;  %18550 = vst [vmem:[#allocation110_spill] sm:$0xff] %v16863_v39  ;;  %18551 = vst [vmem:[#allocation111_spill] sm:$0xff] %v16865_v12  ;;  %v16873_v56 = vld [vmem:[#allocation19 + $0xa4] ss:$16 sps:$4 sm:$0xff]   ;;  %v16879_v4 = vld [vmem:[#allocation19 + $0xa8] ss:$16 sps:$4 sm:$0xff]  }
 0x956   :  { %18553 = vst [vmem:[#allocation113_spill] sm:$0xff] %v16873_v56  ;;  %18556 = vst [vmem:[#allocation116_spill] sm:$0xff] %v16879_v4 }
 0x958   :  { %6905 = vmatpush1.bf16.msra.mxu1 %v16853_v23  ;;  %6946 = vmatpush1.bf16.msra.mxu0 %v16855_v61  ;;  %v16875_v23 = vld [vmem:[#allocation19 + $0xac] ss:$16 sps:$4 sm:$0xff]   ;;  %v16877_v61 = vld [vmem:[#allocation19 + $0xa0] ss:$16 sps:$4 sm:$0xff]  }
 0x959   :  { %6906 = vmatprep.subr.bf16.mxu1 %v16861_v30  ;;  %6947 = vmatprep.subr.bf16.mxu0 %v16863_v39  ;;  %18554 = vst [vmem:[#allocation114_spill] sm:$0xff] %v16875_v23  ;;  %18555 = vst [vmem:[#allocation115_spill] sm:$0xff] %v16877_v61  ;;  %v16885_v39 = vld [vmem:[#allocation19 + $0xc4] ss:$16 sps:$4 sm:$0xff]   ;;  %v16891_v30 = vld [vmem:[#allocation19 + $0xc8] ss:$16 sps:$4 sm:$0xff]  }
 0x95a   :  { %18557 = vst [vmem:[#allocation117_spill] sm:$0xff] %v16885_v39  ;;  %18560 = vst [vmem:[#allocation120_spill] sm:$0xff] %v16891_v30 }
 0x95c   :  { %6907 = vmatpush1.bf16.msra.mxu1 %v16865_v12  ;;  %6948 = vmatpush1.bf16.msra.mxu0 %v16867_v15  ;;  %v16887_v12 = vld [vmem:[#allocation19 + $0xcc] ss:$16 sps:$4 sm:$0xff]   ;;  %v16889_v15 = vld [vmem:[#allocation19 + $0xc0] ss:$16 sps:$4 sm:$0xff]  }
 0x95d   :  { %6908 = vmatprep.subr.bf16.mxu1 %v16873_v56  ;;  %6949 = vmatprep.subr.bf16.mxu0 %v16875_v23  ;;  %18558 = vst [vmem:[#allocation118_spill] sm:$0xff] %v16887_v12  ;;  %18559 = vst [vmem:[#allocation119_spill] sm:$0xff] %v16889_v15  ;;  %v16897_v23 = vld [vmem:[#allocation19 + $0xe4] ss:$16 sps:$4 sm:$0xff]   ;;  %v16903_v56 = vld [vmem:[#allocation19 + $0xe8] ss:$16 sps:$4 sm:$0xff]  }
 0x95e   :  { %18561 = vst [vmem:[#allocation121_spill] sm:$0xff] %v16897_v23  ;;  %18564 = vst [vmem:[#allocation124_spill] sm:$0xff] %v16903_v56 }
 0x960   :  { %6909 = vmatpush1.bf16.msra.mxu1 %v16877_v61  ;;  %6950 = vmatpush1.bf16.msra.mxu0 %v16879_v4  ;;  %v16899_v61 = vld [vmem:[#allocation19 + $0xec] ss:$16 sps:$4 sm:$0xff]   ;;  %v16901_v4 = vld [vmem:[#allocation19 + $0xe0] ss:$16 sps:$4 sm:$0xff]  }
 0x961   :  { %6910 = vmatprep.subr.bf16.mxu1 %v16885_v39  ;;  %6951 = vmatprep.subr.bf16.mxu0 %v16887_v12  ;;  %18562 = vst [vmem:[#allocation122_spill] sm:$0xff] %v16899_v61  ;;  %18563 = vst [vmem:[#allocation123_spill] sm:$0xff] %v16901_v4  ;;  %v16909_v12 = vld [vmem:[#allocation19 + $0x104] ss:$16 sps:$4 sm:$0xff]  }
 0x962   :  { %18565 = vst [vmem:[#allocation125_spill] sm:$0xff] %v16909_v12 }
 0x964   :  { %6911 = vmatpush1.bf16.msra.mxu1 %v16889_v15  ;;  %6952 = vmatpush1.bf16.msra.mxu0 %v16891_v30  ;;  %v16911_v15 = vld [vmem:[#allocation19 + $0x10c] ss:$16 sps:$4 sm:$0xff]  }
 0x965   :  { %6912 = vmatprep.subr.bf16.mxu1 %v16897_v23  ;;  %6953 = vmatprep.subr.bf16.mxu0 %v16899_v61  ;;  %18566 = vst [vmem:[#allocation126_spill] sm:$0xff] %v16911_v15 }
 0x968   :  { %6913 = vmatpush1.bf16.msra.mxu1 %v16901_v4  ;;  %6954 = vmatpush1.bf16.msra.mxu0 %v16903_v56 }
 0x969   :  { %7196 = vmatprep.subr.bf16.mxu1 %v16909_v12  ;;  %7237 = vmatprep.subr.bf16.mxu0 %v16911_v15 }
 0x9bd   :  { %v5686_v30 = vpop.f32.mrb[60].mxu1  ;;  %v5727_v39 = vpop.f32.mrb[60].mxu0 }
 0x9be   :  { %v5688_v41 = vpop.f32.mrb[61].mxu1  ;;  %v5729_v63 = vpop.f32.mrb[61].mxu0 }
 0x9bf   :  { %v5738_v40 = vcombine.low %v5686_v30, %v5688_v41  ;;  %v5739_v23 = vcombine.low %v5727_v39, %v5729_v63  ;;  %v5690_v59 = vpop.f32.mrb[62].mxu1  ;;  %v5731_v61 = vpop.f32.mrb[62].mxu0 }
 0x9c0   :  { %v5691_v21 = vpop.f32.mrb[63].mxu1  ;;  %v5732_v4 = vpop.f32.mrb[63].mxu0  ;;  %v18570_v61 = vld [vmem:[#allocation56_spill] sm:$0xff] }
 0x9c1   :  { %v16916_v56 = vrot.slane %v5738_v40, %v16070_v44  ;;  %v16919_v3 = vrot.slane %v5739_v23, %v16070_v44  ;;  %v18569_v23 = vld [vmem:[#allocation51_spill] sm:$0xff] }
 0x9c2   :  { %v18571_v28 = vcombine.low %v18569_v23, %v18570_v61 }
 0x9c3   :  { %18567 = vst [vmem:[#allocation127_spill] sm:$0xff] %v16916_v56  ;;  %18568 = vst [vmem:[#allocation128_spill] sm:$0xff] %v16919_v3 }
 0x9fd   :  { %v6275_v15 = vpop.f32.mrb[68].mxu1  ;;  %v6316_v22 = vpop.f32.mrb[68].mxu0 }
 0x9fe   :  { %v6277_v55 = vpop.f32.mrb[69].mxu1  ;;  %v6318_v46 = vpop.f32.mrb[69].mxu0 }
 0x9ff   :  { %v6327_v42 = vcombine.low %v6275_v15, %v6277_v55  ;;  %v6328_v41 = vcombine.low %v6316_v22, %v6318_v46  ;;  %v6279_v63 = vpop.f32.mrb[70].mxu1  ;;  %v6320_v39 = vpop.f32.mrb[70].mxu0 }
 0xa00   :  { %v6280_v30 = vpop.f32.mrb[71].mxu1  ;;  %v6321_v59 = vpop.f32.mrb[71].mxu0 }
 0xa01   :  { %v6335_v4 = vrot.slane %v6327_v42, %v16070_v44  ;;  %v6342_v40 = vrot.slane %v6328_v41, %v16070_v44 }
 0xa03   :  { %v6343_v21 = vcombine.low %v6335_v4, %v6342_v40 }
 0xa05   :  { %v6345_v47 = vadd.f32 %v6343_v21, %v18571_v28  ;;  %v18572_v21 = vcombine.low %v16542_v58, %v16545_v24  ;;  %v16943_v24 = vld [vmem:[#allocation19 + $0x124] ss:$16 sps:$4 sm:$0xff]  }
 0xa07   :  { %v6346_v12 = vsub.f32 0.0, %v6345_v47  ;;  %v6352_v15 = vrot.slane %v6345_v47, 6 }
 0xa09   :  { %v6347_v3 = vmul.f32 1.442695, %v6346_v12 }
 0xa0b   :  { %14793 = vpow2.f32 %v6347_v3 }
 0xa15   :  { %v14794_v56 = vpop.eup %14793 }
 0xa16   :  { %v6349_v8 = vadd.f32 1.0, %v14794_v56 }
 0xa18   :  { %14795 = vrcp.f32 %v6349_v8 }
 0xa19   :  { %14797 = vtanh.f32 %v6352_v15 }
 0xa1d   :  { %v6592_v46 = vpop.f32.mrb[72].mxu1  ;;  %v6633_v22 = vpop.f32.mrb[72].mxu0 }
 0xa1e   :  { %v6594_v55 = vpop.f32.mrb[73].mxu1  ;;  %v6635_v63 = vpop.f32.mrb[73].mxu0 }
 0xa1f   :  { %v6644_v42 = vcombine.low %v6592_v46, %v6594_v55  ;;  %v6645_v39 = vcombine.low %v6633_v22, %v6635_v63  ;;  %v6596_v41 = vpop.f32.mrb[74].mxu1  ;;  %v6637_v30 = vpop.f32.mrb[74].mxu0 }
 0xa20   :  { %v6597_v59 = vpop.f32.mrb[75].mxu1  ;;  %v6638_v4 = vpop.f32.mrb[75].mxu0 }
 0xa21   :  { %v6652_v28 = vrot.slane %v6644_v42, %v16070_v44  ;;  %v6659_v12 = vrot.slane %v6645_v39, %v16070_v44  ;;  %v16937_v59 = vld [vmem:[#allocation19 + $0x100] ss:$16 sps:$4 sm:$0xff]   ;;  %v16939_v4 = vld [vmem:[#allocation19 + $0x108] ss:$16 sps:$4 sm:$0xff]  }
 0xa22   :  { %v14796_v3 = vpop.eup %14795 }
 0xa23   :  { %v6660_v40 = vcombine.low %v6652_v28, %v6659_v12  ;;  %v6356_v56 = vrot.slane %v14796_v3, 2  ;;  %v14798_v47 = vpop.eup %14797  ;;  %v6362_v55 = vrot.slane %v14796_v3, 4  ;;  %v16951_v28 = vld [vmem:[#allocation19 + $0x120] ss:$16 sps:$4 sm:$0xff]   ;;  %v16953_v12 = vld [vmem:[#allocation19 + $0x128] ss:$16 sps:$4 sm:$0xff]  }
 0xa24   :  { %v6359_v8 = vmul.f32 %v14798_v47, %v14796_v3  ;;  %v16957_v3 = vld [vmem:[#allocation19 + $0x144] ss:$16 sps:$4 sm:$0xff]   ;;  %v16967_v47 = vld [vmem:[#allocation19 + $0x148] ss:$16 sps:$4 sm:$0xff]  }
 0xa25   :  { %v6662_v23 = vadd.f32 %v6660_v40, %v18572_v21  ;;  %v6358_v61 = vmul.f32 %v6356_v56, %v16561_v31  ;;  %v16945_v31 = vld [vmem:[#allocation19 + $0x12c] ss:$16 sps:$4 sm:$0xff]   ;;  %v16965_v56 = vld [vmem:[#allocation19 + $0x140] ss:$16 sps:$4 sm:$0xff]   ;;  %18574 = vst [vmem:[#allocation56_spill] sm:$0xff] %v16967_v47 }
 0xa26   :  { %v16959_v40 = vld [vmem:[#allocation19 + $0x14c] ss:$16 sps:$4 sm:$0xff]   ;;  %18573 = vst [vmem:[#allocation51_spill] sm:$0xff] %v16965_v56 }
 0xa27   :  { %v6663_v15 = vsub.f32 0.0, %v6662_v23  ;;  %v16934_v46 = vadd.f32 %v6359_v8, %v6358_v61  ;;  %v6669_v30 = vrot.slane %v6662_v23, 6  ;;  %v16971_v8 = vld [vmem:[#allocation19 + $0x164] ss:$16 sps:$4 sm:$0xff]   ;;  %v16973_v21 = vld [vmem:[#allocation19 + $0x16c] ss:$16 sps:$4 sm:$0xff]  }
 0xa28   :  { %18575 = vst [vmem:[#allocation129_spill] sm:$0xff] %v16971_v8  ;;  %18576 = vst [vmem:[#allocation130_spill] sm:$0xff] %v16973_v21  ;;  %v16977_v61 = vld [vmem:[#allocation19 + $0x160] ss:$16 sps:$4 sm:$0xff]  }
 0xa29   :  { %v6664_v22 = vmul.f32 1.442695, %v6663_v15  ;;  %14799 = vtanh.f32 %v16934_v46  ;;  %v16979_v15 = vld [vmem:[#allocation19 + $0x168] ss:$16 sps:$4 sm:$0xff]  }
 0xa2b   :  { %14801 = vpow2.f32 %v6664_v22  ;;  %v16983_v22 = vld [vmem:[#allocation19 + $0x184] ss:$16 sps:$4 sm:$0xff]  }
 0xa33   :  { %v14800_v63 = vpop.eup %14799 }
 0xa34   :  { %v6364_v39 = vmul.f32 %v14800_v63, %v6362_v55  ;;  %v16985_v55 = vld [vmem:[#allocation19 + $0x18c] ss:$16 sps:$4 sm:$0xff]  }
 0xa35   :  { %v14802_v42 = vpop.eup %14801  ;;  %18577 = vst [vmem:[#allocation131_spill] sm:$0xff] %v16985_v55 }
 0xa36   :  { %v6666_v41 = vadd.f32 1.0, %v14802_v42  ;;  %v16941_v58 = vpack.c.bf16 %v6364_v39, %v6364_v39 }
 0xa38   :  { %14803 = vrcp.f32 %v6666_v41  ;;  %6931 = vmatmul.mubr.bf16.vlgmr.msra.gmra.mrb[76].mxu1 %v16941_v58  ;;  %6972 = vmatmul.mubr.bf16.vlgmr.msra.gmra.mrb[76].mxu0 %v16941_v58 }
 0xa39   :  { %14805 = vtanh.f32 %v6669_v30  ;;  %7197 = vmatpush1.bf16.msra.mxu1 %v16937_v59  ;;  %7238 = vmatpush1.bf16.msra.mxu0 %v16939_v4  ;;  %v16990_v30 = vld [vmem:[#allocation19 + $0x180] ss:$16 sps:$4 sm:$0xff]  }
 0xa3a   :  { %7198 = vmatprep.subr.bf16.mxu1 %v16943_v24  ;;  %7239 = vmatprep.subr.bf16.mxu0 %v16945_v31  ;;  %18578 = vst [vmem:[#allocation132_spill] sm:$0xff] %v16990_v30 }
 0xa3b   :  { %7228 = vmatprep.mubr.bf16.mxu1 %v18407_v25  ;;  %7269 = vmatprep.mubr.bf16.mxu0 %v18407_v25 }
 0xa3d   :  { %7199 = vmatpush1.bf16.msra.mxu1 %v16951_v28  ;;  %7240 = vmatpush1.bf16.msra.mxu0 %v16953_v12 }
 0xa3e   :  { %7200 = vmatprep.subr.bf16.mxu1 %v16957_v3  ;;  %7241 = vmatprep.subr.bf16.mxu0 %v16959_v40 }
 0xa41   :  { %7201 = vmatpush1.bf16.msra.mxu1 %v16965_v56  ;;  %7242 = vmatpush1.bf16.msra.mxu0 %v16967_v47  ;;  %v16992_v47 = vld [vmem:[#allocation19 + $0x188] ss:$16 sps:$4 sm:$0xff]  }
 0xa42   :  { %v14804_v23 = vpop.eup %14803  ;;  %7202 = vmatprep.subr.bf16.mxu1 %v16971_v8  ;;  %7243 = vmatprep.subr.bf16.mxu0 %v16973_v21  ;;  %18579 = vst [vmem:[#allocation133_spill] sm:$0xff] %v16992_v47  ;;  %v16996_v21 = vld [vmem:[#allocation19 + $0x1a4] ss:$16 sps:$4 sm:$0xff]   ;;  %v16998_v8 = vld [vmem:[#allocation19 + $0x1ac] ss:$16 sps:$4 sm:$0xff]  }
 0xa43   :  { %v6673_v63 = vrot.slane %v14804_v23, 2  ;;  %v14806_v42 = vpop.eup %14805  ;;  %18580 = vst [vmem:[#allocation134_spill] sm:$0xff] %v16996_v21  ;;  %18581 = vst [vmem:[#allocation135_spill] sm:$0xff] %v16998_v8 }
 0xa44   :  { %v6676_v39 = vmul.f32 %v14806_v42, %v14804_v23  ;;  %v17011_v42 = vld [vmem:[#allocation19 + $0x1c4] ss:$16 sps:$4 sm:$0xff]  }
 0xa45   :  { %v6675_v41 = vmul.f32 %v6673_v63, %v16592_v2  ;;  %7203 = vmatpush1.bf16.msra.mxu1 %v16977_v61  ;;  %7244 = vmatpush1.bf16.msra.mxu0 %v16979_v15  ;;  %v17005_v2 = vld [vmem:[#allocation19 + $0x1a0] ss:$16 sps:$4 sm:$0xff]   ;;  %v17007_v63 = vld [vmem:[#allocation19 + $0x1a8] ss:$16 sps:$4 sm:$0xff]   ;;  %18584 = vst [vmem:[#allocation138_spill] sm:$0xff] %v17011_v42 }
 0xa46   :  { %7204 = vmatprep.subr.bf16.mxu1 %v16983_v22  ;;  %7245 = vmatprep.subr.bf16.mxu0 %v16985_v55  ;;  %18582 = vst [vmem:[#allocation136_spill] sm:$0xff] %v17005_v2  ;;  %18583 = vst [vmem:[#allocation137_spill] sm:$0xff] %v17007_v63  ;;  %v17013_v55 = vld [vmem:[#allocation19 + $0x1cc] ss:$16 sps:$4 sm:$0xff]  }
 0xa47   :  { %v17000_v56 = vadd.f32 %v6676_v39, %v6675_v41  ;;  %18585 = vst [vmem:[#allocation139_spill] sm:$0xff] %v17013_v55  ;;  %v17017_v39 = vld [vmem:[#allocation19 + $0x1c0] ss:$16 sps:$4 sm:$0xff]   ;;  %v17019_v41 = vld [vmem:[#allocation19 + $0x1c8] ss:$16 sps:$4 sm:$0xff]  }
 0xa49   :  { %14807 = vtanh.f32 %v17000_v56  ;;  %7205 = vmatpush1.bf16.msra.mxu1 %v16990_v30  ;;  %7246 = vmatpush1.bf16.msra.mxu0 %v16992_v47  ;;  %v17023_v47 = vld [vmem:[#allocation19 + $0x1e4] ss:$16 sps:$4 sm:$0xff]  }
 0xa4a   :  { %7206 = vmatprep.subr.bf16.mxu1 %v16996_v21  ;;  %7247 = vmatprep.subr.bf16.mxu0 %v16998_v8  ;;  %v17025_v21 = vld [vmem:[#allocation19 + $0x1ec] ss:$16 sps:$4 sm:$0xff]   ;;  %v17029_v8 = vld [vmem:[#allocation19 + $0x1e0] ss:$16 sps:$4 sm:$0xff]  }
 0xa4d   :  { %7207 = vmatpush1.bf16.msra.mxu1 %v17005_v2  ;;  %7248 = vmatpush1.bf16.msra.mxu0 %v17007_v63  ;;  %v17031_v2 = vld [vmem:[#allocation19 + $0x1e8] ss:$16 sps:$4 sm:$0xff]   ;;  %v6679_v63 = vrot.slane %v14804_v23, 4  ;;  %v18624_v23 = vld [vmem:[#allocation104_spill] sm:$0xff] }
 0xa4e   :  { %7208 = vmatprep.subr.bf16.mxu1 %v17011_v42  ;;  %7249 = vmatprep.subr.bf16.mxu0 %v17013_v55 }
 0xa51   :  { %7209 = vmatpush1.bf16.msra.mxu1 %v17017_v39  ;;  %7250 = vmatpush1.bf16.msra.mxu0 %v17019_v41 }
 0xa52   :  { %7210 = vmatprep.subr.bf16.mxu1 %v17023_v47  ;;  %7251 = vmatprep.subr.bf16.mxu0 %v17025_v21 }
 0xa53   :  { %v14808_v30 = vpop.eup %14807 }
 0xa54   :  { %v6681_v42 = vmul.f32 %v14808_v30, %v6679_v63  ;;  %v18626_v30 = vld [vmem:[#allocation106_spill] sm:$0xff]  ;;  %v18627_v63 = vld [vmem:[#allocation107_spill] sm:$0xff] }
 0xa55   :  { %7211 = vmatpush1.bf16.msra.mxu1 %v17029_v8  ;;  %7252 = vmatpush1.bf16.msra.mxu0 %v17031_v2 }
 0xa56   :  { %v17037_v55 = vpack.c.bf16 %v6681_v42, %v6681_v42  ;;  %7496 = vmatprep.subr.bf16.mxu1 %v16609_v38  ;;  %7537 = vmatprep.subr.bf16.mxu0 %v16611_v1  ;;  %v18586_v38 = vld [vmem:[#allocation64_spill] sm:$0xff]  ;;  %v18587_v1 = vld [vmem:[#allocation65_spill] sm:$0xff] }
 0xa57   :  { %v18628_v42 = vld [vmem:[#allocation108_spill] sm:$0xff] }
 0xa58   :  { %7229 = vmatmul.mubr.bf16.vlgmr.msra.gmra.mrb[80].mxu1 %v17037_v55  ;;  %7270 = vmatmul.mubr.bf16.vlgmr.msra.gmra.mrb[80].mxu0 %v17037_v55 }
 0xa59   :  { %7497 = vmatpush1.bf16.msra.mxu1 %v16613_v13  ;;  %7538 = vmatpush1.bf16.msra.mxu0 %v16615_v52  ;;  %v18588_v13 = vld [vmem:[#allocation66_spill] sm:$0xff]  ;;  %v18589_v52 = vld [vmem:[#allocation67_spill] sm:$0xff] }
 0xa5a   :  { %7498 = vmatprep.subr.bf16.mxu1 %v16619_v17  ;;  %7539 = vmatprep.subr.bf16.mxu0 %v16621_v32  ;;  %v18590_v17 = vld [vmem:[#allocation68_spill] sm:$0xff]  ;;  %v18591_v32 = vld [vmem:[#allocation69_spill] sm:$0xff] }
 0xa5b   :  { %7528 = vmatprep.mubr.bf16.mxu1 %v18407_v25  ;;  %7569 = vmatprep.mubr.bf16.mxu0 %v18407_v25 }
 0xa5d   :  { %7499 = vmatpush1.bf16.msra.mxu1 %v16627_v27  ;;  %7540 = vmatpush1.bf16.msra.mxu0 %v16629_v60  ;;  %v18592_v27 = vld [vmem:[#allocation70_spill] sm:$0xff]  ;;  %v18593_v60 = vld [vmem:[#allocation71_spill] sm:$0xff] }
 0xa5e   :  { %7500 = vmatprep.subr.bf16.mxu1 %v16633_v5  ;;  %7541 = vmatprep.subr.bf16.mxu0 %v16635_v26  ;;  %v18595_v5 = vld [vmem:[#allocation73_spill] sm:$0xff]  ;;  %v18596_v26 = vld [vmem:[#allocation52_spill] sm:$0xff] }
 0xa61   :  { %7501 = vmatpush1.bf16.msra.mxu1 %v16641_v0  ;;  %7542 = vmatpush1.bf16.msra.mxu0 %v16643_v11  ;;  %v18597_v0 = vld [vmem:[#allocation55_spill] sm:$0xff]  ;;  %v18598_v11 = vld [vmem:[#allocation54_spill] sm:$0xff] }
 0xa62   :  { %7502 = vmatprep.subr.bf16.mxu1 %v16647_v16  ;;  %7543 = vmatprep.subr.bf16.mxu0 %v16649_v18  ;;  %v18599_v16 = vld [vmem:[#allocation75_spill] sm:$0xff]  ;;  %v18600_v18 = vld [vmem:[#allocation80_spill] sm:$0xff] }
 0xa65   :  { %7503 = vmatpush1.bf16.msra.mxu1 %v16653_v34  ;;  %7544 = vmatpush1.bf16.msra.mxu0 %v16655_v50  ;;  %v18601_v34 = vld [vmem:[#allocation81_spill] sm:$0xff]  ;;  %v18602_v50 = vld [vmem:[#allocation82_spill] sm:$0xff] }
 0xa66   :  { %7504 = vmatprep.subr.bf16.mxu1 %v16659_v36  ;;  %7545 = vmatprep.subr.bf16.mxu0 %v16661_v19  ;;  %v18603_v36 = vld [vmem:[#allocation83_spill] sm:$0xff]  ;;  %v18604_v19 = vld [vmem:[#allocation84_spill] sm:$0xff] }
 0xa69   :  { %7505 = vmatpush1.bf16.msra.mxu1 %v16665_v57  ;;  %7546 = vmatpush1.bf16.msra.mxu0 %v16667_v20  ;;  %v18605_v57 = vld [vmem:[#allocation85_spill] sm:$0xff]  ;;  %v18606_v20 = vld [vmem:[#allocation86_spill] sm:$0xff] }
 0xa6a   :  { %7506 = vmatprep.subr.bf16.mxu1 %v16671_v45  ;;  %7547 = vmatprep.subr.bf16.mxu0 %v16673_v53  ;;  %v18607_v45 = vld [vmem:[#allocation87_spill] sm:$0xff]  ;;  %v18608_v53 = vld [vmem:[#allocation88_spill] sm:$0xff] }
 0xa6d   :  { %7507 = vmatpush1.bf16.msra.mxu1 %v16677_v29  ;;  %7548 = vmatpush1.bf16.msra.mxu0 %v16679_v9  ;;  %v18609_v29 = vld [vmem:[#allocation89_spill] sm:$0xff]  ;;  %v18610_v9 = vld [vmem:[#allocation90_spill] sm:$0xff] }
 0xa6e   :  { %7508 = vmatprep.subr.bf16.mxu1 %v16683_v37  ;;  %7549 = vmatprep.subr.bf16.mxu0 %v16685_v48  ;;  %v18611_v37 = vld [vmem:[#allocation91_spill] sm:$0xff]  ;;  %v18612_v48 = vld [vmem:[#allocation92_spill] sm:$0xff] }
 0xa71   :  { %7509 = vmatpush1.bf16.msra.mxu1 %v16689_v49  ;;  %7550 = vmatpush1.bf16.msra.mxu0 %v16691_v6  ;;  %v18613_v49 = vld [vmem:[#allocation93_spill] sm:$0xff]  ;;  %v18614_v6 = vld [vmem:[#allocation94_spill] sm:$0xff] }
 0xa72   :  { %7510 = vmatprep.subr.bf16.mxu1 %v16695_v10  ;;  %7551 = vmatprep.subr.bf16.mxu0 %v16697_v54  ;;  %v18615_v10 = vld [vmem:[#allocation95_spill] sm:$0xff]  ;;  %v18616_v54 = vld [vmem:[#allocation96_spill] sm:$0xff] }
 0xa75   :  { %7511 = vmatpush1.bf16.msra.mxu1 %v16701_v43  ;;  %7552 = vmatpush1.bf16.msra.mxu0 %v16703_v51  ;;  %v18617_v43 = vld [vmem:[#allocation97_spill] sm:$0xff]  ;;  %v18618_v51 = vld [vmem:[#allocation98_spill] sm:$0xff] }
 0xa76   :  { %7812 = vmatprep.subr.bf16.mxu1 %v16707_v33  ;;  %7853 = vmatprep.subr.bf16.mxu0 %v16709_v14  ;;  %v18619_v33 = vld [vmem:[#allocation99_spill] sm:$0xff]  ;;  %v18620_v14 = vld [vmem:[#allocation100_spill] sm:$0xff] }
 0xa78   :  { %7529 = vmatmul.mubr.bf16.vlgmr.msra.gmra.mrb[84].mxu1 %v16941_v58  ;;  %7570 = vmatmul.mubr.bf16.vlgmr.msra.gmra.mrb[84].mxu0 %v16941_v58  ;;  %v18623_v58 = vld [vmem:[#allocation103_spill] sm:$0xff] }
 0xa79   :  { %7813 = vmatpush1.bf16.msra.mxu1 %v16713_v7  ;;  %7854 = vmatpush1.bf16.msra.mxu0 %v16715_v62  ;;  %v18621_v7 = vld [vmem:[#allocation101_spill] sm:$0xff]  ;;  %v18622_v62 = vld [vmem:[#allocation102_spill] sm:$0xff] }
 0xa7a   :  { %7814 = vmatprep.subr.bf16.mxu1 %v16719_v35  ;;  %7855 = vmatprep.subr.bf16.mxu0 %v18586_v38  ;;  %v18594_v35 = vld [vmem:[#allocation53_spill] sm:$0xff] }
 0xa7b   :  { %7844 = vmatprep.mubr.bf16.mxu1 %v18407_v25  ;;  %7885 = vmatprep.mubr.bf16.mxu0 %v18407_v25  ;;  %v18629_v38 = vld [vmem:[#allocation109_spill] sm:$0xff] }
 0xa7d   :  { %7815 = vmatpush1.bf16.msra.mxu1 %v18587_v1  ;;  %7856 = vmatpush1.bf16.msra.mxu0 %v18588_v13  ;;  %v18630_v1 = vld [vmem:[#allocation110_spill] sm:$0xff]  ;;  %v18631_v13 = vld [vmem:[#allocation111_spill] sm:$0xff] }
 0xa7e   :  { %7816 = vmatprep.subr.bf16.mxu1 %v18589_v52  ;;  %7857 = vmatprep.subr.bf16.mxu0 %v18590_v17  ;;  %v18632_v52 = vld [vmem:[#allocation112_spill] sm:$0xff]  ;;  %v18633_v17 = vld [vmem:[#allocation113_spill] sm:$0xff] }
 0xa81   :  { %7817 = vmatpush1.bf16.msra.mxu1 %v18591_v32  ;;  %7858 = vmatpush1.bf16.msra.mxu0 %v18592_v27  ;;  %v18634_v32 = vld [vmem:[#allocation114_spill] sm:$0xff]  ;;  %v18635_v27 = vld [vmem:[#allocation115_spill] sm:$0xff] }
 0xa82   :  { %7818 = vmatprep.subr.bf16.mxu1 %v18593_v60  ;;  %7859 = vmatprep.subr.bf16.mxu0 %v18594_v35  ;;  %v18636_v60 = vld [vmem:[#allocation116_spill] sm:$0xff]  ;;  %v18637_v35 = vld [vmem:[#allocation117_spill] sm:$0xff] }
 0xa85   :  { %7819 = vmatpush1.bf16.msra.mxu1 %v18595_v5  ;;  %7860 = vmatpush1.bf16.msra.mxu0 %v18596_v26  ;;  %v18638_v5 = vld [vmem:[#allocation118_spill] sm:$0xff]  ;;  %v18639_v26 = vld [vmem:[#allocation119_spill] sm:$0xff] }
 0xa86   :  { %7820 = vmatprep.subr.bf16.mxu1 %v18597_v0  ;;  %7861 = vmatprep.subr.bf16.mxu0 %v18598_v11  ;;  %v18640_v0 = vld [vmem:[#allocation120_spill] sm:$0xff]  ;;  %v18641_v11 = vld [vmem:[#allocation121_spill] sm:$0xff] }
 0xa89   :  { %7821 = vmatpush1.bf16.msra.mxu1 %v18599_v16  ;;  %7862 = vmatpush1.bf16.msra.mxu0 %v18600_v18  ;;  %v18642_v16 = vld [vmem:[#allocation122_spill] sm:$0xff]  ;;  %v18643_v18 = vld [vmem:[#allocation123_spill] sm:$0xff] }
 0xa8a   :  { %7822 = vmatprep.subr.bf16.mxu1 %v18601_v34  ;;  %7863 = vmatprep.subr.bf16.mxu0 %v18602_v50  ;;  %v18644_v34 = vld [vmem:[#allocation124_spill] sm:$0xff]  ;;  %v18645_v50 = vld [vmem:[#allocation125_spill] sm:$0xff] }
 0xa8d   :  { %7823 = vmatpush1.bf16.msra.mxu1 %v18603_v36  ;;  %7864 = vmatpush1.bf16.msra.mxu0 %v18604_v19  ;;  %v18646_v36 = vld [vmem:[#allocation126_spill] sm:$0xff]  ;;  %v6716_v19 = vld [vmem:[#allocation22] sm:$0xf] }
 0xa8e   :  { %7824 = vmatprep.subr.bf16.mxu1 %v18605_v57  ;;  %7865 = vmatprep.subr.bf16.mxu0 %v18606_v20  ;;  %v18647_v57 = vld [vmem:[#allocation46_spill] sm:$0xff] }
 0xa8f   :  { %v6721_v20 = vrot.slane %v6716_v19, %v18647_v57 }
 0xa91   :  { %7825 = vmatpush1.bf16.msra.mxu1 %v18607_v45  ;;  %7866 = vmatpush1.bf16.msra.mxu0 %v18608_v53  ;;  %v18648_v45 = vld [vmem:[#allocation74_spill] sm:$0xff] }
 0xa92   :  { %7826 = vmatprep.subr.bf16.mxu1 %v18609_v29  ;;  %7867 = vmatprep.subr.bf16.mxu0 %v18610_v9  ;;  %v6729_v53 = vrot.slane %v6716_v19, %v18648_v45  ;;  %v18649_v29 = vld [vmem:[#allocation47_spill] sm:$0xff] }
 0xa93   :  { %v6725_v9 = vrot.slane %v6716_v19, %v18649_v29 }
 0xa95   :  { %7827 = vmatpush1.bf16.msra.mxu1 %v18611_v37  ;;  %7868 = vmatpush1.bf16.msra.mxu0 %v18612_v48  ;;  %v18650_v37 = vld [vmem:[#allocation72_spill] sm:$0xff] }
 0xa96   :  { %8152 = vmatprep.subr.bf16.mxu1 %v18613_v49  ;;  %8193 = vmatprep.subr.bf16.mxu0 %v18614_v6  ;;  %v6733_v48 = vrot.slane %v6716_v19, %v18650_v37 }
 0xa98   :  { %7845 = vmatmul.mubr.bf16.vlgmr.msra.gmra.mrb[88].mxu1 %v17037_v55  ;;  %7886 = vmatmul.mubr.bf16.vlgmr.msra.gmra.mrb[88].mxu0 %v17037_v55  ;;  %v18625_v55 = vld [vmem:[#allocation105_spill] sm:$0xff] }
 0xa99   :  { %8153 = vmatpush1.bf16.msra.mxu1 %v18615_v10  ;;  %8194 = vmatpush1.bf16.msra.mxu0 %v18616_v54 }
 0xa9a   :  { %8154 = vmatprep.subr.bf16.mxu1 %v18617_v43  ;;  %8195 = vmatprep.subr.bf16.mxu0 %v18618_v51 }
 0xa9b   :  { %8184 = vmatprep.mubr.bf16.mxu1 %v18407_v25  ;;  %8225 = vmatprep.mubr.bf16.mxu0 %v18407_v25 }
 0xa9d   :  { %8155 = vmatpush1.bf16.msra.mxu1 %v18619_v33  ;;  %8196 = vmatpush1.bf16.msra.mxu0 %v18620_v14 }
 0xa9e   :  { %8156 = vmatprep.subr.bf16.mxu1 %v18621_v7  ;;  %8197 = vmatprep.subr.bf16.mxu0 %v18622_v62 }
 0xaa1   :  { %8157 = vmatpush1.bf16.msra.mxu1 %v18623_v58  ;;  %8198 = vmatpush1.bf16.msra.mxu0 %v18624_v23 }
 0xaa2   :  { %8158 = vmatprep.subr.bf16.mxu1 %v18625_v55  ;;  %8199 = vmatprep.subr.bf16.mxu0 %v18626_v30 }
 0xaa5   :  { %8159 = vmatpush1.bf16.msra.mxu1 %v18627_v63  ;;  %8200 = vmatpush1.bf16.msra.mxu0 %v18628_v42 }
 0xaa6   :  { %8160 = vmatprep.subr.bf16.mxu1 %v18629_v38  ;;  %8201 = vmatprep.subr.bf16.mxu0 %v18630_v1  ;;  %v17377_v38 = vld [vmem:[#allocation17 + $0x8c] ss:$16 sps:$4 sm:$0xff]  }
 0xaa7   :  { %18687 = vst [vmem:[#allocation83_spill] sm:$0xff] %v17377_v38 }
 0xaa9   :  { %8161 = vmatpush1.bf16.msra.mxu1 %v18631_v13  ;;  %8202 = vmatpush1.bf16.msra.mxu0 %v18632_v52 }
 0xaaa   :  { %8162 = vmatprep.subr.bf16.mxu1 %v18633_v17  ;;  %8203 = vmatprep.subr.bf16.mxu0 %v18634_v32 }
 0xaad   :  { %8163 = vmatpush1.bf16.msra.mxu1 %v18635_v27  ;;  %8204 = vmatpush1.bf16.msra.mxu0 %v18636_v60 }
 0xaae   :  { %8164 = vmatprep.subr.bf16.mxu1 %v18637_v35  ;;  %8205 = vmatprep.subr.bf16.mxu0 %v18638_v5 }
 0xab1   :  { %8165 = vmatpush1.bf16.msra.mxu1 %v18639_v26  ;;  %8206 = vmatpush1.bf16.msra.mxu0 %v18640_v0 }
 0xab2   :  { %8166 = vmatprep.subr.bf16.mxu1 %v18641_v11  ;;  %8207 = vmatprep.subr.bf16.mxu0 %v18642_v16  ;;  %v17381_v16 = vld [vmem:[#allocation17 + $0x80] ss:$16 sps:$4 sm:$0xff]  }
 0xab3   :  { %18688 = vst [vmem:[#allocation84_spill] sm:$0xff] %v17381_v16 }
 0xab5   :  { %8167 = vmatpush1.bf16.msra.mxu1 %v18643_v18  ;;  %8208 = vmatpush1.bf16.msra.mxu0 %v18644_v34 }
 0xab6   :  { %8450 = vmatprep.subr.bf16.mxu1 %v18645_v50  ;;  %8491 = vmatprep.subr.bf16.mxu0 %v18646_v36 }
 0xb0b   :  { %v6932_v49 = vpop.f32.mrb[76].mxu1  ;;  %v6973_v6 = vpop.f32.mrb[76].mxu0 }
 0xb0c   :  { %v6933_v10 = vadd.f32 %v6932_v49, %v6721_v20  ;;  %v6974_v54 = vadd.f32 %v6973_v6, %v6729_v53  ;;  %v6934_v43 = vpop.f32.mrb[77].mxu1  ;;  %v6975_v51 = vpop.f32.mrb[77].mxu0 }
 0xb0d   :  { %v6935_v33 = vadd.f32 %v6934_v43, %v6725_v9  ;;  %v6976_v14 = vadd.f32 %v6975_v51, %v6733_v48  ;;  %v6936_v7 = vpop.f32.mrb[78].mxu1  ;;  %v6977_v62 = vpop.f32.mrb[78].mxu0  ;;  %v18655_v43 = vld [vmem:[#allocation49_spill] sm:$0xff]  ;;  %v18656_v51 = vld [vmem:[#allocation48_spill] sm:$0xff] }
 0xb0e   :  { %v6937_v58 = vpop.f32.mrb[79].mxu1  ;;  %v6978_v23 = vpop.f32.mrb[79].mxu0 }
 0xb0f   :  { %v6984_v55 = vcombine.low %v6933_v10, %v6935_v33  ;;  %v6985_v30 = vcombine.low %v6974_v54, %v6976_v14  ;;  %v18657_v33 = vcombine.low %v18655_v43, %v18656_v51 }
 0xb11   :  { %v17154_v63 = vrot.slane %v6984_v55, %v16070_v44  ;;  %v17157_v42 = vrot.slane %v6985_v30, %v16070_v44 }
 0xb13   :  { %18651 = vst [vmem:[#allocation64_spill] sm:$0xff] %v17154_v63  ;;  %18652 = vst [vmem:[#allocation65_spill] sm:$0xff] %v17157_v42  ;;  %v17383_v42 = vld [vmem:[#allocation17 + $0x88] ss:$16 sps:$4 sm:$0xff]   ;;  %v17387_v63 = vld [vmem:[#allocation17 + $0xa4] ss:$16 sps:$4 sm:$0xff]  }
 0xb14   :  { %18689 = vst [vmem:[#allocation85_spill] sm:$0xff] %v17383_v42  ;;  %18690 = vst [vmem:[#allocation86_spill] sm:$0xff] %v17387_v63 }
 0xb2b   :  { %v7230_v1 = vpop.f32.mrb[80].mxu1  ;;  %v7271_v13 = vpop.f32.mrb[80].mxu0 }
 0xb2c   :  { %v7232_v52 = vpop.f32.mrb[81].mxu1  ;;  %v7273_v17 = vpop.f32.mrb[81].mxu0 }
 0xb2d   :  { %v7282_v32 = vcombine.low %v7230_v1, %v7232_v52  ;;  %v7283_v27 = vcombine.low %v7271_v13, %v7273_v17  ;;  %v7234_v60 = vpop.f32.mrb[82].mxu1  ;;  %v7275_v35 = vpop.f32.mrb[82].mxu0 }
 0xb2e   :  { %v7235_v5 = vpop.f32.mrb[83].mxu1  ;;  %v7276_v26 = vpop.f32.mrb[83].mxu0 }
 0xb2f   :  { %v17162_v0 = vrot.slane %v7282_v32, %v16070_v44  ;;  %v17165_v11 = vrot.slane %v7283_v27, %v16070_v44 }
 0xb31   :  { %18653 = vst [vmem:[#allocation66_spill] sm:$0xff] %v17162_v0  ;;  %18654 = vst [vmem:[#allocation67_spill] sm:$0xff] %v17165_v11  ;;  %v17389_v11 = vld [vmem:[#allocation17 + $0xac] ss:$16 sps:$4 sm:$0xff]   ;;  %v17393_v0 = vld [vmem:[#allocation17 + $0xa0] ss:$16 sps:$4 sm:$0xff]  }
 0xb32   :  { %18691 = vst [vmem:[#allocation87_spill] sm:$0xff] %v17389_v11  ;;  %18692 = vst [vmem:[#allocation88_spill] sm:$0xff] %v17393_v0 }
 0xb4b   :  { %v7530_v18 = vpop.f32.mrb[84].mxu1  ;;  %v7571_v34 = vpop.f32.mrb[84].mxu0 }
 0xb4c   :  { %v7532_v50 = vpop.f32.mrb[85].mxu1  ;;  %v7573_v36 = vpop.f32.mrb[85].mxu0 }
 0xb4d   :  { %v7582_v19 = vcombine.low %v7530_v18, %v7532_v50  ;;  %v7583_v20 = vcombine.low %v7571_v34, %v7573_v36  ;;  %v7534_v53 = vpop.f32.mrb[86].mxu1  ;;  %v7575_v9 = vpop.f32.mrb[86].mxu0 }
 0xb4e   :  { %v7535_v48 = vpop.f32.mrb[87].mxu1  ;;  %v7576_v49 = vpop.f32.mrb[87].mxu0  ;;  %v18658_v53 = vld [vmem:[#allocation50_spill] sm:$0xff]  ;;  %v18659_v9 = vld [vmem:[#allocation76_spill] sm:$0xff] }
 0xb4f   :  { %v7590_v6 = vrot.slane %v7582_v19, %v16070_v44  ;;  %v7597_v10 = vrot.slane %v7583_v20, %v16070_v44  ;;  %v18660_v48 = vcombine.low %v18658_v53, %v18659_v9  ;;  %v17269_v53 = vld [vmem:[#allocation16 + $0x60] ss:$16 sps:$4 sm:$0xff]   ;;  %v17271_v9 = vld [vmem:[#allocation16 + $0x68] ss:$16 sps:$4 sm:$0xff]  }
 0xb51   :  { %v7598_v54 = vcombine.low %v7590_v6, %v7597_v10 }
 0xb53   :  { %v7600_v14 = vadd.f32 %v7598_v54, %v18657_v33 }
 0xb55   :  { %v7601_v7 = vsub.f32 0.0, %v7600_v14  ;;  %v7607_v55 = vrot.slane %v7600_v14, 6 }
 0xb57   :  { %v7602_v62 = vmul.f32 1.442695, %v7601_v7 }
 0xb59   :  { %14809 = vpow2.f32 %v7602_v62 }
 0xb63   :  { %v14810_v58 = vpop.eup %14809 }
 0xb64   :  { %v7604_v23 = vadd.f32 1.0, %v14810_v58 }
 0xb66   :  { %14811 = vrcp.f32 %v7604_v23 }
 0xb67   :  { %14813 = vtanh.f32 %v7607_v55 }
 0xb6b   :  { %v7846_v30 = vpop.f32.mrb[88].mxu1  ;;  %v7887_v1 = vpop.f32.mrb[88].mxu0 }
 0xb6c   :  { %v7848_v13 = vpop.f32.mrb[89].mxu1  ;;  %v7889_v52 = vpop.f32.mrb[89].mxu0 }
 0xb6d   :  { %v7898_v17 = vcombine.low %v7846_v30, %v7848_v13  ;;  %v7899_v32 = vcombine.low %v7887_v1, %v7889_v52  ;;  %v7850_v27 = vpop.f32.mrb[90].mxu1  ;;  %v7891_v60 = vpop.f32.mrb[90].mxu0  ;;  %v18667_v13 = vld [vmem:[#allocation133_spill] sm:$0xff]  ;;  %v18668_v52 = vld [vmem:[#allocation134_spill] sm:$0xff] }
 0xb6e   :  { %v7851_v35 = vpop.f32.mrb[91].mxu1  ;;  %v7892_v5 = vpop.f32.mrb[91].mxu0  ;;  %v17221_v60 = vld [vmem:[#allocation16 + $0x4] ss:$16 sps:$4 sm:$0xff]  }
 0xb6f   :  { %v7906_v26 = vrot.slane %v7898_v17, %v16070_v44  ;;  %v7913_v18 = vrot.slane %v7899_v32, %v16070_v44  ;;  %v18669_v17 = vld [vmem:[#allocation135_spill] sm:$0xff] }
 0xb70   :  { %v14812_v34 = vpop.eup %14811  ;;  %v17223_v35 = vld [vmem:[#allocation16 + $0xc] ss:$16 sps:$4 sm:$0xff]  }
 0xb71   :  { %v7914_v50 = vcombine.low %v7906_v26, %v7913_v18  ;;  %v7611_v36 = vrot.slane %v14812_v34, 2  ;;  %v14814_v19 = vpop.eup %14813  ;;  %v7617_v51 = vrot.slane %v14812_v34, 4  ;;  %v17227_v26 = vld [vmem:[#allocation16] ss:$16 sps:$4 sm:$0xff]   ;;  %v17249_v18 = vld [vmem:[#allocation16 + $0x44] ss:$16 sps:$4 sm:$0xff]  }
 0xb72   :  { %v7614_v20 = vmul.f32 %v14814_v19, %v14812_v34  ;;  %v17251_v34 = vld [vmem:[#allocation16 + $0x4c] ss:$16 sps:$4 sm:$0xff]   ;;  %v17263_v19 = vld [vmem:[#allocation16 + $0x64] ss:$16 sps:$4 sm:$0xff]  }
 0xb73   :  { %v7916_v49 = vadd.f32 %v7914_v50, %v18660_v48  ;;  %v7613_v6 = vmul.f32 %v7611_v36, %v16934_v46  ;;  %v17257_v50 = vld [vmem:[#allocation16 + $0x40] ss:$16 sps:$4 sm:$0xff]   ;;  %v17259_v36 = vld [vmem:[#allocation16 + $0x48] ss:$16 sps:$4 sm:$0xff]   ;;  %v17275_v48 = vld [vmem:[#allocation16 + $0x84] ss:$16 sps:$4 sm:$0xff]  }
 0xb75   :  { %v7917_v10 = vsub.f32 0.0, %v7916_v49  ;;  %v17180_v54 = vadd.f32 %v7614_v20, %v7613_v6  ;;  %v7923_v58 = vrot.slane %v7916_v49, 6  ;;  %v17265_v20 = vld [vmem:[#allocation16 + $0x6c] ss:$16 sps:$4 sm:$0xff]   ;;  %v17281_v6 = vld [vmem:[#allocation16 + $0x80] ss:$16 sps:$4 sm:$0xff]  }
 0xb76   :  { %v17277_v49 = vld [vmem:[#allocation16 + $0x8c] ss:$16 sps:$4 sm:$0xff]  }
 0xb77   :  { %v7918_v43 = vmul.f32 1.442695, %v7917_v10  ;;  %14815 = vtanh.f32 %v17180_v54  ;;  %v17283_v10 = vld [vmem:[#allocation16 + $0x88] ss:$16 sps:$4 sm:$0xff]  }
 0xb79   :  { %14817 = vpow2.f32 %v7918_v43  ;;  %v17287_v43 = vld [vmem:[#allocation16 + $0xa4] ss:$16 sps:$4 sm:$0xff]  }
 0xb81   :  { %v14816_v33 = vpop.eup %14815 }
 0xb82   :  { %v7619_v7 = vmul.f32 %v14816_v33, %v7617_v51  ;;  %v17289_v51 = vld [vmem:[#allocation16 + $0xac] ss:$16 sps:$4 sm:$0xff]   ;;  %v17293_v33 = vld [vmem:[#allocation16 + $0xa0] ss:$16 sps:$4 sm:$0xff]  }
 0xb83   :  { %v14818_v14 = vpop.eup %14817 }
 0xb84   :  { %v7920_v62 = vadd.f32 1.0, %v14818_v14  ;;  %v17183_v23 = vpack.c.bf16 %v7619_v7, %v7619_v7  ;;  %v17295_v14 = vld [vmem:[#allocation16 + $0xa8] ss:$16 sps:$4 sm:$0xff]   ;;  %v17299_v7 = vld [vmem:[#allocation16 + $0xc4] ss:$16 sps:$4 sm:$0xff]  }
 0xb86   :  { %14819 = vrcp.f32 %v7920_v62  ;;  %8185 = vmatmul.mubr.bf16.vlgmr.msra.gmra.mrb[92].mxu1 %v17183_v23  ;;  %8226 = vmatmul.mubr.bf16.vlgmr.msra.gmra.mrb[92].mxu0 %v17183_v23  ;;  %v17301_v62 = vld [vmem:[#allocation16 + $0xcc] ss:$16 sps:$4 sm:$0xff]  }
 0xb87   :  { %14821 = vtanh.f32 %v7923_v58  ;;  %8451 = vmatpush1.bf16.msra.mxu1 %v16937_v59  ;;  %8492 = vmatpush1.bf16.msra.mxu0 %v16939_v4  ;;  %v18661_v59 = vld [vmem:[#allocation51_spill] sm:$0xff]  ;;  %v18662_v4 = vld [vmem:[#allocation56_spill] sm:$0xff] }
 0xb88   :  { %8452 = vmatprep.subr.bf16.mxu1 %v16943_v24  ;;  %8493 = vmatprep.subr.bf16.mxu0 %v16945_v31  ;;  %v18663_v24 = vld [vmem:[#allocation129_spill] sm:$0xff]  ;;  %v18664_v31 = vld [vmem:[#allocation130_spill] sm:$0xff] }
 0xb89   :  { %8482 = vmatprep.mubr.bf16.mxu1 %v18407_v25  ;;  %8523 = vmatprep.mubr.bf16.mxu0 %v18407_v25  ;;  %v17305_v58 = vld [vmem:[#allocation16 + $0xc0] ss:$16 sps:$4 sm:$0xff]  }
 0xb8b   :  { %8453 = vmatpush1.bf16.msra.mxu1 %v16951_v28  ;;  %8494 = vmatpush1.bf16.msra.mxu0 %v16953_v12  ;;  %v18665_v12 = vld [vmem:[#allocation131_spill] sm:$0xff] }
 0xb8c   :  { %8454 = vmatprep.subr.bf16.mxu1 %v16957_v3  ;;  %8495 = vmatprep.subr.bf16.mxu0 %v16959_v40  ;;  %v18666_v40 = vld [vmem:[#allocation132_spill] sm:$0xff] }
 0xb8f   :  { %8455 = vmatpush1.bf16.msra.mxu1 %v18661_v59  ;;  %8496 = vmatpush1.bf16.msra.mxu0 %v18662_v4  ;;  %v17311_v59 = vld [vmem:[#allocation16 + $0xe4] ss:$16 sps:$4 sm:$0xff]   ;;  %v17313_v4 = vld [vmem:[#allocation16 + $0xec] ss:$16 sps:$4 sm:$0xff]  }
 0xb90   :  { %v14820_v46 = vpop.eup %14819  ;;  %8456 = vmatprep.subr.bf16.mxu1 %v18663_v24  ;;  %8497 = vmatprep.subr.bf16.mxu0 %v18664_v31  ;;  %v17317_v24 = vld [vmem:[#allocation16 + $0xe0] ss:$16 sps:$4 sm:$0xff]   ;;  %v17319_v31 = vld [vmem:[#allocation16 + $0xe8] ss:$16 sps:$4 sm:$0xff]  }
 0xb91   :  { %v7927_v55 = vrot.slane %v14820_v46, 2  ;;  %v14822_v30 = vpop.eup %14821  ;;  %v7933_v32 = vrot.slane %v14820_v46, 4 }
 0xb92   :  { %v7930_v1 = vmul.f32 %v14822_v30, %v14820_v46  ;;  %v17307_v46 = vld [vmem:[#allocation16 + $0xc8] ss:$16 sps:$4 sm:$0xff]   ;;  %v17325_v30 = vld [vmem:[#allocation17 + $0xc] ss:$16 sps:$4 sm:$0xff]  }
 0xb93   :  { %v7929_v28 = vmul.f32 %v7927_v55, %v17000_v56  ;;  %8457 = vmatpush1.bf16.msra.mxu1 %v16977_v61  ;;  %8498 = vmatpush1.bf16.msra.mxu0 %v16979_v15  ;;  %v18670_v56 = vld [vmem:[#allocation136_spill] sm:$0xff]  ;;  %v18671_v61 = vld [vmem:[#allocation137_spill] sm:$0xff]  ;;  %v18672_v15 = vld [vmem:[#allocation138_spill] sm:$0xff] }
 0xb94   :  { %8458 = vmatprep.subr.bf16.mxu1 %v16983_v22  ;;  %8499 = vmatprep.subr.bf16.mxu0 %v18665_v12  ;;  %v18673_v22 = vld [vmem:[#allocation139_spill] sm:$0xff] }
 0xb95   :  { %v17206_v3 = vadd.f32 %v7930_v1, %v7929_v28  ;;  %v17323_v55 = vld [vmem:[#allocation17 + $0x4] ss:$16 sps:$4 sm:$0xff]   ;;  %v17329_v1 = vld [vmem:[#allocation17] ss:$16 sps:$4 sm:$0xff]   ;;  %v17331_v28 = vld [vmem:[#allocation17 + $0x8] ss:$16 sps:$4 sm:$0xff]  }
 0xb96   :  { %v17335_v12 = vld [vmem:[#allocation17 + $0x24] ss:$16 sps:$4 sm:$0xff]  }
 0xb97   :  { %14823 = vtanh.f32 %v17206_v3  ;;  %8459 = vmatpush1.bf16.msra.mxu1 %v18666_v40  ;;  %8500 = vmatpush1.bf16.msra.mxu0 %v18667_v13  ;;  %18674 = vst [vmem:[#allocation68_spill] sm:$0xff] %v17335_v12  ;;  %v17337_v40 = vld [vmem:[#allocation17 + $0x2c] ss:$16 sps:$4 sm:$0xff]   ;;  %v17343_v13 = vld [vmem:[#allocation17 + $0x20] ss:$16 sps:$4 sm:$0xff]  }
 0xb98   :  { %8460 = vmatprep.subr.bf16.mxu1 %v18668_v52  ;;  %8501 = vmatprep.subr.bf16.mxu0 %v18669_v17  ;;  %18675 = vst [vmem:[#allocation69_spill] sm:$0xff] %v17337_v40  ;;  %18676 = vst [vmem:[#allocation70_spill] sm:$0xff] %v17343_v13  ;;  %v17345_v52 = vld [vmem:[#allocation17 + $0x28] ss:$16 sps:$4 sm:$0xff]   ;;  %v17349_v17 = vld [vmem:[#allocation17 + $0x44] ss:$16 sps:$4 sm:$0xff]  }
 0xb99   :  { %18677 = vst [vmem:[#allocation71_spill] sm:$0xff] %v17345_v52  ;;  %18678 = vst [vmem:[#allocation53_spill] sm:$0xff] %v17349_v17 }
 0xb9b   :  { %8461 = vmatpush1.bf16.msra.mxu1 %v18670_v56  ;;  %8502 = vmatpush1.bf16.msra.mxu0 %v18671_v61  ;;  %v17351_v56 = vld [vmem:[#allocation17 + $0x4c] ss:$16 sps:$4 sm:$0xff]   ;;  %v17359_v61 = vld [vmem:[#allocation17 + $0x48] ss:$16 sps:$4 sm:$0xff]  }
 0xb9c   :  { %8462 = vmatprep.subr.bf16.mxu1 %v18672_v15  ;;  %8503 = vmatprep.subr.bf16.mxu0 %v18673_v22  ;;  %18679 = vst [vmem:[#allocation73_spill] sm:$0xff] %v17351_v56  ;;  %18681 = vst [vmem:[#allocation55_spill] sm:$0xff] %v17359_v61  ;;  %v17363_v15 = vld [vmem:[#allocation17 + $0x64] ss:$16 sps:$4 sm:$0xff]   ;;  %v17365_v22 = vld [vmem:[#allocation17 + $0x6c] ss:$16 sps:$4 sm:$0xff]  }
 0xb9d   :  { %18682 = vst [vmem:[#allocation54_spill] sm:$0xff] %v17363_v15  ;;  %18683 = vst [vmem:[#allocation75_spill] sm:$0xff] %v17365_v22 }
 0xb9f   :  { %8463 = vmatpush1.bf16.msra.mxu1 %v17017_v39  ;;  %8504 = vmatpush1.bf16.msra.mxu0 %v17019_v41  ;;  %v17229_v39 = vld [vmem:[#allocation16 + $0x8] ss:$16 sps:$4 sm:$0xff]  }
 0xba0   :  { %8464 = vmatprep.subr.bf16.mxu1 %v17023_v47  ;;  %8505 = vmatprep.subr.bf16.mxu0 %v17025_v21  ;;  %v17235_v47 = vld [vmem:[#allocation16 + $0x24] ss:$16 sps:$4 sm:$0xff]   ;;  %v17237_v21 = vld [vmem:[#allocation16 + $0x2c] ss:$16 sps:$4 sm:$0xff]  }
 0xba1   :  { %v14824_v27 = vpop.eup %14823 }
 0xba2   :  { %v7935_v5 = vmul.f32 %v14824_v27, %v7933_v32  ;;  %v17369_v32 = vld [vmem:[#allocation17 + $0x60] ss:$16 sps:$4 sm:$0xff]   ;;  %v17371_v27 = vld [vmem:[#allocation17 + $0x68] ss:$16 sps:$4 sm:$0xff]  }
 0xba3   :  { %8465 = vmatpush1.bf16.msra.mxu1 %v17029_v8  ;;  %8506 = vmatpush1.bf16.msra.mxu0 %v17031_v2  ;;  %v17243_v8 = vld [vmem:[#allocation16 + $0x20] ss:$16 sps:$4 sm:$0xff]   ;;  %v17245_v2 = vld [vmem:[#allocation16 + $0x28] ss:$16 sps:$4 sm:$0xff]   ;;  %18684 = vst [vmem:[#allocation80_spill] sm:$0xff] %v17369_v32  ;;  %18685 = vst [vmem:[#allocation81_spill] sm:$0xff] %v17371_v27 }
 0xba4   :  { %v17231_v41 = vpack.c.bf16 %v7935_v5, %v7935_v5  ;;  %8749 = vmatprep.subr.bf16.mxu1 %v17221_v60  ;;  %8790 = vmatprep.subr.bf16.mxu0 %v17223_v35  ;;  %v17375_v5 = vld [vmem:[#allocation17 + $0x84] ss:$16 sps:$4 sm:$0xff]  }
 0xba5   :  { %18686 = vst [vmem:[#allocation82_spill] sm:$0xff] %v17375_v5 }
 0xba6   :  { %8483 = vmatmul.mubr.bf16.vlgmr.msra.gmra.mrb[96].mxu1 %v17231_v41  ;;  %8524 = vmatmul.mubr.bf16.vlgmr.msra.gmra.mrb[96].mxu0 %v17231_v41 }
 0xba7   :  { %8750 = vmatpush1.bf16.msra.mxu1 %v17227_v26  ;;  %8791 = vmatpush1.bf16.msra.mxu0 %v17229_v39 }
 0xba8   :  { %8751 = vmatprep.subr.bf16.mxu1 %v17235_v47  ;;  %8792 = vmatprep.subr.bf16.mxu0 %v17237_v21 }
 0xba9   :  { %8781 = vmatprep.mubr.bf16.mxu1 %v18407_v25  ;;  %8822 = vmatprep.mubr.bf16.mxu0 %v18407_v25 }
 0xbab   :  { %8752 = vmatpush1.bf16.msra.mxu1 %v17243_v8  ;;  %8793 = vmatpush1.bf16.msra.mxu0 %v17245_v2 }
 0xbac   :  { %8753 = vmatprep.subr.bf16.mxu1 %v17249_v18  ;;  %8794 = vmatprep.subr.bf16.mxu0 %v17251_v34 }
 0xbaf   :  { %8754 = vmatpush1.bf16.msra.mxu1 %v17257_v50  ;;  %8795 = vmatpush1.bf16.msra.mxu0 %v17259_v36 }
 0xbb0   :  { %8755 = vmatprep.subr.bf16.mxu1 %v17263_v19  ;;  %8796 = vmatprep.subr.bf16.mxu0 %v17265_v20 }
 0xbb3   :  { %8756 = vmatpush1.bf16.msra.mxu1 %v17269_v53  ;;  %8797 = vmatpush1.bf16.msra.mxu0 %v17271_v9 }
 0xbb4   :  { %8757 = vmatprep.subr.bf16.mxu1 %v17275_v48  ;;  %8798 = vmatprep.subr.bf16.mxu0 %v17277_v49 }
 0xbb7   :  { %8758 = vmatpush1.bf16.msra.mxu1 %v17281_v6  ;;  %8799 = vmatpush1.bf16.msra.mxu0 %v17283_v10 }
 0xbb8   :  { %8759 = vmatprep.subr.bf16.mxu1 %v17287_v43  ;;  %8800 = vmatprep.subr.bf16.mxu0 %v17289_v51 }
 0xbbb   :  { %8760 = vmatpush1.bf16.msra.mxu1 %v17293_v33  ;;  %8801 = vmatpush1.bf16.msra.mxu0 %v17295_v14 }
 0xbbc   :  { %8761 = vmatprep.subr.bf16.mxu1 %v17299_v7  ;;  %8802 = vmatprep.subr.bf16.mxu0 %v17301_v62 }
 0xbbf   :  { %8762 = vmatpush1.bf16.msra.mxu1 %v17305_v58  ;;  %8803 = vmatpush1.bf16.msra.mxu0 %v17307_v46 }
 0xbc0   :  { %8763 = vmatprep.subr.bf16.mxu1 %v17311_v59  ;;  %8804 = vmatprep.subr.bf16.mxu0 %v17313_v4 }
 0xbc3   :  { %8764 = vmatpush1.bf16.msra.mxu1 %v17317_v24  ;;  %8805 = vmatpush1.bf16.msra.mxu0 %v17319_v31 }
 0xbc4   :  { %9066 = vmatprep.subr.bf16.mxu1 %v17323_v55  ;;  %9107 = vmatprep.subr.bf16.mxu0 %v17325_v30 }
 0xbc6   :  { %8782 = vmatmul.mubr.bf16.vlgmr.msra.gmra.mrb[100].mxu1 %v17183_v23  ;;  %8823 = vmatmul.mubr.bf16.vlgmr.msra.gmra.mrb[100].mxu0 %v17183_v23  ;;  %v17357_v23 = vld [vmem:[#allocation17 + $0x40] ss:$16 sps:$4 sm:$0xff]  }
 0xbc7   :  { %9067 = vmatpush1.bf16.msra.mxu1 %v17329_v1  ;;  %9108 = vmatpush1.bf16.msra.mxu0 %v17331_v28  ;;  %18680 = vst [vmem:[#allocation52_spill] sm:$0xff] %v17357_v23 }
 0xbc8   :  { %9068 = vmatprep.subr.bf16.mxu1 %v17335_v12  ;;  %9109 = vmatprep.subr.bf16.mxu0 %v17337_v40 }
 0xbc9   :  { %9098 = vmatprep.mubr.bf16.mxu1 %v18407_v25  ;;  %9139 = vmatprep.mubr.bf16.mxu0 %v18407_v25 }
 0xbcb   :  { %9069 = vmatpush1.bf16.msra.mxu1 %v17343_v13  ;;  %9110 = vmatpush1.bf16.msra.mxu0 %v17345_v52 }
 0xbcc   :  { %9070 = vmatprep.subr.bf16.mxu1 %v17349_v17  ;;  %9111 = vmatprep.subr.bf16.mxu0 %v17351_v56 }
 0xbcf   :  { %9071 = vmatpush1.bf16.msra.mxu1 %v17357_v23  ;;  %9112 = vmatpush1.bf16.msra.mxu0 %v17359_v61 }
 0xbd0   :  { %9072 = vmatprep.subr.bf16.mxu1 %v17363_v15  ;;  %9113 = vmatprep.subr.bf16.mxu0 %v17365_v22 }
 0xbd3   :  { %9073 = vmatpush1.bf16.msra.mxu1 %v17369_v32  ;;  %9114 = vmatpush1.bf16.msra.mxu0 %v17371_v27  ;;  %v17395_v32 = vld [vmem:[#allocation17 + $0xa8] ss:$16 sps:$4 sm:$0xff]   ;;  %v17399_v27 = vld [vmem:[#allocation17 + $0xc4] ss:$16 sps:$4 sm:$0xff]  }
 0xbd4   :  { %9074 = vmatprep.subr.bf16.mxu1 %v17375_v5  ;;  %9115 = vmatprep.subr.bf16.mxu0 %v17377_v38  ;;  %18693 = vst [vmem:[#allocation89_spill] sm:$0xff] %v17395_v32  ;;  %18694 = vst [vmem:[#allocation90_spill] sm:$0xff] %v17399_v27  ;;  %v17401_v5 = vld [vmem:[#allocation17 + $0xcc] ss:$16 sps:$4 sm:$0xff]   ;;  %v17405_v38 = vld [vmem:[#allocation17 + $0xc0] ss:$16 sps:$4 sm:$0xff]  }
 0xbd5   :  { %18695 = vst [vmem:[#allocation91_spill] sm:$0xff] %v17401_v5  ;;  %18696 = vst [vmem:[#allocation92_spill] sm:$0xff] %v17405_v38 }
 0xbd7   :  { %9075 = vmatpush1.bf16.msra.mxu1 %v17381_v16  ;;  %9116 = vmatpush1.bf16.msra.mxu0 %v17383_v42  ;;  %v17407_v16 = vld [vmem:[#allocation17 + $0xc8] ss:$16 sps:$4 sm:$0xff]   ;;  %v17411_v42 = vld [vmem:[#allocation17 + $0xe4] ss:$16 sps:$4 sm:$0xff]  }
 0xbd8   :  { %9076 = vmatprep.subr.bf16.mxu1 %v17387_v63  ;;  %9117 = vmatprep.subr.bf16.mxu0 %v17389_v11  ;;  %18697 = vst [vmem:[#allocation93_spill] sm:$0xff] %v17407_v16  ;;  %18698 = vst [vmem:[#allocation94_spill] sm:$0xff] %v17411_v42  ;;  %v17413_v63 = vld [vmem:[#allocation17 + $0xec] ss:$16 sps:$4 sm:$0xff]   ;;  %v17417_v11 = vld [vmem:[#allocation17 + $0xe0] ss:$16 sps:$4 sm:$0xff]  }
 0xbd9   :  { %18699 = vst [vmem:[#allocation95_spill] sm:$0xff] %v17413_v63  ;;  %18700 = vst [vmem:[#allocation96_spill] sm:$0xff] %v17417_v11 }
 0xbdb   :  { %9077 = vmatpush1.bf16.msra.mxu1 %v17393_v0  ;;  %9118 = vmatpush1.bf16.msra.mxu0 %v17395_v32  ;;  %v17419_v0 = vld [vmem:[#allocation17 + $0xe8] ss:$16 sps:$4 sm:$0xff]  }
 0xbdc   :  { %9078 = vmatprep.subr.bf16.mxu1 %v17399_v27  ;;  %9119 = vmatprep.subr.bf16.mxu0 %v17401_v5  ;;  %18701 = vst [vmem:[#allocation97_spill] sm:$0xff] %v17419_v0  ;;  %v17433_v5 = vld [vmem:[#allocation19] ss:$16 sps:$4 sm:$0xff]  }
 0xbdd   :  { %18704 = vst [vmem:[#allocation100_spill] sm:$0xff] %v17433_v5 }
 0xbdf   :  { %9079 = vmatpush1.bf16.msra.mxu1 %v17405_v38  ;;  %9120 = vmatpush1.bf16.msra.mxu0 %v17407_v16  ;;  %v17429_v16 = vld [vmem:[#allocation19 + $0x4] ss:$16 sps:$4 sm:$0xff]   ;;  %v17431_v38 = vld [vmem:[#allocation19 + $0xc] ss:$16 sps:$4 sm:$0xff]  }
 0xbe0   :  { %9080 = vmatprep.subr.bf16.mxu1 %v17411_v42  ;;  %9121 = vmatprep.subr.bf16.mxu0 %v17413_v63  ;;  %18702 = vst [vmem:[#allocation98_spill] sm:$0xff] %v17429_v16  ;;  %18703 = vst [vmem:[#allocation99_spill] sm:$0xff] %v17431_v38  ;;  %v17435_v42 = vld [vmem:[#allocation19 + $0x8] ss:$16 sps:$4 sm:$0xff]  }
 0xbe1   :  { %18705 = vst [vmem:[#allocation101_spill] sm:$0xff] %v17435_v42  ;;  %v17447_v63 = vld [vmem:[#allocation19 + $0x28] ss:$16 sps:$4 sm:$0xff]  }
 0xbe2   :  { %18709 = vst [vmem:[#allocation105_spill] sm:$0xff] %v17447_v63 }
 0xbe3   :  { %9081 = vmatpush1.bf16.msra.mxu1 %v17417_v11  ;;  %9122 = vmatpush1.bf16.msra.mxu0 %v17419_v0  ;;  %v17443_v0 = vld [vmem:[#allocation19 + $0x2c] ss:$16 sps:$4 sm:$0xff]   ;;  %v17445_v11 = vld [vmem:[#allocation19 + $0x20] ss:$16 sps:$4 sm:$0xff]  }
 0xbe4   :  { %9406 = vmatprep.subr.bf16.mxu1 %v17429_v16  ;;  %9447 = vmatprep.subr.bf16.mxu0 %v17431_v38  ;;  %18707 = vst [vmem:[#allocation103_spill] sm:$0xff] %v17443_v0  ;;  %18708 = vst [vmem:[#allocation104_spill] sm:$0xff] %v17445_v11  ;;  %v17453_v38 = vld [vmem:[#allocation19 + $0x44] ss:$16 sps:$4 sm:$0xff]   ;;  %v17459_v16 = vld [vmem:[#allocation19 + $0x48] ss:$16 sps:$4 sm:$0xff]  }
 0xbe5   :  { %18710 = vst [vmem:[#allocation106_spill] sm:$0xff] %v17453_v38  ;;  %18713 = vst [vmem:[#allocation109_spill] sm:$0xff] %v17459_v16 }
 0xbe6   :  { %9099 = vmatmul.mubr.bf16.vlgmr.msra.gmra.mrb[104].mxu1 %v17231_v41  ;;  %9140 = vmatmul.mubr.bf16.vlgmr.msra.gmra.mrb[104].mxu0 %v17231_v41  ;;  %v17441_v41 = vld [vmem:[#allocation19 + $0x24] ss:$16 sps:$4 sm:$0xff]  }
 0xbe7   :  { %9438 = vmatprep.mubr.bf16.mxu1 %v18407_v25  ;;  %9479 = vmatprep.mubr.bf16.mxu0 %v18407_v25  ;;  %18706 = vst [vmem:[#allocation102_spill] sm:$0xff] %v17441_v41 }
 0xbe8   :  { %9407 = vmatpush1.bf16.msra.mxu1 %v17433_v5  ;;  %9448 = vmatpush1.bf16.msra.mxu0 %v17435_v42  ;;  %v17455_v5 = vld [vmem:[#allocation19 + $0x4c] ss:$16 sps:$4 sm:$0xff]   ;;  %v17457_v42 = vld [vmem:[#allocation19 + $0x40] ss:$16 sps:$4 sm:$0xff]  }
 0xbe9   :  { %9408 = vmatprep.subr.bf16.mxu1 %v17441_v41  ;;  %9449 = vmatprep.subr.bf16.mxu0 %v17443_v0  ;;  %18711 = vst [vmem:[#allocation107_spill] sm:$0xff] %v17455_v5  ;;  %18712 = vst [vmem:[#allocation108_spill] sm:$0xff] %v17457_v42  ;;  %v17465_v0 = vld [vmem:[#allocation19 + $0x64] ss:$16 sps:$4 sm:$0xff]   ;;  %v17471_v41 = vld [vmem:[#allocation19 + $0x68] ss:$16 sps:$4 sm:$0xff]  }
 0xbea   :  { %18714 = vst [vmem:[#allocation110_spill] sm:$0xff] %v17465_v0  ;;  %18717 = vst [vmem:[#allocation113_spill] sm:$0xff] %v17471_v41 }
 0xbec   :  { %9409 = vmatpush1.bf16.msra.mxu1 %v17445_v11  ;;  %9450 = vmatpush1.bf16.msra.mxu0 %v17447_v63  ;;  %v17467_v11 = vld [vmem:[#allocation19 + $0x6c] ss:$16 sps:$4 sm:$0xff]   ;;  %v17469_v63 = vld [vmem:[#allocation19 + $0x60] ss:$16 sps:$4 sm:$0xff]  }
 0xbed   :  { %9410 = vmatprep.subr.bf16.mxu1 %v17453_v38  ;;  %9451 = vmatprep.subr.bf16.mxu0 %v17455_v5  ;;  %18715 = vst [vmem:[#allocation111_spill] sm:$0xff] %v17467_v11  ;;  %18716 = vst [vmem:[#allocation112_spill] sm:$0xff] %v17469_v63  ;;  %v17477_v5 = vld [vmem:[#allocation19 + $0x84] ss:$16 sps:$4 sm:$0xff]   ;;  %v17483_v38 = vld [vmem:[#allocation19 + $0x88] ss:$16 sps:$4 sm:$0xff]  }
 0xbee   :  { %18718 = vst [vmem:[#allocation114_spill] sm:$0xff] %v17477_v5  ;;  %18721 = vst [vmem:[#allocation117_spill] sm:$0xff] %v17483_v38 }
 0xbf0   :  { %9411 = vmatpush1.bf16.msra.mxu1 %v17457_v42  ;;  %9452 = vmatpush1.bf16.msra.mxu0 %v17459_v16  ;;  %v17479_v42 = vld [vmem:[#allocation19 + $0x8c] ss:$16 sps:$4 sm:$0xff]   ;;  %v17481_v16 = vld [vmem:[#allocation19 + $0x80] ss:$16 sps:$4 sm:$0xff]  }
 0xbf1   :  { %9412 = vmatprep.subr.bf16.mxu1 %v17465_v0  ;;  %9453 = vmatprep.subr.bf16.mxu0 %v17467_v11  ;;  %18719 = vst [vmem:[#allocation115_spill] sm:$0xff] %v17479_v42  ;;  %18720 = vst [vmem:[#allocation116_spill] sm:$0xff] %v17481_v16  ;;  %v17489_v11 = vld [vmem:[#allocation19 + $0xa4] ss:$16 sps:$4 sm:$0xff]   ;;  %v17495_v0 = vld [vmem:[#allocation19 + $0xa8] ss:$16 sps:$4 sm:$0xff]  }
 0xbf2   :  { %18722 = vst [vmem:[#allocation118_spill] sm:$0xff] %v17489_v11  ;;  %18725 = vst [vmem:[#allocation121_spill] sm:$0xff] %v17495_v0 }
 0xbf4   :  { %9413 = vmatpush1.bf16.msra.mxu1 %v17469_v63  ;;  %9454 = vmatpush1.bf16.msra.mxu0 %v17471_v41  ;;  %v17491_v63 = vld [vmem:[#allocation19 + $0xac] ss:$16 sps:$4 sm:$0xff]   ;;  %v17493_v41 = vld [vmem:[#allocation19 + $0xa0] ss:$16 sps:$4 sm:$0xff]  }
 0xbf5   :  { %9414 = vmatprep.subr.bf16.mxu1 %v17477_v5  ;;  %9455 = vmatprep.subr.bf16.mxu0 %v17479_v42  ;;  %18723 = vst [vmem:[#allocation119_spill] sm:$0xff] %v17491_v63  ;;  %18724 = vst [vmem:[#allocation120_spill] sm:$0xff] %v17493_v41  ;;  %v17501_v42 = vld [vmem:[#allocation19 + $0xc4] ss:$16 sps:$4 sm:$0xff]   ;;  %v17507_v5 = vld [vmem:[#allocation19 + $0xc8] ss:$16 sps:$4 sm:$0xff]  }
 0xbf6   :  { %18726 = vst [vmem:[#allocation122_spill] sm:$0xff] %v17501_v42  ;;  %18729 = vst [vmem:[#allocation125_spill] sm:$0xff] %v17507_v5 }
 0xbf8   :  { %9415 = vmatpush1.bf16.msra.mxu1 %v17481_v16  ;;  %9456 = vmatpush1.bf16.msra.mxu0 %v17483_v38  ;;  %v17503_v16 = vld [vmem:[#allocation19 + $0xcc] ss:$16 sps:$4 sm:$0xff]   ;;  %v17505_v38 = vld [vmem:[#allocation19 + $0xc0] ss:$16 sps:$4 sm:$0xff]  }
 0xbf9   :  { %9416 = vmatprep.subr.bf16.mxu1 %v17489_v11  ;;  %9457 = vmatprep.subr.bf16.mxu0 %v17491_v63  ;;  %18727 = vst [vmem:[#allocation123_spill] sm:$0xff] %v17503_v16  ;;  %18728 = vst [vmem:[#allocation124_spill] sm:$0xff] %v17505_v38  ;;  %v17513_v63 = vld [vmem:[#allocation19 + $0xe4] ss:$16 sps:$4 sm:$0xff]   ;;  %v17519_v11 = vld [vmem:[#allocation19 + $0xe8] ss:$16 sps:$4 sm:$0xff]  }
 0xbfa   :  { %18730 = vst [vmem:[#allocation126_spill] sm:$0xff] %v17513_v63  ;;  %18733 = vst [vmem:[#allocation50_spill] sm:$0xff] %v17519_v11 }
 0xbfc   :  { %9417 = vmatpush1.bf16.msra.mxu1 %v17493_v41  ;;  %9458 = vmatpush1.bf16.msra.mxu0 %v17495_v0  ;;  %v17515_v41 = vld [vmem:[#allocation19 + $0xec] ss:$16 sps:$4 sm:$0xff]   ;;  %v17517_v0 = vld [vmem:[#allocation19 + $0xe0] ss:$16 sps:$4 sm:$0xff]  }
 0xbfd   :  { %9418 = vmatprep.subr.bf16.mxu1 %v17501_v42  ;;  %9459 = vmatprep.subr.bf16.mxu0 %v17503_v16  ;;  %18731 = vst [vmem:[#allocation49_spill] sm:$0xff] %v17515_v41  ;;  %18732 = vst [vmem:[#allocation48_spill] sm:$0xff] %v17517_v0  ;;  %v17525_v16 = vld [vmem:[#allocation19 + $0x104] ss:$16 sps:$4 sm:$0xff]  }
 0xbfe   :  { %18734 = vst [vmem:[#allocation76_spill] sm:$0xff] %v17525_v16 }
 0xc00   :  { %9419 = vmatpush1.bf16.msra.mxu1 %v17505_v38  ;;  %9460 = vmatpush1.bf16.msra.mxu0 %v17507_v5  ;;  %v17527_v38 = vld [vmem:[#allocation19 + $0x10c] ss:$16 sps:$4 sm:$0xff]   ;;  %v7970_v5 = vld [vmem:[#allocation22] sm:$0xf] }
 0xc01   :  { %9420 = vmatprep.subr.bf16.mxu1 %v17513_v63  ;;  %9461 = vmatprep.subr.bf16.mxu0 %v17515_v41  ;;  %18735 = vst [vmem:[#allocation51_spill] sm:$0xff] %v17527_v38  ;;  %v7975_v42 = vrot.slane %v7970_v5, %v18647_v57  ;;  %v7983_v27 = vrot.slane %v7970_v5, %v18648_v45 }
 0xc02   :  { %v7979_v63 = vrot.slane %v7970_v5, %v18649_v29  ;;  %v7987_v41 = vrot.slane %v7970_v5, %v18650_v37 }
 0xc04   :  { %9421 = vmatpush1.bf16.msra.mxu1 %v17517_v0  ;;  %9462 = vmatpush1.bf16.msra.mxu0 %v17519_v11 }
 0xc05   :  { %9704 = vmatprep.subr.bf16.mxu1 %v17525_v16  ;;  %9745 = vmatprep.subr.bf16.mxu0 %v17527_v38 }
 0xc59   :  { %v8186_v0 = vpop.f32.mrb[92].mxu1  ;;  %v8227_v32 = vpop.f32.mrb[92].mxu0 }
 0xc5a   :  { %v8187_v11 = vadd.f32 %v8186_v0, %v7975_v42  ;;  %v8228_v22 = vadd.f32 %v8227_v32, %v7983_v27  ;;  %v8188_v15 = vpop.f32.mrb[93].mxu1  ;;  %v8229_v61 = vpop.f32.mrb[93].mxu0 }
 0xc5b   :  { %v8189_v23 = vadd.f32 %v8188_v15, %v7979_v63  ;;  %v8230_v56 = vadd.f32 %v8229_v61, %v7987_v41  ;;  %v8190_v17 = vpop.f32.mrb[94].mxu1  ;;  %v8231_v16 = vpop.f32.mrb[94].mxu0 }
 0xc5c   :  { %v8191_v52 = vpop.f32.mrb[95].mxu1  ;;  %v8232_v38 = vpop.f32.mrb[95].mxu0 }
 0xc5d   :  { %v8238_v13 = vcombine.low %v8187_v11, %v8189_v23  ;;  %v8239_v57 = vcombine.low %v8228_v22, %v8230_v56 }
 0xc5f   :  { %v8246_v45 = vrot.slane %v8238_v13, %v16070_v44  ;;  %v8253_v29 = vrot.slane %v8239_v57, %v16070_v44 }
 0xc61   :  { %v8254_v40 = vcombine.low %v8246_v45, %v8253_v29 }
 0xc79   :  { %v8484_v5 = vpop.f32.mrb[96].mxu1  ;;  %v8525_v37 = vpop.f32.mrb[96].mxu0 }
 0xc7a   :  { %v8486_v12 = vpop.f32.mrb[97].mxu1  ;;  %v8527_v42 = vpop.f32.mrb[97].mxu0 }
 0xc7b   :  { %v8536_v0 = vcombine.low %v8484_v5, %v8486_v12  ;;  %v8537_v32 = vcombine.low %v8525_v37, %v8527_v42  ;;  %v8488_v27 = vpop.f32.mrb[98].mxu1  ;;  %v8529_v63 = vpop.f32.mrb[98].mxu0 }
 0xc7c   :  { %v8489_v61 = vpop.f32.mrb[99].mxu1  ;;  %v8530_v17 = vpop.f32.mrb[99].mxu0 }
 0xc7d   :  { %v8544_v16 = vrot.slane %v8536_v0, %v16070_v44  ;;  %v8551_v38 = vrot.slane %v8537_v32, %v16070_v44  ;;  %v18737_v0 = vld [vmem:[#allocation77_spill] sm:$0xff]  ;;  %v18738_v32 = vld [vmem:[#allocation59_spill] sm:$0xff] }
 0xc7e   :  { %v18739_v27 = vcombine.low %v18737_v0, %v18738_v32 }
 0xc7f   :  { %v8552_v11 = vcombine.low %v8544_v16, %v8551_v38 }
 0xc81   :  { %v17539_v52 = vadd.f32 %v8552_v11, %v8254_v40 }
 0xc83   :  { %18736 = vst [vmem:[#allocation56_spill] sm:$0xff] %v17539_v52  ;;  %v17610_v52 = vld [vmem:[#allocation19 + $0x188] ss:$16 sps:$4 sm:$0xff]  }
 0xc84   :  { %18748 = vst [vmem:[#allocation134_spill] sm:$0xff] %v17610_v52 }
 0xc99   :  { %v8783_v13 = vpop.f32.mrb[100].mxu1  ;;  %v8824_v57 = vpop.f32.mrb[100].mxu0 }
 0xc9a   :  { %v8785_v45 = vpop.f32.mrb[101].mxu1  ;;  %v8826_v29 = vpop.f32.mrb[101].mxu0 }
 0xc9b   :  { %v8835_v56 = vcombine.low %v8783_v13, %v8785_v45  ;;  %v8836_v23 = vcombine.low %v8824_v57, %v8826_v29  ;;  %v8787_v15 = vpop.f32.mrb[102].mxu1  ;;  %v8828_v12 = vpop.f32.mrb[102].mxu0 }
 0xc9c   :  { %v8788_v37 = vpop.f32.mrb[103].mxu1  ;;  %v8829_v22 = vpop.f32.mrb[103].mxu0 }
 0xc9d   :  { %v8843_v41 = vrot.slane %v8835_v56, %v16070_v44  ;;  %v8850_v5 = vrot.slane %v8836_v23, %v16070_v44 }
 0xc9f   :  { %v8851_v42 = vcombine.low %v8843_v41, %v8850_v5 }
 0xca1   :  { %v8853_v40 = vadd.f32 %v8851_v42, %v18739_v27 }
 0xca3   :  { %v8854_v63 = vsub.f32 0.0, %v8853_v40  ;;  %v8860_v38 = vrot.slane %v8853_v40, 6  ;;  %v18740_v40 = vld [vmem:[#allocation57_spill] sm:$0xff] }
 0xca5   :  { %v8855_v61 = vmul.f32 1.442695, %v8854_v63  ;;  %v18741_v63 = vld [vmem:[#allocation58_spill] sm:$0xff] }
 0xca7   :  { %14825 = vpow2.f32 %v8855_v61  ;;  %v18742_v61 = vcombine.low %v18740_v40, %v18741_v63  ;;  %v17585_v40 = vld [vmem:[#allocation19 + $0x148] ss:$16 sps:$4 sm:$0xff]   ;;  %v17589_v63 = vld [vmem:[#allocation19 + $0x164] ss:$16 sps:$4 sm:$0xff]  }
 0xca8   :  { %18743 = vst [vmem:[#allocation129_spill] sm:$0xff] %v17585_v40  ;;  %18744 = vst [vmem:[#allocation130_spill] sm:$0xff] %v17589_v63 }
 0xcb1   :  { %v14826_v17 = vpop.eup %14825 }
 0xcb2   :  { %v8857_v16 = vadd.f32 1.0, %v14826_v17 }
 0xcb4   :  { %14827 = vrcp.f32 %v8857_v16 }
 0xcb5   :  { %14829 = vtanh.f32 %v8860_v38 }
 0xcb9   :  { %v9100_v11 = vpop.f32.mrb[104].mxu1  ;;  %v9141_v13 = vpop.f32.mrb[104].mxu0 }
 0xcba   :  { %v9102_v57 = vpop.f32.mrb[105].mxu1  ;;  %v9143_v45 = vpop.f32.mrb[105].mxu0 }
 0xcbb   :  { %v9152_v29 = vcombine.low %v9100_v11, %v9102_v57  ;;  %v9153_v56 = vcombine.low %v9141_v13, %v9143_v45  ;;  %v9104_v23 = vpop.f32.mrb[106].mxu1  ;;  %v9145_v15 = vpop.f32.mrb[106].mxu0 }
 0xcbc   :  { %v9105_v12 = vpop.f32.mrb[107].mxu1  ;;  %v9146_v37 = vpop.f32.mrb[107].mxu0 }
 0xcbd   :  { %v9160_v22 = vrot.slane %v9152_v29, %v16070_v44  ;;  %v9167_v41 = vrot.slane %v9153_v56, %v16070_v44  ;;  %v17555_v12 = vld [vmem:[#allocation19 + $0x100] ss:$16 sps:$4 sm:$0xff]   ;;  %v17557_v37 = vld [vmem:[#allocation19 + $0x108] ss:$16 sps:$4 sm:$0xff]  }
 0xcbe   :  { %v14828_v5 = vpop.eup %14827 }
 0xcbf   :  { %v9168_v42 = vcombine.low %v9160_v22, %v9167_v41  ;;  %v8864_v0 = vrot.slane %v14828_v5, 2  ;;  %v14830_v32 = vpop.eup %14829  ;;  %v8870_v57 = vrot.slane %v14828_v5, 4  ;;  %v17563_v41 = vld [vmem:[#allocation19 + $0x12c] ss:$16 sps:$4 sm:$0xff]  }
 0xcc0   :  { %v8867_v27 = vmul.f32 %v14830_v32, %v14828_v5  ;;  %v17569_v5 = vld [vmem:[#allocation19 + $0x120] ss:$16 sps:$4 sm:$0xff]   ;;  %v17577_v32 = vld [vmem:[#allocation19 + $0x14c] ss:$16 sps:$4 sm:$0xff]  }
 0xcc1   :  { %v9170_v17 = vadd.f32 %v9168_v42, %v18742_v61  ;;  %v8866_v16 = vmul.f32 %v8864_v0, %v17180_v54  ;;  %v17561_v54 = vld [vmem:[#allocation19 + $0x124] ss:$16 sps:$4 sm:$0xff]   ;;  %v17571_v42 = vld [vmem:[#allocation19 + $0x128] ss:$16 sps:$4 sm:$0xff]   ;;  %v17591_v61 = vld [vmem:[#allocation19 + $0x16c] ss:$16 sps:$4 sm:$0xff]  }
 0xcc2   :  { %v17575_v0 = vld [vmem:[#allocation19 + $0x144] ss:$16 sps:$4 sm:$0xff]   ;;  %18745 = vst [vmem:[#allocation131_spill] sm:$0xff] %v17591_v61 }
 0xcc3   :  { %v9171_v38 = vsub.f32 0.0, %v9170_v17  ;;  %v17552_v11 = vadd.f32 %v8867_v27, %v8866_v16  ;;  %v9177_v15 = vrot.slane %v9170_v17, 6  ;;  %v17583_v27 = vld [vmem:[#allocation19 + $0x140] ss:$16 sps:$4 sm:$0xff]  }
 0xcc4   :  { %v17595_v16 = vld [vmem:[#allocation19 + $0x160] ss:$16 sps:$4 sm:$0xff]  }
 0xcc5   :  { %v9172_v13 = vmul.f32 1.442695, %v9171_v38  ;;  %14831 = vtanh.f32 %v17552_v11  ;;  %v17597_v38 = vld [vmem:[#allocation19 + $0x168] ss:$16 sps:$4 sm:$0xff]  }
 0xcc7   :  { %14833 = vpow2.f32 %v9172_v13  ;;  %v17601_v13 = vld [vmem:[#allocation19 + $0x184] ss:$16 sps:$4 sm:$0xff]  }
 0xccf   :  { %v14832_v45 = vpop.eup %14831 }
 0xcd0   :  { %v8872_v56 = vmul.f32 %v14832_v45, %v8870_v57  ;;  %v17603_v57 = vld [vmem:[#allocation19 + $0x18c] ss:$16 sps:$4 sm:$0xff]  }
 0xcd1   :  { %v14834_v29 = vpop.eup %14833  ;;  %18746 = vst [vmem:[#allocation132_spill] sm:$0xff] %v17603_v57 }
 0xcd2   :  { %v9174_v23 = vadd.f32 1.0, %v14834_v29  ;;  %v17559_v22 = vpack.c.bf16 %v8872_v56, %v8872_v56 }
 0xcd4   :  { %14835 = vrcp.f32 %v9174_v23  ;;  %9439 = vmatmul.mubr.bf16.vlgmr.msra.gmra.mrb[108].mxu1 %v17559_v22  ;;  %9480 = vmatmul.mubr.bf16.vlgmr.msra.gmra.mrb[108].mxu0 %v17559_v22 }
 0xcd5   :  { %14837 = vtanh.f32 %v9177_v15  ;;  %9705 = vmatpush1.bf16.msra.mxu1 %v17555_v12  ;;  %9746 = vmatpush1.bf16.msra.mxu0 %v17557_v37  ;;  %v17608_v15 = vld [vmem:[#allocation19 + $0x180] ss:$16 sps:$4 sm:$0xff]  }
 0xcd6   :  { %9706 = vmatprep.subr.bf16.mxu1 %v17561_v54  ;;  %9747 = vmatprep.subr.bf16.mxu0 %v17563_v41  ;;  %18747 = vst [vmem:[#allocation133_spill] sm:$0xff] %v17608_v15 }
 0xcd7   :  { %9736 = vmatprep.mubr.bf16.mxu1 %v18407_v25  ;;  %9777 = vmatprep.mubr.bf16.mxu0 %v18407_v25 }
 0xcd9   :  { %9707 = vmatpush1.bf16.msra.mxu1 %v17569_v5  ;;  %9748 = vmatpush1.bf16.msra.mxu0 %v17571_v42 }
 0xcda   :  { %9708 = vmatprep.subr.bf16.mxu1 %v17575_v0  ;;  %9749 = vmatprep.subr.bf16.mxu0 %v17577_v32 }
 0xcdd   :  { %9709 = vmatpush1.bf16.msra.mxu1 %v17583_v27  ;;  %9750 = vmatpush1.bf16.msra.mxu0 %v17585_v40 }
 0xcde   :  { %v14836_v17 = vpop.eup %14835  ;;  %9710 = vmatprep.subr.bf16.mxu1 %v17589_v63  ;;  %9751 = vmatprep.subr.bf16.mxu0 %v17591_v61  ;;  %v17614_v61 = vld [vmem:[#allocation19 + $0x1a4] ss:$16 sps:$4 sm:$0xff]   ;;  %v17616_v63 = vld [vmem:[#allocation19 + $0x1ac] ss:$16 sps:$4 sm:$0xff]  }
 0xcdf   :  { %v9181_v45 = vrot.slane %v14836_v17, 2  ;;  %v14838_v29 = vpop.eup %14837  ;;  %18749 = vst [vmem:[#allocation135_spill] sm:$0xff] %v17614_v61  ;;  %18750 = vst [vmem:[#allocation136_spill] sm:$0xff] %v17616_v63 }
 0xce0   :  { %v9184_v56 = vmul.f32 %v14838_v29, %v14836_v17  ;;  %v17629_v29 = vld [vmem:[#allocation19 + $0x1c4] ss:$16 sps:$4 sm:$0xff]  }
 0xce1   :  { %v9183_v23 = vmul.f32 %v9181_v45, %v17206_v3  ;;  %9711 = vmatpush1.bf16.msra.mxu1 %v17595_v16  ;;  %9752 = vmatpush1.bf16.msra.mxu0 %v17597_v38  ;;  %v17623_v3 = vld [vmem:[#allocation19 + $0x1a0] ss:$16 sps:$4 sm:$0xff]   ;;  %v17625_v45 = vld [vmem:[#allocation19 + $0x1a8] ss:$16 sps:$4 sm:$0xff]   ;;  %18753 = vst [vmem:[#allocation139_spill] sm:$0xff] %v17629_v29 }
 0xce2   :  { %9712 = vmatprep.subr.bf16.mxu1 %v17601_v13  ;;  %9753 = vmatprep.subr.bf16.mxu0 %v17603_v57  ;;  %18751 = vst [vmem:[#allocation137_spill] sm:$0xff] %v17623_v3  ;;  %18752 = vst [vmem:[#allocation138_spill] sm:$0xff] %v17625_v45  ;;  %v17631_v57 = vld [vmem:[#allocation19 + $0x1cc] ss:$16 sps:$4 sm:$0xff]  }
 0xce3   :  { %v17618_v40 = vadd.f32 %v9184_v56, %v9183_v23  ;;  %18754 = vst [vmem:[#allocation77_spill] sm:$0xff] %v17631_v57  ;;  %v17635_v56 = vld [vmem:[#allocation19 + $0x1c0] ss:$16 sps:$4 sm:$0xff]   ;;  %v17637_v23 = vld [vmem:[#allocation19 + $0x1c8] ss:$16 sps:$4 sm:$0xff]  }
 0xce5   :  { %14839 = vtanh.f32 %v17618_v40  ;;  %9713 = vmatpush1.bf16.msra.mxu1 %v17608_v15  ;;  %9754 = vmatpush1.bf16.msra.mxu0 %v17610_v52  ;;  %v17641_v52 = vld [vmem:[#allocation19 + $0x1e4] ss:$16 sps:$4 sm:$0xff]  }
 0xce6   :  { %9714 = vmatprep.subr.bf16.mxu1 %v17614_v61  ;;  %9755 = vmatprep.subr.bf16.mxu0 %v17616_v63  ;;  %v17643_v61 = vld [vmem:[#allocation19 + $0x1ec] ss:$16 sps:$4 sm:$0xff]   ;;  %v17647_v63 = vld [vmem:[#allocation19 + $0x1e0] ss:$16 sps:$4 sm:$0xff]  }
 0xce9   :  { %9715 = vmatpush1.bf16.msra.mxu1 %v17623_v3  ;;  %9756 = vmatpush1.bf16.msra.mxu0 %v17625_v45  ;;  %v17649_v3 = vld [vmem:[#allocation19 + $0x1e8] ss:$16 sps:$4 sm:$0xff]   ;;  %v9187_v45 = vrot.slane %v14836_v17, 4 }
 0xcea   :  { %9716 = vmatprep.subr.bf16.mxu1 %v17629_v29  ;;  %9757 = vmatprep.subr.bf16.mxu0 %v17631_v57  ;;  %v18792_v17 = vld [vmem:[#allocation107_spill] sm:$0xff] }
 0xced   :  { %9717 = vmatpush1.bf16.msra.mxu1 %v17635_v56  ;;  %9758 = vmatpush1.bf16.msra.mxu0 %v17637_v23 }
 0xcee   :  { %9718 = vmatprep.subr.bf16.mxu1 %v17641_v52  ;;  %9759 = vmatprep.subr.bf16.mxu0 %v17643_v61 }
 0xcef   :  { %v14840_v15 = vpop.eup %14839 }
 0xcf0   :  { %v9189_v29 = vmul.f32 %v14840_v15, %v9187_v45  ;;  %v18794_v15 = vld [vmem:[#allocation109_spill] sm:$0xff]  ;;  %v18795_v45 = vld [vmem:[#allocation110_spill] sm:$0xff] }
 0xcf1   :  { %9719 = vmatpush1.bf16.msra.mxu1 %v17647_v63  ;;  %9760 = vmatpush1.bf16.msra.mxu0 %v17649_v3 }
 0xcf2   :  { %v17655_v57 = vpack.c.bf16 %v9189_v29, %v9189_v29  ;;  %10003 = vmatprep.subr.bf16.mxu1 %v17221_v60  ;;  %10044 = vmatprep.subr.bf16.mxu0 %v17223_v35  ;;  %v18755_v60 = vld [vmem:[#allocation68_spill] sm:$0xff]  ;;  %v18756_v35 = vld [vmem:[#allocation69_spill] sm:$0xff]  ;;  %v18796_v29 = vld [vmem:[#allocation111_spill] sm:$0xff] }
 0xcf4   :  { %9737 = vmatmul.mubr.bf16.vlgmr.msra.gmra.mrb[112].mxu1 %v17655_v57  ;;  %9778 = vmatmul.mubr.bf16.vlgmr.msra.gmra.mrb[112].mxu0 %v17655_v57 }
 0xcf5   :  { %10004 = vmatpush1.bf16.msra.mxu1 %v17227_v26  ;;  %10045 = vmatpush1.bf16.msra.mxu0 %v17229_v39  ;;  %v18757_v26 = vld [vmem:[#allocation70_spill] sm:$0xff]  ;;  %v18758_v39 = vld [vmem:[#allocation71_spill] sm:$0xff] }
 0xcf6   :  { %10005 = vmatprep.subr.bf16.mxu1 %v17235_v47  ;;  %10046 = vmatprep.subr.bf16.mxu0 %v17237_v21  ;;  %v18759_v47 = vld [vmem:[#allocation53_spill] sm:$0xff] }
 0xcf7   :  { %10035 = vmatprep.mubr.bf16.mxu1 %v18407_v25  ;;  %10076 = vmatprep.mubr.bf16.mxu0 %v18407_v25  ;;  %v18760_v21 = vld [vmem:[#allocation73_spill] sm:$0xff] }
 0xcf9   :  { %10006 = vmatpush1.bf16.msra.mxu1 %v17243_v8  ;;  %10047 = vmatpush1.bf16.msra.mxu0 %v17245_v2  ;;  %v18761_v8 = vld [vmem:[#allocation52_spill] sm:$0xff]  ;;  %v18762_v2 = vld [vmem:[#allocation55_spill] sm:$0xff] }
 0xcfa   :  { %10007 = vmatprep.subr.bf16.mxu1 %v17249_v18  ;;  %10048 = vmatprep.subr.bf16.mxu0 %v17251_v34  ;;  %v18763_v18 = vld [vmem:[#allocation54_spill] sm:$0xff]  ;;  %v18764_v34 = vld [vmem:[#allocation75_spill] sm:$0xff] }
 0xcfd   :  { %10008 = vmatpush1.bf16.msra.mxu1 %v17257_v50  ;;  %10049 = vmatpush1.bf16.msra.mxu0 %v17259_v36  ;;  %v18765_v50 = vld [vmem:[#allocation80_spill] sm:$0xff]  ;;  %v18766_v36 = vld [vmem:[#allocation81_spill] sm:$0xff] }
 0xcfe   :  { %10009 = vmatprep.subr.bf16.mxu1 %v17263_v19  ;;  %10050 = vmatprep.subr.bf16.mxu0 %v17265_v20  ;;  %v18767_v19 = vld [vmem:[#allocation82_spill] sm:$0xff]  ;;  %v18768_v20 = vld [vmem:[#allocation83_spill] sm:$0xff] }
 0xd01   :  { %10010 = vmatpush1.bf16.msra.mxu1 %v17269_v53  ;;  %10051 = vmatpush1.bf16.msra.mxu0 %v17271_v9  ;;  %v18769_v53 = vld [vmem:[#allocation84_spill] sm:$0xff]  ;;  %v18770_v9 = vld [vmem:[#allocation85_spill] sm:$0xff] }
 0xd02   :  { %10011 = vmatprep.subr.bf16.mxu1 %v17275_v48  ;;  %10052 = vmatprep.subr.bf16.mxu0 %v17277_v49  ;;  %v18771_v48 = vld [vmem:[#allocation86_spill] sm:$0xff]  ;;  %v18772_v49 = vld [vmem:[#allocation87_spill] sm:$0xff] }
 0xd05   :  { %10012 = vmatpush1.bf16.msra.mxu1 %v17281_v6  ;;  %10053 = vmatpush1.bf16.msra.mxu0 %v17283_v10  ;;  %v18773_v6 = vld [vmem:[#allocation88_spill] sm:$0xff]  ;;  %v18774_v10 = vld [vmem:[#allocation89_spill] sm:$0xff] }
 0xd06   :  { %10013 = vmatprep.subr.bf16.mxu1 %v17287_v43  ;;  %10054 = vmatprep.subr.bf16.mxu0 %v17289_v51  ;;  %v18775_v43 = vld [vmem:[#allocation90_spill] sm:$0xff]  ;;  %v18776_v51 = vld [vmem:[#allocation91_spill] sm:$0xff] }
 0xd09   :  { %10014 = vmatpush1.bf16.msra.mxu1 %v17293_v33  ;;  %10055 = vmatpush1.bf16.msra.mxu0 %v17295_v14  ;;  %v18777_v33 = vld [vmem:[#allocation92_spill] sm:$0xff]  ;;  %v18778_v14 = vld [vmem:[#allocation93_spill] sm:$0xff] }
 0xd0a   :  { %10015 = vmatprep.subr.bf16.mxu1 %v17299_v7  ;;  %10056 = vmatprep.subr.bf16.mxu0 %v17301_v62  ;;  %v18779_v7 = vld [vmem:[#allocation94_spill] sm:$0xff]  ;;  %v18780_v62 = vld [vmem:[#allocation95_spill] sm:$0xff] }
 0xd0d   :  { %10016 = vmatpush1.bf16.msra.mxu1 %v17305_v58  ;;  %10057 = vmatpush1.bf16.msra.mxu0 %v17307_v46  ;;  %v18781_v58 = vld [vmem:[#allocation96_spill] sm:$0xff]  ;;  %v18782_v46 = vld [vmem:[#allocation97_spill] sm:$0xff] }
 0xd0e   :  { %10017 = vmatprep.subr.bf16.mxu1 %v17311_v59  ;;  %10058 = vmatprep.subr.bf16.mxu0 %v17313_v4  ;;  %v18783_v59 = vld [vmem:[#allocation98_spill] sm:$0xff]  ;;  %v18784_v4 = vld [vmem:[#allocation99_spill] sm:$0xff] }
 0xd11   :  { %10018 = vmatpush1.bf16.msra.mxu1 %v17317_v24  ;;  %10059 = vmatpush1.bf16.msra.mxu0 %v17319_v31  ;;  %v18785_v24 = vld [vmem:[#allocation100_spill] sm:$0xff]  ;;  %v18786_v31 = vld [vmem:[#allocation101_spill] sm:$0xff] }
 0xd12   :  { %10320 = vmatprep.subr.bf16.mxu1 %v17323_v55  ;;  %10361 = vmatprep.subr.bf16.mxu0 %v17325_v30  ;;  %v18787_v55 = vld [vmem:[#allocation102_spill] sm:$0xff]  ;;  %v18788_v30 = vld [vmem:[#allocation103_spill] sm:$0xff] }
 0xd14   :  { %10036 = vmatmul.mubr.bf16.vlgmr.msra.gmra.mrb[116].mxu1 %v17559_v22  ;;  %10077 = vmatmul.mubr.bf16.vlgmr.msra.gmra.mrb[116].mxu0 %v17559_v22  ;;  %v18791_v22 = vld [vmem:[#allocation106_spill] sm:$0xff] }
 0xd15   :  { %10321 = vmatpush1.bf16.msra.mxu1 %v17329_v1  ;;  %10362 = vmatpush1.bf16.msra.mxu0 %v17331_v28  ;;  %v18789_v1 = vld [vmem:[#allocation104_spill] sm:$0xff]  ;;  %v18790_v28 = vld [vmem:[#allocation105_spill] sm:$0xff] }
 0xd16   :  { %10322 = vmatprep.subr.bf16.mxu1 %v18755_v60  ;;  %10363 = vmatprep.subr.bf16.mxu0 %v18756_v35  ;;  %v18797_v60 = vld [vmem:[#allocation112_spill] sm:$0xff]  ;;  %v18798_v35 = vld [vmem:[#allocation113_spill] sm:$0xff] }
 0xd17   :  { %10352 = vmatprep.mubr.bf16.mxu1 %v18407_v25  ;;  %10393 = vmatprep.mubr.bf16.mxu0 %v18407_v25 }
 0xd19   :  { %10323 = vmatpush1.bf16.msra.mxu1 %v18757_v26  ;;  %10364 = vmatpush1.bf16.msra.mxu0 %v18758_v39  ;;  %v18799_v26 = vld [vmem:[#allocation114_spill] sm:$0xff]  ;;  %v18800_v39 = vld [vmem:[#allocation115_spill] sm:$0xff] }
 0xd1a   :  { %10324 = vmatprep.subr.bf16.mxu1 %v18759_v47  ;;  %10365 = vmatprep.subr.bf16.mxu0 %v18760_v21  ;;  %v18801_v47 = vld [vmem:[#allocation116_spill] sm:$0xff]  ;;  %v18802_v21 = vld [vmem:[#allocation117_spill] sm:$0xff] }
 0xd1d   :  { %10325 = vmatpush1.bf16.msra.mxu1 %v18761_v8  ;;  %10366 = vmatpush1.bf16.msra.mxu0 %v18762_v2  ;;  %v18803_v8 = vld [vmem:[#allocation118_spill] sm:$0xff]  ;;  %v18804_v2 = vld [vmem:[#allocation119_spill] sm:$0xff] }
 0xd1e   :  { %10326 = vmatprep.subr.bf16.mxu1 %v18763_v18  ;;  %10367 = vmatprep.subr.bf16.mxu0 %v18764_v34  ;;  %v18805_v18 = vld [vmem:[#allocation120_spill] sm:$0xff]  ;;  %v18806_v34 = vld [vmem:[#allocation121_spill] sm:$0xff] }
 0xd21   :  { %10327 = vmatpush1.bf16.msra.mxu1 %v18765_v50  ;;  %10368 = vmatpush1.bf16.msra.mxu0 %v18766_v36  ;;  %v18807_v50 = vld [vmem:[#allocation122_spill] sm:$0xff]  ;;  %v18808_v36 = vld [vmem:[#allocation123_spill] sm:$0xff] }
 0xd22   :  { %10328 = vmatprep.subr.bf16.mxu1 %v18767_v19  ;;  %10369 = vmatprep.subr.bf16.mxu0 %v18768_v20  ;;  %v18809_v19 = vld [vmem:[#allocation124_spill] sm:$0xff]  ;;  %v18810_v20 = vld [vmem:[#allocation125_spill] sm:$0xff] }
 0xd25   :  { %10329 = vmatpush1.bf16.msra.mxu1 %v18769_v53  ;;  %10370 = vmatpush1.bf16.msra.mxu0 %v18770_v9  ;;  %v18811_v53 = vld [vmem:[#allocation126_spill] sm:$0xff]  ;;  %v18812_v9 = vld [vmem:[#allocation49_spill] sm:$0xff] }
 0xd26   :  { %10330 = vmatprep.subr.bf16.mxu1 %v18771_v48  ;;  %10371 = vmatprep.subr.bf16.mxu0 %v18772_v49  ;;  %v18813_v48 = vld [vmem:[#allocation48_spill] sm:$0xff]  ;;  %v18814_v49 = vld [vmem:[#allocation50_spill] sm:$0xff] }
 0xd29   :  { %10331 = vmatpush1.bf16.msra.mxu1 %v18773_v6  ;;  %10372 = vmatpush1.bf16.msra.mxu0 %v18774_v10  ;;  %v18815_v6 = vld [vmem:[#allocation76_spill] sm:$0xff]  ;;  %v18816_v10 = vld [vmem:[#allocation51_spill] sm:$0xff] }
 0xd2a   :  { %10332 = vmatprep.subr.bf16.mxu1 %v18775_v43  ;;  %10373 = vmatprep.subr.bf16.mxu0 %v18776_v51  ;;  %v9224_v43 = vld [vmem:[#allocation22] sm:$0xf]  ;;  %v18817_v51 = vld [vmem:[#allocation46_spill] sm:$0xff] }
 0xd2d   :  { %10333 = vmatpush1.bf16.msra.mxu1 %v18777_v33  ;;  %10374 = vmatpush1.bf16.msra.mxu0 %v18778_v14  ;;  %v9229_v33 = vrot.slane %v9224_v43, %v18817_v51  ;;  %v18818_v14 = vld [vmem:[#allocation74_spill] sm:$0xff] }
 0xd2e   :  { %10334 = vmatprep.subr.bf16.mxu1 %v18779_v7  ;;  %10375 = vmatprep.subr.bf16.mxu0 %v18780_v62  ;;  %v9237_v7 = vrot.slane %v9224_v43, %v18818_v14  ;;  %v18819_v62 = vld [vmem:[#allocation47_spill] sm:$0xff] }
 0xd31   :  { %10335 = vmatpush1.bf16.msra.mxu1 %v18781_v58  ;;  %10376 = vmatpush1.bf16.msra.mxu0 %v18782_v46  ;;  %v9233_v58 = vrot.slane %v9224_v43, %v18819_v62  ;;  %v18820_v46 = vld [vmem:[#allocation72_spill] sm:$0xff] }
 0xd32   :  { %10660 = vmatprep.subr.bf16.mxu1 %v18783_v59  ;;  %10701 = vmatprep.subr.bf16.mxu0 %v18784_v4  ;;  %v9241_v59 = vrot.slane %v9224_v43, %v18820_v46 }
 0xd34   :  { %10353 = vmatmul.mubr.bf16.vlgmr.msra.gmra.mrb[120].mxu1 %v17655_v57  ;;  %10394 = vmatmul.mubr.bf16.vlgmr.msra.gmra.mrb[120].mxu0 %v17655_v57  ;;  %v18793_v57 = vld [vmem:[#allocation108_spill] sm:$0xff] }
 0xd35   :  { %10661 = vmatpush1.bf16.msra.mxu1 %v18785_v24  ;;  %10702 = vmatpush1.bf16.msra.mxu0 %v18786_v31 }
 0xd36   :  { %10662 = vmatprep.subr.bf16.mxu1 %v18787_v55  ;;  %10703 = vmatprep.subr.bf16.mxu0 %v18788_v30 }
 0xd37   :  { %10692 = vmatprep.mubr.bf16.mxu1 %v18407_v25  ;;  %10733 = vmatprep.mubr.bf16.mxu0 %v18407_v25 }
 0xd39   :  { %10663 = vmatpush1.bf16.msra.mxu1 %v18789_v1  ;;  %10704 = vmatpush1.bf16.msra.mxu0 %v18790_v28 }
 0xd3a   :  { %10664 = vmatprep.subr.bf16.mxu1 %v18791_v22  ;;  %10705 = vmatprep.subr.bf16.mxu0 %v18792_v17 }
 0xd3d   :  { %10665 = vmatpush1.bf16.msra.mxu1 %v18793_v57  ;;  %10706 = vmatpush1.bf16.msra.mxu0 %v18794_v15 }
 0xd3e   :  { %10666 = vmatprep.subr.bf16.mxu1 %v18795_v45  ;;  %10707 = vmatprep.subr.bf16.mxu0 %v18796_v29 }
 0xd41   :  { %10667 = vmatpush1.bf16.msra.mxu1 %v18797_v60  ;;  %10708 = vmatpush1.bf16.msra.mxu0 %v18798_v35 }
 0xd42   :  { %10668 = vmatprep.subr.bf16.mxu1 %v18799_v26  ;;  %10709 = vmatprep.subr.bf16.mxu0 %v18800_v39 }
 0xd45   :  { %10669 = vmatpush1.bf16.msra.mxu1 %v18801_v47  ;;  %10710 = vmatpush1.bf16.msra.mxu0 %v18802_v21  ;;  %v18821_v47 = vld [vmem:[#allocation66_spill] sm:$0xff]  ;;  %v18822_v21 = vld [vmem:[#allocation67_spill] sm:$0xff] }
 0xd46   :  { %10670 = vmatprep.subr.bf16.mxu1 %v18803_v8  ;;  %10711 = vmatprep.subr.bf16.mxu0 %v18804_v2  ;;  %v18823_v8 = vcombine.low %v18821_v47, %v18822_v21 }
 0xd49   :  { %10671 = vmatpush1.bf16.msra.mxu1 %v18805_v18  ;;  %10712 = vmatpush1.bf16.msra.mxu0 %v18806_v34 }
 0xd4a   :  { %10672 = vmatprep.subr.bf16.mxu1 %v18807_v50  ;;  %10713 = vmatprep.subr.bf16.mxu0 %v18808_v36 }
 0xd4d   :  { %10673 = vmatpush1.bf16.msra.mxu1 %v18809_v19  ;;  %10714 = vmatpush1.bf16.msra.mxu0 %v18810_v20 }
 0xd4e   :  { %10674 = vmatprep.subr.bf16.mxu1 %v18811_v53  ;;  %10715 = vmatprep.subr.bf16.mxu0 %v18812_v9 }
 0xd51   :  { %10675 = vmatpush1.bf16.msra.mxu1 %v18813_v48  ;;  %10716 = vmatpush1.bf16.msra.mxu0 %v18814_v49 }
 0xd52   :  { %10958 = vmatprep.subr.bf16.mxu1 %v18815_v6  ;;  %10999 = vmatprep.subr.bf16.mxu0 %v18816_v10 }
 0xda7   :  { %v9440_v4 = vpop.f32.mrb[108].mxu1  ;;  %v9481_v24 = vpop.f32.mrb[108].mxu0 }
 0xda8   :  { %v9441_v31 = vadd.f32 %v9440_v4, %v9229_v33  ;;  %v9482_v55 = vadd.f32 %v9481_v24, %v9237_v7  ;;  %v9442_v30 = vpop.f32.mrb[109].mxu1  ;;  %v9483_v1 = vpop.f32.mrb[109].mxu0  ;;  %v18824_v33 = vld [vmem:[#allocation64_spill] sm:$0xff]  ;;  %v18825_v7 = vld [vmem:[#allocation65_spill] sm:$0xff] }
 0xda9   :  { %v9443_v28 = vadd.f32 %v9442_v30, %v9233_v58  ;;  %v9484_v22 = vadd.f32 %v9483_v1, %v9241_v59  ;;  %v9444_v17 = vpop.f32.mrb[110].mxu1  ;;  %v9485_v57 = vpop.f32.mrb[110].mxu0  ;;  %v18826_v58 = vcombine.low %v18824_v33, %v18825_v7 }
 0xdaa   :  { %v9445_v15 = vpop.f32.mrb[111].mxu1  ;;  %v9486_v45 = vpop.f32.mrb[111].mxu0 }
 0xdab   :  { %v9492_v29 = vcombine.low %v9441_v31, %v9443_v28  ;;  %v9493_v60 = vcombine.low %v9482_v55, %v9484_v22 }
 0xdad   :  { %v9500_v35 = vrot.slane %v9492_v29, %v16070_v44  ;;  %v9507_v26 = vrot.slane %v9493_v60, %v16070_v44  ;;  %v18827_v60 = vld [vmem:[#allocation60_spill] sm:$0xff] }
 0xdaf   :  { %v9508_v39 = vcombine.low %v9500_v35, %v9507_v26  ;;  %v18828_v35 = vld [vmem:[#allocation61_spill] sm:$0xff] }
 0xdb0   :  { %v18829_v26 = vcombine.low %v18827_v60, %v18828_v35 }
 0xdb1   :  { %v17776_v2 = vadd.f32 %v9508_v39, %v18823_v8 }
 0xdc7   :  { %v9738_v18 = vpop.f32.mrb[112].mxu1  ;;  %v9779_v34 = vpop.f32.mrb[112].mxu0 }
 0xdc8   :  { %v9740_v50 = vpop.f32.mrb[113].mxu1  ;;  %v9781_v36 = vpop.f32.mrb[113].mxu0 }
 0xdc9   :  { %v9790_v19 = vcombine.low %v9738_v18, %v9740_v50  ;;  %v9791_v20 = vcombine.low %v9779_v34, %v9781_v36  ;;  %v9742_v53 = vpop.f32.mrb[114].mxu1  ;;  %v9783_v9 = vpop.f32.mrb[114].mxu0 }
 0xdca   :  { %v9743_v48 = vpop.f32.mrb[115].mxu1  ;;  %v9784_v49 = vpop.f32.mrb[115].mxu0 }
 0xdcb   :  { %v9798_v6 = vrot.slane %v9790_v19, %v16070_v44  ;;  %v9805_v10 = vrot.slane %v9791_v20, %v16070_v44 }
 0xdcd   :  { %v9806_v43 = vcombine.low %v9798_v6, %v9805_v10 }
 0xdcf   :  { %v17783_v59 = vadd.f32 %v9806_v43, %v18826_v58 }
 0xde7   :  { %v10037_v4 = vpop.f32.mrb[116].mxu1  ;;  %v10078_v24 = vpop.f32.mrb[116].mxu0 }
 0xde8   :  { %v10039_v31 = vpop.f32.mrb[117].mxu1  ;;  %v10080_v55 = vpop.f32.mrb[117].mxu0 }
 0xde9   :  { %v10089_v30 = vcombine.low %v10037_v4, %v10039_v31  ;;  %v10090_v1 = vcombine.low %v10078_v24, %v10080_v55  ;;  %v10041_v28 = vpop.f32.mrb[118].mxu1  ;;  %v10082_v22 = vpop.f32.mrb[118].mxu0  ;;  %v18830_v55 = vld [vmem:[#allocation78_spill] sm:$0xff] }
 0xdea   :  { %v10042_v17 = vpop.f32.mrb[119].mxu1  ;;  %v10083_v57 = vpop.f32.mrb[119].mxu0 }
 0xdeb   :  { %v10097_v15 = vrot.slane %v10089_v30, %v16070_v44  ;;  %v10104_v45 = vrot.slane %v10090_v1, %v16070_v44  ;;  %v18831_v30 = vld [vmem:[#allocation79_spill] sm:$0xff] }
 0xdec   :  { %v18832_v1 = vcombine.low %v18830_v55, %v18831_v30  ;;  %v14684_v55 = vld [vmem:[#allocation23 + $0x88] ss:$16 sps:$4 sm:$0xff]   ;;  %v14689_v30 = vld [vmem:[#allocation23 + $0xa4] ss:$16 sps:$4 sm:$0xff]  }
 0xded   :  { %v10105_v29 = vcombine.low %v10097_v15, %v10104_v45 }
 0xdef   :  { %v10107_v39 = vadd.f32 %v10105_v29, %v18829_v26 }
 0xdf1   :  { %v10108_v47 = vsub.f32 0.0, %v10107_v39  ;;  %v10114_v34 = vrot.slane %v10107_v39, 6 }
 0xdf3   :  { %v10109_v21 = vmul.f32 1.442695, %v10108_v47 }
 0xdf5   :  { %14841 = vpow2.f32 %v10109_v21 }
 0xdff   :  { %v14842_v8 = vpop.eup %14841 }
 0xe00   :  { %v10111_v18 = vadd.f32 1.0, %v14842_v8 }
 0xe02   :  { %14843 = vrcp.f32 %v10111_v18  ;;  %v18839_v18 = vld [vmem:[#allocation135_spill] sm:$0xff] }
 0xe03   :  { %14845 = vtanh.f32 %v10114_v34  ;;  %v18840_v34 = vld [vmem:[#allocation136_spill] sm:$0xff] }
 0xe07   :  { %v10354_v50 = vpop.f32.mrb[120].mxu1  ;;  %v10395_v36 = vpop.f32.mrb[120].mxu0 }
 0xe08   :  { %v10356_v19 = vpop.f32.mrb[121].mxu1  ;;  %v10397_v20 = vpop.f32.mrb[121].mxu0 }
 0xe09   :  { %v10406_v53 = vcombine.low %v10354_v50, %v10356_v19  ;;  %v10407_v9 = vcombine.low %v10395_v36, %v10397_v20  ;;  %v10358_v48 = vpop.f32.mrb[122].mxu1  ;;  %v10399_v49 = vpop.f32.mrb[122].mxu0  ;;  %v18841_v50 = vld [vmem:[#allocation137_spill] sm:$0xff]  ;;  %v14662_v20 = vld [vmem:[#allocation23 + $0xc] ss:$16 sps:$4 sm:$0xff]  }
 0xe0a   :  { %v10359_v6 = vpop.f32.mrb[123].mxu1  ;;  %v10400_v10 = vpop.f32.mrb[123].mxu0  ;;  %v14659_v19 = vld [vmem:[#allocation23 + $0x4] ss:$16 sps:$4 sm:$0xff]   ;;  %v14660_v48 = vld [vmem:[#allocation23 + $0x8] ss:$16 sps:$4 sm:$0xff]  }
 0xe0b   :  { %v10414_v43 = vrot.slane %v10406_v53, %v16070_v44  ;;  %v10421_v33 = vrot.slane %v10407_v9, %v16070_v44  ;;  %v14657_v9 = vld [vmem:[#allocation23] ss:$16 sps:$4 sm:$0xff]   ;;  %v14671_v6 = vld [vmem:[#allocation23 + $0x44] ss:$16 sps:$4 sm:$0xff]   ;;  %v14674_v10 = vld [vmem:[#allocation23 + $0x4c] ss:$16 sps:$4 sm:$0xff]  }
 0xe0c   :  { %v14844_v7 = vpop.eup %14843 }
 0xe0d   :  { %v10422_v58 = vcombine.low %v10414_v43, %v10421_v33  ;;  %v10118_v4 = vrot.slane %v14844_v7, 2  ;;  %v14846_v24 = vpop.eup %14845  ;;  %v10124_v45 = vrot.slane %v14844_v7, 4  ;;  %v14677_v43 = vld [vmem:[#allocation23 + $0x64] ss:$16 sps:$4 sm:$0xff]   ;;  %v14680_v33 = vld [vmem:[#allocation23 + $0x6c] ss:$16 sps:$4 sm:$0xff]  }
 0xe0e   :  { %v10121_v31 = vmul.f32 %v14846_v24, %v14844_v7  ;;  %v14675_v7 = vld [vmem:[#allocation23 + $0x60] ss:$16 sps:$4 sm:$0xff]   ;;  %v14686_v24 = vld [vmem:[#allocation23 + $0x8c] ss:$16 sps:$4 sm:$0xff]  }
 0xe0f   :  { %v10424_v28 = vadd.f32 %v10422_v58, %v18832_v1  ;;  %v10120_v22 = vmul.f32 %v10118_v4, %v17552_v11  ;;  %v14678_v58 = vld [vmem:[#allocation23 + $0x68] ss:$16 sps:$4 sm:$0xff]   ;;  %v14683_v4 = vld [vmem:[#allocation23 + $0x84] ss:$16 sps:$4 sm:$0xff]   ;;  %v14692_v1 = vld [vmem:[#allocation23 + $0xac] ss:$16 sps:$4 sm:$0xff]  }
 0xe11   :  { %v10425_v17 = vsub.f32 0.0, %v10424_v28  ;;  %v10122_v57 = vadd.f32 %v10121_v31, %v10120_v22  ;;  %v10431_v39 = vrot.slane %v10424_v28, 6  ;;  %v14681_v31 = vld [vmem:[#allocation23 + $0x80] ss:$16 sps:$4 sm:$0xff]   ;;  %v14690_v22 = vld [vmem:[#allocation23 + $0xa8] ss:$16 sps:$4 sm:$0xff]  }
 0xe12   :  { %v14687_v28 = vld [vmem:[#allocation23 + $0xa0] ss:$16 sps:$4 sm:$0xff]  }
 0xe13   :  { %v10426_v15 = vmul.f32 1.442695, %v10425_v17  ;;  %14847 = vtanh.f32 %v10122_v57  ;;  %v14695_v17 = vld [vmem:[#allocation23 + $0xc4] ss:$16 sps:$4 sm:$0xff]   ;;  %v14698_v57 = vld [vmem:[#allocation23 + $0xcc] ss:$16 sps:$4 sm:$0xff]  }
 0xe15   :  { %14849 = vpow2.f32 %v10426_v15  ;;  %v14693_v15 = vld [vmem:[#allocation23 + $0xc0] ss:$16 sps:$4 sm:$0xff]  }
 0xe1d   :  { %v14848_v29 = vpop.eup %14847 }
 0xe1e   :  { %v10126_v35 = vmul.f32 %v14848_v29, %v10124_v45  ;;  %v14696_v45 = vld [vmem:[#allocation23 + $0xc8] ss:$16 sps:$4 sm:$0xff]   ;;  %v14701_v29 = vld [vmem:[#allocation23 + $0xe4] ss:$16 sps:$4 sm:$0xff]  }
 0xe1f   :  { %v14850_v60 = vpop.eup %14849 }
 0xe20   :  { %v10428_v26 = vadd.f32 1.0, %v14850_v60  ;;  %v17796_v47 = vpack.c.bf16 %v10126_v35, %v10126_v35  ;;  %v14704_v60 = vld [vmem:[#allocation23 + $0xec] ss:$16 sps:$4 sm:$0xff]   ;;  %v14699_v35 = vld [vmem:[#allocation23 + $0xe0] ss:$16 sps:$4 sm:$0xff]  }
 0xe22   :  { %14851 = vrcp.f32 %v10428_v26  ;;  %10693 = vmatmul.mubr.bf16.vlgmr.msra.gmra.mrb[124].mxu1 %v17796_v47  ;;  %10734 = vmatmul.mubr.bf16.vlgmr.msra.gmra.mrb[124].mxu0 %v17796_v47  ;;  %v14702_v26 = vld [vmem:[#allocation23 + $0xe8] ss:$16 sps:$4 sm:$0xff]  }
 0xe23   :  { %14853 = vtanh.f32 %v10431_v39  ;;  %10959 = vmatpush1.bf16.msra.mxu1 %v17555_v12  ;;  %11000 = vmatpush1.bf16.msra.mxu0 %v17557_v37  ;;  %v18833_v12 = vld [vmem:[#allocation129_spill] sm:$0xff]  ;;  %v18834_v37 = vld [vmem:[#allocation130_spill] sm:$0xff] }
 0xe24   :  { %10960 = vmatprep.subr.bf16.mxu1 %v17561_v54  ;;  %11001 = vmatprep.subr.bf16.mxu0 %v17563_v41  ;;  %v18835_v54 = vld [vmem:[#allocation131_spill] sm:$0xff] }
 0xe25   :  { %10990 = vmatprep.mubr.bf16.mxu1 %v18407_v25  ;;  %11031 = vmatprep.mubr.bf16.mxu0 %v18407_v25  ;;  %v17839_v39 = vld [vmem:[#allocation20 + $0x4] ss:$16 sps:$4 sm:$0xff]  }
 0xe27   :  { %10961 = vmatpush1.bf16.msra.mxu1 %v17569_v5  ;;  %11002 = vmatpush1.bf16.msra.mxu0 %v17571_v42  ;;  %v18836_v42 = vld [vmem:[#allocation132_spill] sm:$0xff] }
 0xe28   :  { %10962 = vmatprep.subr.bf16.mxu1 %v17575_v0  ;;  %11003 = vmatprep.subr.bf16.mxu0 %v17577_v32  ;;  %v18837_v32 = vld [vmem:[#allocation133_spill] sm:$0xff] }
 0xe2b   :  { %10963 = vmatpush1.bf16.msra.mxu1 %v17583_v27  ;;  %11004 = vmatpush1.bf16.msra.mxu0 %v18833_v12  ;;  %v18838_v27 = vld [vmem:[#allocation134_spill] sm:$0xff] }
 0xe2c   :  { %v14852_v11 = vpop.eup %14851  ;;  %10964 = vmatprep.subr.bf16.mxu1 %v18834_v37  ;;  %11005 = vmatprep.subr.bf16.mxu0 %v18835_v54  ;;  %v17843_v12 = vld [vmem:[#allocation20] ss:$16 sps:$4 sm:$0xff]   ;;  %v17845_v37 = vld [vmem:[#allocation20 + $0x8] ss:$16 sps:$4 sm:$0xff]   ;;  %v17853_v54 = vld [vmem:[#allocation20 + $0x2c] ss:$16 sps:$4 sm:$0xff]  }
 0xe2d   :  { %v10435_v41 = vrot.slane %v14852_v11, 2  ;;  %v14854_v21 = vpop.eup %14853 }
 0xe2e   :  { %v10438_v8 = vmul.f32 %v14854_v21, %v14852_v11  ;;  %v17857_v21 = vld [vmem:[#allocation20 + $0x28] ss:$16 sps:$4 sm:$0xff]  }
 0xe2f   :  { %v10437_v5 = vmul.f32 %v10435_v41, %v17618_v40  ;;  %10965 = vmatpush1.bf16.msra.mxu1 %v17595_v16  ;;  %11006 = vmatpush1.bf16.msra.mxu0 %v17597_v38  ;;  %v18842_v40 = vld [vmem:[#allocation138_spill] sm:$0xff]  ;;  %v18843_v16 = vld [vmem:[#allocation139_spill] sm:$0xff]  ;;  %v18844_v38 = vld [vmem:[#allocation77_spill] sm:$0xff] }
 0xe30   :  { %10966 = vmatprep.subr.bf16.mxu1 %v17601_v13  ;;  %11007 = vmatprep.subr.bf16.mxu0 %v18836_v42  ;;  %v10441_v13 = vrot.slane %v14852_v11, 4  ;;  %v17841_v11 = vld [vmem:[#allocation20 + $0xc] ss:$16 sps:$4 sm:$0xff]   ;;  %v17855_v41 = vld [vmem:[#allocation20 + $0x20] ss:$16 sps:$4 sm:$0xff]  }
 0xe31   :  { %v10439_v0 = vadd.f32 %v10438_v8, %v10437_v5  ;;  %v17863_v8 = vld [vmem:[#allocation20 + $0x44] ss:$16 sps:$4 sm:$0xff]   ;;  %v17865_v5 = vld [vmem:[#allocation20 + $0x4c] ss:$16 sps:$4 sm:$0xff]   ;;  %v17867_v42 = vld [vmem:[#allocation20 + $0x40] ss:$16 sps:$4 sm:$0xff]  }
 0xe33   :  { %14855 = vtanh.f32 %v10439_v0  ;;  %10967 = vmatpush1.bf16.msra.mxu1 %v18837_v32  ;;  %11008 = vmatpush1.bf16.msra.mxu0 %v18838_v27  ;;  %v17869_v0 = vld [vmem:[#allocation20 + $0x48] ss:$16 sps:$4 sm:$0xff]   ;;  %v17875_v32 = vld [vmem:[#allocation20 + $0x64] ss:$16 sps:$4 sm:$0xff]   ;;  %v17877_v27 = vld [vmem:[#allocation20 + $0x6c] ss:$16 sps:$4 sm:$0xff]  }
 0xe34   :  { %10968 = vmatprep.subr.bf16.mxu1 %v18839_v18  ;;  %11009 = vmatprep.subr.bf16.mxu0 %v18840_v34  ;;  %v17879_v18 = vld [vmem:[#allocation20 + $0x60] ss:$16 sps:$4 sm:$0xff]   ;;  %v17881_v34 = vld [vmem:[#allocation20 + $0x68] ss:$16 sps:$4 sm:$0xff]  }
 0xe37   :  { %10969 = vmatpush1.bf16.msra.mxu1 %v18841_v50  ;;  %11010 = vmatpush1.bf16.msra.mxu0 %v18842_v40  ;;  %v17887_v50 = vld [vmem:[#allocation20 + $0x84] ss:$16 sps:$4 sm:$0xff]   ;;  %v17889_v40 = vld [vmem:[#allocation20 + $0x8c] ss:$16 sps:$4 sm:$0xff]  }
 0xe38   :  { %10970 = vmatprep.subr.bf16.mxu1 %v18843_v16  ;;  %11011 = vmatprep.subr.bf16.mxu0 %v18844_v38  ;;  %v17891_v16 = vld [vmem:[#allocation20 + $0x80] ss:$16 sps:$4 sm:$0xff]   ;;  %v17893_v38 = vld [vmem:[#allocation20 + $0x88] ss:$16 sps:$4 sm:$0xff]  }
 0xe3b   :  { %10971 = vmatpush1.bf16.msra.mxu1 %v17635_v56  ;;  %11012 = vmatpush1.bf16.msra.mxu0 %v17637_v23  ;;  %v14665_v56 = vld [vmem:[#allocation23 + $0x24] ss:$16 sps:$4 sm:$0xff]   ;;  %v14668_v23 = vld [vmem:[#allocation23 + $0x2c] ss:$16 sps:$4 sm:$0xff]  }
 0xe3c   :  { %10972 = vmatprep.subr.bf16.mxu1 %v17641_v52  ;;  %11013 = vmatprep.subr.bf16.mxu0 %v17643_v61  ;;  %v14663_v52 = vld [vmem:[#allocation23 + $0x20] ss:$16 sps:$4 sm:$0xff]   ;;  %v14666_v61 = vld [vmem:[#allocation23 + $0x28] ss:$16 sps:$4 sm:$0xff]  }
 0xe3d   :  { %v14856_v36 = vpop.eup %14855 }
 0xe3e   :  { %v10443_v53 = vmul.f32 %v14856_v36, %v10441_v13  ;;  %v17899_v13 = vld [vmem:[#allocation20 + $0xa4] ss:$16 sps:$4 sm:$0xff]   ;;  %v17901_v36 = vld [vmem:[#allocation20 + $0xac] ss:$16 sps:$4 sm:$0xff]  }
 0xe3f   :  { %10973 = vmatpush1.bf16.msra.mxu1 %v17647_v63  ;;  %11014 = vmatpush1.bf16.msra.mxu0 %v17649_v3  ;;  %v14669_v63 = vld [vmem:[#allocation23 + $0x40] ss:$16 sps:$4 sm:$0xff]   ;;  %v14672_v3 = vld [vmem:[#allocation23 + $0x48] ss:$16 sps:$4 sm:$0xff]  }
 0xe40   :  { %v10445_v49 = vpack.c.bf16 %v10443_v53, %v10443_v53  ;;  %11255 = vmatprep.subr.bf16.mxu1 %v14659_v19  ;;  %11295 = vmatprep.subr.bf16.mxu0 %v14662_v20  ;;  %v17903_v19 = vld [vmem:[#allocation20 + $0xa0] ss:$16 sps:$4 sm:$0xff]   ;;  %v17905_v20 = vld [vmem:[#allocation20 + $0xa8] ss:$16 sps:$4 sm:$0xff]   ;;  %v17911_v53 = vld [vmem:[#allocation20 + $0xc4] ss:$16 sps:$4 sm:$0xff]  }
 0xe42   :  { %10991 = vmatmul.mubr.bf16.vlgmr.msra.gmra.mrb[128].mxu1 %v10445_v49  ;;  %11032 = vmatmul.mubr.bf16.vlgmr.msra.gmra.mrb[128].mxu0 %v10445_v49  ;;  %v17917_v49 = vld [vmem:[#allocation20 + $0xc8] ss:$16 sps:$4 sm:$0xff]  }
 0xe43   :  { %11256 = vmatpush1.bf16.msra.mxu1 %v14657_v9  ;;  %11296 = vmatpush1.bf16.msra.mxu0 %v14660_v48  ;;  %v17913_v9 = vld [vmem:[#allocation20 + $0xcc] ss:$16 sps:$4 sm:$0xff]   ;;  %v17915_v48 = vld [vmem:[#allocation20 + $0xc0] ss:$16 sps:$4 sm:$0xff]  }
 0xe44   :  { %11257 = vmatprep.subr.bf16.mxu1 %v14665_v56  ;;  %11297 = vmatprep.subr.bf16.mxu0 %v14668_v23  ;;  %v17923_v56 = vld [vmem:[#allocation20 + $0xe4] ss:$16 sps:$4 sm:$0xff]   ;;  %v17925_v23 = vld [vmem:[#allocation20 + $0xec] ss:$16 sps:$4 sm:$0xff]  }
 0xe45   :  { %11287 = vmatprep.mubr.bf16.mxu1 %v18407_v25  ;;  %11327 = vmatprep.mubr.bf16.mxu0 %v18407_v25 }
 0xe47   :  { %11258 = vmatpush1.bf16.msra.mxu1 %v14663_v52  ;;  %11298 = vmatpush1.bf16.msra.mxu0 %v14666_v61  ;;  %v17927_v52 = vld [vmem:[#allocation20 + $0xe0] ss:$16 sps:$4 sm:$0xff]   ;;  %v17929_v61 = vld [vmem:[#allocation20 + $0xe8] ss:$16 sps:$4 sm:$0xff]  }
 0xe48   :  { %11259 = vmatprep.subr.bf16.mxu1 %v14671_v6  ;;  %11299 = vmatprep.subr.bf16.mxu0 %v14674_v10  ;;  %v10478_v6 = vld [vmem:[#allocation22] sm:$0xf] }
 0xe49   :  { %v10483_v10 = vrot.slane %v10478_v6, %v18817_v51 }
 0xe4b   :  { %11260 = vmatpush1.bf16.msra.mxu1 %v14669_v63  ;;  %11300 = vmatpush1.bf16.msra.mxu0 %v14672_v3  ;;  %v10491_v63 = vrot.slane %v10478_v6, %v18818_v14  ;;  %v10487_v3 = vrot.slane %v10478_v6, %v18819_v62 }
 0xe4c   :  { %11261 = vmatprep.subr.bf16.mxu1 %v14677_v43  ;;  %11301 = vmatprep.subr.bf16.mxu0 %v14680_v33  ;;  %v10495_v43 = vrot.slane %v10478_v6, %v18820_v46 }
 0xe4f   :  { %11262 = vmatpush1.bf16.msra.mxu1 %v14675_v7  ;;  %11302 = vmatpush1.bf16.msra.mxu0 %v14678_v58 }
 0xe50   :  { %11263 = vmatprep.subr.bf16.mxu1 %v14683_v4  ;;  %11303 = vmatprep.subr.bf16.mxu0 %v14686_v24 }
 0xe53   :  { %11264 = vmatpush1.bf16.msra.mxu1 %v14681_v31  ;;  %11304 = vmatpush1.bf16.msra.mxu0 %v14684_v55 }
 0xe54   :  { %11265 = vmatprep.subr.bf16.mxu1 %v14689_v30  ;;  %11305 = vmatprep.subr.bf16.mxu0 %v14692_v1 }
 0xe57   :  { %11266 = vmatpush1.bf16.msra.mxu1 %v14687_v28  ;;  %11306 = vmatpush1.bf16.msra.mxu0 %v14690_v22 }
 0xe58   :  { %11267 = vmatprep.subr.bf16.mxu1 %v14695_v17  ;;  %11307 = vmatprep.subr.bf16.mxu0 %v14698_v57 }
 0xe5b   :  { %11268 = vmatpush1.bf16.msra.mxu1 %v14693_v15  ;;  %11308 = vmatpush1.bf16.msra.mxu0 %v14696_v45 }
 0xe5c   :  { %11269 = vmatprep.subr.bf16.mxu1 %v14701_v29  ;;  %11309 = vmatprep.subr.bf16.mxu0 %v14704_v60  ;;  %v18845_v60 = vld [vmem:[#allocation127_spill] sm:$0xff] }
 0xe5f   :  { %11270 = vmatpush1.bf16.msra.mxu1 %v14699_v35  ;;  %11310 = vmatpush1.bf16.msra.mxu0 %v14702_v26  ;;  %v18846_v35 = vld [vmem:[#allocation128_spill] sm:$0xff] }
 0xe60   :  { %11553 = vmatprep.subr.bf16.mxu1 %v17839_v39  ;;  %11594 = vmatprep.subr.bf16.mxu0 %v17841_v11  ;;  %v18847_v26 = vcombine.low %v18845_v60, %v18846_v35  ;;  %v5790_v35 = vld [vmem:[#allocation26] sm:$0xf] }
 0xe62   :  { %11288 = vmatmul.mubr.bf16.vlgmr.msra.gmra.mrb[64].mxu1 %v17796_v47  ;;  %11328 = vmatmul.mubr.bf16.vlgmr.msra.gmra.mrb[64].mxu0 %v17796_v47  ;;  %v17851_v47 = vld [vmem:[#allocation20 + $0x24] ss:$16 sps:$4 sm:$0xff]  }
 0xe63   :  { %11585 = vmatprep.mubr.bf16.mxu1 %v18407_v25  ;;  %11626 = vmatprep.mubr.bf16.mxu0 %v18407_v25 }
 0xe64   :  { %11554 = vmatpush1.bf16.msra.mxu1 %v17843_v12  ;;  %11595 = vmatpush1.bf16.msra.mxu0 %v17845_v37 }
 0xe65   :  { %11555 = vmatprep.subr.bf16.mxu1 %v17851_v47  ;;  %11596 = vmatprep.subr.bf16.mxu0 %v17853_v54 }
 0xe68   :  { %11556 = vmatpush1.bf16.msra.mxu1 %v17855_v41  ;;  %11597 = vmatpush1.bf16.msra.mxu0 %v17857_v21 }
 0xe69   :  { %11557 = vmatprep.subr.bf16.mxu1 %v17863_v8  ;;  %11598 = vmatprep.subr.bf16.mxu0 %v17865_v5 }
 0xe6c   :  { %11558 = vmatpush1.bf16.msra.mxu1 %v17867_v42  ;;  %11599 = vmatpush1.bf16.msra.mxu0 %v17869_v0 }
 0xe6d   :  { %11559 = vmatprep.subr.bf16.mxu1 %v17875_v32  ;;  %11600 = vmatprep.subr.bf16.mxu0 %v17877_v27 }
 0xe70   :  { %11560 = vmatpush1.bf16.msra.mxu1 %v17879_v18  ;;  %11601 = vmatpush1.bf16.msra.mxu0 %v17881_v34 }
 0xe71   :  { %11561 = vmatprep.subr.bf16.mxu1 %v17887_v50  ;;  %11602 = vmatprep.subr.bf16.mxu0 %v17889_v40 }
 0xe74   :  { %11562 = vmatpush1.bf16.msra.mxu1 %v17891_v16  ;;  %11603 = vmatpush1.bf16.msra.mxu0 %v17893_v38 }
 0xe75   :  { %11563 = vmatprep.subr.bf16.mxu1 %v17899_v13  ;;  %11604 = vmatprep.subr.bf16.mxu0 %v17901_v36 }
 0xe78   :  { %11564 = vmatpush1.bf16.msra.mxu1 %v17903_v19  ;;  %11605 = vmatpush1.bf16.msra.mxu0 %v17905_v20 }
 0xe79   :  { %11565 = vmatprep.subr.bf16.mxu1 %v17911_v53  ;;  %11606 = vmatprep.subr.bf16.mxu0 %v17913_v9 }
 0xe7c   :  { %11566 = vmatpush1.bf16.msra.mxu1 %v17915_v48  ;;  %11607 = vmatpush1.bf16.msra.mxu0 %v17917_v49 }
 0xe7d   :  { %11567 = vmatprep.subr.bf16.mxu1 %v17923_v56  ;;  %11608 = vmatprep.subr.bf16.mxu0 %v17925_v23 }
 0xe80   :  { %11568 = vmatpush1.bf16.msra.mxu1 %v17927_v52  ;;  %11609 = vmatpush1.bf16.msra.mxu0 %v17929_v61 }
 0xe81   :  { %11681 = vmatprep.subr.bf16.mxu1 %v17839_v39  ;;  %11722 = vmatprep.subr.bf16.mxu0 %v17841_v11 }
 0xef5   :  { %v10694_v33 = vpop.f32.mrb[124].mxu1  ;;  %v10735_v7 = vpop.f32.mrb[124].mxu0 }
 0xef6   :  { %v10695_v58 = vadd.f32 %v10694_v33, %v10483_v10  ;;  %v10736_v4 = vadd.f32 %v10735_v7, %v10491_v63  ;;  %v10696_v24 = vpop.f32.mrb[125].mxu1  ;;  %v10737_v31 = vpop.f32.mrb[125].mxu0 }
 0xef7   :  { %v10697_v55 = vadd.f32 %v10696_v24, %v10487_v3  ;;  %v10738_v30 = vadd.f32 %v10737_v31, %v10495_v43  ;;  %v10698_v1 = vpop.f32.mrb[126].mxu1  ;;  %v10739_v28 = vpop.f32.mrb[126].mxu0 }
 0xef8   :  { %v10699_v22 = vpop.f32.mrb[127].mxu1  ;;  %v10740_v17 = vpop.f32.mrb[127].mxu0  ;;  %v18848_v28 = vld [vmem:[#allocation62_spill] sm:$0xff] }
 0xef9   :  { %v10746_v57 = vcombine.low %v10695_v58, %v10697_v55  ;;  %v10747_v15 = vcombine.low %v10736_v4, %v10738_v30  ;;  %v18849_v22 = vld [vmem:[#allocation63_spill] sm:$0xff] }
 0xefa   :  { %v18850_v17 = vcombine.low %v18848_v28, %v18849_v22 }
 0xefb   :  { %v10754_v45 = vrot.slane %v10746_v57, %v16070_v44  ;;  %v10761_v62 = vrot.slane %v10747_v15, %v16070_v44 }
 0xefd   :  { %v10762_v29 = vcombine.low %v10754_v45, %v10761_v62 }
 0xeff   :  { %v17946_v6 = vadd.f32 %v10762_v29, %v18847_v26  ;;  %v5795_v26 = vrot.slane %v5790_v35, %v18817_v51 }
 0xf15   :  { %v10992_v10 = vpop.f32.mrb[128].mxu1  ;;  %v11033_v63 = vpop.f32.mrb[128].mxu0 }
 0xf16   :  { %v10994_v3 = vpop.f32.mrb[129].mxu1  ;;  %v11035_v43 = vpop.f32.mrb[129].mxu0 }
 0xf17   :  { %v11044_v33 = vcombine.low %v10992_v10, %v10994_v3  ;;  %v11045_v7 = vcombine.low %v11033_v63, %v11035_v43  ;;  %v10996_v24 = vpop.f32.mrb[130].mxu1  ;;  %v11037_v31 = vpop.f32.mrb[130].mxu0  ;;  %v5799_v10 = vrot.slane %v5790_v35, %v18818_v14 }
 0xf18   :  { %v10997_v58 = vpop.f32.mrb[131].mxu1  ;;  %v11038_v4 = vpop.f32.mrb[131].mxu0 }
 0xf19   :  { %v11052_v55 = vrot.slane %v11044_v33, %v16070_v44  ;;  %v11059_v30 = vrot.slane %v11045_v7, %v16070_v44 }
 0xf1b   :  { %v11060_v1 = vcombine.low %v11052_v55, %v11059_v30 }
 0xf1d   :  { %v11341_v57 = vadd.f32 %v11060_v1, %v18850_v17 }
 0xf1f   :  { %v11342_v15 = vsub.f32 0.0, %v11341_v57  ;;  %v11348_v62 = vrot.slane %v11341_v57, 6  ;;  %v5803_v57 = vrot.slane %v5790_v35, %v18820_v46 }
 0xf21   :  { %v11343_v45 = vmul.f32 1.442695, %v11342_v15 }
 0xf23   :  { %14857 = vpow2.f32 %v11343_v45 }
 0xf24   :  { %14859 = vtanh.f32 %v11348_v62 }
 0xf2d   :  { %v14858_v29 = vpop.eup %14857 }
 0xf2e   :  { %v11345_v60 = vadd.f32 1.0, %v14858_v29  ;;  %v14860_v1 = vpop.eup %14859 }
 0xf30   :  { %14861 = vrcp.f32 %v11345_v60 }
 0xf35   :  { %v11289_v63 = vpop.f32.mrb[64].mxu1  ;;  %v11329_v3 = vpop.f32.mrb[64].mxu0 }
 0xf36   :  { %v14007_v43 = vadd.f32 %v11289_v63, %v5795_v26  ;;  %v11291_v33 = vpop.f32.mrb[65].mxu1  ;;  %v11331_v7 = vpop.f32.mrb[65].mxu0  ;;  %v14008_v4 = vadd.f32 %v11329_v3, %v5799_v10 }
 0xf37   :  { %v11292_v24 = vpop.f32.mrb[66].mxu1  ;;  %v11333_v31 = vpop.f32.mrb[66].mxu0  ;;  %v14009_v15 = vadd.f32 %v11331_v7, %v5803_v57 }
 0xf38   :  { %v12061_v58 = vsub.f32 0.0, %v14007_v43  ;;  %v11293_v55 = vpop.f32.mrb[67].mxu1  ;;  %v11334_v30 = vpop.f32.mrb[67].mxu0  ;;  %v12062_v51 = vsub.f32 0.0, %v14008_v4 }
 0xf3a   :  { %v14862_v28 = vpop.eup %14861  ;;  %v12063_v22 = vmul.f32 1.442695, %v12061_v58  ;;  %v12065_v14 = vmul.f32 1.442695, %v12062_v51 }
 0xf3b   :  { %v17955_v17 = vmul.f32 %v14862_v28, %v14860_v1  ;;  %v11354_v29 = vrot.slane %v14862_v28, 4 }
 0xf3c   :  { %14863 = vpow2.f32 %v12063_v22 }
 0xf3d   :  { %14865 = vtanh.f32 %v17955_v17 }
 0xf3e   :  { %14867 = vpow2.f32 %v12065_v14 }
 0xf3f   :  { %14869 = vtanh.f32 %v14009_v15 }
 0xf46   :  { %v14864_v45 = vpop.eup %14863 }
 0xf47   :  { %v12067_v62 = vadd.f32 1.0, %v14864_v45  ;;  %v14866_v60 = vpop.eup %14865 }
 0xf48   :  { %v11356_v26 = vmul.f32 %v14866_v60, %v11354_v29  ;;  %v14868_v63 = vpop.eup %14867 }
 0xf49   :  { %14871 = vrcp.f32 %v12067_v62  ;;  %v12068_v46 = vadd.f32 1.0, %v14868_v63  ;;  %v14870_v35 = vpop.eup %14869 }
 0xf4a   :  { %v11360_v10 = vpack.c.bf16 %v11356_v26, %v11356_v26 }
 0xf4b   :  { %14873 = vrcp.f32 %v12068_v46 }
 0xf4c   :  { %11586 = vmatmul.mubr.bf16.vlgmr.msra.gmra.mrb[132].mxu1 %v11360_v10  ;;  %11627 = vmatmul.mubr.bf16.vlgmr.msra.gmra.mrb[132].mxu0 %v11360_v10 }
 0xf4d   :  { %11682 = vmatpush1.bf16.msra.mxu1 %v17843_v12  ;;  %11723 = vmatpush1.bf16.msra.mxu0 %v17845_v37 }
 0xf4e   :  { %11683 = vmatprep.subr.bf16.mxu1 %v17851_v47  ;;  %11724 = vmatprep.subr.bf16.mxu0 %v17853_v54 }
 0xf4f   :  { %11713 = vmatprep.mubr.bf16.mxu1 %v18407_v25  ;;  %11754 = vmatprep.mubr.bf16.mxu0 %v18407_v25 }
 0xf51   :  { %11684 = vmatpush1.bf16.msra.mxu1 %v17855_v41  ;;  %11725 = vmatpush1.bf16.msra.mxu0 %v17857_v21 }
 0xf52   :  { %11685 = vmatprep.subr.bf16.mxu1 %v17863_v8  ;;  %11726 = vmatprep.subr.bf16.mxu0 %v17865_v5 }
 0xf53   :  { %v14872_v3 = vpop.eup %14871 }
 0xf54   :  { %v12072_v43 = vmul.f32 %v14872_v3, %v14870_v35 }
 0xf55   :  { %11686 = vmatpush1.bf16.msra.mxu1 %v17867_v42  ;;  %11727 = vmatpush1.bf16.msra.mxu0 %v17869_v0  ;;  %v14874_v33 = vpop.eup %14873 }
 0xf56   :  { %14875 = vtanh.f32 %v12072_v43  ;;  %11687 = vmatprep.subr.bf16.mxu1 %v17875_v32  ;;  %11728 = vmatprep.subr.bf16.mxu0 %v17877_v27 }
 0xf59   :  { %11688 = vmatpush1.bf16.msra.mxu1 %v17879_v18  ;;  %11729 = vmatpush1.bf16.msra.mxu0 %v17881_v34 }
 0xf5a   :  { %11689 = vmatprep.subr.bf16.mxu1 %v17887_v50  ;;  %11730 = vmatprep.subr.bf16.mxu0 %v17889_v40 }
 0xf5d   :  { %11690 = vmatpush1.bf16.msra.mxu1 %v17891_v16  ;;  %11731 = vmatpush1.bf16.msra.mxu0 %v17893_v38 }
 0xf5e   :  { %11691 = vmatprep.subr.bf16.mxu1 %v17899_v13  ;;  %11732 = vmatprep.subr.bf16.mxu0 %v17901_v36 }
 0xf60   :  { %v14876_v7 = vpop.eup %14875 }
 0xf61   :  { %v17981_v24 = vmul.f32 %v14876_v7, %v14874_v33  ;;  %11692 = vmatpush1.bf16.msra.mxu1 %v17903_v19  ;;  %11733 = vmatpush1.bf16.msra.mxu0 %v17905_v20 }
 0xf62   :  { %11693 = vmatprep.subr.bf16.mxu1 %v17911_v53  ;;  %11734 = vmatprep.subr.bf16.mxu0 %v17913_v9 }
 0xf65   :  { %11694 = vmatpush1.bf16.msra.mxu1 %v17915_v48  ;;  %11735 = vmatpush1.bf16.msra.mxu0 %v17917_v49 }
 0xf66   :  { %11695 = vmatprep.subr.bf16.mxu1 %v17923_v56  ;;  %11736 = vmatprep.subr.bf16.mxu0 %v17925_v23 }
 0xf69   :  { %11696 = vmatpush1.bf16.msra.mxu1 %v17927_v52  ;;  %11737 = vmatpush1.bf16.msra.mxu0 %v17929_v61 }
 0xf6a   :  { %11809 = vmatprep.subr.bf16.mxu1 %v17839_v39  ;;  %11850 = vmatprep.subr.bf16.mxu0 %v17841_v11 }
0x101f   :  { %v11587_v31 = vpop.f32.mrb[132].mxu1  ;;  %v11628_v58 = vpop.f32.mrb[132].mxu0 }
0x1020   :  { %v11589_v4 = vpop.f32.mrb[133].mxu1  ;;  %v11630_v55 = vpop.f32.mrb[133].mxu0 }
0x1021   :  { %v11639_v30 = vcombine.low %v11587_v31, %v11589_v4  ;;  %v11640_v1 = vcombine.low %v11628_v58, %v11630_v55  ;;  %v11591_v28 = vpop.f32.mrb[134].mxu1  ;;  %v11632_v22 = vpop.f32.mrb[134].mxu0 }
0x1022   :  { %v11592_v51 = vpop.f32.mrb[135].mxu1  ;;  %v11633_v14 = vpop.f32.mrb[135].mxu0 }
0x1023   :  { %v11647_v57 = vrot.slane %v11639_v30, %v16070_v44  ;;  %v11654_v15 = vrot.slane %v11640_v1, %v16070_v44 }
0x1025   :  { %v11655_v45 = vcombine.low %v11647_v57, %v11654_v15 }
0x1027   :  { %v11657_v62 = vadd.f32 %v11655_v45, %v17783_v59 }
0x1029   :  { %v11658_v29 = vsub.f32 0.0, %v11657_v62  ;;  %v11664_v63 = vrot.slane %v11657_v62, 6 }
0x102b   :  { %v11659_v60 = vmul.f32 1.442695, %v11658_v29 }
0x102d   :  { %14877 = vpow2.f32 %v11659_v60  ;;  %v18851_v60 = vld [vmem:[#allocation56_spill] sm:$0xff] }
0x1037   :  { %v14878_v26 = vpop.eup %14877 }
0x1038   :  { %v11661_v10 = vadd.f32 1.0, %v14878_v26 }
0x103a   :  { %14879 = vrcp.f32 %v11661_v10 }
0x103b   :  { %14881 = vtanh.f32 %v11664_v63 }
0x1044   :  { %v14880_v46 = vpop.eup %14879 }
0x1045   :  { %v11668_v35 = vrot.slane %v14880_v46, 2  ;;  %v14882_v3 = vpop.eup %14881  ;;  %v11674_v31 = vrot.slane %v14880_v46, 4 }
0x1046   :  { %v11671_v43 = vmul.f32 %v14882_v3, %v14880_v46 }
0x1047   :  { %v11670_v33 = vmul.f32 %v11668_v35, %v17955_v17 }
0x1049   :  { %v17999_v7 = vadd.f32 %v11671_v43, %v11670_v33 }
0x104b   :  { %14883 = vtanh.f32 %v17999_v7 }
0x1055   :  { %v14884_v59 = vpop.eup %14883 }
0x1056   :  { %v11676_v58 = vmul.f32 %v14884_v59, %v11674_v31 }
0x1058   :  { %v11680_v4 = vpack.c.bf16 %v11676_v58, %v11676_v58 }
0x105a   :  { %11714 = vmatmul.mubr.bf16.vlgmr.msra.gmra.mrb[136].mxu1 %v11680_v4  ;;  %11755 = vmatmul.mubr.bf16.vlgmr.msra.gmra.mrb[136].mxu0 %v11680_v4 }
0x105b   :  { %11810 = vmatpush1.bf16.msra.mxu1 %v17843_v12  ;;  %11851 = vmatpush1.bf16.msra.mxu0 %v17845_v37 }
0x105c   :  { %11811 = vmatprep.subr.bf16.mxu1 %v17851_v47  ;;  %11852 = vmatprep.subr.bf16.mxu0 %v17853_v54 }
0x105d   :  { %11841 = vmatprep.mubr.bf16.mxu1 %v18407_v25  ;;  %11882 = vmatprep.mubr.bf16.mxu0 %v18407_v25 }
0x105f   :  { %11812 = vmatpush1.bf16.msra.mxu1 %v17855_v41  ;;  %11853 = vmatpush1.bf16.msra.mxu0 %v17857_v21 }
0x1060   :  { %11813 = vmatprep.subr.bf16.mxu1 %v17863_v8  ;;  %11854 = vmatprep.subr.bf16.mxu0 %v17865_v5 }
0x1063   :  { %11814 = vmatpush1.bf16.msra.mxu1 %v17867_v42  ;;  %11855 = vmatpush1.bf16.msra.mxu0 %v17869_v0 }
0x1064   :  { %11815 = vmatprep.subr.bf16.mxu1 %v17875_v32  ;;  %11856 = vmatprep.subr.bf16.mxu0 %v17877_v27 }
0x1067   :  { %11816 = vmatpush1.bf16.msra.mxu1 %v17879_v18  ;;  %11857 = vmatpush1.bf16.msra.mxu0 %v17881_v34 }
0x1068   :  { %11817 = vmatprep.subr.bf16.mxu1 %v17887_v50  ;;  %11858 = vmatprep.subr.bf16.mxu0 %v17889_v40 }
0x106b   :  { %11818 = vmatpush1.bf16.msra.mxu1 %v17891_v16  ;;  %11859 = vmatpush1.bf16.msra.mxu0 %v17893_v38 }
0x106c   :  { %11819 = vmatprep.subr.bf16.mxu1 %v17899_v13  ;;  %11860 = vmatprep.subr.bf16.mxu0 %v17901_v36 }
0x106f   :  { %11820 = vmatpush1.bf16.msra.mxu1 %v17903_v19  ;;  %11861 = vmatpush1.bf16.msra.mxu0 %v17905_v20 }
0x1070   :  { %11821 = vmatprep.subr.bf16.mxu1 %v17911_v53  ;;  %11862 = vmatprep.subr.bf16.mxu0 %v17913_v9 }
0x1073   :  { %11822 = vmatpush1.bf16.msra.mxu1 %v17915_v48  ;;  %11863 = vmatpush1.bf16.msra.mxu0 %v17917_v49 }
0x1074   :  { %11823 = vmatprep.subr.bf16.mxu1 %v17923_v56  ;;  %11864 = vmatprep.subr.bf16.mxu0 %v17925_v23 }
0x1077   :  { %11824 = vmatpush1.bf16.msra.mxu1 %v17927_v52  ;;  %11865 = vmatpush1.bf16.msra.mxu0 %v17929_v61 }
0x1078   :  { %11937 = vmatprep.subr.bf16.mxu1 %v17839_v39  ;;  %11978 = vmatprep.subr.bf16.mxu0 %v17841_v11 }
0x112d   :  { %v11715_v17 = vpop.f32.mrb[136].mxu1  ;;  %v11756_v55 = vpop.f32.mrb[136].mxu0 }
0x112e   :  { %v11717_v30 = vpop.f32.mrb[137].mxu1  ;;  %v11758_v1 = vpop.f32.mrb[137].mxu0 }
0x112f   :  { %v11767_v28 = vcombine.low %v11715_v17, %v11717_v30  ;;  %v11768_v22 = vcombine.low %v11756_v55, %v11758_v1  ;;  %v11719_v51 = vpop.f32.mrb[138].mxu1  ;;  %v11760_v14 = vpop.f32.mrb[138].mxu0  ;;  %v14756_v30 = vld [vmem:[#allocation28 + $0x58] sm:$0xff]   ;;  %v14757_v1 = vld [vmem:[#allocation28 + $0x60] sm:$0xff]  }
0x1130   :  { %v11720_v57 = vpop.f32.mrb[139].mxu1  ;;  %v11761_v15 = vpop.f32.mrb[139].mxu0  ;;  %v14760_v51 = vld [vmem:[#allocation28 + $0x78] sm:$0xff]   ;;  %v12092_v14 = vpack.c.bf16 %v17981_v24, %v17981_v24  ;;  %v14765_v24 = vld [vmem:[#allocation28 + $0x20] sm:$0xff]  }
0x1131   :  { %v11775_v45 = vrot.slane %v11767_v28, %v16070_v44  ;;  %v11782_v62 = vrot.slane %v11768_v22, %v16070_v44  ;;  %v14758_v28 = vld [vmem:[#allocation28 + $0x68] sm:$0xff]   ;;  %v14759_v22 = vld [vmem:[#allocation28 + $0x70] sm:$0xff]   ;;  %v14761_v57 = vld [vmem:[#allocation28] sm:$0xff]  }
0x1132   :  { %v14762_v15 = vld [vmem:[#allocation28 + $0x8] sm:$0xff]  }
0x1133   :  { %v11783_v29 = vcombine.low %v11775_v45, %v11782_v62  ;;  %v14763_v45 = vld [vmem:[#allocation28 + $0x10] sm:$0xff]   ;;  %v14764_v62 = vld [vmem:[#allocation28 + $0x18] sm:$0xff]  }
0x1135   :  { %v11785_v26 = vadd.f32 %v11783_v29, %v18851_v60  ;;  %v14766_v29 = vld [vmem:[#allocation28 + $0x28] sm:$0xff]   ;;  %v14767_v60 = vld [vmem:[#allocation28 + $0x30] sm:$0xff]  }
0x1137   :  { %v11786_v39 = vsub.f32 0.0, %v11785_v26  ;;  %v11792_v46 = vrot.slane %v11785_v26, 6  ;;  %v14768_v26 = vld [vmem:[#allocation28 + $0x38] sm:$0xff]  }
0x1139   :  { %v11787_v10 = vmul.f32 1.442695, %v11786_v39  ;;  %v14769_v39 = vld [vmem:[#allocation31] sm:$0xff]  }
0x113b   :  { %14885 = vpow2.f32 %v11787_v10  ;;  %v14770_v10 = vld [vmem:[#allocation31 + $0x8] sm:$0xff]  }
0x1145   :  { %v14886_v11 = vpop.eup %14885 }
0x1146   :  { %v11789_v63 = vadd.f32 1.0, %v14886_v11  ;;  %v14771_v11 = vld [vmem:[#allocation31 + $0x10] sm:$0xff]  }
0x1148   :  { %14887 = vrcp.f32 %v11789_v63  ;;  %v14772_v63 = vld [vmem:[#allocation31 + $0x18] sm:$0xff]  }
0x1149   :  { %14889 = vtanh.f32 %v11792_v46  ;;  %v14773_v46 = vld [vmem:[#allocation31 + $0x20] sm:$0xff]  }
0x1152   :  { %v14888_v35 = vpop.eup %14887 }
0x1153   :  { %v11796_v3 = vrot.slane %v14888_v35, 2  ;;  %v14890_v43 = vpop.eup %14889  ;;  %v11802_v58 = vrot.slane %v14888_v35, 4 }
0x1154   :  { %v11799_v33 = vmul.f32 %v14890_v43, %v14888_v35  ;;  %v14774_v35 = vld [vmem:[#allocation31 + $0x28] sm:$0xff]  }
0x1155   :  { %v11798_v31 = vmul.f32 %v11796_v3, %v17999_v7  ;;  %v14755_v7 = vld [vmem:[#allocation28 + $0x50] sm:$0xff]  }
0x1157   :  { %v18040_v59 = vadd.f32 %v11799_v33, %v11798_v31 }
0x1159   :  { %14891 = vtanh.f32 %v18040_v59 }
0x1163   :  { %v14892_v4 = vpop.eup %14891 }
0x1164   :  { %v11804_v17 = vmul.f32 %v14892_v4, %v11802_v58 }
0x1166   :  { %v11808_v55 = vpack.c.bf16 %v11804_v17, %v11804_v17 }
0x1168   :  { %11842 = vmatmul.mubr.bf16.vlgmr.msra.gmra.mrb[140].mxu1 %v11808_v55  ;;  %11883 = vmatmul.mubr.bf16.vlgmr.msra.gmra.mrb[140].mxu0 %v11808_v55 }
0x1169   :  { %11938 = vmatpush1.bf16.msra.mxu1 %v17843_v12  ;;  %11979 = vmatpush1.bf16.msra.mxu0 %v17845_v37 }
0x116a   :  { %11939 = vmatprep.subr.bf16.mxu1 %v17851_v47  ;;  %11980 = vmatprep.subr.bf16.mxu0 %v17853_v54 }
0x116b   :  { %11969 = vmatprep.mubr.bf16.mxu1 %v18407_v25  ;;  %12010 = vmatprep.mubr.bf16.mxu0 %v18407_v25  ;;  %v15379_v25 = vmov 0.0  }
0x116d   :  { %11940 = vmatpush1.bf16.msra.mxu1 %v17855_v41  ;;  %11981 = vmatpush1.bf16.msra.mxu0 %v17857_v21 }
0x116e   :  { %11941 = vmatprep.subr.bf16.mxu1 %v17863_v8  ;;  %11982 = vmatprep.subr.bf16.mxu0 %v17865_v5 }
0x1171   :  { %11942 = vmatpush1.bf16.msra.mxu1 %v17867_v42  ;;  %11983 = vmatpush1.bf16.msra.mxu0 %v17869_v0 }
0x1172   :  { %11943 = vmatprep.subr.bf16.mxu1 %v17875_v32  ;;  %11984 = vmatprep.subr.bf16.mxu0 %v17877_v27 }
0x1175   :  { %11944 = vmatpush1.bf16.msra.mxu1 %v17879_v18  ;;  %11985 = vmatpush1.bf16.msra.mxu0 %v17881_v34 }
0x1176   :  { %11945 = vmatprep.subr.bf16.mxu1 %v17887_v50  ;;  %11986 = vmatprep.subr.bf16.mxu0 %v17889_v40 }
0x1179   :  { %11946 = vmatpush1.bf16.msra.mxu1 %v17891_v16  ;;  %11987 = vmatpush1.bf16.msra.mxu0 %v17893_v38 }
0x117a   :  { %11947 = vmatprep.subr.bf16.mxu1 %v17899_v13  ;;  %11988 = vmatprep.subr.bf16.mxu0 %v17901_v36 }
0x117d   :  { %11948 = vmatpush1.bf16.msra.mxu1 %v17903_v19  ;;  %11989 = vmatpush1.bf16.msra.mxu0 %v17905_v20 }
0x117e   :  { %11949 = vmatprep.subr.bf16.mxu1 %v17911_v53  ;;  %11990 = vmatprep.subr.bf16.mxu0 %v17913_v9 }
0x1181   :  { %11950 = vmatpush1.bf16.msra.mxu1 %v17915_v48  ;;  %11991 = vmatpush1.bf16.msra.mxu0 %v17917_v49 }
0x1182   :  { %11951 = vmatprep.subr.bf16.mxu1 %v17923_v56  ;;  %11992 = vmatprep.subr.bf16.mxu0 %v17925_v23  ;;  %v14753_v23 = vld [vmem:[#allocation28 + $0x40] sm:$0xff]  }
0x1185   :  { %11952 = vmatpush1.bf16.msra.mxu1 %v17927_v52  ;;  %11993 = vmatpush1.bf16.msra.mxu0 %v17929_v61  ;;  %v14754_v61 = vld [vmem:[#allocation28 + $0x48] sm:$0xff]  }
0x1186   :  { %13687 = vmatprep.subr.bf16.mxu1 %v15379_v25  ;;  %13707 = vmatprep.subr.bf16.mxu0 %v15379_v25 }
0x123b   :  { %v11843_v12 = vpop.f32.mrb[140].mxu1  ;;  %v11884_v37 = vpop.f32.mrb[140].mxu0 }
0x123c   :  { %v11845_v47 = vpop.f32.mrb[141].mxu1  ;;  %v11886_v54 = vpop.f32.mrb[141].mxu0 }
0x123d   :  { %v11895_v41 = vcombine.low %v11843_v12, %v11845_v47  ;;  %v11896_v21 = vcombine.low %v11884_v37, %v11886_v54  ;;  %v11847_v8 = vpop.f32.mrb[142].mxu1  ;;  %v11888_v5 = vpop.f32.mrb[142].mxu0 }
0x123e   :  { %v11848_v42 = vpop.f32.mrb[143].mxu1  ;;  %v11889_v0 = vpop.f32.mrb[143].mxu0 }
0x123f   :  { %v11903_v32 = vrot.slane %v11895_v41, %v16070_v44  ;;  %v11910_v27 = vrot.slane %v11896_v21, %v16070_v44 }
0x1241   :  { %v11911_v18 = vcombine.low %v11903_v32, %v11910_v27 }
0x1243   :  { %v11913_v34 = vadd.f32 %v11911_v18, %v17776_v2 }
0x1245   :  { %v11914_v50 = vsub.f32 0.0, %v11913_v34  ;;  %v11920_v13 = vrot.slane %v11913_v34, 6 }
0x1247   :  { %v11915_v40 = vmul.f32 1.442695, %v11914_v50 }
0x1249   :  { %14893 = vpow2.f32 %v11915_v40 }
0x1253   :  { %v14894_v16 = vpop.eup %14893 }
0x1254   :  { %v11917_v38 = vadd.f32 1.0, %v14894_v16 }
0x1256   :  { %14895 = vrcp.f32 %v11917_v38 }
0x1257   :  { %14897 = vtanh.f32 %v11920_v13 }
0x1260   :  { %v14896_v36 = vpop.eup %14895 }
0x1261   :  { %v11924_v19 = vrot.slane %v14896_v36, 2  ;;  %v14898_v20 = vpop.eup %14897  ;;  %v11930_v49 = vrot.slane %v14896_v36, 4 }
0x1262   :  { %v11927_v53 = vmul.f32 %v14898_v20, %v14896_v36 }
0x1263   :  { %v11926_v9 = vmul.f32 %v11924_v19, %v18040_v59 }
0x1265   :  { %v18081_v48 = vadd.f32 %v11927_v53, %v11926_v9  ;;  %v14775_v53 = vld [vmem:[#allocation31 + $0x30] sm:$0xff]   ;;  %v14776_v9 = vld [vmem:[#allocation31 + $0x38] sm:$0xff]  }
0x1267   :  { %14899 = vtanh.f32 %v18081_v48 }
0x1271   :  { %v14900_v2 = vpop.eup %14899 }
0x1272   :  { %v11932_v56 = vmul.f32 %v14900_v2, %v11930_v49  ;;  %v13540_v2 = vld [vmem:[#allocation29] ss:$0 sm:$0xff] }
0x1274   :  { %v11936_v52 = vpack.c.bf16 %v11932_v56, %v11932_v56 }
0x1276   :  { %11970 = vmatmul.mubr.bf16.vlgmr.msra.gmra.mrb[144].mxu1 %v11936_v52  ;;  %12011 = vmatmul.mubr.bf16.vlgmr.msra.gmra.mrb[144].mxu0 %v11936_v52 }
0x1277   :  { %13688 = vmatpush3.bf16.msra.mxu1 %v14753_v23  ;;  %13703 = vmatprep.mubr.msk.bf16.mxu1 %vm15380_vm2, %v15379_v25 }
0x1278   :  { %13689 = vmatprep.subr.bf16.mxu1 %v15379_v25  ;;  %13723 = vmatprep.mubr.msk.bf16.mxu0 %vm15380_vm2, %v15379_v25 }
0x1279   :  { %13708 = vmatpush3.bf16.msra.mxu0 %v14761_v57 }
0x127a   :  { %13709 = vmatprep.subr.bf16.mxu0 %v15379_v25 }
0x127b   :  { %13690 = vmatpush3.bf16.msra.mxu1 %v14754_v61 }
0x127c   :  { %13691 = vmatprep.subr.bf16.mxu1 %v15379_v25 }
0x127d   :  { %13710 = vmatpush3.bf16.msra.mxu0 %v14762_v15 }
0x127e   :  { %13711 = vmatprep.subr.bf16.mxu0 %v15379_v25 }
0x127f   :  { %13692 = vmatpush3.bf16.msra.mxu1 %v14755_v7 }
0x1280   :  { %13693 = vmatprep.subr.bf16.mxu1 %v15379_v25 }
0x1281   :  { %13712 = vmatpush3.bf16.msra.mxu0 %v14763_v45 }
0x1282   :  { %13713 = vmatprep.subr.bf16.mxu0 %v15379_v25 }
0x1283   :  { %13694 = vmatpush3.bf16.msra.mxu1 %v14756_v30 }
0x1284   :  { %13695 = vmatprep.subr.bf16.mxu1 %v15379_v25 }
0x1285   :  { %13714 = vmatpush3.bf16.msra.mxu0 %v14764_v62 }
0x1286   :  { %13715 = vmatprep.subr.bf16.mxu0 %v15379_v25 }
0x1287   :  { %13696 = vmatpush3.bf16.msra.mxu1 %v14757_v1  ;;  %v13541_v1 = vld [vmem:[#allocation32] ss:$0 sm:$0xff] }
0x1288   :  { %13697 = vmatprep.subr.bf16.mxu1 %v15379_v25 }
0x1289   :  { %13716 = vmatpush3.bf16.msra.mxu0 %v14765_v24 }
0x128a   :  { %13717 = vmatprep.subr.bf16.mxu0 %v15379_v25 }
0x128b   :  { %13698 = vmatpush3.bf16.msra.mxu1 %v14758_v28 }
0x128c   :  { %13699 = vmatprep.subr.bf16.mxu1 %v15379_v25 }
0x128d   :  { %13718 = vmatpush3.bf16.msra.mxu0 %v14766_v29 }
0x128e   :  { %13719 = vmatprep.subr.bf16.mxu0 %v15379_v25 }
0x128f   :  { %13700 = vmatpush3.bf16.msra.mxu1 %v14759_v22 }
0x1290   :  { %13701 = vmatprep.subr.bf16.mxu1 %v15379_v25 }
0x1291   :  { %13720 = vmatpush3.bf16.msra.mxu0 %v14767_v60 }
0x1292   :  { %13721 = vmatprep.subr.bf16.mxu0 %v15379_v25 }
0x1293   :  { %13702 = vmatpush3.bf16.msra.mxu1 %v14760_v51 }
0x1294   :  { %13727 = vmatprep.subr.bf16.mxu1 %v15379_v25 }
0x1295   :  { %13722 = vmatpush3.bf16.msra.mxu0 %v14768_v26 }
0x1296   :  { %13704 = vmatmul.mubr.bf16.vlgmr.msra.gmra.mrb[148].mxu1 %v12092_v14 }
0x1297   :  { %13743 = vmatprep.mubr.msk.bf16.mxu1 %vm15380_vm2, %v15379_v25  ;;  %13728 = vmatpush3.bf16.msra.mxu1 %v14769_v39 }
0x1298   :  { %13729 = vmatprep.subr.bf16.mxu1 %v15379_v25 }
0x129b   :  { %13730 = vmatpush3.bf16.msra.mxu1 %v14770_v10 }
0x129c   :  { %13731 = vmatprep.subr.bf16.mxu1 %v15379_v25 }
0x129f   :  { %13732 = vmatpush3.bf16.msra.mxu1 %v14771_v11 }
0x12a0   :  { %13733 = vmatprep.subr.bf16.mxu1 %v15379_v25 }
0x12a3   :  { %13734 = vmatpush3.bf16.msra.mxu1 %v14772_v63 }
0x12a4   :  { %13735 = vmatprep.subr.bf16.mxu1 %v15379_v25 }
0x12a7   :  { %13736 = vmatpush3.bf16.msra.mxu1 %v14773_v46 }
0x12a8   :  { %13737 = vmatprep.subr.bf16.mxu1 %v15379_v25 }
0x12ab   :  { %13738 = vmatpush3.bf16.msra.mxu1 %v14774_v35 }
0x12ac   :  { %13739 = vmatprep.subr.bf16.mxu1 %v15379_v25 }
0x12af   :  { %13740 = vmatpush3.bf16.msra.mxu1 %v14775_v53 }
0x12b0   :  { %13741 = vmatprep.subr.bf16.mxu1 %v15379_v25 }
0x12b3   :  { %13742 = vmatpush3.bf16.msra.mxu1 %v14776_v9 }
0x1349   :  { %v11971_v3 = vpop.f32.mrb[144].mxu1  ;;  %v12012_v43 = vpop.f32.mrb[144].mxu0 }
0x134a   :  { %v11973_v33 = vpop.f32.mrb[145].mxu1  ;;  %v12014_v31 = vpop.f32.mrb[145].mxu0 }
0x134b   :  { %v12023_v59 = vcombine.low %v11971_v3, %v11973_v33  ;;  %v12024_v58 = vcombine.low %v12012_v43, %v12014_v31  ;;  %v11975_v4 = vpop.f32.mrb[146].mxu1  ;;  %v12016_v17 = vpop.f32.mrb[146].mxu0 }
0x134c   :  { %v11976_v55 = vpop.f32.mrb[147].mxu1  ;;  %v12017_v12 = vpop.f32.mrb[147].mxu0 }
0x134d   :  { %v12031_v37 = vrot.slane %v12023_v59, %v16070_v44  ;;  %v12038_v47 = vrot.slane %v12024_v58, %v16070_v44 }
0x134f   :  { %v12039_v54 = vcombine.low %v12031_v37, %v12038_v47 }
0x1351   :  { %v12041_v41 = vadd.f32 %v12039_v54, %v17946_v6 }
0x1353   :  { %v12042_v21 = vsub.f32 0.0, %v12041_v41  ;;  %v12048_v0 = vrot.slane %v12041_v41, 6 }
0x1355   :  { %v12043_v8 = vmul.f32 1.442695, %v12042_v21 }
0x1357   :  { %14901 = vpow2.f32 %v12043_v8 }
0x1361   :  { %v14902_v5 = vpop.eup %14901 }
0x1362   :  { %v12045_v42 = vadd.f32 1.0, %v14902_v5 }
0x1364   :  { %14903 = vrcp.f32 %v12045_v42 }
0x1365   :  { %14905 = vtanh.f32 %v12048_v0 }
0x1369   :  { %v12191_v32 = vpop.f32.mrb[148].mxu1 }
0x136a   :  { %v13705_v27 = vpop.f32.mrb[149].mxu1 }
0x136b   :  { %v12194_v18 = vpop.f32.mrb[150].mxu1 }
0x136c   :  { %v13706_v34 = vpop.f32.mrb[151].mxu1 }
0x136e   :  { %v14904_v50 = vpop.eup %14903 }
0x136f   :  { %v12052_v40 = vrot.slane %v14904_v50, 2  ;;  %v14906_v16 = vpop.eup %14905  ;;  %v12058_v6 = vrot.slane %v14904_v50, 4 }
0x1370   :  { %v12055_v38 = vmul.f32 %v14906_v16, %v14904_v50 }
0x1371   :  { %v12054_v44 = vmul.f32 %v12052_v40, %v18081_v48 }
0x1373   :  { %v12056_v13 = vadd.f32 %v12055_v38, %v12054_v44 }
0x1375   :  { %14907 = vtanh.f32 %v12056_v13 }
0x137f   :  { %v14908_v36 = vpop.eup %14907 }
0x1380   :  { %v12060_v19 = vmul.f32 %v14908_v36, %v12058_v6 }
0x1382   :  { %v12075_v20 = vpack.c.bf16 %v12060_v19, %v12060_v19 }
0x1384   :  { %13724 = vmatmul.mubr.bf16.vlgmr.msra.gmra.mrb[148].mxu0 %v12075_v20 }
0x1457   :  { %v12279_v49 = vpop.f32.mrb[148].mxu0 }
0x1458   :  { %v12280_v56 = vadd.f32 %v12279_v49, %v12191_v32  ;;  %v13725_v23 = vpop.f32.mrb[149].mxu0 }
0x1459   :  { %v12282_v52 = vpop.f32.mrb[150].mxu0 }
0x145a   :  { %v12292_v61 = vadd.f32 %v13540_v2, %v12280_v56  ;;  %v13726_v48 = vpop.f32.mrb[151].mxu0 }
0x145c   :  { %v12293_v7 = vmax.f32 %v12292_v61, 0.0 }
0x145e   :  { %v12294_v30 = vpack.c.bf16 %v12293_v7, %v12293_v7 }
0x1460   :  { %13744 = vmatmul.mubr.bf16.vlgmr.msra.gmra.mrb[152].mxu1 %v12294_v30 }
0x1533   :  { %v12400_v28 = vpop.f32.mrb[152].mxu1 }
0x1534   :  { %v12401_v22 = vadd.f32 %v13541_v1, %v12400_v28  ;;  %v13745_v51 = vpop.f32.mrb[153].mxu1 }
0x1535   :  { %v12403_v25 = vpop.f32.mrb[154].mxu1 }
0x1536   :  { %12406 = vst [vmem:[#allocation34] sm:$0x3] %v12401_v22  ;;  %v13746_v14 = vpop.f32.mrb[155].mxu1 }
0x1537   :  { %15318 = shalt.err (!%p15315_p8)
}
0x1538   :  { %s15319_s30 = scalar_lea.hbm %s18149_s19, 32 }
0x1539   :  { %p15320_p9 = scmp.ne.s32.totalorder %s18149_s19, %s15319_s30  ;;  %p15323_p10 = scmp.lt.u32.totalorder %s15319_s30, %s18149_s19 }
0x153b   :  { %p15325_p11 = pnand %p15323_p10, %p15320_p9 }
0x153d   :  { %15328 = shalt.err (!%p15325_p11)
}
0x153e   :  { %12416 = dma.vmem_to_hbm [thread:$0]  %s12414_s23, 32, %s18149_s19, [#allocation7]  }
0x153f   :  { %15349 = dma.done.wait [#allocation7], 32  }
0x1540   :  { %15350 = vsyncadd [#allocation7], 4294967264 }
0x1541   :  { %12420 = vsyncpa [#allocation6], 1 }
0x1542   :  { %12421 = vsyncpa [#allocation9], 1 }
0x1543   :  { %12422 = vsyncpa [#allocation12], 1 }
0x1544   :  { %12423 = vsyncpa [#allocation15], 1 }
0x1545   :  { %12424 = vsyncpa [#allocation18], 1 }
0x1546   :  { %12425 = vsyncpa [#allocation21], 1 }
0x1547   :  { %12426 = vsyncpa [#allocation24], 1 }
0x1548   :  { %12427 = vsyncpa [#allocation27], 1 }
0x1549   :  { %12428 = vsyncpa [#allocation30], 1 }
0x154a   :  { %12429 = vsyncpa [#allocation33], 1 }
0x154b   :  { %12430 = vsyncpa [#allocation7], 1 }

</bundles_post_ra>
